<compile_context>
chip_gen: v7x
topology: tpu7x:2x2x1
jax: 0.10.0
libtpu: 0.0.40
codegen_flags: <defaults>
</compile_context>

<pallas_src>
import math
import functools

import jax
import jax.numpy as jnp
from jax.experimental import pallas as pl
from jax.experimental.pallas import tpu as pltpu


_VMEM = pl.BlockSpec(memory_space=pltpu.MemorySpace.VMEM)
# Raise the scoped VMEM limit above the v5e default (16 MiB); the fused
# embedder kernel keeps ~8 MiB of weights resident.
_COMPILER_PARAMS = pltpu.CompilerParams(vmem_limit_bytes=32 * 1024 * 1024)


def _gelu_exact(x):
    # matches torch.nn.GELU() default (erf-based)
    return 0.5 * x * (1.0 + jax.lax.erf(x / jnp.sqrt(2.0).astype(x.dtype)))


def _layernorm(x, g, b, eps=1e-5):
    mu = jnp.mean(x, axis=-1, keepdims=True)
    var = jnp.mean((x - mu) ** 2, axis=-1, keepdims=True)
    return (x - mu) * jax.lax.rsqrt(var + eps) * g + b


# --------------------------- fused embedder kernel ---------------------------

def _embedder_kernel(imgs_ref, descs_ref,
                     img_w_ref, img_b_ref,
                     ffd_w1_ref, ffd_b1_ref, ffd_w2_ref, ffd_b2_ref,
                     ffr_w1_ref, ffr_b1_ref, ffr_w2_ref, ffr_b2_ref,
                     emb_wi_ref, emb_wd_ref, emb_b_ref,
                     o_ref):
    f32 = jnp.float32
    # image branch (ResNet18 stand-in: linear projection of flattened pixels)
    img = jnp.dot(imgs_ref[...], img_w_ref[...],
                  preferred_element_type=f32) + img_b_ref[...]
    i = _gelu_exact(jnp.dot(img, ffr_w1_ref[...],
                            preferred_element_type=f32) + ffr_b1_ref[...])
    i = jnp.dot(i, ffr_w2_ref[...], preferred_element_type=f32) + ffr_b2_ref[...]
    # text branch (DistilBERT hidden state supplied from the wrapper)
    d = _gelu_exact(jnp.dot(descs_ref[...], ffd_w1_ref[...],
                            preferred_element_type=f32) + ffd_b1_ref[...])
    d = jnp.dot(d, ffd_w2_ref[...], preferred_element_type=f32) + ffd_b2_ref[...]
    # L2-normalize onto the unit hypersphere (rsqrt -> EUP; eps guards zero rows)
    i = i * jax.lax.rsqrt(jnp.maximum(jnp.sum(i * i, axis=-1, keepdims=True), 1e-12))
    d = d * jax.lax.rsqrt(jnp.maximum(jnp.sum(d * d, axis=-1, keepdims=True), 1e-12))
    # concat([i, d], -1) @ emb_w  ==  i @ emb_w[:256] + d @ emb_w[256:]  (no concat)
    emb = (jnp.dot(i, emb_wi_ref[...], preferred_element_type=f32)
           + jnp.dot(d, emb_wd_ref[...], preferred_element_type=f32)
           + emb_b_ref[...])
    o_ref[...] = emb.astype(o_ref.dtype)


def pallas_embedder(imgs_flat, descs_emb, p):
    M = imgs_flat.shape[0]
    dim_inp = p['emb_wi'].shape[1]
    args = (imgs_flat, descs_emb,
            p['img_w'], p['img_b'],
            p['ffd_w1'], p['ffd_b1'], p['ffd_w2'], p['ffd_b2'],
            p['ffr_w1'], p['ffr_b1'], p['ffr_w2'], p['ffr_b2'],
            p['emb_wi'], p['emb_wd'], p['emb_b'])
    return pl.pallas_call(
        _embedder_kernel,
        out_shape=jax.ShapeDtypeStruct((M, dim_inp), jnp.float32),
        in_specs=[_VMEM] * len(args),
        out_specs=_VMEM,
        compiler_params=_COMPILER_PARAMS,
    )(*args)


# ----------------------- fused all-layers encoder kernel ---------------------

def _encoder_stack_kernel(x_ref, wqkv_ref, bqkv_ref, wo_ref, bo_ref,
                          g1_ref, t1_ref, w1_ref, b1_ref, w2_ref, b2_ref,
                          g2_ref, t2_ref, o_ref,
                          *, num_heads, num_layers, dim_out):
    f32 = jnp.float32
    x = x_ref[...]                                    # (B, S, D), stays resident
    hd = num_heads * dim_out
    for l in range(num_layers):                       # static, unrolled
        # Fused QKV: ONE wide matmul per layer (1/sqrt(Dh) already folded into Q).
        qkv = jnp.einsum('bsd,de->bse', x, wqkv_ref[l],
                         preferred_element_type=f32) + bqkv_ref[l]
        attn_out = jnp.zeros(x.shape, f32)
        for h in range(num_heads):
            q = qkv[:, :, h * dim_out:(h + 1) * dim_out]
            k = qkv[:, :, hd + h * dim_out:hd + (h + 1) * dim_out]
            v = qkv[:, :, 2 * hd + h * dim_out:2 * hd + (h + 1) * dim_out]
            s = jnp.einsum('bqe,bke->bqk', q, k, preferred_element_type=f32)
            s = s - jnp.max(s, axis=-1, keepdims=True)
            p = jnp.exp(s)
            attn = p * pl.reciprocal(jnp.sum(p, axis=-1, keepdims=True), approx=True)
            ctx = jnp.einsum('bqk,bke->bqe', attn, v, preferred_element_type=f32)
            # head-concat + output linear folded into a per-head accumulation
            attn_out = attn_out + jnp.einsum(
                'bqe,ed->bqd', ctx, wo_ref[l, h * dim_out:(h + 1) * dim_out, :],
                preferred_element_type=f32)
        attn_out = attn_out + bo_ref[l]
        context = _layernorm(x + attn_out, g1_ref[l], t1_ref[l])
        ff = _gelu_exact(jnp.einsum('bsd,df->bsf', context, w1_ref[l],
                                    preferred_element_type=f32) + b1_ref[l])
        ff = jnp.einsum('bsf,fd->bsd', ff, w2_ref[l],
                        preferred_element_type=f32) + b2_ref[l]
        # NOTE: second residual uses the layer INPUT x (matches PyTorch Encoder.forward)
        x = _layernorm(ff + x, g2_ref[l], t2_ref[l])
    # final_embedding = mean over the sequence axis, fused into the kernel
    o_ref[...] = jnp.mean(x, axis=1).astype(o_ref.dtype)


def pallas_encoder_stack(x, enc, num_heads, dim_out):
    B, S, D = x.shape
    num_layers = enc['wqkv'].shape[0]
    args = (x.astype(jnp.float32), enc['wqkv'], enc['bqkv'], enc['wo'], enc['bo'],
            enc['g1'], enc['t1'], enc['w1'], enc['b1'],
            enc['w2'], enc['b2'], enc['g2'], enc['t2'])
    return pl.pallas_call(
        functools.partial(_encoder_stack_kernel, num_heads=num_heads,
                          num_layers=num_layers, dim_out=dim_out),
        out_shape=jax.ShapeDtypeStruct((B, D), jnp.float32),
        in_specs=[_VMEM] * len(args),
        out_specs=_VMEM,
        compiler_params=_COMPILER_PARAMS,
    )(*args)


# --------------------------- parameter construction --------------------------

def _uniform(key, shape, fan_in):
    bound = 1.0 / math.sqrt(fan_in)
    return jax.random.uniform(key, shape, jnp.float32, -bound, bound)


def init_params(key, dim_inp, dim_out, num_heads, num_encoders,
                img_feat_in, vocab_size):
    ks = iter(jax.random.split(key, 512))
    p = {}
    # TODO(synk): DistilBERT (pretrained) replaced by a deterministic token-embedding table.
    p['text_emb'] = 0.02 * jax.random.normal(next(ks), (vocab_size, 768), jnp.float32)
    # TODO(synk): ResNet18 (pretrained, torch.hub) replaced by a linear projection of flattened pixels.
    p['img_w'] = _uniform(next(ks), (img_feat_in, 512), img_feat_in)
    p['img_b'] = _uniform(next(ks), (1, 512), img_feat_in)

    p['ffd_w1'] = _uniform(next(ks), (768, 1024), 768)
    p['ffd_b1'] = _uniform(next(ks), (1, 1024), 768)
    p['ffd_w2'] = _uniform(next(ks), (1024, 256), 1024)
    p['ffd_b2'] = _uniform(next(ks), (1, 256), 1024)

    p['ffr_w1'] = _uniform(next(ks), (512, 1024), 512)
    p['ffr_b1'] = _uniform(next(ks), (1, 1024), 512)
    p['ffr_w2'] = _uniform(next(ks), (1024, 256), 1024)
    p['ffr_b2'] = _uniform(next(ks), (1, 256), 1024)

    emb_w = _uniform(next(ks), (512, dim_inp), 512)
    p['emb_wi'] = emb_w[:256]          # image half of concat([img, txt], -1)
    p['emb_wd'] = emb_w[256:]          # text half
    p['emb_b'] = _uniform(next(ks), (1, dim_inp), 512)

    # Encoder weights: fuse QKV across heads, fold 1/sqrt(dim_out) into Q,
    # then stack layers on a leading axis so a single kernel holds them all.
    scale = 1.0 / math.sqrt(dim_out)
    hd = num_heads * dim_out
    stacks = {k: [] for k in ('wqkv', 'bqkv', 'wo', 'bo', 'g1', 't1',
                              'w1', 'b1', 'w2', 'b2', 'g2', 't2')}
    for _ in range(num_encoders):
        wq = _uniform(next(ks), (num_heads, dim_inp, dim_out), dim_inp)
        bq = _uniform(next(ks), (num_heads, dim_out), dim_inp)
        wk = _uniform(next(ks), (num_heads, dim_inp, dim_out), dim_inp)
        bk = _uniform(next(ks), (num_heads, dim_out), dim_inp)
        wv = _uniform(next(ks), (num_heads, dim_inp, dim_out), dim_inp)
        bv = _uniform(next(ks), (num_heads, dim_out), dim_inp)
        wq_f = jnp.transpose(wq, (1, 0, 2)).reshape(dim_inp, hd) * scale
        wk_f = jnp.transpose(wk, (1, 0, 2)).reshape(dim_inp, hd)
        wv_f = jnp.transpose(wv, (1, 0, 2)).reshape(dim_inp, hd)
        bq_f = bq.reshape(1, hd) * scale
        bk_f = bk.reshape(1, hd)
        bv_f = bv.reshape(1, hd)
        stacks['wqkv'].append(jnp.concatenate([wq_f, wk_f, wv_f], axis=1))
        stacks['bqkv'].append(jnp.concatenate([bq_f, bk_f, bv_f], axis=1))
        stacks['wo'].append(_uniform(next(ks), (hd, dim_inp), hd))
        stacks['bo'].append(_uniform(next(ks), (1, dim_inp), hd))
        stacks['g1'].append(jnp.ones((1, dim_inp), jnp.float32))
        stacks['t1'].append(jnp.zeros((1, dim_inp), jnp.float32))
        stacks['w1'].append(_uniform(next(ks), (dim_inp, 4 * dim_inp), dim_inp))
        stacks['b1'].append(_uniform(next(ks), (1, 4 * dim_inp), dim_inp))
        stacks['w2'].append(_uniform(next(ks), (4 * dim_inp, dim_inp), 4 * dim_inp))
        stacks['b2'].append(_uniform(next(ks), (1, dim_inp), 4 * dim_inp))
        stacks['g2'].append(jnp.ones((1, dim_inp), jnp.float32))
        stacks['t2'].append(jnp.zeros((1, dim_inp), jnp.float32))
    p['enc'] = {k: jnp.stack(v) for k, v in stacks.items()}
    return p


# ------------------------------- forward pass --------------------------------

def bert_forward(params, imgs, descs, num_heads, dim_out):
    """imgs: (B, n_items, 3, H, W) float32; descs: (B, n_items, L) int32.
    Returns (final_embedding (B, dim), positive_pair (B, dim),
             negative_pairs (B, n_items-5, dim)). Dropout = identity (eval)."""
    B, n_items = imgs.shape[:2]

    # TODO(synk): DistilBERT hidden state at token position 1 approximated by a
    # deterministic embedding-table lookup (gather done in JAX, not Pallas).
    tok = descs[:, :, 1]                                      # (B, n_items)
    descs_emb = params['text_emb'][tok].reshape(B * n_items, 768)
    imgs_flat = imgs.reshape(B * n_items, -1).astype(jnp.float32)

    # Entire embedder chain in ONE kernel -> (B*n, dim_inp)
    emb = pallas_embedder(imgs_flat, descs_emb, params)
    emb = emb.reshape(B, n_items, -1)

    x = emb[:, :4, :]
    positive_pair = emb[:, 4, :]
    negative_pairs = emb[:, 5:, :]

    # All encoder layers + the final sequence-mean in ONE kernel.
    final_embedding = pallas_encoder_stack(x, params['enc'], num_heads, dim_out)
    return final_embedding, positive_pair, negative_pairs


# ----------------------------------- main -------------------------------------

if __name__ == "__main__":
    DIM_INP = 32          # Bert dim_inp
    DIM_OUT = 16          # per-head dim_out
    NUM_HEADS = 4
    NUM_ENCODERS = 4
    B, N_ITEMS = 2, 6     # n_items >= 6 (needs slices :4, 4, 5:)
    H = W = 8
    DESC_LEN = 5
    VOCAB = 50

    key = jax.random.PRNGKey(0)
    k_params, k_imgs, k_descs = jax.random.split(key, 3)

    params = init_params(k_params, DIM_INP, DIM_OUT, NUM_HEADS, NUM_ENCODERS,
                         img_feat_in=3 * H * W, vocab_size=VOCAB)

    imgs = jax.random.normal(k_imgs, (B, N_ITEMS, 3, H, W), jnp.float32)
    descs = jax.random.randint(k_descs, (B, N_ITEMS, DESC_LEN), 0, VOCAB, jnp.int32)

    final_emb, pos_pair, neg_pairs = bert_forward(params, imgs, descs,
                                                  NUM_HEADS, DIM_OUT)
    jax.block_until_ready((final_emb, pos_pair, neg_pairs))

    assert final_emb.shape == (B, DIM_INP)
    assert pos_pair.shape == (B, DIM_INP)
    assert neg_pairs.shape == (B, N_ITEMS - 5, DIM_INP)
    print("KERNEL_OK")
</pallas_src>

<mosaic_0001>
module attributes {stable_mosaic.version = 11 : i64} {
  func.func @_embedder_kernel(%arg0: memref<12x192xf32, #tpu.memory_space<vmem>>, %arg1: memref<12x768xf32, #tpu.memory_space<vmem>>, %arg2: memref<192x512xf32, #tpu.memory_space<vmem>>, %arg3: memref<1x512xf32, #tpu.memory_space<vmem>>, %arg4: memref<768x1024xf32, #tpu.memory_space<vmem>>, %arg5: memref<1x1024xf32, #tpu.memory_space<vmem>>, %arg6: memref<1024x256xf32, #tpu.memory_space<vmem>>, %arg7: memref<1x256xf32, #tpu.memory_space<vmem>>, %arg8: memref<512x1024xf32, #tpu.memory_space<vmem>>, %arg9: memref<1x1024xf32, #tpu.memory_space<vmem>>, %arg10: memref<1024x256xf32, #tpu.memory_space<vmem>>, %arg11: memref<1x256xf32, #tpu.memory_space<vmem>>, %arg12: memref<256x32xf32, #tpu.memory_space<vmem>>, %arg13: memref<256x32xf32, #tpu.memory_space<vmem>>, %arg14: memref<1x32xf32, #tpu.memory_space<vmem>>, %arg15: memref<12x32xf32, #tpu.memory_space<vmem>>) attributes {dimension_semantics = [], scalar_prefetch = 0 : i64, scratch_operands = 0 : i64, tpu.core_type = #tpu.core_type<tc>} {
    %c0 = arith.constant 0 : index
    %c0_0 = arith.constant 0 : index
    %0 = vector.load %arg0[%c0, %c0_0] : memref<12x192xf32, #tpu.memory_space<vmem>>, vector<12x192xf32>
    %c0_1 = arith.constant 0 : index
    %c0_2 = arith.constant 0 : index
    %1 = vector.load %arg2[%c0_1, %c0_2] : memref<192x512xf32, #tpu.memory_space<vmem>>, vector<192x512xf32>
    %cst = arith.constant dense<0.000000e+00> : vector<12x512xf32>
    %2 = tpu.matmul %0, %1, %cst {dimension_numbers = #tpu.dot_dimension_numbers<[1], [0], [0], [1], [0, 0, 1, 1], [], []>} : vector<12x192xf32>, vector<192x512xf32>, vector<12x512xf32> -> vector<12x512xf32>
    %c0_3 = arith.constant 0 : index
    %c0_4 = arith.constant 0 : index
    %3 = vector.load %arg3[%c0_3, %c0_4] : memref<1x512xf32, #tpu.memory_space<vmem>>, vector<1x512xf32>
    %4 = vector.broadcast %3 : vector<1x512xf32> to vector<12x512xf32>
    %5 = arith.addf %2, %4 : vector<12x512xf32>
    %c0_5 = arith.constant 0 : index
    %c0_6 = arith.constant 0 : index
    %6 = vector.load %arg8[%c0_5, %c0_6] : memref<512x1024xf32, #tpu.memory_space<vmem>>, vector<512x1024xf32>
    %cst_7 = arith.constant dense<0.000000e+00> : vector<12x1024xf32>
    %7 = tpu.matmul %5, %6, %cst_7 {dimension_numbers = #tpu.dot_dimension_numbers<[1], [0], [0], [1], [0, 0, 1, 1], [], []>} : vector<12x512xf32>, vector<512x1024xf32>, vector<12x1024xf32> -> vector<12x1024xf32>
    %c0_8 = arith.constant 0 : index
    %c0_9 = arith.constant 0 : index
    %8 = vector.load %arg9[%c0_8, %c0_9] : memref<1x1024xf32, #tpu.memory_space<vmem>>, vector<1x1024xf32>
    %9 = vector.broadcast %8 : vector<1x1024xf32> to vector<12x1024xf32>
    %10 = arith.addf %7, %9 : vector<12x1024xf32>
    %cst_10 = arith.constant 5.000000e-01 : f32
    %11 = vector.broadcast %cst_10 : f32 to vector<12x1024xf32>
    %12 = arith.mulf %11, %10 : vector<12x1024xf32>
    %cst_11 = arith.constant 2.000000e+00 : f32
    %13 = math.sqrt %cst_11 : f32
    %14 = vector.broadcast %13 : f32 to vector<12x1024xf32>
    %15 = arith.divf %10, %14 : vector<12x1024xf32>
    %16 = math.erf %15 : vector<12x1024xf32>
    %cst_12 = arith.constant 1.000000e+00 : f32
    %17 = vector.broadcast %cst_12 : f32 to vector<12x1024xf32>
    %18 = arith.addf %17, %16 : vector<12x1024xf32>
    %19 = arith.mulf %12, %18 : vector<12x1024xf32>
    %c0_13 = arith.constant 0 : index
    %c0_14 = arith.constant 0 : index
    %20 = vector.load %arg10[%c0_13, %c0_14] : memref<1024x256xf32, #tpu.memory_space<vmem>>, vector<1024x256xf32>
    %cst_15 = arith.constant dense<0.000000e+00> : vector<12x256xf32>
    %21 = tpu.matmul %19, %20, %cst_15 {dimension_numbers = #tpu.dot_dimension_numbers<[1], [0], [0], [1], [0, 0, 1, 1], [], []>} : vector<12x1024xf32>, vector<1024x256xf32>, vector<12x256xf32> -> vector<12x256xf32>
    %c0_16 = arith.constant 0 : index
    %c0_17 = arith.constant 0 : index
    %22 = vector.load %arg11[%c0_16, %c0_17] : memref<1x256xf32, #tpu.memory_space<vmem>>, vector<1x256xf32>
    %23 = vector.broadcast %22 : vector<1x256xf32> to vector<12x256xf32>
    %24 = arith.addf %21, %23 : vector<12x256xf32>
    %c0_18 = arith.constant 0 : index
    %c0_19 = arith.constant 0 : index
    %25 = vector.load %arg1[%c0_18, %c0_19] : memref<12x768xf32, #tpu.memory_space<vmem>>, vector<12x768xf32>
    %c0_20 = arith.constant 0 : index
    %c0_21 = arith.constant 0 : index
    %26 = vector.load %arg4[%c0_20, %c0_21] : memref<768x1024xf32, #tpu.memory_space<vmem>>, vector<768x1024xf32>
    %cst_22 = arith.constant dense<0.000000e+00> : vector<12x1024xf32>
    %27 = tpu.matmul %25, %26, %cst_22 {dimension_numbers = #tpu.dot_dimension_numbers<[1], [0], [0], [1], [0, 0, 1, 1], [], []>} : vector<12x768xf32>, vector<768x1024xf32>, vector<12x1024xf32> -> vector<12x1024xf32>
    %c0_23 = arith.constant 0 : index
    %c0_24 = arith.constant 0 : index
    %28 = vector.load %arg5[%c0_23, %c0_24] : memref<1x1024xf32, #tpu.memory_space<vmem>>, vector<1x1024xf32>
    %29 = vector.broadcast %28 : vector<1x1024xf32> to vector<12x1024xf32>
    %30 = arith.addf %27, %29 : vector<12x1024xf32>
    %cst_25 = arith.constant 5.000000e-01 : f32
    %31 = vector.broadcast %cst_25 : f32 to vector<12x1024xf32>
    %32 = arith.mulf %31, %30 : vector<12x1024xf32>
    %cst_26 = arith.constant 2.000000e+00 : f32
    %33 = math.sqrt %cst_26 : f32
    %34 = vector.broadcast %33 : f32 to vector<12x1024xf32>
    %35 = arith.divf %30, %34 : vector<12x1024xf32>
    %36 = math.erf %35 : vector<12x1024xf32>
    %cst_27 = arith.constant 1.000000e+00 : f32
    %37 = vector.broadcast %cst_27 : f32 to vector<12x1024xf32>
    %38 = arith.addf %37, %36 : vector<12x1024xf32>
    %39 = arith.mulf %32, %38 : vector<12x1024xf32>
    %c0_28 = arith.constant 0 : index
    %c0_29 = arith.constant 0 : index
    %40 = vector.load %arg6[%c0_28, %c0_29] : memref<1024x256xf32, #tpu.memory_space<vmem>>, vector<1024x256xf32>
    %cst_30 = arith.constant dense<0.000000e+00> : vector<12x256xf32>
    %41 = tpu.matmul %39, %40, %cst_30 {dimension_numbers = #tpu.dot_dimension_numbers<[1], [0], [0], [1], [0, 0, 1, 1], [], []>} : vector<12x1024xf32>, vector<1024x256xf32>, vector<12x256xf32> -> vector<12x256xf32>
    %c0_31 = arith.constant 0 : index
    %c0_32 = arith.constant 0 : index
    %42 = vector.load %arg7[%c0_31, %c0_32] : memref<1x256xf32, #tpu.memory_space<vmem>>, vector<1x256xf32>
    %43 = vector.broadcast %42 : vector<1x256xf32> to vector<12x256xf32>
    %44 = arith.addf %41, %43 : vector<12x256xf32>
    %45 = arith.mulf %24, %24 : vector<12x256xf32>
    %cst_33 = arith.constant dense<0.000000e+00> : vector<12xf32>
    %46 = vector.multi_reduction <add>, %45, %cst_33 [1] : vector<12x256xf32> to vector<12xf32>
    %47 = vector.shape_cast %46 : vector<12xf32> to vector<12x1xf32>
    %cst_34 = arith.constant 9.99999996E-13 : f32
    %48 = vector.broadcast %cst_34 : f32 to vector<12x1xf32>
    %49 = arith.maximumf %47, %48 : vector<12x1xf32>
    %50 = math.rsqrt %49 : vector<12x1xf32>
    %51 = vector.broadcast %50 : vector<12x1xf32> to vector<12x256xf32>
    %52 = arith.mulf %24, %51 : vector<12x256xf32>
    %53 = arith.mulf %44, %44 : vector<12x256xf32>
    %cst_35 = arith.constant dense<0.000000e+00> : vector<12xf32>
    %54 = vector.multi_reduction <add>, %53, %cst_35 [1] : vector<12x256xf32> to vector<12xf32>
    %55 = vector.shape_cast %54 : vector<12xf32> to vector<12x1xf32>
    %cst_36 = arith.constant 9.99999996E-13 : f32
    %56 = vector.broadcast %cst_36 : f32 to vector<12x1xf32>
    %57 = arith.maximumf %55, %56 : vector<12x1xf32>
    %58 = math.rsqrt %57 : vector<12x1xf32>
    %59 = vector.broadcast %58 : vector<12x1xf32> to vector<12x256xf32>
    %60 = arith.mulf %44, %59 : vector<12x256xf32>
    %c0_37 = arith.constant 0 : index
    %c0_38 = arith.constant 0 : index
    %61 = vector.load %arg12[%c0_37, %c0_38] : memref<256x32xf32, #tpu.memory_space<vmem>>, vector<256x32xf32>
    %cst_39 = arith.constant dense<0.000000e+00> : vector<12x32xf32>
    %62 = tpu.matmul %52, %61, %cst_39 {dimension_numbers = #tpu.dot_dimension_numbers<[1], [0], [0], [1], [0, 0, 1, 1], [], []>} : vector<12x256xf32>, vector<256x32xf32>, vector<12x32xf32> -> vector<12x32xf32>
    %c0_40 = arith.constant 0 : index
    %c0_41 = arith.constant 0 : index
    %63 = vector.load %arg13[%c0_40, %c0_41] : memref<256x32xf32, #tpu.memory_space<vmem>>, vector<256x32xf32>
    %cst_42 = arith.constant dense<0.000000e+00> : vector<12x32xf32>
    %64 = tpu.matmul %60, %63, %cst_42 {dimension_numbers = #tpu.dot_dimension_numbers<[1], [0], [0], [1], [0, 0, 1, 1], [], []>} : vector<12x256xf32>, vector<256x32xf32>, vector<12x32xf32> -> vector<12x32xf32>
    %65 = arith.addf %62, %64 : vector<12x32xf32>
    %c0_43 = arith.constant 0 : index
    %c0_44 = arith.constant 0 : index
    %66 = vector.load %arg14[%c0_43, %c0_44] : memref<1x32xf32, #tpu.memory_space<vmem>>, vector<1x32xf32>
    %67 = vector.broadcast %66 : vector<1x32xf32> to vector<12x32xf32>
    %68 = arith.addf %65, %67 : vector<12x32xf32>
    %c0_45 = arith.constant 0 : index
    %c0_46 = arith.constant 0 : index
    %69 = vector.load %arg15[%c0_45, %c0_46] : memref<12x32xf32, #tpu.memory_space<vmem>>, vector<12x32xf32>
    tpu.vector_store %arg15[%c0_45, %c0_46], %68 {strides = array<i32>} : memref<12x32xf32, #tpu.memory_space<vmem>>, vector<12x32xf32>,
    return
  }
}

</mosaic_0001>

<bundles_post_ra>
// kernel: tpu_custom_call.1
= control target key start
LH: loop header
LB: loop body
LE: loop exit
PB: predicated region body
PF: predicated region fallthrough
CT: control target
= control target key end

     0   :  { %s8512_s0 = inlined_call_operand.hbm [shape: f32[12,192], index: 0, kind: input, shape index: {}]   ;;  %s8513_s1 = inlined_call_operand.hbm [shape: f32[12,768], index: 1, kind: input, shape index: {}]   ;;  %s8514_s2 = inlined_call_operand.hbm [shape: f32[192,512], index: 2, kind: input, shape index: {}]   ;;  %s8515_s3 = inlined_call_operand.hbm [shape: f32[1,512], index: 3, kind: input, shape index: {}]   ;;  %s8516_s4 = inlined_call_operand.hbm [shape: f32[768,1024], index: 4, kind: input, shape index: {}]   ;;  %s8517_s5 = inlined_call_operand.hbm [shape: f32[1,1024], index: 5, kind: input, shape index: {}]   ;;  %s8518_s6 = inlined_call_operand.hbm [shape: f32[1024,256], index: 6, kind: input, shape index: {}]   ;;  %s8519_s7 = inlined_call_operand.hbm [shape: f32[1,256], index: 7, kind: input, shape index: {}]   ;;  %s8520_s8 = inlined_call_operand.hbm [shape: f32[512,1024], index: 8, kind: input, shape index: {}]   ;;  %s8521_s9 = inlined_call_operand.hbm [shape: f32[1,1024], index: 9, kind: input, shape index: {}]   ;;  %s8522_s10 = inlined_call_operand.hbm [shape: f32[1024,256], index: 10, kind: input, shape index: {}]   ;;  %s8523_s11 = inlined_call_operand.hbm [shape: f32[1,256], index: 11, kind: input, shape index: {}]   ;;  %s8524_s12 = inlined_call_operand.vmem [shape: f32[256,32], index: 12, kind: input, shape index: {}]   ;;  %s8525_s13 = inlined_call_operand.vmem [shape: f32[256,32], index: 13, kind: input, shape index: {}]   ;;  %s8526_s14 = inlined_call_operand.hbm [shape: f32[1,32], index: 14, kind: input, shape index: {}]   ;;  %s8527_s15 = inlined_call_operand.hbm [shape: f32[12,32], index: 15, kind: output, shape index: {}]  }
   0x1   :  { %8529 = sst [smem:[#allocation32_spill]] %s8527_s15 }
   0x2   :  { %20 = vsyncpa [#allocation3], 0 }
   0x3   :  { %21 = vsyncpa [#allocation6], 0 }
   0x4   :  { %22 = vsyncpa [#allocation9], 0 }
   0x5   :  { %23 = vsyncpa [#allocation12], 0 }
   0x6   :  { %24 = vsyncpa [#allocation15], 0 }
   0x7   :  { %25 = vsyncpa [#allocation18], 0 }
   0x8   :  { %26 = vsyncpa [#allocation21], 0 }
   0x9   :  { %27 = vsyncpa [#allocation4], 0  ;;  %s7625_s18 = smov [#allocation5]   ;;  %s7301_s22 = scalar_lea.hbm %s8513_s1, 1536 }
   0xa   :  { %s45_s19 = sshll.u32 %s7625_s18, 4  ;;  %p7302_p0 = scmp.ne.s32.totalorder %s8513_s1, %s7301_s22  ;;  %s46_s19 = int_to_ptr.vmem [resolvable:$true] %s45_s19 }
   0xb   :  { %p7305_p1 = scmp.lt.u32.totalorder %s7301_s22, %s8513_s1 }
   0xd   :  { %p7307_p2 = pnand %p7305_p1, %p7302_p0 }
   0xf   :  { %7310 = shalt.err (!%p7307_p2)
}
  0x10   :  { %s7311_s27 = scalar_lea.vmem %s46_s19, 1536  ;;  %p7316_p4 = scmp.lt.s32.totalorder %s46_s19, %s46_s19 }
  0x11   :  { %p7312_p3 = scmp.ne.s32.totalorder %s46_s19, %s7311_s27  ;;  %p7317_p5 = scmp.lt.s32.totalorder %s7311_s27, %s7311_s27 }
  0x13   :  { %p7318_p6 = por %p7317_p5, %p7316_p4 }
  0x15   :  { %p7319_p7 = pnand %p7318_p6, %p7312_p3 }
  0x17   :  { %7322 = shalt.err (!%p7319_p7)
}
  0x18   :  { %s7626_s28 = smov 768   ;;  %s7627_s29 = smov 48  }
  0x19   :  { %51 = dma.hbm_to_vmem [thread:$0]  %s8513_s1, 1536, %s46_s19, [#allocation6], %s7626_s28, %s7626_s28, %s7627_s29  }
  0x1a   :  { %s7628_s17 = smov [#allocation8]   ;;  %s7629_s20 = smov [#allocation11]  }
  0x1b   :  { %s70_s18 = sshll.u32 %s7628_s17, 4  ;;  %s92_s21 = sshll.u32 %s7629_s20, 4  ;;  %s71_s18 = int_to_ptr.vmem [resolvable:$true] %s70_s18  ;;  %s93_s21 = int_to_ptr.vmem [resolvable:$true] %s92_s21 }
  0x1c   :  { %s7323_s24 = scalar_lea.hbm %s8515_s3, 64 }
  0x1d   :  { %p7324_p8 = scmp.ne.s32.totalorder %s8515_s3, %s7323_s24  ;;  %p7327_p9 = scmp.lt.u32.totalorder %s7323_s24, %s8515_s3 }
  0x1f   :  { %p7329_p10 = pnand %p7327_p9, %p7324_p8 }
  0x21   :  { %7332 = shalt.err (!%p7329_p10)
}
  0x22   :  { %s7333_s1 = scalar_lea.vmem %s71_s18, 64  ;;  %p7338_p12 = scmp.lt.s32.totalorder %s71_s18, %s71_s18 }
  0x23   :  { %p7334_p11 = scmp.ne.s32.totalorder %s71_s18, %s7333_s1  ;;  %p7339_p13 = scmp.lt.s32.totalorder %s7333_s1, %s7333_s1 }
  0x25   :  { %p7340_p0 = por %p7339_p13, %p7338_p12 }
  0x27   :  { %p7341_p1 = pnand %p7340_p0, %p7334_p11 }
  0x29   :  { %7344 = shalt.err (!%p7341_p1)
}
  0x2a   :  { %73 = dma.hbm_to_vmem [thread:$0]  %s8515_s3, 64, %s71_s18, [#allocation9]  }
  0x2b   :  { %s7345_s16 = scalar_lea.hbm %s8517_s5, 128 }
  0x2c   :  { %p7346_p2 = scmp.ne.s32.totalorder %s8517_s5, %s7345_s16  ;;  %p7349_p3 = scmp.lt.u32.totalorder %s7345_s16, %s8517_s5 }
  0x2e   :  { %p7351_p4 = pnand %p7349_p3, %p7346_p2 }
  0x30   :  { %7354 = shalt.err (!%p7351_p4)
}
  0x31   :  { %s7355_s23 = scalar_lea.vmem %s93_s21, 128  ;;  %p7360_p6 = scmp.lt.s32.totalorder %s93_s21, %s93_s21 }
  0x32   :  { %p7356_p5 = scmp.ne.s32.totalorder %s93_s21, %s7355_s23  ;;  %p7361_p7 = scmp.lt.s32.totalorder %s7355_s23, %s7355_s23 }
  0x34   :  { %p7362_p8 = por %p7361_p7, %p7360_p6 }
  0x36   :  { %p7363_p9 = pnand %p7362_p8, %p7356_p5 }
  0x38   :  { %7366 = shalt.err (!%p7363_p9)
}
  0x39   :  { %95 = dma.hbm_to_vmem [thread:$0]  %s8517_s5, 128, %s93_s21, [#allocation12]  }
  0x3a   :  { %s7630_s24 = smov [#allocation14]   ;;  %s7631_s26 = smov [#allocation17]  }
  0x3b   :  { %s114_s25 = sshll.u32 %s7630_s24, 4  ;;  %s136_s27 = sshll.u32 %s7631_s26, 4  ;;  %s115_s25 = int_to_ptr.vmem [resolvable:$true] %s114_s25  ;;  %s137_s27 = int_to_ptr.vmem [resolvable:$true] %s136_s27 }
  0x3c   :  { %s7367_s28 = scalar_lea.hbm %s8519_s7, 32 }
  0x3d   :  { %p7368_p10 = scmp.ne.s32.totalorder %s8519_s7, %s7367_s28  ;;  %p7371_p11 = scmp.lt.u32.totalorder %s7367_s28, %s8519_s7 }
  0x3f   :  { %p7373_p12 = pnand %p7371_p11, %p7368_p10 }
  0x41   :  { %7376 = shalt.err (!%p7373_p12)
}
  0x42   :  { %s7377_s5 = scalar_lea.vmem %s115_s25, 32  ;;  %p7382_p0 = scmp.lt.s32.totalorder %s115_s25, %s115_s25 }
  0x43   :  { %p7378_p13 = scmp.ne.s32.totalorder %s115_s25, %s7377_s5  ;;  %p7383_p1 = scmp.lt.s32.totalorder %s7377_s5, %s7377_s5 }
  0x45   :  { %p7384_p2 = por %p7383_p1, %p7382_p0 }
  0x47   :  { %p7385_p3 = pnand %p7384_p2, %p7378_p13 }
  0x49   :  { %7388 = shalt.err (!%p7385_p3)
}
  0x4a   :  { %117 = dma.hbm_to_vmem [thread:$0]  %s8519_s7, 32, %s115_s25, [#allocation15]  }
  0x4b   :  { %s7389_s23 = scalar_lea.hbm %s8521_s9, 128 }
  0x4c   :  { %p7390_p4 = scmp.ne.s32.totalorder %s8521_s9, %s7389_s23  ;;  %p7393_p5 = scmp.lt.u32.totalorder %s7389_s23, %s8521_s9 }
  0x4e   :  { %p7395_p6 = pnand %p7393_p5, %p7390_p4 }
  0x50   :  { %7398 = shalt.err (!%p7395_p6)
}
  0x51   :  { %s7399_s1 = scalar_lea.vmem %s137_s27, 128  ;;  %p7404_p8 = scmp.lt.s32.totalorder %s137_s27, %s137_s27 }
  0x52   :  { %p7400_p7 = scmp.ne.s32.totalorder %s137_s27, %s7399_s1  ;;  %p7405_p9 = scmp.lt.s32.totalorder %s7399_s1, %s7399_s1 }
  0x54   :  { %p7406_p10 = por %p7405_p9, %p7404_p8 }
  0x56   :  { %p7407_p11 = pnand %p7406_p10, %p7400_p7 }
  0x58   :  { %7410 = shalt.err (!%p7407_p11)
}
  0x59   :  { %139 = dma.hbm_to_vmem [thread:$0]  %s8521_s9, 128, %s137_s27, [#allocation18]  }
  0x5a   :  { %s7632_s19 = smov [#allocation20]   ;;  %s7633_s29 = smov [#allocation2]  }
  0x5b   :  { %s158_s28 = sshll.u32 %s7632_s19, 4  ;;  %s33_s30 = sshll.u32 %s7633_s29, 4  ;;  %s159_s28 = int_to_ptr.vmem [resolvable:$true] %s158_s28  ;;  %s34_s30 = int_to_ptr.vmem [resolvable:$true] %s33_s30 }
  0x5c   :  { %s7411_s5 = scalar_lea.hbm %s8523_s11, 32 }
  0x5d   :  { %p7412_p12 = scmp.ne.s32.totalorder %s8523_s11, %s7411_s5  ;;  %p7415_p13 = scmp.lt.u32.totalorder %s7411_s5, %s8523_s11 }
  0x5f   :  { %p7417_p0 = pnand %p7415_p13, %p7412_p12 }
  0x61   :  { %7420 = shalt.err (!%p7417_p0)
}
  0x62   :  { %s7421_s9 = scalar_lea.vmem %s159_s28, 32  ;;  %p7426_p2 = scmp.lt.s32.totalorder %s159_s28, %s159_s28 }
  0x63   :  { %p7422_p1 = scmp.ne.s32.totalorder %s159_s28, %s7421_s9  ;;  %p7427_p3 = scmp.lt.s32.totalorder %s7421_s9, %s7421_s9 }
  0x65   :  { %p7428_p4 = por %p7427_p3, %p7426_p2 }
  0x67   :  { %p7429_p5 = pnand %p7428_p4, %p7422_p1 }
  0x69   :  { %7432 = shalt.err (!%p7429_p5)
}
  0x6a   :  { %161 = dma.hbm_to_vmem [thread:$0]  %s8523_s11, 32, %s159_s28, [#allocation21]  }
  0x6b   :  { %s7433_s24 = scalar_lea.hbm %s8512_s0, 512 }
  0x6c   :  { %p7434_p6 = scmp.ne.s32.totalorder %s8512_s0, %s7433_s24  ;;  %p7437_p7 = scmp.lt.u32.totalorder %s7433_s24, %s8512_s0 }
  0x6e   :  { %p7439_p8 = pnand %p7437_p7, %p7434_p6 }
  0x70   :  { %7442 = shalt.err (!%p7439_p8)
}
  0x71   :  { %s7443_s19 = scalar_lea.vmem %s34_s30, 512  ;;  %p7448_p10 = scmp.lt.s32.totalorder %s34_s30, %s34_s30 }
  0x72   :  { %p7444_p9 = scmp.ne.s32.totalorder %s34_s30, %s7443_s19  ;;  %p7449_p11 = scmp.lt.s32.totalorder %s7443_s19, %s7443_s19 }
  0x74   :  { %p7450_p12 = por %p7449_p11, %p7448_p10 }
  0x76   :  { %p7451_p13 = pnand %p7450_p12, %p7444_p9 }
  0x78   :  { %7454 = shalt.err (!%p7451_p13)
}
  0x79   :  { %s7634_s11 = smov 256   ;;  %s7635_s28 = smov 16  }
  0x7a   :  { %39 = dma.hbm_to_vmem [thread:$0]  %s8512_s0, 512, %s34_s30, [#allocation3], %s7634_s11, %s7634_s11, %s7635_s28  }
  0x7b   :  { %s7636_s15 = smov [#allocation7]   ;;  %s7455_s20 = scalar_lea.hbm %s8514_s2, 12288 }
  0x7c   :  { %s57_s5 = sshll.u32 %s7636_s15, 4  ;;  %p7456_p0 = scmp.ne.s32.totalorder %s8514_s2, %s7455_s20  ;;  %s58_s5 = int_to_ptr.vmem [resolvable:$true] %s57_s5 }
  0x7d   :  { %p7459_p1 = scmp.lt.u32.totalorder %s7455_s20, %s8514_s2 }
  0x7f   :  { %p7461_p2 = pnand %p7459_p1, %p7456_p0 }
  0x81   :  { %7464 = shalt.err (!%p7461_p2)
}
  0x82   :  { %s7465_s3 = scalar_lea.vmem %s58_s5, 12288  ;;  %p7470_p4 = scmp.lt.s32.totalorder %s58_s5, %s58_s5 }
  0x83   :  { %p7466_p3 = scmp.ne.s32.totalorder %s58_s5, %s7465_s3  ;;  %p7471_p5 = scmp.lt.s32.totalorder %s7465_s3, %s7465_s3 }
  0x85   :  { %p7472_p6 = por %p7471_p5, %p7470_p4 }
  0x87   :  { %p7473_p7 = pnand %p7472_p6, %p7466_p3 }
  0x89   :  { %7476 = shalt.err (!%p7473_p7)
}
  0x8a   :  { %s7637_s0 = smov 512   ;;  %s7638_s30 = smov 32  }
  0x8b   :  { %63 = dma.hbm_to_vmem [thread:$0]  %s8514_s2, 12288, %s58_s5, [#allocation6], %s7637_s0, %s7637_s0, %s7638_s30  }
  0x8c   :  { %s7639_s26 = smov [#allocation10]   ;;  %s7477_s19 = scalar_lea.hbm %s8516_s4, 98304 }
  0x8d   :  { %s79_s1 = sshll.u32 %s7639_s26, 4  ;;  %p7478_p8 = scmp.ne.s32.totalorder %s8516_s4, %s7477_s19  ;;  %s80_s1 = int_to_ptr.vmem [resolvable:$true] %s79_s1 }
  0x8e   :  { %p7481_p9 = scmp.lt.u32.totalorder %s7477_s19, %s8516_s4 }
  0x90   :  { %p7483_p10 = pnand %p7481_p9, %p7478_p8 }
  0x92   :  { %7486 = shalt.err (!%p7483_p10)
}
  0x93   :  { %s7487_s17 = scalar_lea.vmem %s80_s1, 98304  ;;  %p7492_p12 = scmp.lt.s32.totalorder %s80_s1, %s80_s1 }
  0x94   :  { %p7488_p11 = scmp.ne.s32.totalorder %s80_s1, %s7487_s17  ;;  %p7493_p13 = scmp.lt.s32.totalorder %s7487_s17, %s7487_s17 }
  0x96   :  { %p7494_p0 = por %p7493_p13, %p7492_p12 }
  0x98   :  { %p7495_p1 = pnand %p7494_p0, %p7488_p11 }
  0x9a   :  { %7498 = shalt.err (!%p7495_p1)
}
  0x9b   :  { %s7640_s2 = smov 1024   ;;  %s7641_s5 = smov 64  }
  0x9c   :  { %85 = dma.hbm_to_vmem [thread:$0]  %s8516_s4, 98304, %s80_s1, [#allocation9], %s7640_s2, %s7640_s2, %s7641_s5  }
  0x9d   :  { %s7642_s9 = smov [#allocation13]   ;;  %s7643_s23 = smov [#allocation16]  }
  0x9e   :  { %s101_s27 = sshll.u32 %s7642_s9, 4  ;;  %s123_s3 = sshll.u32 %s7643_s23, 4  ;;  %s102_s27 = int_to_ptr.vmem [resolvable:$true] %s101_s27  ;;  %s124_s3 = int_to_ptr.vmem [resolvable:$true] %s123_s3 }
  0x9f   :  { %s7499_s18 = scalar_lea.hbm %s8518_s6, 32768 }
  0xa0   :  { %p7500_p2 = scmp.ne.s32.totalorder %s8518_s6, %s7499_s18  ;;  %p7503_p3 = scmp.lt.u32.totalorder %s7499_s18, %s8518_s6 }
  0xa2   :  { %p7505_p4 = pnand %p7503_p3, %p7500_p2 }
  0xa4   :  { %7508 = shalt.err (!%p7505_p4)
}
  0xa5   :  { %s7509_s4 = scalar_lea.vmem %s102_s27, 32768  ;;  %p7514_p6 = scmp.lt.s32.totalorder %s102_s27, %s102_s27 }
  0xa6   :  { %p7510_p5 = scmp.ne.s32.totalorder %s102_s27, %s7509_s4  ;;  %p7515_p7 = scmp.lt.s32.totalorder %s7509_s4, %s7509_s4 }
  0xa8   :  { %p7516_p8 = por %p7515_p7, %p7514_p6 }
  0xaa   :  { %p7517_p9 = pnand %p7516_p8, %p7510_p5 }
  0xac   :  { %7520 = shalt.err (!%p7517_p9)
}
  0xad   :  { %107 = dma.hbm_to_vmem [thread:$0]  %s8518_s6, 32768, %s102_s27, [#allocation12], %s7634_s11, %s7634_s11, %s7635_s28  }
  0xae   :  { %s7521_s15 = scalar_lea.hbm %s8520_s8, 65536 }
  0xaf   :  { %p7522_p10 = scmp.ne.s32.totalorder %s8520_s8, %s7521_s15  ;;  %p7525_p11 = scmp.lt.u32.totalorder %s7521_s15, %s8520_s8 }
  0xb1   :  { %p7527_p12 = pnand %p7525_p11, %p7522_p10 }
  0xb3   :  { %7530 = shalt.err (!%p7527_p12)
}
  0xb4   :  { %s7531_s9 = scalar_lea.vmem %s124_s3, 65536  ;;  %p7536_p0 = scmp.lt.s32.totalorder %s124_s3, %s124_s3 }
  0xb5   :  { %p7532_p13 = scmp.ne.s32.totalorder %s124_s3, %s7531_s9  ;;  %p7537_p1 = scmp.lt.s32.totalorder %s7531_s9, %s7531_s9 }
  0xb7   :  { %p7538_p2 = por %p7537_p1, %p7536_p0 }
  0xb9   :  { %p7539_p3 = pnand %p7538_p2, %p7532_p13 }
  0xbb   :  { %7542 = shalt.err (!%p7539_p3)
}
  0xbc   :  { %129 = dma.hbm_to_vmem [thread:$0]  %s8520_s8, 65536, %s124_s3, [#allocation15], %s7640_s2, %s7640_s2, %s7641_s5  }
  0xbd   :  { %s7644_s23 = smov [#allocation19]   ;;  %s7645_s30 = smov [#allocation22]  }
  0xbe   :  { %s145_s0 = sshll.u32 %s7644_s23, 4  ;;  %s172_s18 = sshll.u32 %s7645_s30, 4  ;;  %s146_s0 = int_to_ptr.vmem [resolvable:$true] %s145_s0  ;;  %s173_s18 = int_to_ptr.vmem [resolvable:$true] %s172_s18 }
  0xbf   :  { %s7543_s7 = scalar_lea.hbm %s8522_s10, 32768 }
  0xc0   :  { %p7544_p4 = scmp.ne.s32.totalorder %s8522_s10, %s7543_s7  ;;  %p7547_p5 = scmp.lt.u32.totalorder %s7543_s7, %s8522_s10 }
  0xc2   :  { %p7549_p6 = pnand %p7547_p5, %p7544_p4 }
  0xc4   :  { %7552 = shalt.err (!%p7549_p6)
}
  0xc5   :  { %s7553_s8 = scalar_lea.vmem %s146_s0, 32768  ;;  %p7558_p8 = scmp.lt.s32.totalorder %s146_s0, %s146_s0 }
  0xc6   :  { %p7554_p7 = scmp.ne.s32.totalorder %s146_s0, %s7553_s8  ;;  %p7559_p9 = scmp.lt.s32.totalorder %s7553_s8, %s7553_s8 }
  0xc8   :  { %p7560_p10 = por %p7559_p9, %p7558_p8 }
  0xca   :  { %p7561_p11 = pnand %p7560_p10, %p7554_p7 }
  0xcc   :  { %7564 = shalt.err (!%p7561_p11)
}
  0xcd   :  { %151 = dma.hbm_to_vmem [thread:$0]  %s8522_s10, 32768, %s146_s0, [#allocation18], %s7634_s11, %s7634_s11, %s7635_s28  }
  0xce   :  { %s7565_s16 = scalar_lea.hbm %s8526_s14, 16 }
  0xcf   :  { %p7566_p12 = scmp.ne.s32.totalorder %s8526_s14, %s7565_s16  ;;  %p7569_p13 = scmp.lt.u32.totalorder %s7565_s16, %s8526_s14 }
  0xd1   :  { %p7571_p0 = pnand %p7569_p13, %p7566_p12 }
  0xd3   :  { %7574 = shalt.err (!%p7571_p0)
}
  0xd4   :  { %s7575_s22 = scalar_lea.vmem %s173_s18, 16  ;;  %s7579_s9 = scalar_lea.vmem %s173_s18, 32 }
  0xd5   :  { %p7576_p1 = scmp.ne.s32.totalorder %s173_s18, %s7575_s22  ;;  %p7580_p2 = scmp.lt.s32.totalorder %s173_s18, %s173_s18 }
  0xd6   :  { %p7581_p3 = scmp.lt.s32.totalorder %s7579_s9, %s7575_s22 }
  0xd8   :  { %p7582_p4 = por %p7581_p3, %p7580_p2 }
  0xda   :  { %p7583_p5 = pnand %p7582_p4, %p7576_p1 }
  0xdc   :  { %7586 = shalt.err (!%p7583_p5)
}
  0xdd   :  { %175 = dma.hbm_to_vmem [thread:$0]  %s8526_s14, 16, %s173_s18, [#allocation21]  }
  0xde   :  { %7609 = dma.done.wait [#allocation3], 512  }
  0xdf   :  { %7610 = vsyncadd [#allocation3], 4294966784 }
  0xe0   :  { %7611 = dma.done.wait [#allocation6], 13824  }
  0xe1   :  { %7612 = vsyncadd [#allocation6], 4294953472 }
  0xe2   :  { %7613 = dma.done.wait [#allocation9], 98368  }
  0xe3   :  { %7614 = vsyncadd [#allocation9], 4294868928 }
  0xe4   :  { %7615 = dma.done.wait [#allocation12], 32896  }
  0xe5   :  { %7616 = vsyncadd [#allocation12], 4294934400 }
  0xe6   :  { %7617 = dma.done.wait [#allocation15], 65568  }
  0xe7   :  { %7618 = vsyncadd [#allocation15], 4294901728 }
  0xe8   :  { %7619 = dma.done.wait [#allocation18], 32896  }
  0xe9   :  { %7620 = vsyncadd [#allocation18], 4294934400 }
  0xea   :  { %7621 = dma.done.wait [#allocation21], 48  }
  0xeb   :  { %7622 = vsyncadd [#allocation21], 4294967248  ;;  %v220_v0 = vld [vmem:[#allocation7 + $0x8] sm:$0xff]  ;;  %v219_v2 = vld [vmem:[#allocation7] sm:$0xff]  ;;  %vm337_vm0 = vcmask 523264   ;;  %vm4734_vm1 = vcmask 1043456  }
  0xec   :  { %v224_v1 = vld [vmem:[#allocation7 + $0x28] sm:$0xff]  ;;  %v223_v4 = vld [vmem:[#allocation7 + $0x20] sm:$0xff]  ;;  %v499_v60 = vld [vmem:[#allocation16 + $0x8] sm:$0xff]  ;;  %vm4991_vm2 = vcmask 261120   ;;  %vm4993_vm3 = vcmask 257024  }
  0xed   :  { %v5099_v3 = vpack.c.bf16 %v224_v1, %v220_v0  ;;  %v228_v5 = vld [vmem:[#allocation7 + $0x48] sm:$0xff]  ;;  %v5101_v7 = vpack.c.bf16 %v223_v4, %v219_v2  ;;  %v227_v9 = vld [vmem:[#allocation7 + $0x40] sm:$0xff]  ;;  %v507_v61 = vld [vmem:[#allocation16 + $0x48] sm:$0xff] }
  0xee   :  { %v232_v6 = vld [vmem:[#allocation7 + $0x68] sm:$0xff]  ;;  %v231_v10 = vld [vmem:[#allocation7 + $0x60] sm:$0xff]  ;;  %v5195_v0 = vpack.c.bf16 %v507_v61, %v499_v60  ;;  %v7911_v61 = vld [vmem:[#allocation2 + $0x10] sm:$0xf] }
  0xef   :  { %v5103_v8 = vpack.c.bf16 %v232_v6, %v228_v5  ;;  %v236_v11 = vld [vmem:[#allocation7 + $0x88] sm:$0xff]  ;;  %5100 = vmatprep.subr.bf16.mxu1 %v5099_v3  ;;  %v5105_v13 = vpack.c.bf16 %v231_v10, %v227_v9  ;;  %v235_v15 = vld [vmem:[#allocation7 + $0x80] sm:$0xff]  ;;  %v515_v6 = vld [vmem:[#allocation16 + $0x88] sm:$0xff] }
  0xf0   :  { %v240_v12 = vld [vmem:[#allocation7 + $0xa8] sm:$0xff]  ;;  %5102 = vmatpush1.bf16.msra.mxu1 %v5101_v7  ;;  %v239_v16 = vld [vmem:[#allocation7 + $0xa0] sm:$0xff]  ;;  %5196 = vmatprep.subr.bf16.mxu0 %v5195_v0  ;;  %v523_v7 = vld [vmem:[#allocation16 + $0xc8] sm:$0xff] }
  0xf1   :  { %5104 = vmatprep.subr.bf16.mxu1 %v5103_v8  ;;  %v5107_v14 = vpack.c.bf16 %v240_v12, %v236_v11  ;;  %v244_v17 = vld [vmem:[#allocation7 + $0xc8] sm:$0xff]  ;;  %v5109_v19 = vpack.c.bf16 %v239_v16, %v235_v15  ;;  %v243_v21 = vld [vmem:[#allocation7 + $0xc0] sm:$0xff]  ;;  %v5199_v10 = vpack.c.bf16 %v523_v7, %v515_v6  ;;  %v531_v16 = vld [vmem:[#allocation16 + $0x108] sm:$0xff] }
  0xf2   :  { %v248_v18 = vld [vmem:[#allocation7 + $0xe8] sm:$0xff]  ;;  %v247_v22 = vld [vmem:[#allocation7 + $0xe0] sm:$0xff] }
  0xf3   :  { %v5111_v20 = vpack.c.bf16 %v248_v18, %v244_v17  ;;  %v252_v23 = vld [vmem:[#allocation7 + $0x108] sm:$0xff]  ;;  %v5113_v25 = vpack.c.bf16 %v247_v22, %v243_v21  ;;  %v251_v27 = vld [vmem:[#allocation7 + $0x100] sm:$0xff]  ;;  %v539_v17 = vld [vmem:[#allocation16 + $0x148] sm:$0xff] }
  0xf4   :  { %5106 = vmatpush1.bf16.msra.mxu1 %v5105_v13  ;;  %v256_v24 = vld [vmem:[#allocation7 + $0x128] sm:$0xff]  ;;  %v255_v28 = vld [vmem:[#allocation7 + $0x120] sm:$0xff] }
  0xf5   :  { %5108 = vmatprep.subr.bf16.mxu1 %v5107_v14  ;;  %v5115_v26 = vpack.c.bf16 %v256_v24, %v252_v23  ;;  %v260_v29 = vld [vmem:[#allocation7 + $0x148] sm:$0xff]  ;;  %v5117_v31 = vpack.c.bf16 %v255_v28, %v251_v27  ;;  %v259_v34 = vld [vmem:[#allocation7 + $0x140] sm:$0xff]  ;;  %v222_v27 = vld [vmem:[#allocation7 + $0x18] sm:$0xff] }
  0xf6   :  { %v264_v30 = vld [vmem:[#allocation7 + $0x168] sm:$0xff]  ;;  %v263_v35 = vld [vmem:[#allocation7 + $0x160] sm:$0xff]  ;;  %v226_v28 = vld [vmem:[#allocation7 + $0x38] sm:$0xff] }
  0xf7   :  { %v7900_v32 = vld [vmem:[#allocation2 + $0x8] sm:$0xff]  ;;  %v5119_v33 = vpack.c.bf16 %v264_v30, %v260_v29  ;;  %v5121_v38 = vpack.c.bf16 %v263_v35, %v259_v34  ;;  %v267_v40 = vld [vmem:[#allocation7 + $0x180] sm:$0xff]  ;;  %v563_v35 = vld [vmem:[#allocation16 + $0x208] sm:$0xff] }
  0xf8   :  { %5110 = vmatpush1.bf16.msra.mxu1 %v5109_v19  ;;  %5018 = vmatprep.mubr.msk.f32.mxu1 %vm337_vm0, %v7900_v32  ;;  %v268_v36 = vld [vmem:[#allocation7 + $0x188] sm:$0xff]  ;;  %v271_v41 = vld [vmem:[#allocation7 + $0x1a0] sm:$0xff] }
  0xf9   :  { %5112 = vmatprep.subr.bf16.mxu1 %v5111_v20  ;;  %v272_v37 = vld [vmem:[#allocation7 + $0x1a8] sm:$0xff]  ;;  %v5125_v44 = vpack.c.bf16 %v271_v41, %v267_v40  ;;  %v275_v46 = vld [vmem:[#allocation7 + $0x1c0] sm:$0xff]  ;;  %v5203_v20 = vpack.c.bf16 %v539_v17, %v531_v16  ;;  %v230_v40 = vld [vmem:[#allocation7 + $0x58] sm:$0xff] }
  0xfa   :  { %v5123_v39 = vpack.c.bf16 %v272_v37, %v268_v36  ;;  %v276_v42 = vld [vmem:[#allocation7 + $0x1c8] sm:$0xff]  ;;  %v279_v47 = vld [vmem:[#allocation7 + $0x1e0] sm:$0xff]  ;;  %v571_v36 = vld [vmem:[#allocation16 + $0x248] sm:$0xff]  ;;  %v5147_v37 = vpack.c.bf16 %v226_v28, %v222_v27 }
  0xfb   :  { %v280_v43 = vld [vmem:[#allocation7 + $0x1e8] sm:$0xff]  ;;  %v5129_v50 = vpack.c.bf16 %v279_v47, %v275_v46  ;;  %v283_v52 = vld [vmem:[#allocation7 + $0x200] sm:$0xff]  ;;  %v234_v41 = vld [vmem:[#allocation7 + $0x78] sm:$0xff] }
  0xfc   :  { %5114 = vmatpush1.bf16.msra.mxu1 %v5113_v25  ;;  %v5127_v45 = vpack.c.bf16 %v280_v43, %v276_v42  ;;  %v284_v48 = vld [vmem:[#allocation7 + $0x208] sm:$0xff]  ;;  %v287_v53 = vld [vmem:[#allocation7 + $0x220] sm:$0xff]  ;;  %v547_v25 = vld [vmem:[#allocation16 + $0x188] sm:$0xff]  ;;  %v5211_v43 = vpack.c.bf16 %v571_v36, %v563_v35 }
  0xfd   :  { %5116 = vmatprep.subr.bf16.mxu1 %v5115_v26  ;;  %v288_v49 = vld [vmem:[#allocation7 + $0x228] sm:$0xff]  ;;  %v5133_v56 = vpack.c.bf16 %v287_v53, %v283_v52  ;;  %v291_v57 = vld [vmem:[#allocation7 + $0x240] sm:$0xff]  ;;  %v555_v26 = vld [vmem:[#allocation16 + $0x1c8] sm:$0xff] }
  0xfe   :  { %v5131_v51 = vpack.c.bf16 %v288_v49, %v284_v48  ;;  %v292_v54 = vld [vmem:[#allocation7 + $0x248] sm:$0xff]  ;;  %v295_v59 = vld [vmem:[#allocation7 + $0x260] sm:$0xff]  ;;  %v5207_v30 = vpack.c.bf16 %v555_v26, %v547_v25  ;;  %v579_v48 = vld [vmem:[#allocation16 + $0x288] sm:$0xff] }
  0xff   :  { %v296_v55 = vld [vmem:[#allocation7 + $0x268] sm:$0xff]  ;;  %v5137_v3 = vpack.c.bf16 %v295_v59, %v291_v57  ;;  %v299_v4 = vld [vmem:[#allocation7 + $0x280] sm:$0xff]  ;;  %v587_v49 = vld [vmem:[#allocation16 + $0x2c8] sm:$0xff] }
 0x100   :  { %5118 = vmatpush1.bf16.msra.mxu1 %v5117_v31  ;;  %v5135_v58 = vpack.c.bf16 %v296_v55, %v292_v54  ;;  %v300_v62 = vld [vmem:[#allocation7 + $0x288] sm:$0xff]  ;;  %v303_v9 = vld [vmem:[#allocation7 + $0x2a0] sm:$0xff]  ;;  %v233_v52 = vld [vmem:[#allocation7 + $0x70] sm:$0xff]  ;;  %v5215_v57 = vpack.c.bf16 %v587_v49, %v579_v48 }
 0x101   :  { %5120 = vmatprep.subr.bf16.mxu1 %v5119_v33  ;;  %v304_v63 = vld [vmem:[#allocation7 + $0x2a8] sm:$0xff]  ;;  %v5141_v18 = vpack.c.bf16 %v303_v9, %v299_v4  ;;  %v307_v19 = vld [vmem:[#allocation7 + $0x2c0] sm:$0xff]  ;;  %v7906_v53 = vld [vmem:[#allocation2 + $0x18] sm:$0xf] }
 0x102   :  { %v498_v1 = vld [vmem:[#allocation16] sm:$0xff]  ;;  %v5139_v8 = vpack.c.bf16 %v304_v63, %v300_v62  ;;  %v311_v24 = vld [vmem:[#allocation7 + $0x2e0] sm:$0xff]  ;;  %v238_v54 = vld [vmem:[#allocation7 + $0x98] sm:$0xff] }
 0x103   :  { %v506_v2 = vld [vmem:[#allocation16 + $0x40] sm:$0xff]  ;;  %v5145_v34 = vpack.c.bf16 %v311_v24, %v307_v19  ;;  %v7904_v46 = vld [vmem:[#allocation2] sm:$0xff]  ;;  %v242_v55 = vld [vmem:[#allocation7 + $0xb8] sm:$0xff] }
 0x104   :  { %5122 = vmatpush1.bf16.msra.mxu1 %v5121_v38  ;;  %v5197_v5 = vpack.c.bf16 %v506_v2, %v498_v1  ;;  %v514_v11 = vld [vmem:[#allocation16 + $0x80] sm:$0xff]  ;;  %v595_v62 = vld [vmem:[#allocation16 + $0x308] sm:$0xff]  ;;  %v5155_v0 = vpack.c.bf16 %v242_v55, %v238_v54 }
 0x105   :  { %5124 = vmatprep.subr.bf16.mxu1 %v5123_v39  ;;  %v522_v12 = vld [vmem:[#allocation16 + $0xc0] sm:$0xff]  ;;  %v603_v63 = vld [vmem:[#allocation16 + $0x348] sm:$0xff] }
 0x106   :  { %v308_v13 = vld [vmem:[#allocation7 + $0x2c8] sm:$0xff]  ;;  %5198 = vmatpush1.bf16.msra.mxu0 %v5197_v5  ;;  %v5201_v15 = vpack.c.bf16 %v522_v12, %v514_v11  ;;  %v221_v38 = vld [vmem:[#allocation7 + $0x10] sm:$0xff]  ;;  %v250_v4 = vld [vmem:[#allocation7 + $0xf8] sm:$0xff]  ;;  %v5219_v6 = vpack.c.bf16 %v603_v63, %v595_v62 }
 0x107   :  { %v312_v14 = vld [vmem:[#allocation7 + $0x2e8] sm:$0xff]  ;;  %5200 = vmatprep.subr.bf16.mxu0 %v5199_v10  ;;  %v225_v39 = vld [vmem:[#allocation7 + $0x30] sm:$0xff]  ;;  %v258_v16 = vld [vmem:[#allocation7 + $0x138] sm:$0xff] }
 0x108   :  { %5126 = vmatpush1.bf16.msra.mxu1 %v5125_v44  ;;  %v530_v21 = vld [vmem:[#allocation16 + $0x100] sm:$0xff]  ;;  %v5143_v23 = vpack.c.bf16 %v312_v14, %v308_v13  ;;  %v5149_v47 = vpack.c.bf16 %v225_v39, %v221_v38  ;;  %v611_v10 = vld [vmem:[#allocation16 + $0x388] sm:$0xff] }
 0x109   :  { %5128 = vmatprep.subr.bf16.mxu1 %v5127_v45  ;;  %v538_v22 = vld [vmem:[#allocation16 + $0x140] sm:$0xff]  ;;  %v619_v11 = vld [vmem:[#allocation16 + $0x3c8] sm:$0xff] }
 0x10a   :  { %5202 = vmatpush1.bf16.msra.mxu0 %v5201_v15  ;;  %v5205_v29 = vpack.c.bf16 %v538_v22, %v530_v21  ;;  %v546_v31 = vld [vmem:[#allocation16 + $0x180] sm:$0xff]  ;;  %v254_v15 = vld [vmem:[#allocation7 + $0x118] sm:$0xff] }
 0x10b   :  { %5204 = vmatprep.subr.bf16.mxu0 %v5203_v20  ;;  %v554_v33 = vld [vmem:[#allocation16 + $0x1c0] sm:$0xff]  ;;  %v627_v22 = vld [vmem:[#allocation16 + $0x408] sm:$0xff] }
 0x10c   :  { %5130 = vmatpush1.bf16.msra.mxu1 %v5129_v50  ;;  %v5209_v42 = vpack.c.bf16 %v554_v33, %v546_v31  ;;  %v562_v44 = vld [vmem:[#allocation16 + $0x200] sm:$0xff]  ;;  %v5151_v50 = vpack.c.bf16 %v234_v41, %v230_v40  ;;  %v262_v26 = vld [vmem:[#allocation7 + $0x158] sm:$0xff] }
 0x10d   :  { %5132 = vmatprep.subr.bf16.mxu1 %v5131_v51  ;;  %v570_v45 = vld [vmem:[#allocation16 + $0x240] sm:$0xff]  ;;  %v266_v27 = vld [vmem:[#allocation7 + $0x178] sm:$0xff] }
 0x10e   :  { %5206 = vmatpush1.bf16.msra.mxu0 %v5205_v29  ;;  %v229_v51 = vld [vmem:[#allocation7 + $0x50] sm:$0xff]  ;;  %v5167_v36 = vpack.c.bf16 %v266_v27, %v262_v26  ;;  %v270_v39 = vld [vmem:[#allocation7 + $0x198] sm:$0xff] }
 0x10f   :  { %5208 = vmatprep.subr.bf16.mxu0 %v5207_v30  ;;  %v586_v59 = vld [vmem:[#allocation16 + $0x2c0] sm:$0xff]  ;;  %v5153_v60 = vpack.c.bf16 %v233_v52, %v229_v51  ;;  %v651_v35 = vld [vmem:[#allocation16 + $0x4c8] sm:$0xff] }
 0x110   :  { %5134 = vmatpush1.bf16.msra.mxu1 %v5133_v56  ;;  %v5213_v56 = vpack.c.bf16 %v570_v45, %v562_v44  ;;  %v237_v1 = vld [vmem:[#allocation7 + $0x90] sm:$0xff]  ;;  %v274_v40 = vld [vmem:[#allocation7 + $0x1b8] sm:$0xff] }
 0x111   :  { %5136 = vmatprep.subr.bf16.mxu1 %v5135_v58  ;;  %v578_v58 = vld [vmem:[#allocation16 + $0x280] sm:$0xff]  ;;  %v667_v48 = vld [vmem:[#allocation16 + $0x548] sm:$0xff]  ;;  %v5171_v49 = vpack.c.bf16 %v274_v40, %v270_v39 }
 0x112   :  { %5210 = vmatpush1.bf16.msra.mxu0 %v5209_v42  ;;  %v241_v2 = vld [vmem:[#allocation7 + $0xb0] sm:$0xff]  ;;  %v5217_v5 = vpack.c.bf16 %v586_v59, %v578_v58  ;;  %v278_v52 = vld [vmem:[#allocation7 + $0x1d8] sm:$0xff] }
 0x113   :  { %5212 = vmatprep.subr.bf16.mxu0 %v5211_v43  ;;  %v594_v7 = vld [vmem:[#allocation16 + $0x300] sm:$0xff]  ;;  %v5157_v9 = vpack.c.bf16 %v241_v2, %v237_v1  ;;  %v282_v54 = vld [vmem:[#allocation7 + $0x1f8] sm:$0xff] }
 0x114   :  { %5138 = vmatpush1.bf16.msra.mxu1 %v5137_v3  ;;  %v246_v3 = vld [vmem:[#allocation7 + $0xd8] sm:$0xff]  ;;  %v245_v13 = vld [vmem:[#allocation7 + $0xd0] sm:$0xff]  ;;  %v5175_v63 = vpack.c.bf16 %v282_v54, %v278_v52 }
 0x115   :  { %5140 = vmatprep.subr.bf16.mxu1 %v5139_v8  ;;  %v602_v8 = vld [vmem:[#allocation16 + $0x340] sm:$0xff]  ;;  %v5159_v12 = vpack.c.bf16 %v250_v4, %v246_v3  ;;  %v683_v62 = vld [vmem:[#allocation16 + $0x5c8] sm:$0xff] }
 0x116   :  { %5214 = vmatpush1.bf16.msra.mxu0 %v5213_v56  ;;  %v249_v14 = vld [vmem:[#allocation7 + $0xf0] sm:$0xff]  ;;  %v5221_v17 = vpack.c.bf16 %v602_v8, %v594_v7  ;;  %v286_v2 = vld [vmem:[#allocation7 + $0x218] sm:$0xff] }
 0x117   :  { %5216 = vmatprep.subr.bf16.mxu0 %v5215_v57  ;;  %v610_v19 = vld [vmem:[#allocation16 + $0x380] sm:$0xff]  ;;  %v5161_v21 = vpack.c.bf16 %v249_v14, %v245_v13  ;;  %v290_v3 = vld [vmem:[#allocation7 + $0x238] sm:$0xff] }
 0x118   :  { %5142 = vmatpush1.bf16.msra.mxu1 %v5141_v18  ;;  %v5223_v18 = vpack.c.bf16 %v619_v11, %v611_v10  ;;  %v618_v20 = vld [vmem:[#allocation16 + $0x3c0] sm:$0xff]  ;;  %v699_v10 = vld [vmem:[#allocation16 + $0x648] sm:$0xff]  ;;  %v5179_v11 = vpack.c.bf16 %v290_v3, %v286_v2 }
 0x119   :  { %5144 = vmatprep.subr.bf16.mxu1 %v5143_v23  ;;  %v635_v23 = vld [vmem:[#allocation16 + $0x448] sm:$0xff]  ;;  %v5225_v28 = vpack.c.bf16 %v618_v20, %v610_v19  ;;  %v626_v30 = vld [vmem:[#allocation16 + $0x400] sm:$0xff] }
 0x11a   :  { %5218 = vmatpush1.bf16.msra.mxu0 %v5217_v5  ;;  %v253_v24 = vld [vmem:[#allocation7 + $0x110] sm:$0xff]  ;;  %v5227_v29 = vpack.c.bf16 %v635_v23, %v627_v22  ;;  %v294_v14 = vld [vmem:[#allocation7 + $0x258] sm:$0xff] }
 0x11b   :  { %5220 = vmatprep.subr.bf16.mxu0 %v5219_v6  ;;  %v257_v25 = vld [vmem:[#allocation7 + $0x130] sm:$0xff]  ;;  %v306_v26 = vld [vmem:[#allocation7 + $0x2b8] sm:$0xff] }
 0x11c   :  { %5146 = vmatpush1.bf16.msra.mxu1 %v5145_v34  ;;  %v634_v31 = vld [vmem:[#allocation16 + $0x440] sm:$0xff]  ;;  %v5165_v33 = vpack.c.bf16 %v257_v25, %v253_v24  ;;  %v643_v34 = vld [vmem:[#allocation16 + $0x488] sm:$0xff] }
 0x11d   :  { %5148 = vmatprep.subr.bf16.mxu1 %v5147_v37  ;;  %v261_v37 = vld [vmem:[#allocation7 + $0x150] sm:$0xff]  ;;  %v5229_v41 = vpack.c.bf16 %v634_v31, %v626_v30  ;;  %v5231_v42 = vpack.c.bf16 %v651_v35, %v643_v34  ;;  %v302_v25 = vld [vmem:[#allocation7 + $0x298] sm:$0xff] }
 0x11e   :  { %5222 = vmatpush1.bf16.msra.mxu0 %v5221_v17  ;;  %v265_v38 = vld [vmem:[#allocation7 + $0x170] sm:$0xff]  ;;  %v5187_v35 = vpack.c.bf16 %v306_v26, %v302_v25  ;;  %v314_v39 = vld [vmem:[#allocation7 + $0x2f8] sm:$0xff]  ;;  %v613_v26 = vld [vmem:[#allocation16 + $0x398] sm:$0xff] }
 0x11f   :  { %409 = vmatmul.mubr.f32.vlgmr.msra.gmra.mrb[0].mxu1 %v7904_v46  ;;  %5224 = vmatprep.subr.bf16.mxu0 %v5223_v18  ;;  %v642_v43 = vld [vmem:[#allocation16 + $0x480] sm:$0xff]  ;;  %v5169_v45 = vpack.c.bf16 %v265_v38, %v261_v37  ;;  %v715_v22 = vld [vmem:[#allocation16 + $0x6c8] sm:$0xff]  ;;  %v604_v25 = vld [vmem:[#allocation16 + $0x350] sm:$0xff] }
 0x120   :  { %5150 = vmatpush1.bf16.msra.mxu1 %v5149_v47  ;;  %5019 = vmatprep.mubr.msk.f32.mxu1 %vm337_vm0, %v7906_v53  ;;  %v650_v44 = vld [vmem:[#allocation16 + $0x4c0] sm:$0xff]  ;;  %v659_v47 = vld [vmem:[#allocation16 + $0x508] sm:$0xff] }
 0x121   :  { %5152 = vmatprep.subr.bf16.mxu1 %v5151_v50  ;;  %v269_v50 = vld [vmem:[#allocation7 + $0x190] sm:$0xff]  ;;  %v5233_v55 = vpack.c.bf16 %v650_v44, %v642_v43  ;;  %v5235_v56 = vpack.c.bf16 %v667_v48, %v659_v47  ;;  %v310_v38 = vld [vmem:[#allocation7 + $0x2d8] sm:$0xff] }
 0x122   :  { %5226 = vmatpush1.bf16.msra.mxu0 %v5225_v28  ;;  %v273_v51 = vld [vmem:[#allocation7 + $0x1b0] sm:$0xff] }
 0x123   :  { %415 = vmatmul.mubr.f32.gmra.mrb[2].mxu1 %v7911_v61  ;;  %5228 = vmatprep.subr.bf16.mxu0 %v5227_v29  ;;  %v658_v57 = vld [vmem:[#allocation16 + $0x500] sm:$0xff]  ;;  %v5173_v59 = vpack.c.bf16 %v273_v51, %v269_v50  ;;  %v731_v34 = vld [vmem:[#allocation16 + $0x748] sm:$0xff]  ;;  %v509_v50 = vld [vmem:[#allocation16 + $0x58] sm:$0xff] }
 0x124   :  { %5154 = vmatpush1.bf16.msra.mxu1 %v5153_v60  ;;  %5020 = vmatprep.mubr.msk.f32.mxu1 %vm337_vm0, %v7900_v32  ;;  %v5163_v32 = vpack.c.bf16 %v258_v16, %v254_v15  ;;  %v666_v58 = vld [vmem:[#allocation16 + $0x540] sm:$0xff]  ;;  %v675_v60 = vld [vmem:[#allocation16 + $0x588] sm:$0xff] }
 0x125   :  { %5156 = vmatprep.subr.bf16.mxu1 %v5155_v0  ;;  %v277_v0 = vld [vmem:[#allocation7 + $0x1d0] sm:$0xff]  ;;  %v5237_v4 = vpack.c.bf16 %v666_v58, %v658_v57  ;;  %v5239_v5 = vpack.c.bf16 %v683_v62, %v675_v60  ;;  %v298_v15 = vld [vmem:[#allocation7 + $0x278] sm:$0xff]  ;;  %v517_v57 = vld [vmem:[#allocation16 + $0x98] sm:$0xff] }
 0x126   :  { %5230 = vmatpush1.bf16.msra.mxu0 %v5229_v41  ;;  %v281_v1 = vld [vmem:[#allocation7 + $0x1f0] sm:$0xff]  ;;  %v5183_v23 = vpack.c.bf16 %v298_v15, %v294_v14  ;;  %v525_v58 = vld [vmem:[#allocation16 + $0xd8] sm:$0xff]  ;;  %v516_v62 = vld [vmem:[#allocation16 + $0x90] sm:$0xff] }
 0x127   :  { %5232 = vmatprep.subr.bf16.mxu0 %v5231_v42  ;;  %v674_v6 = vld [vmem:[#allocation16 + $0x580] sm:$0xff]  ;;  %v5177_v8 = vpack.c.bf16 %v281_v1, %v277_v0  ;;  %v5327_v60 = vpack.c.bf16 %v525_v58, %v517_v57  ;;  %v533_v0 = vld [vmem:[#allocation16 + $0x118] sm:$0xff]  ;;  %v564_v14 = vld [vmem:[#allocation16 + $0x210] sm:$0xff] }
 0x128   :  { %5158 = vmatpush1.bf16.msra.mxu1 %v5157_v9  ;;  %v682_v7 = vld [vmem:[#allocation16 + $0x5c0] sm:$0xff]  ;;  %v691_v9 = vld [vmem:[#allocation16 + $0x608] sm:$0xff]  ;;  %v541_v1 = vld [vmem:[#allocation16 + $0x158] sm:$0xff] }
 0x129   :  { %5160 = vmatprep.subr.bf16.mxu1 %v5159_v12  ;;  %v285_v12 = vld [vmem:[#allocation7 + $0x210] sm:$0xff]  ;;  %v5241_v16 = vpack.c.bf16 %v682_v7, %v674_v6  ;;  %v5243_v17 = vpack.c.bf16 %v699_v10, %v691_v9  ;;  %v5331_v3 = vpack.c.bf16 %v541_v1, %v533_v0  ;;  %v549_v6 = vld [vmem:[#allocation16 + $0x198] sm:$0xff]  ;;  %v548_v10 = vld [vmem:[#allocation16 + $0x190] sm:$0xff] }
 0x12a   :  { %5234 = vmatpush1.bf16.msra.mxu0 %v5233_v55  ;;  %v289_v13 = vld [vmem:[#allocation7 + $0x230] sm:$0xff]  ;;  %v500_v55 = vld [vmem:[#allocation16 + $0x10] sm:$0xff]  ;;  %v557_v7 = vld [vmem:[#allocation16 + $0x1d8] sm:$0xff] }
 0x12b   :  { %5236 = vmatprep.subr.bf16.mxu0 %v5235_v56  ;;  %v690_v18 = vld [vmem:[#allocation16 + $0x600] sm:$0xff]  ;;  %v5181_v20 = vpack.c.bf16 %v289_v13, %v285_v12  ;;  %v508_v56 = vld [vmem:[#allocation16 + $0x50] sm:$0xff]  ;;  %v5335_v9 = vpack.c.bf16 %v557_v7, %v549_v6  ;;  %v573_v12 = vld [vmem:[#allocation16 + $0x258] sm:$0xff] }
 0x12c   :  { %5162 = vmatpush1.bf16.msra.mxu1 %v5161_v21  ;;  %v698_v19 = vld [vmem:[#allocation16 + $0x640] sm:$0xff]  ;;  %v707_v21 = vld [vmem:[#allocation16 + $0x688] sm:$0xff]  ;;  %v572_v15 = vld [vmem:[#allocation16 + $0x250] sm:$0xff] }
 0x12d   :  { %5164 = vmatprep.subr.bf16.mxu1 %v5163_v32  ;;  %v293_v32 = vld [vmem:[#allocation7 + $0x250] sm:$0xff]  ;;  %v5245_v27 = vpack.c.bf16 %v698_v19, %v690_v18  ;;  %v5247_v28 = vpack.c.bf16 %v715_v22, %v707_v21  ;;  %v5341_v18 = vpack.c.bf16 %v572_v15, %v564_v14  ;;  %v580_v19 = vld [vmem:[#allocation16 + $0x290] sm:$0xff]  ;;  %v597_v21 = vld [vmem:[#allocation16 + $0x318] sm:$0xff] }
 0x12e   :  { %5238 = vmatpush1.bf16.msra.mxu0 %v5237_v4  ;;  %v297_v24 = vld [vmem:[#allocation7 + $0x270] sm:$0xff]  ;;  %v532_v4 = vld [vmem:[#allocation16 + $0x110] sm:$0xff]  ;;  %v605_v22 = vld [vmem:[#allocation16 + $0x358] sm:$0xff] }
 0x12f   :  { %5240 = vmatprep.subr.bf16.mxu0 %v5239_v5  ;;  %v706_v29 = vld [vmem:[#allocation16 + $0x680] sm:$0xff]  ;;  %v5185_v31 = vpack.c.bf16 %v297_v24, %v293_v32  ;;  %v540_v5 = vld [vmem:[#allocation16 + $0x150] sm:$0xff]  ;;  %v5347_v32 = vpack.c.bf16 %v605_v22, %v597_v21  ;;  %v701_v6 = vld [vmem:[#allocation16 + $0x658] sm:$0xff] }
 0x130   :  { %5166 = vmatpush1.bf16.msra.mxu1 %v5165_v33  ;;  %v714_v30 = vld [vmem:[#allocation16 + $0x6c0] sm:$0xff]  ;;  %v723_v33 = vld [vmem:[#allocation16 + $0x708] sm:$0xff]  ;;  %v596_v24 = vld [vmem:[#allocation16 + $0x310] sm:$0xff] }
 0x131   :  { %5168 = vmatprep.subr.bf16.mxu1 %v5167_v36  ;;  %v301_v36 = vld [vmem:[#allocation7 + $0x290] sm:$0xff]  ;;  %v5249_v40 = vpack.c.bf16 %v714_v30, %v706_v29  ;;  %v5251_v41 = vpack.c.bf16 %v731_v34, %v723_v33  ;;  %v612_v30 = vld [vmem:[#allocation16 + $0x390] sm:$0xff]  ;;  %v629_v33 = vld [vmem:[#allocation16 + $0x418] sm:$0xff] }
 0x132   :  { %5242 = vmatpush1.bf16.msra.mxu0 %v5241_v16  ;;  %v305_v37 = vld [vmem:[#allocation7 + $0x2b0] sm:$0xff]  ;;  %v581_v16 = vld [vmem:[#allocation16 + $0x298] sm:$0xff]  ;;  %v668_v57 = vld [vmem:[#allocation16 + $0x550] sm:$0xff] }
 0x133   :  { %5244 = vmatprep.subr.bf16.mxu0 %v5243_v17  ;;  %v722_v42 = vld [vmem:[#allocation16 + $0x700] sm:$0xff]  ;;  %v5189_v44 = vpack.c.bf16 %v305_v37, %v301_v36  ;;  %v589_v17 = vld [vmem:[#allocation16 + $0x2d8] sm:$0xff]  ;;  %v628_v37 = vld [vmem:[#allocation16 + $0x410] sm:$0xff] }
 0x134   :  { %5170 = vmatpush1.bf16.msra.mxu1 %v5169_v45  ;;  %v730_v43 = vld [vmem:[#allocation16 + $0x740] sm:$0xff]  ;;  %v5191_v45 = vpack.c.bf16 %v314_v39, %v310_v38  ;;  %v637_v34 = vld [vmem:[#allocation16 + $0x458] sm:$0xff]  ;;  %v636_v38 = vld [vmem:[#allocation16 + $0x450] sm:$0xff] }
 0x135   :  { %5172 = vmatprep.subr.bf16.mxu1 %v5171_v49  ;;  %v309_v47 = vld [vmem:[#allocation7 + $0x2d0] sm:$0xff]  ;;  %v501_v49 = vld [vmem:[#allocation16 + $0x18] sm:$0xff]  ;;  %v5253_v51 = vpack.c.bf16 %v730_v43, %v722_v42  ;;  %v5355_v36 = vpack.c.bf16 %v637_v34, %v629_v33  ;;  %v644_v43 = vld [vmem:[#allocation16 + $0x490] sm:$0xff] }
 0x136   :  { %5246 = vmatpush1.bf16.msra.mxu0 %v5245_v27  ;;  %v313_v48 = vld [vmem:[#allocation7 + $0x2f0] sm:$0xff]  ;;  %v5323_v54 = vpack.c.bf16 %v509_v50, %v501_v49  ;;  %v621_v27 = vld [vmem:[#allocation16 + $0x3d8] sm:$0xff]  ;;  %v716_v14 = vld [vmem:[#allocation16 + $0x6d0] sm:$0xff] }
 0x137   :  { %5248 = vmatprep.subr.bf16.mxu0 %v5247_v28  ;;  %v5193_v52 = vpack.c.bf16 %v313_v48, %v309_v47  ;;  %v5349_v28 = vpack.c.bf16 %v604_v25, %v596_v24  ;;  %v5351_v29 = vpack.c.bf16 %v621_v27, %v613_v26  ;;  %v645_v39 = vld [vmem:[#allocation16 + $0x498] sm:$0xff]  ;;  %v739_v48 = vld [vmem:[#allocation16 + $0x788] sm:$0xff]  ;;  %v748_v24 = vld [vmem:[#allocation16 + $0x7d0] sm:$0xff] }
 0x138   :  { %5174 = vmatpush1.bf16.msra.mxu1 %v5173_v59  ;;  %v5325_v59 = vpack.c.bf16 %v508_v56, %v500_v55  ;;  %v669_v47 = vld [vmem:[#allocation16 + $0x558] sm:$0xff]  ;;  %v747_v49 = vld [vmem:[#allocation16 + $0x7c8] sm:$0xff]  ;;  %v660_v56 = vld [vmem:[#allocation16 + $0x510] sm:$0xff] }
 0x139   :  { %5176 = vmatprep.subr.bf16.mxu1 %v5175_v63  ;;  %v524_v63 = vld [vmem:[#allocation16 + $0xd0] sm:$0xff]  ;;  %v5365_v0 = vpack.c.bf16 %v668_v57, %v660_v56  ;;  %v725_v15 = vld [vmem:[#allocation16 + $0x718] sm:$0xff] }
 0x13a   :  { %5250 = vmatpush1.bf16.msra.mxu0 %v5249_v40  ;;  %v5329_v2 = vpack.c.bf16 %v524_v63, %v516_v62  ;;  %v653_v40 = vld [vmem:[#allocation16 + $0x4d8] sm:$0xff]  ;;  %v755_v62 = vld [vmem:[#allocation16 + $0x808] sm:$0xff]  ;;  %v7925_v33 = vld [vmem:[#allocation8] sm:$0xf] }
 0x13b   :  { %5252 = vmatprep.subr.bf16.mxu0 %v5251_v41  ;;  %v5357_v41 = vpack.c.bf16 %v636_v38, %v628_v37  ;;  %v5359_v42 = vpack.c.bf16 %v653_v40, %v645_v39  ;;  %v763_v63 = vld [vmem:[#allocation16 + $0x848] sm:$0xff]  ;;  %v749_v21 = vld [vmem:[#allocation16 + $0x7d8] sm:$0xff]  ;;  %v762_v37 = vld [vmem:[#allocation16 + $0x840] sm:$0xff] }
 0x13c   :  { %5178 = vmatpush1.bf16.msra.mxu1 %v5177_v8  ;;  %v5333_v8 = vpack.c.bf16 %v540_v5, %v532_v4  ;;  %v5259_v1 = vpack.c.bf16 %v763_v63, %v755_v62  ;;  %v684_v4 = vld [vmem:[#allocation16 + $0x5d0] sm:$0xff]  ;;  %v693_v5 = vld [vmem:[#allocation16 + $0x618] sm:$0xff] }
 0x13d   :  { %5180 = vmatprep.subr.bf16.mxu1 %v5179_v11  ;;  %v556_v11 = vld [vmem:[#allocation16 + $0x1d0] sm:$0xff]  ;;  %v757_v25 = vld [vmem:[#allocation16 + $0x818] sm:$0xff] }
 0x13e   :  { %5254 = vmatpush1.bf16.msra.mxu0 %v5253_v51  ;;  %v5255_v51 = vpack.c.bf16 %v747_v49, %v739_v48  ;;  %v765_v26 = vld [vmem:[#allocation16 + $0x858] sm:$0xff]  ;;  %v756_v39 = vld [vmem:[#allocation16 + $0x810] sm:$0xff] }
 0x13f   :  { %v764_v40 = vld [vmem:[#allocation16 + $0x850] sm:$0xff]  ;;  %v789_v62 = vld [vmem:[#allocation16 + $0x918] sm:$0xff] }
 0x140   :  { %5182 = vmatpush1.bf16.msra.mxu1 %v5181_v20  ;;  %v588_v20 = vld [vmem:[#allocation16 + $0x2d0] sm:$0xff]  ;;  %5256 = vmatprep.subr.bf16.mxu0 %v5255_v51  ;;  %v770_v51 = vld [vmem:[#allocation16 + $0x880] sm:$0xff]  ;;  %v797_v63 = vld [vmem:[#allocation16 + $0x958] sm:$0xff] }
 0x141   :  { %5184 = vmatprep.subr.bf16.mxu1 %v5183_v23  ;;  %v5345_v23 = vpack.c.bf16 %v588_v20, %v580_v19  ;;  %v732_v19 = vld [vmem:[#allocation16 + $0x750] sm:$0xff]  ;;  %v741_v20 = vld [vmem:[#allocation16 + $0x798] sm:$0xff] }
 0x142   :  { %v772_v57 = vld [vmem:[#allocation16 + $0x890] sm:$0xff] }
 0x144   :  { %5186 = vmatpush1.bf16.msra.mxu1 %v5185_v31  ;;  %v620_v31 = vld [vmem:[#allocation16 + $0x3d0] sm:$0xff] }
 0x145   :  { %5188 = vmatprep.subr.bf16.mxu1 %v5187_v35  ;;  %v5353_v35 = vpack.c.bf16 %v620_v31, %v612_v30 }
 0x148   :  { %5190 = vmatpush1.bf16.msra.mxu1 %v5189_v44  ;;  %v652_v44 = vld [vmem:[#allocation16 + $0x4d0] sm:$0xff] }
 0x149   :  { %5192 = vmatprep.subr.bf16.mxu1 %v5191_v45  ;;  %v661_v45 = vld [vmem:[#allocation16 + $0x518] sm:$0xff]  ;;  %v5361_v50 = vpack.c.bf16 %v652_v44, %v644_v43  ;;  %v779_v43 = vld [vmem:[#allocation16 + $0x8c8] sm:$0xff] }
 0x14a   :  { %v5363_v55 = vpack.c.bf16 %v669_v47, %v661_v45  ;;  %v773_v44 = vld [vmem:[#allocation16 + $0x898] sm:$0xff] }
 0x14b   :  { %v781_v45 = vld [vmem:[#allocation16 + $0x8d8] sm:$0xff] }
 0x14c   :  { %5194 = vmatpush1.bf16.msra.mxu1 %v5193_v52  ;;  %v738_v52 = vld [vmem:[#allocation16 + $0x780] sm:$0xff]  ;;  %v5391_v56 = vpack.c.bf16 %v781_v45, %v773_v44 }
 0x14d   :  { %5324 = vmatprep.subr.bf16.mxu1 %v5323_v54  ;;  %v746_v54 = vld [vmem:[#allocation16 + $0x7c0] sm:$0xff] }
 0x14e   :  { %v5257_v58 = vpack.c.bf16 %v746_v54, %v738_v52  ;;  %v778_v52 = vld [vmem:[#allocation16 + $0x8c0] sm:$0xff] }
 0x14f   :  { %486 = vmatmul.mubr.f32.vlgmr.msra.gmra.mrb[4].mxu1 %v7904_v46  ;;  %v565_v46 = vld [vmem:[#allocation16 + $0x218] sm:$0xff]  ;;  %v842_v44 = vld [vmem:[#allocation16 + $0xac0] sm:$0xff] }
 0x150   :  { %5021 = vmatprep.mubr.msk.f32.mxu1 %vm337_vm0, %v7906_v53  ;;  %5326 = vmatpush1.bf16.msra.mxu1 %v5325_v59  ;;  %v5337_v53 = vpack.c.bf16 %v556_v11, %v548_v10  ;;  %v5339_v13 = vpack.c.bf16 %v573_v12, %v565_v46  ;;  %v677_v59 = vld [vmem:[#allocation16 + $0x598] sm:$0xff]  ;;  %v700_v10 = vld [vmem:[#allocation16 + $0x650] sm:$0xff] }
 0x151   :  { %5328 = vmatprep.subr.bf16.mxu1 %v5327_v60  ;;  %v685_v60 = vld [vmem:[#allocation16 + $0x5d8] sm:$0xff]  ;;  %5258 = vmatpush1.bf16.msra.mxu0 %v5257_v58  ;;  %v780_v58 = vld [vmem:[#allocation16 + $0x8d0] sm:$0xff] }
 0x152   :  { %5260 = vmatprep.subr.bf16.mxu0 %v5259_v1  ;;  %v709_v11 = vld [vmem:[#allocation16 + $0x698] sm:$0xff] }
 0x153   :  { %492 = vmatmul.mubr.f32.gmra.mrb[6].mxu1 %v7911_v61  ;;  %v5343_v61 = vpack.c.bf16 %v589_v17, %v581_v16  ;;  %v717_v46 = vld [vmem:[#allocation16 + $0x6d8] sm:$0xff] }
 0x154   :  { %5330 = vmatpush1.bf16.msra.mxu1 %v5329_v2  ;;  %v5367_v2 = vpack.c.bf16 %v685_v60, %v677_v59  ;;  %v733_v16 = vld [vmem:[#allocation16 + $0x758] sm:$0xff]  ;;  %v787_v59 = vld [vmem:[#allocation16 + $0x908] sm:$0xff] }
 0x155   :  { %5332 = vmatprep.subr.bf16.mxu1 %v5331_v3  ;;  %v676_v3 = vld [vmem:[#allocation16 + $0x590] sm:$0xff]  ;;  %v795_v60 = vld [vmem:[#allocation16 + $0x948] sm:$0xff] }
 0x156   :  { %v5369_v7 = vpack.c.bf16 %v684_v4, %v676_v3  ;;  %v5265_v3 = vpack.c.bf16 %v778_v52, %v770_v51  ;;  %v5393_v4 = vpack.c.bf16 %v780_v58, %v772_v57  ;;  %v851_v51 = vld [vmem:[#allocation16 + $0xb08] sm:$0xff] }
 0x157   :  { %v859_v52 = vld [vmem:[#allocation16 + $0xb48] sm:$0xff] }
 0x158   :  { %5334 = vmatpush1.bf16.msra.mxu1 %v5333_v8  ;;  %v5371_v8 = vpack.c.bf16 %v701_v6, %v693_v5  ;;  %v786_v5 = vld [vmem:[#allocation16 + $0x900] sm:$0xff] }
 0x159   :  { %5336 = vmatprep.subr.bf16.mxu1 %v5335_v9  ;;  %v692_v9 = vld [vmem:[#allocation16 + $0x610] sm:$0xff]  ;;  %v794_v6 = vld [vmem:[#allocation16 + $0x940] sm:$0xff] }
 0x15a   :  { %v5373_v12 = vpack.c.bf16 %v700_v10, %v692_v9  ;;  %v5395_v9 = vpack.c.bf16 %v797_v63, %v789_v62  ;;  %v788_v10 = vld [vmem:[#allocation16 + $0x910] sm:$0xff]  ;;  %v5283_v62 = vpack.c.bf16 %v859_v52, %v851_v51 }
 0x15c   :  { %5338 = vmatpush1.bf16.msra.mxu1 %v5337_v53  ;;  %v5375_v53 = vpack.c.bf16 %v717_v46, %v709_v11  ;;  %v796_v11 = vld [vmem:[#allocation16 + $0x950] sm:$0xff]  ;;  %v803_v46 = vld [vmem:[#allocation16 + $0x988] sm:$0xff] }
 0x15d   :  { %5340 = vmatprep.subr.bf16.mxu1 %v5339_v13  ;;  %v708_v13 = vld [vmem:[#allocation16 + $0x690] sm:$0xff] }
 0x15e   :  { %v5377_v17 = vpack.c.bf16 %v716_v14, %v708_v13  ;;  %v813_v13 = vld [vmem:[#allocation16 + $0x9d8] sm:$0xff]  ;;  %v5269_v14 = vpack.c.bf16 %v794_v6, %v786_v5 }
 0x15f   :  { %v869_v5 = vld [vmem:[#allocation16 + $0xb98] sm:$0xff] }
 0x160   :  { %5342 = vmatpush1.bf16.msra.mxu1 %v5341_v18  ;;  %v5379_v18 = vpack.c.bf16 %v733_v16, %v725_v15  ;;  %v5397_v15 = vpack.c.bf16 %v796_v11, %v788_v10  ;;  %v802_v16 = vld [vmem:[#allocation16 + $0x980] sm:$0xff]  ;;  %v877_v6 = vld [vmem:[#allocation16 + $0xbd8] sm:$0xff] }
 0x161   :  { %5344 = vmatprep.subr.bf16.mxu1 %v5343_v61  ;;  %v724_v61 = vld [vmem:[#allocation16 + $0x710] sm:$0xff]  ;;  %v866_v10 = vld [vmem:[#allocation16 + $0xb80] sm:$0xff] }
 0x162   :  { %v5381_v22 = vpack.c.bf16 %v732_v19, %v724_v61  ;;  %v804_v19 = vld [vmem:[#allocation16 + $0x990] sm:$0xff]  ;;  %v874_v11 = vld [vmem:[#allocation16 + $0xbc0] sm:$0xff] }
 0x164   :  { %5346 = vmatpush1.bf16.msra.mxu1 %v5345_v23  ;;  %v5383_v23 = vpack.c.bf16 %v749_v21, %v741_v20  ;;  %v812_v20 = vld [vmem:[#allocation16 + $0x9d0] sm:$0xff]  ;;  %v819_v21 = vld [vmem:[#allocation16 + $0xa08] sm:$0xff] }
 0x165   :  { %5348 = vmatprep.subr.bf16.mxu1 %v5347_v32  ;;  %v740_v32 = vld [vmem:[#allocation16 + $0x790] sm:$0xff] }
 0x166   :  { %v5385_v27 = vpack.c.bf16 %v748_v24, %v740_v32  ;;  %v829_v32 = vld [vmem:[#allocation16 + $0xa58] sm:$0xff] }
 0x168   :  { %5350 = vmatpush1.bf16.msra.mxu1 %v5349_v28  ;;  %v5387_v28 = vpack.c.bf16 %v765_v26, %v757_v25  ;;  %v5401_v25 = vpack.c.bf16 %v812_v20, %v804_v19  ;;  %v818_v26 = vld [vmem:[#allocation16 + $0xa00] sm:$0xff] }
 0x169   :  { %5352 = vmatprep.subr.bf16.mxu1 %v5351_v29  ;;  %v317_v29 = vlaneseq  ;;  %v882_v19 = vld [vmem:[#allocation16 + $0xc00] sm:$0xff] }
 0x16a   :  { %v890_v20 = vld [vmem:[#allocation16 + $0xc40] sm:$0xff] }
 0x16b   :  { %v7920_v30 = vshrl.u32 %v317_v29, 7 }
 0x16c   :  { %5354 = vmatpush1.bf16.msra.mxu1 %v5353_v35 }
 0x16d   :  { %5356 = vmatprep.subr.bf16.mxu1 %v5355_v36  ;;  %v7923_v31 = vsub.s32 1, %v7920_v30  ;;  %v7928_v34 = vsub.s32 0, %v7920_v30  ;;  %v754_v36 = vld [vmem:[#allocation16 + $0x800] sm:$0xff] }
 0x16e   :  { %v5261_v49 = vpack.c.bf16 %v762_v37, %v754_v36  ;;  %v828_v36 = vld [vmem:[#allocation16 + $0xa50] sm:$0xff]  ;;  %v835_v37 = vld [vmem:[#allocation16 + $0xa88] sm:$0xff] }
 0x16f   :  { %v324_v35 = vrot.slane %v7925_v33, %v7923_v31  ;;  %v320_v38 = vrot.slane %v7925_v33, %v7928_v34 }
 0x170   :  { %5358 = vmatpush1.bf16.msra.mxu1 %v5357_v41  ;;  %v771_v41 = vld [vmem:[#allocation16 + $0x888] sm:$0xff] }
 0x171   :  { %5360 = vmatprep.subr.bf16.mxu1 %v5359_v42 }
 0x174   :  { %5362 = vmatpush1.bf16.msra.mxu1 %v5361_v50  ;;  %v5389_v50 = vpack.c.bf16 %v764_v40, %v756_v39  ;;  %v837_v39 = vld [vmem:[#allocation16 + $0xa98] sm:$0xff] }
 0x175   :  { %5364 = vmatprep.subr.bf16.mxu1 %v5363_v55  ;;  %v5263_v55 = vpack.c.bf16 %v779_v43, %v771_v41  ;;  %v845_v40 = vld [vmem:[#allocation16 + $0xad8] sm:$0xff]  ;;  %v834_v43 = vld [vmem:[#allocation16 + $0xa80] sm:$0xff] }
 0x176   :  { %v5281_v57 = vpack.c.bf16 %v842_v44, %v834_v43  ;;  %v917_v43 = vld [vmem:[#allocation16 + $0xd18] sm:$0xff] }
 0x177   :  { %v925_v44 = vld [vmem:[#allocation16 + $0xd58] sm:$0xff] }
 0x178   :  { %5366 = vmatpush1.bf16.msra.mxu1 %v5365_v0  ;;  %v5427_v52 = vpack.c.bf16 %v925_v44, %v917_v43 }
 0x179   :  { %5368 = vmatprep.subr.bf16.mxu1 %v5367_v2 }
 0x17c   :  { %5370 = vmatpush1.bf16.msra.mxu1 %v5369_v7 }
 0x17d   :  { %5372 = vmatprep.subr.bf16.mxu1 %v5371_v8  ;;  %v5267_v8 = vpack.c.bf16 %v795_v60, %v787_v59  ;;  %v850_v59 = vld [vmem:[#allocation16 + $0xb00] sm:$0xff] }
 0x17e   :  { %v858_v60 = vld [vmem:[#allocation16 + $0xb40] sm:$0xff] }
 0x180   :  { %5374 = vmatpush1.bf16.msra.mxu1 %v5373_v12  ;;  %v811_v12 = vld [vmem:[#allocation16 + $0x9c8] sm:$0xff] }
 0x181   :  { %5376 = vmatprep.subr.bf16.mxu1 %v5375_v53  ;;  %v805_v53 = vld [vmem:[#allocation16 + $0x998] sm:$0xff] }
 0x182   :  { %v5399_v61 = vpack.c.bf16 %v813_v13, %v805_v53  ;;  %v868_v53 = vld [vmem:[#allocation16 + $0xb90] sm:$0xff] }
 0x183   :  { %v876_v13 = vld [vmem:[#allocation16 + $0xbd0] sm:$0xff] }
 0x184   :  { %5378 = vmatpush1.bf16.msra.mxu1 %v5377_v17  ;;  %v810_v17 = vld [vmem:[#allocation16 + $0x9c0] sm:$0xff] }
 0x185   :  { %5380 = vmatprep.subr.bf16.mxu1 %v5379_v18  ;;  %v5271_v18 = vpack.c.bf16 %v811_v12, %v803_v46  ;;  %v5273_v24 = vpack.c.bf16 %v810_v17, %v802_v16  ;;  %v5415_v12 = vpack.c.bf16 %v877_v6, %v869_v5  ;;  %v885_v16 = vld [vmem:[#allocation16 + $0xc18] sm:$0xff]  ;;  %v932_v6 = vld [vmem:[#allocation16 + $0xd90] sm:$0xff] }
 0x186   :  { %v893_v17 = vld [vmem:[#allocation16 + $0xc58] sm:$0xff] }
 0x188   :  { %5382 = vmatpush1.bf16.msra.mxu1 %v5381_v22  ;;  %v827_v22 = vld [vmem:[#allocation16 + $0xa48] sm:$0xff] }
 0x189   :  { %5384 = vmatprep.subr.bf16.mxu1 %v5383_v23  ;;  %v821_v23 = vld [vmem:[#allocation16 + $0xa18] sm:$0xff] }
 0x18a   :  { %v5403_v29 = vpack.c.bf16 %v829_v32, %v821_v23  ;;  %v884_v23 = vld [vmem:[#allocation16 + $0xc10] sm:$0xff] }
 0x18b   :  { %v892_v32 = vld [vmem:[#allocation16 + $0xc50] sm:$0xff] }
 0x18c   :  { %5386 = vmatpush1.bf16.msra.mxu1 %v5385_v27  ;;  %v826_v27 = vld [vmem:[#allocation16 + $0xa40] sm:$0xff] }
 0x18d   :  { %5388 = vmatprep.subr.bf16.mxu1 %v5387_v28  ;;  %v5275_v28 = vpack.c.bf16 %v827_v22, %v819_v21  ;;  %v5277_v41 = vpack.c.bf16 %v826_v27, %v818_v26  ;;  %v5419_v22 = vpack.c.bf16 %v893_v17, %v885_v16  ;;  %v901_v26 = vld [vmem:[#allocation16 + $0xc98] sm:$0xff] }
 0x18e   :  { %v909_v27 = vld [vmem:[#allocation16 + $0xcd8] sm:$0xff] }
 0x1f2   :  { %v410_v42 = vpop.f32.mrb[0].mxu1 }
 0x1f3   :  { %v412_v47 = vpop.f32.mrb[1].mxu1  ;;  %v7936_v54 = vadd.f32 %v410_v42, %v320_v38 }
 0x1f4   :  { %v7934_v48 = vadd.f32 %v412_v47, %v324_v35  ;;  %v5407_v47 = vpack.c.bf16 %v845_v40, %v837_v39  ;;  %v900_v39 = vld [vmem:[#allocation16 + $0xc90] sm:$0xff] }
 0x1f5   :  { %v908_v40 = vld [vmem:[#allocation16 + $0xcd0] sm:$0xff] }
 0x1f6   :  { %1116 = vmatprep.mubr.f32.mxu0 %v7934_v48  ;;  %1270 = vmatprep.mubr.f32.mxu1 %v7934_v48  ;;  %v416_v0 = vpop.f32.mrb[2].mxu1 }
 0x1f7   :  { %1117 = vmatmul.mubr.f32.vlgmr.msra.gmra.mrb[0].mxu0 %v7936_v54  ;;  %1271 = vmatmul.mubr.f32.vlgmr.msra.gmra.mrb[8].mxu1 %v7936_v54  ;;  %v7942_v1 = vadd.f32 %v416_v0, %v320_v38  ;;  %v418_v2 = vpop.f32.mrb[3].mxu1  ;;  %v843_v38 = vld [vmem:[#allocation16 + $0xac8] sm:$0xff]  ;;  %v852_v0 = vld [vmem:[#allocation16 + $0xb10] sm:$0xff] }
 0x1f8   :  { %5262 = vmatpush1.bf16.msra.mxu0 %v5261_v49  ;;  %5390 = vmatpush1.bf16.msra.mxu1 %v5389_v50  ;;  %v7944_v7 = vadd.f32 %v418_v2, %v324_v35  ;;  %v820_v35 = vld [vmem:[#allocation16 + $0xa10] sm:$0xff]  ;;  %v5279_v45 = vpack.c.bf16 %v843_v38, %v835_v37  ;;  %v5423_v38 = vpack.c.bf16 %v909_v27, %v901_v26  ;;  %v962_v26 = vld [vmem:[#allocation16 + $0xe80] sm:$0xff] }
 0x1f9   :  { %5264 = vmatprep.subr.bf16.mxu0 %v5263_v55  ;;  %5392 = vmatprep.subr.bf16.mxu1 %v5391_v56  ;;  %v5405_v42 = vpack.c.bf16 %v828_v36, %v820_v35  ;;  %v836_v49 = vld [vmem:[#allocation16 + $0xa90] sm:$0xff]  ;;  %v853_v55 = vld [vmem:[#allocation16 + $0xb18] sm:$0xff]  ;;  %v898_v35 = vld [vmem:[#allocation16 + $0xc80] sm:$0xff] }
 0x1fa   :  { %1122 = vmatprep.mubr.f32.mxu0 %v7944_v7  ;;  %1276 = vmatprep.mubr.f32.mxu1 %v7944_v7  ;;  %v844_v50 = vld [vmem:[#allocation16 + $0xad0] sm:$0xff]  ;;  %v861_v56 = vld [vmem:[#allocation16 + $0xb58] sm:$0xff]  ;;  %v906_v36 = vld [vmem:[#allocation16 + $0xcc0] sm:$0xff] }
 0x1fb   :  { %1123 = vmatmul.mubr.f32.gmra.mrb[2].mxu0 %v7942_v1  ;;  %1277 = vmatmul.mubr.f32.gmra.mrb[10].mxu1 %v7942_v1  ;;  %v5409_v58 = vpack.c.bf16 %v844_v50, %v836_v49  ;;  %v5411_v63 = vpack.c.bf16 %v861_v56, %v853_v55  ;;  %v860_v2 = vld [vmem:[#allocation16 + $0xb50] sm:$0xff]  ;;  %v914_v49 = vld [vmem:[#allocation16 + $0xd00] sm:$0xff] }
 0x1fc   :  { %5266 = vmatpush1.bf16.msra.mxu0 %v5265_v3  ;;  %5394 = vmatpush1.bf16.msra.mxu1 %v5393_v4  ;;  %v867_v3 = vld [vmem:[#allocation16 + $0xb88] sm:$0xff]  ;;  %v922_v50 = vld [vmem:[#allocation16 + $0xd40] sm:$0xff]  ;;  %v916_v55 = vld [vmem:[#allocation16 + $0xd10] sm:$0xff] }
 0x1fd   :  { %5268 = vmatprep.subr.bf16.mxu0 %v5267_v8  ;;  %5396 = vmatprep.subr.bf16.mxu1 %v5395_v9  ;;  %v875_v4 = vld [vmem:[#allocation16 + $0xbc8] sm:$0xff]  ;;  %v5285_v8 = vpack.c.bf16 %v858_v60, %v850_v59  ;;  %v5413_v9 = vpack.c.bf16 %v860_v2, %v852_v0  ;;  %v924_v56 = vld [vmem:[#allocation16 + $0xd50] sm:$0xff]  ;;  %v933_v59 = vld [vmem:[#allocation16 + $0xd98] sm:$0xff] }
 0x1fe   :  { %v5287_v46 = vpack.c.bf16 %v875_v4, %v867_v3  ;;  %v941_v60 = vld [vmem:[#allocation16 + $0xdd8] sm:$0xff]  ;;  %v930_v0 = vld [vmem:[#allocation16 + $0xd80] sm:$0xff]  ;;  %v7951_v3 = vsub.s32 3, %v7920_v30 }
 0x1ff   :  { %v938_v2 = vld [vmem:[#allocation16 + $0xdc0] sm:$0xff]  ;;  %v5431_v5 = vpack.c.bf16 %v941_v60, %v933_v59  ;;  %v1005_v59 = vld [vmem:[#allocation16 + $0xfd8] sm:$0xff]  ;;  %v7967_v60 = vsub.s32 2, %v7920_v30 }
 0x200   :  { %5270 = vmatpush1.bf16.msra.mxu0 %v5269_v14  ;;  %5398 = vmatpush1.bf16.msra.mxu1 %v5397_v15  ;;  %v883_v14 = vld [vmem:[#allocation16 + $0xc08] sm:$0xff]  ;;  %v970_v27 = vld [vmem:[#allocation16 + $0xec0] sm:$0xff] }
 0x201   :  { %5272 = vmatprep.subr.bf16.mxu0 %v5271_v18  ;;  %5400 = vmatprep.subr.bf16.mxu1 %v5399_v61  ;;  %v891_v15 = vld [vmem:[#allocation16 + $0xc48] sm:$0xff]  ;;  %v5289_v18 = vpack.c.bf16 %v874_v11, %v866_v10  ;;  %v5417_v61 = vpack.c.bf16 %v876_v13, %v868_v53  ;;  %v949_v11 = vld [vmem:[#allocation16 + $0xe18] sm:$0xff]  ;;  %v946_v13 = vld [vmem:[#allocation16 + $0xe00] sm:$0xff]  ;;  %v5313_v44 = vpack.c.bf16 %v970_v27, %v962_v26 }
 0x202   :  { %v5291_v21 = vpack.c.bf16 %v891_v15, %v883_v14  ;;  %v955_v10 = vld [vmem:[#allocation16 + $0xe48] sm:$0xff]  ;;  %v954_v14 = vld [vmem:[#allocation16 + $0xe40] sm:$0xff]  ;;  %v7955_v15 = vrot.slane %v7925_v33, %v7951_v3 }
 0x203   :  { %v518_v27 = vld [vmem:[#allocation16 + $0xa0] sm:$0xff] }
 0x204   :  { %5274 = vmatpush1.bf16.msra.mxu0 %v5273_v24  ;;  %5402 = vmatpush1.bf16.msra.mxu1 %v5401_v25  ;;  %v899_v24 = vld [vmem:[#allocation16 + $0xc88] sm:$0xff] }
 0x205   :  { %5276 = vmatprep.subr.bf16.mxu0 %v5275_v28  ;;  %5404 = vmatprep.subr.bf16.mxu1 %v5403_v29  ;;  %v907_v25 = vld [vmem:[#allocation16 + $0xcc8] sm:$0xff]  ;;  %v5293_v28 = vpack.c.bf16 %v890_v20, %v882_v19  ;;  %v5421_v29 = vpack.c.bf16 %v892_v32, %v884_v23 }
 0x206   :  { %v5295_v37 = vpack.c.bf16 %v907_v25, %v899_v24  ;;  %v963_v19 = vld [vmem:[#allocation16 + $0xe88] sm:$0xff]  ;;  %v5309_v24 = vpack.c.bf16 %v954_v14, %v946_v13  ;;  %v502_v14 = vld [vmem:[#allocation16 + $0x20] sm:$0xff] }
 0x207   :  { %v971_v20 = vld [vmem:[#allocation16 + $0xec8] sm:$0xff] }
 0x208   :  { %5278 = vmatpush1.bf16.msra.mxu0 %v5277_v41  ;;  %5406 = vmatpush1.bf16.msra.mxu1 %v5405_v42  ;;  %v915_v41 = vld [vmem:[#allocation16 + $0xd08] sm:$0xff] }
 0x209   :  { %5280 = vmatprep.subr.bf16.mxu0 %v5279_v45  ;;  %5408 = vmatprep.subr.bf16.mxu1 %v5407_v47  ;;  %v923_v42 = vld [vmem:[#allocation16 + $0xd48] sm:$0xff]  ;;  %v5297_v45 = vpack.c.bf16 %v906_v36, %v898_v35  ;;  %v5425_v47 = vpack.c.bf16 %v908_v40, %v900_v39  ;;  %v964_v36 = vld [vmem:[#allocation16 + $0xe90] sm:$0xff]  ;;  %v981_v40 = vld [vmem:[#allocation16 + $0xf18] sm:$0xff] }
 0x20a   :  { %v5299_v51 = vpack.c.bf16 %v923_v42, %v915_v41  ;;  %v987_v39 = vld [vmem:[#allocation16 + $0xf48] sm:$0xff]  ;;  %v989_v41 = vld [vmem:[#allocation16 + $0xf58] sm:$0xff] }
 0x20c   :  { %5282 = vmatpush1.bf16.msra.mxu0 %v5281_v57  ;;  %5410 = vmatpush1.bf16.msra.mxu1 %v5409_v58  ;;  %v931_v57 = vld [vmem:[#allocation16 + $0xd88] sm:$0xff] }
 0x20d   :  { %5284 = vmatprep.subr.bf16.mxu0 %v5283_v62  ;;  %5412 = vmatprep.subr.bf16.mxu1 %v5411_v63  ;;  %v939_v58 = vld [vmem:[#allocation16 + $0xdc8] sm:$0xff]  ;;  %v5301_v62 = vpack.c.bf16 %v922_v50, %v914_v49  ;;  %v5429_v63 = vpack.c.bf16 %v924_v56, %v916_v55  ;;  %v986_v49 = vld [vmem:[#allocation16 + $0xf40] sm:$0xff]  ;;  %v988_v55 = vld [vmem:[#allocation16 + $0xf50] sm:$0xff] }
 0x20e   :  { %v5303_v4 = vpack.c.bf16 %v939_v58, %v931_v57  ;;  %v995_v56 = vld [vmem:[#allocation16 + $0xf88] sm:$0xff]  ;;  %v997_v58 = vld [vmem:[#allocation16 + $0xf98] sm:$0xff] }
 0x20f   :  { %v1003_v57 = vld [vmem:[#allocation16 + $0xfc8] sm:$0xff] }
 0x210   :  { %5286 = vmatpush1.bf16.msra.mxu0 %v5285_v8  ;;  %5414 = vmatpush1.bf16.msra.mxu1 %v5413_v9  ;;  %v940_v8 = vld [vmem:[#allocation16 + $0xdd0] sm:$0xff]  ;;  %v947_v9 = vld [vmem:[#allocation16 + $0xe08] sm:$0xff] }
 0x211   :  { %5288 = vmatprep.subr.bf16.mxu0 %v5287_v46  ;;  %5416 = vmatprep.subr.bf16.mxu1 %v5415_v12  ;;  %v957_v46 = vld [vmem:[#allocation16 + $0xe58] sm:$0xff]  ;;  %v5305_v12 = vpack.c.bf16 %v938_v2, %v930_v0  ;;  %v5433_v53 = vpack.c.bf16 %v940_v8, %v932_v6  ;;  %v5307_v16 = vpack.c.bf16 %v955_v10, %v947_v9  ;;  %v994_v0 = vld [vmem:[#allocation16 + $0xf80] sm:$0xff]  ;;  %v996_v6 = vld [vmem:[#allocation16 + $0xf90] sm:$0xff] }
 0x212   :  { %v5435_v17 = vpack.c.bf16 %v957_v46, %v949_v11  ;;  %v1002_v2 = vld [vmem:[#allocation16 + $0xfc0] sm:$0xff]  ;;  %v1004_v8 = vld [vmem:[#allocation16 + $0xfd0] sm:$0xff]  ;;  %v503_v9 = vld [vmem:[#allocation16 + $0x28] sm:$0xff] }
 0x213   :  { %v511_v10 = vld [vmem:[#allocation16 + $0x68] sm:$0xff]  ;;  %v505_v11 = vld [vmem:[#allocation16 + $0x38] sm:$0xff]  ;;  %v5449_v13 = vpack.c.bf16 %v1004_v8, %v996_v6 }
 0x214   :  { %5290 = vmatpush1.bf16.msra.mxu0 %v5289_v18  ;;  %5418 = vmatpush1.bf16.msra.mxu1 %v5417_v61  ;;  %v948_v18 = vld [vmem:[#allocation16 + $0xe10] sm:$0xff]  ;;  %v513_v46 = vld [vmem:[#allocation16 + $0x78] sm:$0xff]  ;;  %v567_v6 = vld [vmem:[#allocation16 + $0x228] sm:$0xff] }
 0x215   :  { %5292 = vmatprep.subr.bf16.mxu0 %v5291_v21  ;;  %5420 = vmatprep.subr.bf16.mxu1 %v5419_v22  ;;  %v956_v61 = vld [vmem:[#allocation16 + $0xe50] sm:$0xff]  ;;  %v965_v21 = vld [vmem:[#allocation16 + $0xe98] sm:$0xff]  ;;  %v575_v8 = vld [vmem:[#allocation16 + $0x268] sm:$0xff] }
 0x216   :  { %v973_v22 = vld [vmem:[#allocation16 + $0xed8] sm:$0xff]  ;;  %v5437_v25 = vpack.c.bf16 %v956_v61, %v948_v18  ;;  %v510_v18 = vld [vmem:[#allocation16 + $0x60] sm:$0xff]  ;;  %v504_v61 = vld [vmem:[#allocation16 + $0x30] sm:$0xff] }
 0x217   :  { %v5439_v35 = vpack.c.bf16 %v973_v22, %v965_v21  ;;  %v527_v22 = vld [vmem:[#allocation16 + $0xe8] sm:$0xff] }
 0x218   :  { %5294 = vmatpush1.bf16.msra.mxu0 %v5293_v28  ;;  %5422 = vmatpush1.bf16.msra.mxu1 %v5421_v29  ;;  %v5311_v29 = vpack.c.bf16 %v971_v20, %v963_v19  ;;  %v512_v19 = vld [vmem:[#allocation16 + $0x70] sm:$0xff]  ;;  %v519_v20 = vld [vmem:[#allocation16 + $0xa8] sm:$0xff] }
 0x219   :  { %5296 = vmatprep.subr.bf16.mxu0 %v5295_v37  ;;  %5424 = vmatprep.subr.bf16.mxu1 %v5423_v38  ;;  %v972_v37 = vld [vmem:[#allocation16 + $0xed0] sm:$0xff]  ;;  %v979_v38 = vld [vmem:[#allocation16 + $0xf08] sm:$0xff] }
 0x21a   :  { %v5315_v50 = vpack.c.bf16 %v987_v39, %v979_v38  ;;  %v528_v38 = vld [vmem:[#allocation16 + $0xf0] sm:$0xff] }
 0x21c   :  { %5298 = vmatpush1.bf16.msra.mxu0 %v5297_v45  ;;  %5426 = vmatpush1.bf16.msra.mxu1 %v5425_v47  ;;  %v5441_v45 = vpack.c.bf16 %v972_v37, %v964_v36  ;;  %v978_v47 = vld [vmem:[#allocation16 + $0xf00] sm:$0xff]  ;;  %v520_v37 = vld [vmem:[#allocation16 + $0xb0] sm:$0xff] }
 0x21d   :  { %5300 = vmatprep.subr.bf16.mxu0 %v5299_v51  ;;  %5428 = vmatprep.subr.bf16.mxu1 %v5427_v52  ;;  %v5443_v51 = vpack.c.bf16 %v989_v41, %v981_v40  ;;  %v980_v52 = vld [vmem:[#allocation16 + $0xf10] sm:$0xff]  ;;  %v543_v40 = vld [vmem:[#allocation16 + $0x168] sm:$0xff]  ;;  %v537_v41 = vld [vmem:[#allocation16 + $0x138] sm:$0xff] }
 0x220   :  { %5302 = vmatpush1.bf16.msra.mxu0 %v5301_v62  ;;  %5430 = vmatpush1.bf16.msra.mxu1 %v5429_v63  ;;  %v5317_v62 = vpack.c.bf16 %v986_v49, %v978_v47  ;;  %v5445_v63 = vpack.c.bf16 %v988_v55, %v980_v52  ;;  %v542_v47 = vld [vmem:[#allocation16 + $0x160] sm:$0xff]  ;;  %v536_v49 = vld [vmem:[#allocation16 + $0x130] sm:$0xff]  ;;  %v551_v52 = vld [vmem:[#allocation16 + $0x1a8] sm:$0xff] }
 0x221   :  { %5304 = vmatprep.subr.bf16.mxu0 %v5303_v4  ;;  %5432 = vmatprep.subr.bf16.mxu1 %v5431_v5  ;;  %v5319_v4 = vpack.c.bf16 %v1003_v57, %v995_v56  ;;  %v5447_v5 = vpack.c.bf16 %v1005_v59, %v997_v58  ;;  %v559_v55 = vld [vmem:[#allocation16 + $0x1e8] sm:$0xff]  ;;  %v553_v56 = vld [vmem:[#allocation16 + $0x1b8] sm:$0xff] }
 0x222   :  { %v7957_v23 = vpop.f32.mrb[4].mxu1  ;;  %v561_v57 = vld [vmem:[#allocation16 + $0x1f8] sm:$0xff] }
 0x223   :  { %v489_v32 = vpop.f32.mrb[5].mxu1 }
 0x224   :  { %5306 = vmatpush1.bf16.msra.mxu0 %v5305_v12  ;;  %5434 = vmatpush1.bf16.msra.mxu1 %v5433_v53  ;;  %v7960_v28 = vadd.f32 %v489_v32, %v7955_v15  ;;  %v328_v12 = vrot.slane %v7925_v33, %v7967_v60  ;;  %v5321_v53 = vpack.c.bf16 %v1002_v2, %v994_v0  ;;  %v521_v32 = vld [vmem:[#allocation16 + $0xb8] sm:$0xff]  ;;  %v558_v0 = vld [vmem:[#allocation16 + $0x1e0] sm:$0xff]  ;;  %v552_v2 = vld [vmem:[#allocation16 + $0x1b0] sm:$0xff] }
 0x225   :  { %5308 = vmatprep.subr.bf16.mxu0 %v5307_v16  ;;  %5436 = vmatprep.subr.bf16.mxu1 %v5435_v17  ;;  %v5451_v16 = vpack.c.bf16 %v511_v10, %v503_v9  ;;  %v5579_v17 = vpack.c.bf16 %v513_v46, %v505_v11  ;;  %v5453_v33 = vpack.c.bf16 %v510_v18, %v502_v14  ;;  %v569_v9 = vld [vmem:[#allocation16 + $0x238] sm:$0xff]  ;;  %v591_v18 = vld [vmem:[#allocation16 + $0x2e8] sm:$0xff] }
 0x226   :  { %v7962_v42 = vpop.f32.mrb[6].mxu1  ;;  %1193 = vmatprep.mubr.f32.mxu0 %v7960_v28  ;;  %1347 = vmatprep.mubr.f32.mxu1 %v7960_v28  ;;  %v7972_v21 = vadd.f32 %v7957_v23, %v328_v12  ;;  %v535_v23 = vld [vmem:[#allocation16 + $0x128] sm:$0xff]  ;;  %v577_v10 = vld [vmem:[#allocation16 + $0x278] sm:$0xff] }
 0x227   :  { %v495_v43 = vpop.f32.mrb[7].mxu1  ;;  %v7978_v39 = vadd.f32 %v7962_v42, %v328_v12  ;;  %v5459_v42 = vpack.c.bf16 %v543_v40, %v535_v23  ;;  %v5467_v12 = vpack.c.bf16 %v575_v8, %v567_v6  ;;  %v5595_v14 = vpack.c.bf16 %v577_v10, %v569_v9  ;;  %v630_v10 = vld [vmem:[#allocation16 + $0x420] sm:$0xff] }
 0x228   :  { %5310 = vmatpush1.bf16.msra.mxu0 %v5309_v24  ;;  %5438 = vmatpush1.bf16.msra.mxu1 %v5437_v25  ;;  %v529_v24 = vld [vmem:[#allocation16 + $0xf8] sm:$0xff]  ;;  %v5581_v25 = vpack.c.bf16 %v512_v19, %v504_v61  ;;  %v7975_v26 = vadd.f32 %v495_v43, %v7955_v15 }
 0x229   :  { %5312 = vmatprep.subr.bf16.mxu0 %v5311_v29  ;;  %5440 = vmatprep.subr.bf16.mxu1 %v5439_v35  ;;  %v526_v29 = vld [vmem:[#allocation16 + $0xe0] sm:$0xff]  ;;  %v5455_v35 = vpack.c.bf16 %v527_v22, %v519_v20  ;;  %v5583_v36 = vpack.c.bf16 %v529_v24, %v521_v32  ;;  %v545_v15 = vld [vmem:[#allocation16 + $0x178] sm:$0xff] }
 0x22a   :  { %v5457_v43 = vpack.c.bf16 %v526_v29, %v518_v27  ;;  %v585_v61 = vld [vmem:[#allocation16 + $0x2b8] sm:$0xff]  ;;  %v582_v24 = vld [vmem:[#allocation16 + $0x2a0] sm:$0xff]  ;;  %v592_v29 = vld [vmem:[#allocation16 + $0x2f0] sm:$0xff] }
 0x22b   :  { %v593_v19 = vld [vmem:[#allocation16 + $0x2f8] sm:$0xff] }
 0x22c   :  { %5314 = vmatpush1.bf16.msra.mxu0 %v5313_v44  ;;  %5442 = vmatpush1.bf16.msra.mxu1 %v5441_v45  ;;  %v5585_v44 = vpack.c.bf16 %v528_v38, %v520_v37  ;;  %v534_v45 = vld [vmem:[#allocation16 + $0x120] sm:$0xff]  ;;  %v5599_v27 = vpack.c.bf16 %v593_v19, %v585_v61  ;;  %v601_v37 = vld [vmem:[#allocation16 + $0x338] sm:$0xff] }
 0x22d   :  { %5316 = vmatprep.subr.bf16.mxu0 %v5315_v50  ;;  %5444 = vmatprep.subr.bf16.mxu1 %v5443_v51  ;;  %v5587_v50 = vpack.c.bf16 %v545_v15, %v537_v41  ;;  %v544_v51 = vld [vmem:[#allocation16 + $0x170] sm:$0xff]  ;;  %v5461_v58 = vpack.c.bf16 %v542_v47, %v534_v45  ;;  %v609_v38 = vld [vmem:[#allocation16 + $0x378] sm:$0xff]  ;;  %v598_v15 = vld [vmem:[#allocation16 + $0x320] sm:$0xff] }
 0x22e   :  { %v5589_v59 = vpack.c.bf16 %v544_v51, %v536_v49  ;;  %v5603_v45 = vpack.c.bf16 %v609_v38, %v601_v37  ;;  %v608_v47 = vld [vmem:[#allocation16 + $0x370] sm:$0xff]  ;;  %v615_v49 = vld [vmem:[#allocation16 + $0x3a8] sm:$0xff]  ;;  %v625_v51 = vld [vmem:[#allocation16 + $0x3f8] sm:$0xff] }
 0x22f   :  { %v646_v19 = vld [vmem:[#allocation16 + $0x4a0] sm:$0xff] }
 0x230   :  { %5318 = vmatpush1.bf16.msra.mxu0 %v5317_v62  ;;  %5446 = vmatpush1.bf16.msra.mxu1 %v5445_v63  ;;  %v5463_v62 = vpack.c.bf16 %v559_v55, %v551_v52  ;;  %v550_v63 = vld [vmem:[#allocation16 + $0x1a0] sm:$0xff] }
 0x231   :  { %5320 = vmatprep.subr.bf16.mxu0 %v5319_v4  ;;  %5448 = vmatprep.subr.bf16.mxu1 %v5447_v5  ;;  %v5591_v4 = vpack.c.bf16 %v561_v57, %v553_v56  ;;  %v560_v5 = vld [vmem:[#allocation16 + $0x1f0] sm:$0xff]  ;;  %v5465_v11 = vpack.c.bf16 %v558_v0, %v550_v63  ;;  %v614_v57 = vld [vmem:[#allocation16 + $0x3a0] sm:$0xff]  ;;  %v631_v0 = vld [vmem:[#allocation16 + $0x428] sm:$0xff] }
 0x232   :  { %v5593_v46 = vpack.c.bf16 %v560_v5, %v552_v2  ;;  %v624_v63 = vld [vmem:[#allocation16 + $0x3f0] sm:$0xff]  ;;  %v639_v2 = vld [vmem:[#allocation16 + $0x468] sm:$0xff]  ;;  %v641_v5 = vld [vmem:[#allocation16 + $0x478] sm:$0xff] }
 0x233   :  { %v5483_v9 = vpack.c.bf16 %v639_v2, %v631_v0  ;;  %v662_v38 = vld [vmem:[#allocation16 + $0x520] sm:$0xff] }
 0x234   :  { %5322 = vmatpush1.bf16.msra.mxu0 %v5321_v53  ;;  %5450 = vmatpush1.bf16.msra.mxu1 %v5449_v13  ;;  %v574_v53 = vld [vmem:[#allocation16 + $0x260] sm:$0xff]  ;;  %v568_v13 = vld [vmem:[#allocation16 + $0x230] sm:$0xff] }
 0x235   :  { %5452 = vmatprep.subr.bf16.mxu0 %v5451_v16  ;;  %5580 = vmatprep.subr.bf16.mxu1 %v5579_v17  ;;  %v576_v16 = vld [vmem:[#allocation16 + $0x270] sm:$0xff]  ;;  %v583_v17 = vld [vmem:[#allocation16 + $0x2a8] sm:$0xff] }
 0x236   :  { %v5597_v22 = vpack.c.bf16 %v576_v16, %v568_v13  ;;  %v5471_v32 = vpack.c.bf16 %v591_v18, %v583_v17  ;;  %v655_v13 = vld [vmem:[#allocation16 + $0x4e8] sm:$0xff]  ;;  %v657_v16 = vld [vmem:[#allocation16 + $0x4f8] sm:$0xff] }
 0x237   :  { %1194 = vmatmul.mubr.f32.vlgmr.msra.gmra.mrb[0].mxu0 %v7972_v21  ;;  %1348 = vmatmul.mubr.f32.vlgmr.msra.gmra.mrb[8].mxu1 %v7972_v21 }
 0x238   :  { %5454 = vmatpush1.bf16.msra.mxu0 %v5453_v33  ;;  %5582 = vmatpush1.bf16.msra.mxu1 %v5581_v25  ;;  %v590_v33 = vld [vmem:[#allocation16 + $0x2e0] sm:$0xff]  ;;  %v584_v25 = vld [vmem:[#allocation16 + $0x2b0] sm:$0xff] }
 0x239   :  { %1199 = vmatprep.mubr.f32.mxu0 %v7975_v26  ;;  %1353 = vmatprep.mubr.f32.mxu1 %v7975_v26  ;;  %v5473_v23 = vpack.c.bf16 %v590_v33, %v582_v24  ;;  %v5601_v40 = vpack.c.bf16 %v592_v29, %v584_v25  ;;  %v656_v24 = vld [vmem:[#allocation16 + $0x4f0] sm:$0xff]  ;;  %v663_v33 = vld [vmem:[#allocation16 + $0x528] sm:$0xff]  ;;  %v673_v29 = vld [vmem:[#allocation16 + $0x578] sm:$0xff] }
 0x23a   :  { %5456 = vmatprep.subr.bf16.mxu0 %v5455_v35  ;;  %5584 = vmatprep.subr.bf16.mxu1 %v5583_v36  ;;  %v599_v35 = vld [vmem:[#allocation16 + $0x328] sm:$0xff] }
 0x23b   :  { %1200 = vmatmul.mubr.f32.gmra.mrb[2].mxu0 %v7978_v39  ;;  %1354 = vmatmul.mubr.f32.gmra.mrb[10].mxu1 %v7978_v39  ;;  %v607_v36 = vld [vmem:[#allocation16 + $0x368] sm:$0xff] }
 0x23c   :  { %5458 = vmatpush1.bf16.msra.mxu0 %v5457_v43  ;;  %1424 = vmatprep.mubr.f32.mxu0 %v7934_v48  ;;  %v5475_v41 = vpack.c.bf16 %v607_v36, %v599_v35  ;;  %v606_v43 = vld [vmem:[#allocation16 + $0x360] sm:$0xff]  ;;  %v671_v25 = vld [vmem:[#allocation16 + $0x568] sm:$0xff] }
 0x23d   :  { %5586 = vmatpush1.bf16.msra.mxu1 %v5585_v44  ;;  %1578 = vmatprep.mubr.f32.mxu1 %v7934_v48  ;;  %v566_v48 = vld [vmem:[#allocation16 + $0x220] sm:$0xff]  ;;  %v600_v44 = vld [vmem:[#allocation16 + $0x330] sm:$0xff]  ;;  %v5477_v52 = vpack.c.bf16 %v606_v43, %v598_v15  ;;  %v5491_v37 = vpack.c.bf16 %v671_v25, %v663_v33  ;;  %v679_v43 = vld [vmem:[#allocation16 + $0x5a8] sm:$0xff] }
 0x23e   :  { %5460 = vmatprep.subr.bf16.mxu0 %v5459_v42  ;;  %5588 = vmatprep.subr.bf16.mxu1 %v5587_v50  ;;  %v5469_v20 = vpack.c.bf16 %v574_v53, %v566_v48  ;;  %v623_v42 = vld [vmem:[#allocation16 + $0x3e8] sm:$0xff]  ;;  %v617_v50 = vld [vmem:[#allocation16 + $0x3b8] sm:$0xff]  ;;  %v5605_v55 = vpack.c.bf16 %v608_v47, %v600_v44  ;;  %v640_v48 = vld [vmem:[#allocation16 + $0x470] sm:$0xff] }
 0x23f   :  { %v5479_v56 = vpack.c.bf16 %v623_v42, %v615_v49  ;;  %v647_v53 = vld [vmem:[#allocation16 + $0x4a8] sm:$0xff]  ;;  %v672_v15 = vld [vmem:[#allocation16 + $0x570] sm:$0xff]  ;;  %v689_v47 = vld [vmem:[#allocation16 + $0x5f8] sm:$0xff] }
 0x240   :  { %5462 = vmatpush1.bf16.msra.mxu0 %v5461_v58  ;;  %v622_v58 = vld [vmem:[#allocation16 + $0x3e0] sm:$0xff]  ;;  %v5487_v61 = vpack.c.bf16 %v655_v13, %v647_v53  ;;  %v687_v44 = vld [vmem:[#allocation16 + $0x5e8] sm:$0xff] }
 0x241   :  { %5590 = vmatpush1.bf16.msra.mxu1 %v5589_v59  ;;  %5464 = vmatprep.subr.bf16.mxu0 %v5463_v62  ;;  %v616_v59 = vld [vmem:[#allocation16 + $0x3b0] sm:$0xff]  ;;  %v5607_v62 = vpack.c.bf16 %v625_v51, %v617_v50  ;;  %v5481_v6 = vpack.c.bf16 %v622_v58, %v614_v57  ;;  %v5495_v50 = vpack.c.bf16 %v687_v44, %v679_v43  ;;  %v678_v51 = vld [vmem:[#allocation16 + $0x5a0] sm:$0xff]  ;;  %v695_v58 = vld [vmem:[#allocation16 + $0x628] sm:$0xff] }
 0x242   :  { %5592 = vmatprep.subr.bf16.mxu1 %v5591_v4  ;;  %v633_v4 = vld [vmem:[#allocation16 + $0x438] sm:$0xff]  ;;  %v5609_v8 = vpack.c.bf16 %v624_v63, %v616_v59  ;;  %v688_v57 = vld [vmem:[#allocation16 + $0x5f0] sm:$0xff]  ;;  %v703_v59 = vld [vmem:[#allocation16 + $0x668] sm:$0xff] }
 0x243   :  { %v705_v63 = vld [vmem:[#allocation16 + $0x678] sm:$0xff] }
 0x244   :  { %5466 = vmatpush1.bf16.msra.mxu0 %v5465_v11  ;;  %v638_v11 = vld [vmem:[#allocation16 + $0x460] sm:$0xff] }
 0x245   :  { %5594 = vmatpush1.bf16.msra.mxu1 %v5593_v46  ;;  %5468 = vmatprep.subr.bf16.mxu0 %v5467_v12  ;;  %v632_v46 = vld [vmem:[#allocation16 + $0x430] sm:$0xff]  ;;  %v5611_v12 = vpack.c.bf16 %v641_v5, %v633_v4  ;;  %v5485_v17 = vpack.c.bf16 %v638_v11, %v630_v10  ;;  %v5499_v4 = vpack.c.bf16 %v703_v59, %v695_v58  ;;  %v694_v5 = vld [vmem:[#allocation16 + $0x620] sm:$0xff]  ;;  %v711_v11 = vld [vmem:[#allocation16 + $0x6a8] sm:$0xff] }
 0x246   :  { %5596 = vmatprep.subr.bf16.mxu1 %v5595_v14  ;;  %v649_v14 = vld [vmem:[#allocation16 + $0x4b8] sm:$0xff]  ;;  %v5613_v18 = vpack.c.bf16 %v640_v48, %v632_v46  ;;  %v704_v10 = vld [vmem:[#allocation16 + $0x670] sm:$0xff]  ;;  %v719_v46 = vld [vmem:[#allocation16 + $0x6e8] sm:$0xff] }
 0x247   :  { %v721_v48 = vld [vmem:[#allocation16 + $0x6f8] sm:$0xff] }
 0x248   :  { %5470 = vmatpush1.bf16.msra.mxu0 %v5469_v20  ;;  %v654_v20 = vld [vmem:[#allocation16 + $0x4e0] sm:$0xff] }
 0x249   :  { %5598 = vmatpush1.bf16.msra.mxu1 %v5597_v22  ;;  %5472 = vmatprep.subr.bf16.mxu0 %v5471_v32  ;;  %v648_v22 = vld [vmem:[#allocation16 + $0x4b0] sm:$0xff]  ;;  %v5615_v32 = vpack.c.bf16 %v657_v16, %v649_v14  ;;  %v5489_v35 = vpack.c.bf16 %v654_v20, %v646_v19  ;;  %v5503_v14 = vpack.c.bf16 %v719_v46, %v711_v11  ;;  %v710_v16 = vld [vmem:[#allocation16 + $0x6a0] sm:$0xff]  ;;  %v727_v20 = vld [vmem:[#allocation16 + $0x728] sm:$0xff] }
 0x24a   :  { %5600 = vmatprep.subr.bf16.mxu1 %v5599_v27  ;;  %v665_v27 = vld [vmem:[#allocation16 + $0x538] sm:$0xff]  ;;  %v5617_v36 = vpack.c.bf16 %v656_v24, %v648_v22  ;;  %v720_v19 = vld [vmem:[#allocation16 + $0x6f0] sm:$0xff]  ;;  %v735_v22 = vld [vmem:[#allocation16 + $0x768] sm:$0xff] }
 0x24b   :  { %v737_v24 = vld [vmem:[#allocation16 + $0x778] sm:$0xff] }
 0x24c   :  { %5474 = vmatpush1.bf16.msra.mxu0 %v5473_v23  ;;  %v670_v23 = vld [vmem:[#allocation16 + $0x560] sm:$0xff] }
 0x24d   :  { %5602 = vmatpush1.bf16.msra.mxu1 %v5601_v40  ;;  %5476 = vmatprep.subr.bf16.mxu0 %v5475_v41  ;;  %v664_v40 = vld [vmem:[#allocation16 + $0x530] sm:$0xff]  ;;  %v5619_v41 = vpack.c.bf16 %v673_v29, %v665_v27  ;;  %v5493_v49 = vpack.c.bf16 %v670_v23, %v662_v38  ;;  %v5507_v27 = vpack.c.bf16 %v735_v22, %v727_v20  ;;  %v726_v29 = vld [vmem:[#allocation16 + $0x720] sm:$0xff]  ;;  %v743_v23 = vld [vmem:[#allocation16 + $0x7a8] sm:$0xff] }
 0x24e   :  { %5604 = vmatprep.subr.bf16.mxu1 %v5603_v45  ;;  %v681_v45 = vld [vmem:[#allocation16 + $0x5b8] sm:$0xff]  ;;  %v5621_v42 = vpack.c.bf16 %v672_v15, %v664_v40  ;;  %v736_v38 = vld [vmem:[#allocation16 + $0x770] sm:$0xff]  ;;  %v751_v40 = vld [vmem:[#allocation16 + $0x7e8] sm:$0xff] }
 0x24f   :  { %v753_v15 = vld [vmem:[#allocation16 + $0x7f8] sm:$0xff] }
 0x250   :  { %5478 = vmatpush1.bf16.msra.mxu0 %v5477_v52  ;;  %v686_v52 = vld [vmem:[#allocation16 + $0x5e0] sm:$0xff] }
 0x251   :  { %5606 = vmatpush1.bf16.msra.mxu1 %v5605_v55  ;;  %5480 = vmatprep.subr.bf16.mxu0 %v5479_v56  ;;  %v680_v55 = vld [vmem:[#allocation16 + $0x5b0] sm:$0xff]  ;;  %v5623_v56 = vpack.c.bf16 %v689_v47, %v681_v45  ;;  %v5497_v0 = vpack.c.bf16 %v686_v52, %v678_v51  ;;  %v5511_v45 = vpack.c.bf16 %v751_v40, %v743_v23  ;;  %v742_v47 = vld [vmem:[#allocation16 + $0x7a0] sm:$0xff]  ;;  %v759_v52 = vld [vmem:[#allocation16 + $0x828] sm:$0xff] }
 0x252   :  { %5608 = vmatprep.subr.bf16.mxu1 %v5607_v62  ;;  %v697_v62 = vld [vmem:[#allocation16 + $0x638] sm:$0xff]  ;;  %v5625_v2 = vpack.c.bf16 %v688_v57, %v680_v55  ;;  %v752_v51 = vld [vmem:[#allocation16 + $0x7f0] sm:$0xff]  ;;  %v767_v55 = vld [vmem:[#allocation16 + $0x868] sm:$0xff] }
 0x253   :  { %v769_v57 = vld [vmem:[#allocation16 + $0x878] sm:$0xff]  ;;  %v806_v40 = vld [vmem:[#allocation16 + $0x9a0] sm:$0xff] }
 0x254   :  { %5482 = vmatpush1.bf16.msra.mxu0 %v5481_v6  ;;  %v702_v6 = vld [vmem:[#allocation16 + $0x660] sm:$0xff] }
 0x255   :  { %5610 = vmatpush1.bf16.msra.mxu1 %v5609_v8  ;;  %5484 = vmatprep.subr.bf16.mxu0 %v5483_v9  ;;  %v696_v8 = vld [vmem:[#allocation16 + $0x630] sm:$0xff]  ;;  %v5627_v9 = vpack.c.bf16 %v705_v63, %v697_v62  ;;  %v5501_v53 = vpack.c.bf16 %v702_v6, %v694_v5  ;;  %v5515_v62 = vpack.c.bf16 %v767_v55, %v759_v52  ;;  %v775_v6 = vld [vmem:[#allocation16 + $0x8a8] sm:$0xff]  ;;  %v830_v52 = vld [vmem:[#allocation16 + $0xa60] sm:$0xff] }
 0x256   :  { %5612 = vmatprep.subr.bf16.mxu1 %v5611_v12  ;;  %v713_v12 = vld [vmem:[#allocation16 + $0x6b8] sm:$0xff]  ;;  %v5629_v13 = vpack.c.bf16 %v704_v10, %v696_v8  ;;  %v768_v5 = vld [vmem:[#allocation16 + $0x870] sm:$0xff]  ;;  %v783_v8 = vld [vmem:[#allocation16 + $0x8e8] sm:$0xff] }
 0x257   :  { %v785_v10 = vld [vmem:[#allocation16 + $0x8f8] sm:$0xff]  ;;  %v824_v55 = vld [vmem:[#allocation16 + $0xa30] sm:$0xff] }
 0x258   :  { %5486 = vmatpush1.bf16.msra.mxu0 %v5485_v17  ;;  %v718_v17 = vld [vmem:[#allocation16 + $0x6e0] sm:$0xff] }
 0x259   :  { %5614 = vmatpush1.bf16.msra.mxu1 %v5613_v18  ;;  %5488 = vmatprep.subr.bf16.mxu0 %v5487_v61  ;;  %v712_v18 = vld [vmem:[#allocation16 + $0x6b0] sm:$0xff]  ;;  %v5631_v61 = vpack.c.bf16 %v721_v48, %v713_v12  ;;  %v5505_v33 = vpack.c.bf16 %v718_v17, %v710_v16  ;;  %v5519_v12 = vpack.c.bf16 %v783_v8, %v775_v6  ;;  %v774_v48 = vld [vmem:[#allocation16 + $0x8a0] sm:$0xff]  ;;  %v791_v17 = vld [vmem:[#allocation16 + $0x928] sm:$0xff] }
 0x25a   :  { %5616 = vmatprep.subr.bf16.mxu1 %v5615_v32  ;;  %v729_v32 = vld [vmem:[#allocation16 + $0x738] sm:$0xff]  ;;  %v5633_v25 = vpack.c.bf16 %v720_v19, %v712_v18  ;;  %v784_v16 = vld [vmem:[#allocation16 + $0x8f0] sm:$0xff]  ;;  %v799_v18 = vld [vmem:[#allocation16 + $0x968] sm:$0xff] }
 0x25b   :  { %v801_v19 = vld [vmem:[#allocation16 + $0x978] sm:$0xff]  ;;  %v846_v6 = vld [vmem:[#allocation16 + $0xae0] sm:$0xff]  ;;  %v840_v8 = vld [vmem:[#allocation16 + $0xab0] sm:$0xff] }
 0x25c   :  { %5490 = vmatpush1.bf16.msra.mxu0 %v5489_v35  ;;  %v734_v35 = vld [vmem:[#allocation16 + $0x760] sm:$0xff] }
 0x25d   :  { %5618 = vmatpush1.bf16.msra.mxu1 %v5617_v36  ;;  %5492 = vmatprep.subr.bf16.mxu0 %v5491_v37  ;;  %v728_v36 = vld [vmem:[#allocation16 + $0x730] sm:$0xff]  ;;  %v5635_v37 = vpack.c.bf16 %v737_v24, %v729_v32  ;;  %v5509_v43 = vpack.c.bf16 %v734_v35, %v726_v29  ;;  %v5523_v32 = vpack.c.bf16 %v799_v18, %v791_v17  ;;  %v790_v24 = vld [vmem:[#allocation16 + $0x920] sm:$0xff]  ;;  %v807_v29 = vld [vmem:[#allocation16 + $0x9a8] sm:$0xff] }
 0x25e   :  { %5620 = vmatprep.subr.bf16.mxu1 %v5619_v41  ;;  %v745_v41 = vld [vmem:[#allocation16 + $0x7b8] sm:$0xff]  ;;  %v5637_v44 = vpack.c.bf16 %v736_v38, %v728_v36  ;;  %v815_v35 = vld [vmem:[#allocation16 + $0x9e8] sm:$0xff]  ;;  %v862_v17 = vld [vmem:[#allocation16 + $0xb60] sm:$0xff] }
 0x25f   :  { %v817_v36 = vld [vmem:[#allocation16 + $0x9f8] sm:$0xff]  ;;  %v5527_v23 = vpack.c.bf16 %v815_v35, %v807_v29  ;;  %v856_v18 = vld [vmem:[#allocation16 + $0xb30] sm:$0xff]  ;;  %v878_v29 = vld [vmem:[#allocation16 + $0xbe0] sm:$0xff] }
 0x260   :  { %5494 = vmatpush1.bf16.msra.mxu0 %v5493_v49  ;;  %v750_v49 = vld [vmem:[#allocation16 + $0x7e0] sm:$0xff]  ;;  %v872_v35 = vld [vmem:[#allocation16 + $0xbb0] sm:$0xff] }
 0x261   :  { %5622 = vmatpush1.bf16.msra.mxu1 %v5621_v42  ;;  %5496 = vmatprep.subr.bf16.mxu0 %v5495_v50  ;;  %v744_v42 = vld [vmem:[#allocation16 + $0x7b0] sm:$0xff]  ;;  %v5639_v50 = vpack.c.bf16 %v753_v15, %v745_v41  ;;  %v5513_v58 = vpack.c.bf16 %v750_v49, %v742_v47  ;;  %v814_v41 = vld [vmem:[#allocation16 + $0x9e0] sm:$0xff]  ;;  %v825_v47 = vld [vmem:[#allocation16 + $0xa38] sm:$0xff] }
 0x262   :  { %5624 = vmatprep.subr.bf16.mxu1 %v5623_v56  ;;  %v761_v56 = vld [vmem:[#allocation16 + $0x838] sm:$0xff]  ;;  %v5641_v59 = vpack.c.bf16 %v752_v51, %v744_v42  ;;  %v808_v15 = vld [vmem:[#allocation16 + $0x9b0] sm:$0xff]  ;;  %v5529_v42 = vpack.c.bf16 %v814_v41, %v806_v40  ;;  %v822_v51 = vld [vmem:[#allocation16 + $0xa20] sm:$0xff] }
 0x263   :  { %v5643_v63 = vpack.c.bf16 %v769_v57, %v761_v56  ;;  %v833_v49 = vld [vmem:[#allocation16 + $0xa78] sm:$0xff]  ;;  %v832_v57 = vld [vmem:[#allocation16 + $0xa70] sm:$0xff] }
 0x264   :  { %5498 = vmatpush1.bf16.msra.mxu0 %v5497_v0  ;;  %v758_v0 = vld [vmem:[#allocation16 + $0x820] sm:$0xff]  ;;  %v5659_v56 = vpack.c.bf16 %v833_v49, %v825_v47  ;;  %v897_v40 = vld [vmem:[#allocation16 + $0xc78] sm:$0xff]  ;;  %v896_v49 = vld [vmem:[#allocation16 + $0xc70] sm:$0xff] }
 0x265   :  { %5626 = vmatpush1.bf16.msra.mxu1 %v5625_v2  ;;  %5500 = vmatprep.subr.bf16.mxu0 %v5499_v4  ;;  %v766_v2 = vld [vmem:[#allocation16 + $0x860] sm:$0xff]  ;;  %v760_v4 = vld [vmem:[#allocation16 + $0x830] sm:$0xff] }
 0x266   :  { %5628 = vmatprep.subr.bf16.mxu1 %v5627_v9  ;;  %v777_v9 = vld [vmem:[#allocation16 + $0x8b8] sm:$0xff]  ;;  %v5517_v11 = vpack.c.bf16 %v766_v2, %v758_v0  ;;  %v5645_v46 = vpack.c.bf16 %v768_v5, %v760_v4  ;;  %v5533_v0 = vpack.c.bf16 %v830_v52, %v822_v51  ;;  %v5661_v2 = vpack.c.bf16 %v832_v57, %v824_v55  ;;  %v838_v5 = vld [vmem:[#allocation16 + $0xaa0] sm:$0xff] }
 0x267   :  { %v913_v51 = vld [vmem:[#allocation16 + $0xcf8] sm:$0xff]  ;;  %v902_v57 = vld [vmem:[#allocation16 + $0xca0] sm:$0xff] }
 0x268   :  { %5502 = vmatpush1.bf16.msra.mxu0 %v5501_v53  ;;  %v782_v53 = vld [vmem:[#allocation16 + $0x8e0] sm:$0xff] }
 0x269   :  { %5630 = vmatpush1.bf16.msra.mxu1 %v5629_v13  ;;  %5504 = vmatprep.subr.bf16.mxu0 %v5503_v14  ;;  %v776_v13 = vld [vmem:[#allocation16 + $0x8b0] sm:$0xff]  ;;  %v5647_v14 = vpack.c.bf16 %v785_v10, %v777_v9  ;;  %v5521_v20 = vpack.c.bf16 %v782_v53, %v774_v48  ;;  %v865_v48 = vld [vmem:[#allocation16 + $0xb78] sm:$0xff]  ;;  %v5537_v53 = vpack.c.bf16 %v846_v6, %v838_v5 }
 0x26a   :  { %5632 = vmatprep.subr.bf16.mxu1 %v5631_v61  ;;  %v793_v61 = vld [vmem:[#allocation16 + $0x938] sm:$0xff]  ;;  %v5649_v22 = vpack.c.bf16 %v784_v16, %v776_v13  ;;  %v848_v10 = vld [vmem:[#allocation16 + $0xaf0] sm:$0xff]  ;;  %v854_v16 = vld [vmem:[#allocation16 + $0xb20] sm:$0xff] }
 0x26b   :  { %v5665_v13 = vpack.c.bf16 %v848_v10, %v840_v8  ;;  %v929_v5 = vld [vmem:[#allocation16 + $0xd78] sm:$0xff]  ;;  %v918_v10 = vld [vmem:[#allocation16 + $0xd20] sm:$0xff] }
 0x26c   :  { %5506 = vmatpush1.bf16.msra.mxu0 %v5505_v33  ;;  %v798_v33 = vld [vmem:[#allocation16 + $0x960] sm:$0xff] }
 0x26d   :  { %5634 = vmatpush1.bf16.msra.mxu1 %v5633_v25  ;;  %5508 = vmatprep.subr.bf16.mxu0 %v5507_v27  ;;  %v792_v25 = vld [vmem:[#allocation16 + $0x930] sm:$0xff]  ;;  %v5651_v27 = vpack.c.bf16 %v801_v19, %v793_v61 }
 0x26e   :  { %5636 = vmatprep.subr.bf16.mxu1 %v5635_v37  ;;  %v5525_v37 = vpack.c.bf16 %v798_v33, %v790_v24  ;;  %v864_v19 = vld [vmem:[#allocation16 + $0xb70] sm:$0xff]  ;;  %v881_v24 = vld [vmem:[#allocation16 + $0xbf8] sm:$0xff]  ;;  %v5541_v33 = vpack.c.bf16 %v862_v17, %v854_v16 }
 0x26f   :  { %v945_v16 = vld [vmem:[#allocation16 + $0xdf8] sm:$0xff] }
 0x270   :  { %5510 = vmatpush1.bf16.msra.mxu0 %v5509_v43 }
 0x271   :  { %5638 = vmatpush1.bf16.msra.mxu1 %v5637_v44  ;;  %5512 = vmatprep.subr.bf16.mxu0 %v5511_v45  ;;  %v816_v44 = vld [vmem:[#allocation16 + $0x9f0] sm:$0xff]  ;;  %v823_v45 = vld [vmem:[#allocation16 + $0xa28] sm:$0xff] }
 0x272   :  { %5640 = vmatprep.subr.bf16.mxu1 %v5639_v50 }
 0x274   :  { %5514 = vmatpush1.bf16.msra.mxu0 %v5513_v58  ;;  %v839_v58 = vld [vmem:[#allocation16 + $0xaa8] sm:$0xff] }
 0x275   :  { %5642 = vmatpush1.bf16.msra.mxu1 %v5641_v59  ;;  %5516 = vmatprep.subr.bf16.mxu0 %v5515_v62  ;;  %v847_v59 = vld [vmem:[#allocation16 + $0xae8] sm:$0xff]  ;;  %v841_v62 = vld [vmem:[#allocation16 + $0xab8] sm:$0xff] }
 0x276   :  { %5644 = vmatprep.subr.bf16.mxu1 %v5643_v63  ;;  %v849_v63 = vld [vmem:[#allocation16 + $0xaf8] sm:$0xff]  ;;  %v5535_v4 = vpack.c.bf16 %v847_v59, %v839_v58  ;;  %v910_v58 = vld [vmem:[#allocation16 + $0xce0] sm:$0xff]  ;;  %v904_v59 = vld [vmem:[#allocation16 + $0xcb0] sm:$0xff] }
 0x277   :  { %1425 = vmatmul.mubr.f32.vlgmr.msra.gmra.mrb[4].mxu0 %v7936_v54  ;;  %v5663_v9 = vpack.c.bf16 %v849_v63, %v841_v62  ;;  %v912_v63 = vld [vmem:[#allocation16 + $0xcf0] sm:$0xff]  ;;  %v5553_v6 = vpack.c.bf16 %v910_v58, %v902_v57  ;;  %v993_v57 = vld [vmem:[#allocation16 + $0xf78] sm:$0xff] }
 0x278   :  { %1579 = vmatmul.mubr.f32.vlgmr.msra.gmra.mrb[12].mxu1 %v7936_v54  ;;  %1430 = vmatprep.mubr.f32.mxu0 %v7944_v7  ;;  %v800_v54 = vld [vmem:[#allocation16 + $0x970] sm:$0xff]  ;;  %v5681_v8 = vpack.c.bf16 %v912_v63, %v904_v59  ;;  %v982_v63 = vld [vmem:[#allocation16 + $0xf20] sm:$0xff] }
 0x279   :  { %5518 = vmatpush1.bf16.msra.mxu0 %v5517_v11  ;;  %1584 = vmatprep.mubr.f32.mxu1 %v7944_v7  ;;  %v809_v7 = vld [vmem:[#allocation16 + $0x9b8] sm:$0xff]  ;;  %v5653_v38 = vpack.c.bf16 %v800_v54, %v792_v25  ;;  %v855_v11 = vld [vmem:[#allocation16 + $0xb28] sm:$0xff]  ;;  %v5669_v25 = vpack.c.bf16 %v864_v19, %v856_v18  ;;  %v870_v54 = vld [vmem:[#allocation16 + $0xba0] sm:$0xff] }
 0x27a   :  { %5646 = vmatpush1.bf16.msra.mxu1 %v5645_v46  ;;  %5520 = vmatprep.subr.bf16.mxu0 %v5519_v12  ;;  %v5655_v43 = vpack.c.bf16 %v817_v36, %v809_v7  ;;  %v863_v46 = vld [vmem:[#allocation16 + $0xb68] sm:$0xff]  ;;  %v857_v12 = vld [vmem:[#allocation16 + $0xb38] sm:$0xff]  ;;  %v880_v36 = vld [vmem:[#allocation16 + $0xbf0] sm:$0xff]  ;;  %v5545_v41 = vpack.c.bf16 %v878_v29, %v870_v54 }
 0x27b   :  { %1431 = vmatmul.mubr.f32.gmra.mrb[6].mxu0 %v7942_v1  ;;  %5648 = vmatprep.subr.bf16.mxu1 %v5647_v14  ;;  %v5539_v14 = vpack.c.bf16 %v863_v46, %v855_v11  ;;  %v5667_v61 = vpack.c.bf16 %v865_v48, %v857_v12  ;;  %v926_v11 = vld [vmem:[#allocation16 + $0xd60] sm:$0xff]  ;;  %v920_v46 = vld [vmem:[#allocation16 + $0xd30] sm:$0xff]  ;;  %v961_v54 = vld [vmem:[#allocation16 + $0xe78] sm:$0xff] }
 0x27c   :  { %1585 = vmatmul.mubr.f32.gmra.mrb[14].mxu1 %v7942_v1  ;;  %1501 = vmatprep.mubr.f32.mxu0 %v7960_v28  ;;  %v831_v1 = vld [vmem:[#allocation16 + $0xa68] sm:$0xff]  ;;  %v928_v48 = vld [vmem:[#allocation16 + $0xd70] sm:$0xff]  ;;  %v5557_v17 = vpack.c.bf16 %v926_v11, %v918_v10  ;;  %v934_v19 = vld [vmem:[#allocation16 + $0xda0] sm:$0xff] }
 0x27d   :  { %5522 = vmatpush1.bf16.msra.mxu0 %v5521_v20  ;;  %1655 = vmatprep.mubr.f32.mxu1 %v7960_v28  ;;  %v5657_v28 = vpack.c.bf16 %v816_v44, %v808_v15  ;;  %v5531_v50 = vpack.c.bf16 %v831_v1, %v823_v45  ;;  %v871_v20 = vld [vmem:[#allocation16 + $0xba8] sm:$0xff]  ;;  %v5673_v15 = vpack.c.bf16 %v880_v36, %v872_v35  ;;  %v886_v44 = vld [vmem:[#allocation16 + $0xc20] sm:$0xff]  ;;  %v888_v1 = vld [vmem:[#allocation16 + $0xc30] sm:$0xff] }
 0x27e   :  { %5650 = vmatpush1.bf16.msra.mxu1 %v5649_v22  ;;  %5524 = vmatprep.subr.bf16.mxu0 %v5523_v32  ;;  %v879_v22 = vld [vmem:[#allocation16 + $0xbe8] sm:$0xff]  ;;  %v873_v32 = vld [vmem:[#allocation16 + $0xbb8] sm:$0xff]  ;;  %v894_v45 = vld [vmem:[#allocation16 + $0xc60] sm:$0xff]  ;;  %v5677_v55 = vpack.c.bf16 %v896_v49, %v888_v1  ;;  %v5685_v18 = vpack.c.bf16 %v928_v48, %v920_v46 }
 0x27f   :  { %5652 = vmatprep.subr.bf16.mxu1 %v5651_v27  ;;  %v5543_v27 = vpack.c.bf16 %v879_v22, %v871_v20  ;;  %v5671_v7 = vpack.c.bf16 %v881_v24, %v873_v32  ;;  %v5549_v52 = vpack.c.bf16 %v894_v45, %v886_v44  ;;  %v942_v20 = vld [vmem:[#allocation16 + $0xde0] sm:$0xff]  ;;  %v936_v22 = vld [vmem:[#allocation16 + $0xdb0] sm:$0xff]  ;;  %v977_v44 = vld [vmem:[#allocation16 + $0xef8] sm:$0xff] }
 0x280   :  { %v944_v24 = vld [vmem:[#allocation16 + $0xdf0] sm:$0xff]  ;;  %v5561_v29 = vpack.c.bf16 %v942_v20, %v934_v19  ;;  %v950_v36 = vld [vmem:[#allocation16 + $0xe20] sm:$0xff]  ;;  %v1009_v10 = vld [vmem:[#allocation16 + $0xff8] sm:$0xff] }
 0x281   :  { %5526 = vmatpush1.bf16.msra.mxu0 %v5525_v37  ;;  %v887_v37 = vld [vmem:[#allocation16 + $0xc28] sm:$0xff]  ;;  %v5689_v35 = vpack.c.bf16 %v944_v24, %v936_v22  ;;  %v966_v49 = vld [vmem:[#allocation16 + $0xea0] sm:$0xff] }
 0x282   :  { %5654 = vmatpush1.bf16.msra.mxu1 %v5653_v38  ;;  %5528 = vmatprep.subr.bf16.mxu0 %v5527_v23  ;;  %v895_v38 = vld [vmem:[#allocation16 + $0xc68] sm:$0xff]  ;;  %v889_v23 = vld [vmem:[#allocation16 + $0xc38] sm:$0xff]  ;;  %v998_v48 = vld [vmem:[#allocation16 + $0xfa0] sm:$0xff] }
 0x283   :  { %5656 = vmatprep.subr.bf16.mxu1 %v5655_v43  ;;  %v5547_v43 = vpack.c.bf16 %v895_v38, %v887_v37  ;;  %v5675_v47 = vpack.c.bf16 %v897_v40, %v889_v23  ;;  %v958_v37 = vld [vmem:[#allocation16 + $0xe60] sm:$0xff]  ;;  %v952_v38 = vld [vmem:[#allocation16 + $0xe30] sm:$0xff] }
 0x284   :  { %v960_v40 = vld [vmem:[#allocation16 + $0xe70] sm:$0xff]  ;;  %v5565_v45 = vpack.c.bf16 %v958_v37, %v950_v36  ;;  %v2346_v19 = vld [vmem:[#allocation10 + $0x48] sm:$0xff] }
 0x285   :  { %5530 = vmatpush1.bf16.msra.mxu0 %v5529_v42  ;;  %v903_v42 = vld [vmem:[#allocation16 + $0xca8] sm:$0xff]  ;;  %v5693_v1 = vpack.c.bf16 %v960_v40, %v952_v38  ;;  %v1756_v36 = vld [vmem:[#allocation19 + $0x38] sm:$0xff]  ;;  %v2361_v40 = vld [vmem:[#allocation10 + $0xc0] sm:$0xff] }
 0x286   :  { %5658 = vmatpush1.bf16.msra.mxu1 %v5657_v28  ;;  %5532 = vmatprep.subr.bf16.mxu0 %v5531_v50  ;;  %v911_v28 = vld [vmem:[#allocation16 + $0xce8] sm:$0xff]  ;;  %v905_v50 = vld [vmem:[#allocation16 + $0xcb8] sm:$0xff] }
 0x287   :  { %5660 = vmatprep.subr.bf16.mxu1 %v5659_v56  ;;  %v5551_v56 = vpack.c.bf16 %v911_v28, %v903_v42  ;;  %v5679_v62 = vpack.c.bf16 %v913_v51, %v905_v50  ;;  %v974_v42 = vld [vmem:[#allocation16 + $0xee0] sm:$0xff]  ;;  %v968_v28 = vld [vmem:[#allocation16 + $0xeb0] sm:$0xff] }
 0x288   :  { %v976_v51 = vld [vmem:[#allocation16 + $0xef0] sm:$0xff]  ;;  %v5569_v58 = vpack.c.bf16 %v974_v42, %v966_v49  ;;  %v1760_v49 = vld [vmem:[#allocation19 + $0x58] sm:$0xff] }
 0x289   :  { %5534 = vmatpush1.bf16.msra.mxu0 %v5533_v0  ;;  %v919_v0 = vld [vmem:[#allocation16 + $0xd28] sm:$0xff]  ;;  %v5697_v59 = vpack.c.bf16 %v976_v51, %v968_v28  ;;  %v2369_v28 = vld [vmem:[#allocation10 + $0x100] sm:$0xff] }
 0x28a   :  { %5662 = vmatpush1.bf16.msra.mxu1 %v5661_v2  ;;  %5536 = vmatprep.subr.bf16.mxu0 %v5535_v4  ;;  %v927_v2 = vld [vmem:[#allocation16 + $0xd68] sm:$0xff]  ;;  %v921_v4 = vld [vmem:[#allocation16 + $0xd38] sm:$0xff] }
 0x28b   :  { %5664 = vmatprep.subr.bf16.mxu1 %v5663_v9  ;;  %v5555_v9 = vpack.c.bf16 %v927_v2, %v919_v0  ;;  %v5683_v12 = vpack.c.bf16 %v929_v5, %v921_v4  ;;  %v990_v0 = vld [vmem:[#allocation16 + $0xf60] sm:$0xff]  ;;  %v984_v2 = vld [vmem:[#allocation16 + $0xf30] sm:$0xff] }
 0x28c   :  { %v992_v5 = vld [vmem:[#allocation16 + $0xf70] sm:$0xff]  ;;  %v5573_v11 = vpack.c.bf16 %v990_v0, %v982_v63 }
 0x28d   :  { %5538 = vmatpush1.bf16.msra.mxu0 %v5537_v53  ;;  %v935_v53 = vld [vmem:[#allocation16 + $0xda8] sm:$0xff]  ;;  %v5701_v46 = vpack.c.bf16 %v992_v5, %v984_v2  ;;  %v2377_v51 = vld [vmem:[#allocation10 + $0x140] sm:$0xff]  ;;  %v2402_v5 = vld [vmem:[#allocation10 + $0x208] sm:$0xff] }
 0x28e   :  { %5666 = vmatpush1.bf16.msra.mxu1 %v5665_v13  ;;  %5540 = vmatprep.subr.bf16.mxu0 %v5539_v14  ;;  %v943_v13 = vld [vmem:[#allocation16 + $0xde8] sm:$0xff]  ;;  %v937_v14 = vld [vmem:[#allocation16 + $0xdb8] sm:$0xff]  ;;  %v5973_v63 = vpack.c.bf16 %v2377_v51, %v2369_v28  ;;  %v1780_v28 = vld [vmem:[#allocation19 + $0xf8] sm:$0xff] }
 0x28f   :  { %5668 = vmatprep.subr.bf16.mxu1 %v5667_v61  ;;  %v5559_v61 = vpack.c.bf16 %v943_v13, %v935_v53  ;;  %v5687_v32 = vpack.c.bf16 %v945_v16, %v937_v14  ;;  %v1006_v53 = vld [vmem:[#allocation16 + $0xfe0] sm:$0xff]  ;;  %v1000_v13 = vld [vmem:[#allocation16 + $0xfb0] sm:$0xff] }
 0x290   :  { %v1008_v16 = vld [vmem:[#allocation16 + $0xff0] sm:$0xff]  ;;  %v5577_v20 = vpack.c.bf16 %v1006_v53, %v998_v48 }
 0x291   :  { %5542 = vmatpush1.bf16.msra.mxu0 %v5541_v33  ;;  %v951_v33 = vld [vmem:[#allocation16 + $0xe28] sm:$0xff]  ;;  %v5705_v22 = vpack.c.bf16 %v1008_v16, %v1000_v13  ;;  %v2385_v2 = vld [vmem:[#allocation10 + $0x180] sm:$0xff] }
 0x292   :  { %5670 = vmatpush1.bf16.msra.mxu1 %v5669_v25  ;;  %5544 = vmatprep.subr.bf16.mxu0 %v5543_v27  ;;  %v959_v25 = vld [vmem:[#allocation16 + $0xe68] sm:$0xff]  ;;  %v953_v27 = vld [vmem:[#allocation16 + $0xe38] sm:$0xff] }
 0x293   :  { %5672 = vmatprep.subr.bf16.mxu1 %v5671_v7  ;;  %v5563_v7 = vpack.c.bf16 %v959_v25, %v951_v33  ;;  %v5691_v23 = vpack.c.bf16 %v961_v54, %v953_v27  ;;  %v2337_v33 = vld [vmem:[#allocation10] sm:$0xff]  ;;  %v2354_v27 = vld [vmem:[#allocation10 + $0x88] sm:$0xff] }
 0x294   :  { %v2345_v25 = vld [vmem:[#allocation10 + $0x40] sm:$0xff]  ;;  %v2362_v54 = vld [vmem:[#allocation10 + $0xc8] sm:$0xff] }
 0x295   :  { %5546 = vmatpush1.bf16.msra.mxu0 %v5545_v41  ;;  %v967_v41 = vld [vmem:[#allocation16 + $0xea8] sm:$0xff]  ;;  %v5965_v37 = vpack.c.bf16 %v2345_v25, %v2337_v33  ;;  %v5967_v38 = vpack.c.bf16 %v2362_v54, %v2354_v27  ;;  %v2401_v53 = vld [vmem:[#allocation10 + $0x200] sm:$0xff]  ;;  %v2434_v27 = vld [vmem:[#allocation10 + $0x308] sm:$0xff] }
 0x296   :  { %5674 = vmatpush1.bf16.msra.mxu1 %v5673_v15  ;;  %5548 = vmatprep.subr.bf16.mxu0 %v5547_v43  ;;  %v975_v15 = vld [vmem:[#allocation16 + $0xee8] sm:$0xff]  ;;  %v969_v43 = vld [vmem:[#allocation16 + $0xeb8] sm:$0xff] }
 0x297   :  { %5676 = vmatprep.subr.bf16.mxu1 %v5675_v47  ;;  %v5567_v47 = vpack.c.bf16 %v975_v15, %v967_v41  ;;  %v5695_v50 = vpack.c.bf16 %v977_v44, %v969_v43  ;;  %v2370_v41 = vld [vmem:[#allocation10 + $0x108] sm:$0xff]  ;;  %v2409_v13 = vld [vmem:[#allocation10 + $0x240] sm:$0xff] }
 0x298   :  { %v2378_v43 = vld [vmem:[#allocation10 + $0x148] sm:$0xff]  ;;  %v2417_v33 = vld [vmem:[#allocation10 + $0x280] sm:$0xff] }
 0x299   :  { %5550 = vmatpush1.bf16.msra.mxu0 %v5549_v52  ;;  %v983_v52 = vld [vmem:[#allocation16 + $0xf28] sm:$0xff]  ;;  %v2425_v25 = vld [vmem:[#allocation10 + $0x2c0] sm:$0xff] }
 0x29a   :  { %5678 = vmatpush1.bf16.msra.mxu1 %v5677_v55  ;;  %5552 = vmatprep.subr.bf16.mxu0 %v5551_v56  ;;  %v991_v55 = vld [vmem:[#allocation16 + $0xf68] sm:$0xff]  ;;  %v985_v56 = vld [vmem:[#allocation16 + $0xf38] sm:$0xff] }
 0x29b   :  { %5680 = vmatprep.subr.bf16.mxu1 %v5679_v62  ;;  %v5571_v62 = vpack.c.bf16 %v991_v55, %v983_v52  ;;  %v5699_v4 = vpack.c.bf16 %v993_v57, %v985_v56  ;;  %v2386_v52 = vld [vmem:[#allocation10 + $0x188] sm:$0xff] }
 0x29c   :  { %v2326_v56 = vld [vmem:[#allocation5 + $0x8] sm:$0xff] }
 0x29d   :  { %5554 = vmatpush1.bf16.msra.mxu0 %v5553_v6  ;;  %v999_v6 = vld [vmem:[#allocation16 + $0xfa8] sm:$0xff]  ;;  %v2394_v57 = vld [vmem:[#allocation10 + $0x1c8] sm:$0xff] }
 0x29e   :  { %5682 = vmatpush1.bf16.msra.mxu1 %v5681_v8  ;;  %5556 = vmatprep.subr.bf16.mxu0 %v5555_v9  ;;  %v1007_v8 = vld [vmem:[#allocation16 + $0xfe8] sm:$0xff]  ;;  %v1001_v9 = vld [vmem:[#allocation16 + $0xfb8] sm:$0xff]  ;;  %v5975_v0 = vpack.c.bf16 %v2394_v57, %v2386_v52 }
 0x29f   :  { %5684 = vmatprep.subr.bf16.mxu1 %v5683_v12  ;;  %v5575_v12 = vpack.c.bf16 %v1007_v8, %v999_v6  ;;  %v5703_v14 = vpack.c.bf16 %v1009_v10, %v1001_v9  ;;  %v2410_v8 = vld [vmem:[#allocation10 + $0x248] sm:$0xff]  ;;  %v1761_v10 = vld [vmem:[#allocation19 + $0x60] sm:$0xff]  ;;  %v2449_v52 = vld [vmem:[#allocation10 + $0x380] sm:$0xff] }
 0x2a0   :  { %v5979_v48 = vpack.c.bf16 %v2410_v8, %v2402_v5  ;;  %v2473_v5 = vld [vmem:[#allocation10 + $0x440] sm:$0xff] }
 0x2a1   :  { %5558 = vmatpush1.bf16.msra.mxu0 %v5557_v17  ;;  %v1750_v17 = vld [vmem:[#allocation19 + $0x8] sm:$0xff] }
 0x2a2   :  { %5686 = vmatpush1.bf16.msra.mxu1 %v5685_v18  ;;  %5560 = vmatprep.subr.bf16.mxu0 %v5559_v61  ;;  %v1752_v18 = vld [vmem:[#allocation19 + $0x18] sm:$0xff] }
 0x2a3   :  { %5688 = vmatprep.subr.bf16.mxu1 %v5687_v32  ;;  %v2338_v61 = vld [vmem:[#allocation10 + $0x8] sm:$0xff]  ;;  %v5707_v32 = vpack.c.bf16 %v1752_v18, %v1750_v17 }
 0x2a4   :  { %v5963_v24 = vpack.c.bf16 %v2346_v19, %v2338_v61  ;;  %v2426_v17 = vld [vmem:[#allocation10 + $0x2c8] sm:$0xff]  ;;  %v1765_v61 = vld [vmem:[#allocation19 + $0x80] sm:$0xff] }
 0x2a5   :  { %5562 = vmatpush1.bf16.msra.mxu0 %v5561_v29  ;;  %v1749_v29 = vld [vmem:[#allocation19] sm:$0xff]  ;;  %v1767_v19 = vld [vmem:[#allocation19 + $0x90] sm:$0xff] }
 0x2a6   :  { %5690 = vmatpush1.bf16.msra.mxu1 %v5689_v35  ;;  %5564 = vmatprep.subr.bf16.mxu0 %v5563_v7  ;;  %v1751_v35 = vld [vmem:[#allocation19 + $0x10] sm:$0xff]  ;;  %v1754_v7 = vld [vmem:[#allocation19 + $0x28] sm:$0xff]  ;;  %v5725_v54 = vpack.c.bf16 %v1767_v19, %v1765_v61  ;;  %v1785_v19 = vld [vmem:[#allocation19 + $0x120] sm:$0xff] }
 0x2a7   :  { %5692 = vmatprep.subr.bf16.mxu1 %v5691_v23  ;;  %v2353_v23 = vld [vmem:[#allocation10 + $0x80] sm:$0xff]  ;;  %v5709_v15 = vpack.c.bf16 %v1751_v35, %v1749_v29  ;;  %v5711_v44 = vpack.c.bf16 %v1756_v36, %v1754_v7  ;;  %v2442_v29 = vld [vmem:[#allocation10 + $0x348] sm:$0xff]  ;;  %v1769_v7 = vld [vmem:[#allocation19 + $0xa0] sm:$0xff] }
 0x2a8   :  { %v5969_v42 = vpack.c.bf16 %v2361_v40, %v2353_v23  ;;  %v1771_v36 = vld [vmem:[#allocation19 + $0xb0] sm:$0xff]  ;;  %v5985_v23 = vpack.c.bf16 %v2425_v25, %v2417_v33  ;;  %v5987_v40 = vpack.c.bf16 %v2442_v29, %v2434_v27 }
 0x2a9   :  { %5566 = vmatpush1.bf16.msra.mxu0 %v5565_v45  ;;  %v1753_v45 = vld [vmem:[#allocation19 + $0x20] sm:$0xff]  ;;  %v2497_v25 = vld [vmem:[#allocation10 + $0x500] sm:$0xff] }
 0x2aa   :  { %5694 = vmatpush1.bf16.msra.mxu1 %v5693_v1  ;;  %5568 = vmatprep.subr.bf16.mxu0 %v5567_v47  ;;  %v1755_v1 = vld [vmem:[#allocation19 + $0x30] sm:$0xff]  ;;  %v1758_v47 = vld [vmem:[#allocation19 + $0x48] sm:$0xff] }
 0x2ab   :  { %5696 = vmatprep.subr.bf16.mxu1 %v5695_v50  ;;  %v5971_v50 = vpack.c.bf16 %v2378_v43, %v2370_v41  ;;  %v5713_v55 = vpack.c.bf16 %v1755_v1, %v1753_v45  ;;  %v2433_v41 = vld [vmem:[#allocation10 + $0x300] sm:$0xff]  ;;  %v2450_v43 = vld [vmem:[#allocation10 + $0x388] sm:$0xff] }
 0x2ac   :  { %v2458_v45 = vld [vmem:[#allocation10 + $0x3c8] sm:$0xff]  ;;  %v2505_v27 = vld [vmem:[#allocation10 + $0x540] sm:$0xff] }
 0x2ad   :  { %5570 = vmatpush1.bf16.msra.mxu0 %v5569_v58  ;;  %v1757_v58 = vld [vmem:[#allocation19 + $0x40] sm:$0xff]  ;;  %v5991_v51 = vpack.c.bf16 %v2458_v45, %v2450_v43  ;;  %v2521_v43 = vld [vmem:[#allocation10 + $0x5c0] sm:$0xff] }
 0x2ae   :  { %5698 = vmatpush1.bf16.msra.mxu1 %v5697_v59  ;;  %5572 = vmatprep.subr.bf16.mxu0 %v5571_v62  ;;  %v1759_v59 = vld [vmem:[#allocation19 + $0x50] sm:$0xff]  ;;  %v1764_v62 = vld [vmem:[#allocation19 + $0x78] sm:$0xff] }
 0x2af   :  { %5700 = vmatprep.subr.bf16.mxu1 %v5699_v4  ;;  %v2393_v4 = vld [vmem:[#allocation10 + $0x1c0] sm:$0xff]  ;;  %v5717_v6 = vpack.c.bf16 %v1759_v59, %v1757_v58  ;;  %v1777_v59 = vld [vmem:[#allocation19 + $0xe0] sm:$0xff] }
 0x2b1   :  { %5574 = vmatpush1.bf16.msra.mxu0 %v5573_v11  ;;  %v1763_v11 = vld [vmem:[#allocation19 + $0x70] sm:$0xff] }
 0x2b2   :  { %5702 = vmatpush1.bf16.msra.mxu1 %v5701_v46  ;;  %5576 = vmatprep.subr.bf16.mxu0 %v5575_v12  ;;  %v1766_v46 = vld [vmem:[#allocation19 + $0x88] sm:$0xff]  ;;  %v1768_v12 = vld [vmem:[#allocation19 + $0x98] sm:$0xff]  ;;  %v5721_v16 = vpack.c.bf16 %v1763_v11, %v1761_v10  ;;  %v1781_v11 = vld [vmem:[#allocation19 + $0x100] sm:$0xff] }
 0x2b3   :  { %5704 = vmatprep.subr.bf16.mxu1 %v5703_v14  ;;  %v2418_v14 = vld [vmem:[#allocation10 + $0x288] sm:$0xff]  ;;  %v5723_v18 = vpack.c.bf16 %v1768_v12, %v1766_v46  ;;  %v1786_v12 = vld [vmem:[#allocation19 + $0x128] sm:$0xff] }
 0x2b4   :  { %v1783_v46 = vld [vmem:[#allocation19 + $0x110] sm:$0xff] }
 0x2b5   :  { %5578 = vmatpush1.bf16.msra.mxu0 %v5577_v20  ;;  %v1770_v20 = vld [vmem:[#allocation19 + $0xa8] sm:$0xff] }
 0x2b6   :  { %5706 = vmatpush1.bf16.msra.mxu1 %v5705_v22  ;;  %5708 = vmatprep.subr.bf16.mxu0 %v5707_v32  ;;  %v1772_v22 = vld [vmem:[#allocation19 + $0xb8] sm:$0xff]  ;;  %v5981_v32 = vpack.c.bf16 %v2409_v13, %v2401_v53  ;;  %v2481_v13 = vld [vmem:[#allocation10 + $0x480] sm:$0xff] }
 0x2b7   :  { %5964 = vmatprep.subr.bf16.mxu1 %v5963_v24  ;;  %v5983_v24 = vpack.c.bf16 %v2426_v17, %v2418_v14  ;;  %v5727_v35 = vpack.c.bf16 %v1772_v22, %v1770_v20  ;;  %v2489_v14 = vld [vmem:[#allocation10 + $0x4c0] sm:$0xff]  ;;  %v5741_v17 = vpack.c.bf16 %v1783_v46, %v1781_v11  ;;  %v1801_v46 = vld [vmem:[#allocation19 + $0x1a0] sm:$0xff] }
 0x2b8   :  { %1502 = vmatmul.mubr.f32.vlgmr.msra.gmra.mrb[4].mxu0 %v7972_v21  ;;  %v1787_v20 = vld [vmem:[#allocation19 + $0x130] sm:$0xff]  ;;  %v1790_v22 = vld [vmem:[#allocation19 + $0x148] sm:$0xff] }
 0x2b9   :  { %1656 = vmatmul.mubr.f32.vlgmr.msra.gmra.mrb[12].mxu1 %v7972_v21  ;;  %1507 = vmatprep.mubr.f32.mxu0 %v7975_v26  ;;  %v5715_v21 = vpack.c.bf16 %v1760_v49, %v1758_v47  ;;  %v1773_v47 = vld [vmem:[#allocation19 + $0xc0] sm:$0xff]  ;;  %v1775_v49 = vld [vmem:[#allocation19 + $0xd0] sm:$0xff]  ;;  %v5745_v29 = vpack.c.bf16 %v1787_v20, %v1785_v19 }
 0x2ba   :  { %1661 = vmatprep.mubr.f32.mxu1 %v7975_v26  ;;  %5966 = vmatpush1.bf16.msra.mxu1 %v5965_v37  ;;  %v1762_v26 = vld [vmem:[#allocation19 + $0x68] sm:$0xff]  ;;  %v5733_v57 = vpack.c.bf16 %v1775_v49, %v1773_v47  ;;  %v1793_v49 = vld [vmem:[#allocation19 + $0x160] sm:$0xff] }
 0x2bb   :  { %5968 = vmatprep.subr.bf16.mxu1 %v5967_v38  ;;  %5710 = vmatpush1.bf16.msra.mxu0 %v5709_v15  ;;  %v5719_v9 = vpack.c.bf16 %v1764_v62, %v1762_v26  ;;  %v1774_v37 = vld [vmem:[#allocation19 + $0xc8] sm:$0xff]  ;;  %v1776_v38 = vld [vmem:[#allocation19 + $0xd8] sm:$0xff]  ;;  %v1779_v26 = vld [vmem:[#allocation19 + $0xf0] sm:$0xff] }
 0x2bc   :  { %1508 = vmatmul.mubr.f32.gmra.mrb[6].mxu0 %v7978_v39  ;;  %5712 = vmatprep.subr.bf16.mxu0 %v5711_v44  ;;  %v2441_v15 = vld [vmem:[#allocation10 + $0x340] sm:$0xff]  ;;  %v5729_v44 = vpack.c.bf16 %v1771_v36, %v1769_v7  ;;  %v5731_v1 = vpack.c.bf16 %v1776_v38, %v1774_v37  ;;  %v5737_v8 = vpack.c.bf16 %v1779_v26, %v1777_v59  ;;  %v1789_v36 = vld [vmem:[#allocation19 + $0x140] sm:$0xff] }
 0x2bd   :  { %1662 = vmatmul.mubr.f32.gmra.mrb[14].mxu1 %v7978_v39  ;;  %v5977_v39 = vpack.c.bf16 %v2393_v4, %v2385_v2  ;;  %v1782_v62 = vld [vmem:[#allocation19 + $0x108] sm:$0xff]  ;;  %v1791_v37 = vld [vmem:[#allocation19 + $0x150] sm:$0xff]  ;;  %v1797_v26 = vld [vmem:[#allocation19 + $0x180] sm:$0xff] }
 0x2be   :  { %5970 = vmatpush1.bf16.msra.mxu1 %v5969_v42  ;;  %3211 = vmatprep.mubr.f32.mxu1 %v2326_v56  ;;  %v1778_v42 = vld [vmem:[#allocation19 + $0xe8] sm:$0xff]  ;;  %v2466_v56 = vld [vmem:[#allocation10 + $0x408] sm:$0xff]  ;;  %v5749_v45 = vpack.c.bf16 %v1791_v37, %v1789_v36  ;;  %v1805_v20 = vld [vmem:[#allocation19 + $0x1c0] sm:$0xff] }
 0x2bf   :  { %5972 = vmatprep.subr.bf16.mxu1 %v5971_v50  ;;  %5714 = vmatpush1.bf16.msra.mxu0 %v5713_v55  ;;  %v5989_v50 = vpack.c.bf16 %v2441_v15, %v2433_v41  ;;  %v2457_v55 = vld [vmem:[#allocation10 + $0x3c0] sm:$0xff]  ;;  %v5735_v58 = vpack.c.bf16 %v1780_v28, %v1778_v42  ;;  %v1809_v37 = vld [vmem:[#allocation19 + $0x1e0] sm:$0xff] }
 0x2c0   :  { %5716 = vmatprep.subr.bf16.mxu0 %v5715_v21  ;;  %v2474_v21 = vld [vmem:[#allocation10 + $0x448] sm:$0xff]  ;;  %v2465_v4 = vld [vmem:[#allocation10 + $0x400] sm:$0xff] }
 0x2c1   :  { %v5995_v2 = vpack.c.bf16 %v2474_v21, %v2466_v56  ;;  %v1794_v38 = vld [vmem:[#allocation19 + $0x168] sm:$0xff]  ;;  %v1795_v42 = vld [vmem:[#allocation19 + $0x170] sm:$0xff] }
 0x2c2   :  { %5974 = vmatpush1.bf16.msra.mxu1 %v5973_v63  ;;  %v1784_v63 = vld [vmem:[#allocation19 + $0x118] sm:$0xff]  ;;  %v2513_v15 = vld [vmem:[#allocation10 + $0x580] sm:$0xff]  ;;  %v5753_v21 = vpack.c.bf16 %v1795_v42, %v1793_v49 }
 0x2c3   :  { %5976 = vmatprep.subr.bf16.mxu1 %v5975_v0  ;;  %5718 = vmatpush1.bf16.msra.mxu0 %v5717_v6  ;;  %v5993_v0 = vpack.c.bf16 %v2457_v55, %v2449_v52  ;;  %v2482_v6 = vld [vmem:[#allocation10 + $0x488] sm:$0xff]  ;;  %v5739_v10 = vpack.c.bf16 %v1784_v63, %v1782_v62  ;;  %v1798_v28 = vld [vmem:[#allocation19 + $0x188] sm:$0xff] }
 0x2c4   :  { %5720 = vmatprep.subr.bf16.mxu0 %v5719_v9  ;;  %v2490_v9 = vld [vmem:[#allocation10 + $0x4c8] sm:$0xff]  ;;  %v2529_v55 = vld [vmem:[#allocation10 + $0x600] sm:$0xff] }
 0x2c5   :  { %v5999_v53 = vpack.c.bf16 %v2490_v9, %v2482_v6  ;;  %v2537_v56 = vld [vmem:[#allocation10 + $0x640] sm:$0xff] }
 0x2c6   :  { %5978 = vmatpush1.bf16.msra.mxu1 %v5977_v39  ;;  %v1788_v39 = vld [vmem:[#allocation19 + $0x138] sm:$0xff]  ;;  %v1799_v62 = vld [vmem:[#allocation19 + $0x190] sm:$0xff]  ;;  %v1802_v63 = vld [vmem:[#allocation19 + $0x1a8] sm:$0xff] }
 0x2c7   :  { %5980 = vmatprep.subr.bf16.mxu1 %v5979_v48  ;;  %5722 = vmatpush1.bf16.msra.mxu0 %v5721_v16  ;;  %v5997_v48 = vpack.c.bf16 %v2473_v5, %v2465_v4  ;;  %v2498_v16 = vld [vmem:[#allocation10 + $0x508] sm:$0xff]  ;;  %v5743_v61 = vpack.c.bf16 %v1788_v39, %v1786_v12  ;;  %v2545_v5 = vld [vmem:[#allocation10 + $0x680] sm:$0xff]  ;;  %v5757_v9 = vpack.c.bf16 %v1799_v62, %v1797_v26 }
 0x2c8   :  { %5724 = vmatprep.subr.bf16.mxu0 %v5723_v18  ;;  %v2506_v18 = vld [vmem:[#allocation10 + $0x548] sm:$0xff]  ;;  %v2553_v6 = vld [vmem:[#allocation10 + $0x6c0] sm:$0xff] }
 0x2c9   :  { %v6003_v33 = vpack.c.bf16 %v2506_v18, %v2498_v16  ;;  %v1803_v12 = vld [vmem:[#allocation19 + $0x1b0] sm:$0xff]  ;;  %v1806_v39 = vld [vmem:[#allocation19 + $0x1c8] sm:$0xff] }
 0x2ca   :  { %5982 = vmatpush1.bf16.msra.mxu1 %v5981_v32  ;;  %v1792_v32 = vld [vmem:[#allocation19 + $0x158] sm:$0xff]  ;;  %v2569_v16 = vld [vmem:[#allocation10 + $0x740] sm:$0xff]  ;;  %v5761_v18 = vpack.c.bf16 %v1803_v12, %v1801_v46 }
 0x2cb   :  { %5984 = vmatprep.subr.bf16.mxu1 %v5983_v24  ;;  %5726 = vmatpush1.bf16.msra.mxu0 %v5725_v54  ;;  %v6001_v24 = vpack.c.bf16 %v2489_v14, %v2481_v13  ;;  %v2514_v54 = vld [vmem:[#allocation10 + $0x588] sm:$0xff]  ;;  %v5747_v7 = vpack.c.bf16 %v1792_v32, %v1790_v22  ;;  %v2561_v14 = vld [vmem:[#allocation10 + $0x700] sm:$0xff] }
 0x2cc   :  { %5728 = vmatprep.subr.bf16.mxu0 %v5727_v35  ;;  %v2522_v35 = vld [vmem:[#allocation10 + $0x5c8] sm:$0xff]  ;;  %v1810_v32 = vld [vmem:[#allocation19 + $0x1e8] sm:$0xff] }
 0x2cd   :  { %v6007_v41 = vpack.c.bf16 %v2522_v35, %v2514_v54  ;;  %v1807_v22 = vld [vmem:[#allocation19 + $0x1d0] sm:$0xff] }
 0x2ce   :  { %5986 = vmatpush1.bf16.msra.mxu1 %v5985_v23  ;;  %v1796_v23 = vld [vmem:[#allocation19 + $0x178] sm:$0xff]  ;;  %v2585_v54 = vld [vmem:[#allocation10 + $0x7c0] sm:$0xff]  ;;  %v5765_v35 = vpack.c.bf16 %v1807_v22, %v1805_v20 }
 0x2cf   :  { %5988 = vmatprep.subr.bf16.mxu1 %v5987_v40  ;;  %5730 = vmatpush1.bf16.msra.mxu0 %v5729_v44  ;;  %v6005_v40 = vpack.c.bf16 %v2505_v27, %v2497_v25  ;;  %v2530_v44 = vld [vmem:[#allocation10 + $0x608] sm:$0xff]  ;;  %v5751_v47 = vpack.c.bf16 %v1796_v23, %v1794_v38  ;;  %v2577_v27 = vld [vmem:[#allocation10 + $0x780] sm:$0xff] }
 0x2d0   :  { %5732 = vmatprep.subr.bf16.mxu0 %v5731_v1  ;;  %v2538_v1 = vld [vmem:[#allocation10 + $0x648] sm:$0xff]  ;;  %v1814_v23 = vld [vmem:[#allocation19 + $0x208] sm:$0xff] }
 0x2d1   :  { %v6011_v52 = vpack.c.bf16 %v2538_v1, %v2530_v44  ;;  %v1811_v38 = vld [vmem:[#allocation19 + $0x1f0] sm:$0xff] }
 0x2d2   :  { %5990 = vmatpush1.bf16.msra.mxu1 %v5989_v50  ;;  %v1800_v50 = vld [vmem:[#allocation19 + $0x198] sm:$0xff]  ;;  %v2601_v44 = vld [vmem:[#allocation10 + $0x840] sm:$0xff] }
 0x2d3   :  { %5992 = vmatprep.subr.bf16.mxu1 %v5991_v51  ;;  %5734 = vmatpush1.bf16.msra.mxu0 %v5733_v57  ;;  %v6009_v51 = vpack.c.bf16 %v2521_v43, %v2513_v15  ;;  %v2546_v57 = vld [vmem:[#allocation10 + $0x688] sm:$0xff]  ;;  %v5755_v59 = vpack.c.bf16 %v1800_v50, %v1798_v28  ;;  %v2593_v43 = vld [vmem:[#allocation10 + $0x800] sm:$0xff] }
 0x2d4   :  { %5736 = vmatprep.subr.bf16.mxu0 %v5735_v58  ;;  %v2554_v58 = vld [vmem:[#allocation10 + $0x6c8] sm:$0xff]  ;;  %v2325_v42 = vld [vmem:[#allocation5] sm:$0xff]  ;;  %v6029_v28 = vpack.c.bf16 %v2601_v44, %v2593_v43 }
 0x2d5   :  { %v6015_v4 = vpack.c.bf16 %v2554_v58, %v2546_v57  ;;  %v2610_v1 = vld [vmem:[#allocation10 + $0x888] sm:$0xff]  ;;  %v2625_v26 = vld [vmem:[#allocation10 + $0x900] sm:$0xff] }
 0x2d6   :  { %5994 = vmatpush1.bf16.msra.mxu1 %v5993_v0  ;;  %v1804_v0 = vld [vmem:[#allocation19 + $0x1b8] sm:$0xff]  ;;  %v2633_v62 = vld [vmem:[#allocation10 + $0x940] sm:$0xff] }
 0x2d7   :  { %5996 = vmatprep.subr.bf16.mxu1 %v5995_v2  ;;  %5738 = vmatpush1.bf16.msra.mxu0 %v5737_v8  ;;  %v6013_v2 = vpack.c.bf16 %v2537_v56, %v2529_v55  ;;  %v2562_v8 = vld [vmem:[#allocation10 + $0x708] sm:$0xff]  ;;  %v5759_v11 = vpack.c.bf16 %v1804_v0, %v1802_v63  ;;  %v2332_v55 = vld [vmem:[#allocation5 + $0x38] sm:$0xf]  ;;  %v2657_v12 = vld [vmem:[#allocation10 + $0xa00] sm:$0xff] }
 0x2d8   :  { %5740 = vmatprep.subr.bf16.mxu0 %v5739_v10  ;;  %v2570_v10 = vld [vmem:[#allocation10 + $0x748] sm:$0xff]  ;;  %v2328_v63 = vld [vmem:[#allocation5 + $0x18] sm:$0xff] }
 0x2d9   :  { %v6019_v13 = vpack.c.bf16 %v2570_v10, %v2562_v8  ;;  %v2626_v56 = vld [vmem:[#allocation10 + $0x908] sm:$0xff]  ;;  %v2649_v8 = vld [vmem:[#allocation10 + $0x9c0] sm:$0xff] }
 0x2da   :  { %5998 = vmatpush1.bf16.msra.mxu1 %v5997_v48  ;;  %v1808_v48 = vld [vmem:[#allocation19 + $0x1d8] sm:$0xff] }
 0x2db   :  { %6000 = vmatprep.subr.bf16.mxu1 %v5999_v53  ;;  %5742 = vmatpush1.bf16.msra.mxu0 %v5741_v17  ;;  %v6017_v53 = vpack.c.bf16 %v2553_v6, %v2545_v5  ;;  %v2578_v17 = vld [vmem:[#allocation10 + $0x788] sm:$0xff]  ;;  %v5763_v19 = vpack.c.bf16 %v1808_v48, %v1806_v39  ;;  %v2641_v6 = vld [vmem:[#allocation10 + $0x980] sm:$0xff] }
 0x2dc   :  { %5744 = vmatprep.subr.bf16.mxu0 %v5743_v61  ;;  %v2586_v61 = vld [vmem:[#allocation10 + $0x7c8] sm:$0xff]  ;;  %v2665_v39 = vld [vmem:[#allocation10 + $0xa40] sm:$0xff] }
 0x2dd   :  { %v6023_v25 = vpack.c.bf16 %v2586_v61, %v2578_v17  ;;  %v2634_v57 = vld [vmem:[#allocation10 + $0x948] sm:$0xff]  ;;  %v2681_v61 = vld [vmem:[#allocation10 + $0xac0] sm:$0xff] }
 0x2de   :  { %6002 = vmatpush1.bf16.msra.mxu1 %v6001_v24  ;;  %v1812_v24 = vld [vmem:[#allocation19 + $0x1f8] sm:$0xff] }
 0x2df   :  { %6004 = vmatprep.subr.bf16.mxu1 %v6003_v33  ;;  %5746 = vmatpush1.bf16.msra.mxu0 %v5745_v29  ;;  %v6021_v33 = vpack.c.bf16 %v2569_v16, %v2561_v14  ;;  %v2594_v29 = vld [vmem:[#allocation10 + $0x808] sm:$0xff]  ;;  %v5767_v36 = vpack.c.bf16 %v1812_v24, %v1810_v32  ;;  %v6045_v14 = vpack.c.bf16 %v2665_v39, %v2657_v12 }
 0x2e0   :  { %5748 = vmatprep.subr.bf16.mxu0 %v5747_v7  ;;  %v2602_v7 = vld [vmem:[#allocation10 + $0x848] sm:$0xff] }
 0x2e1   :  { %v6027_v15 = vpack.c.bf16 %v2602_v7, %v2594_v29  ;;  %v2331_v58 = vld [vmem:[#allocation5 + $0x30] sm:$0xf]  ;;  %v2689_v7 = vld [vmem:[#allocation10 + $0xb00] sm:$0xff] }
 0x2e2   :  { %6006 = vmatpush1.bf16.msra.mxu1 %v6005_v40  ;;  %v1816_v40 = vld [vmem:[#allocation19 + $0x218] sm:$0xff]  ;;  %v1815_v12 = vld [vmem:[#allocation19 + $0x210] sm:$0xff] }
 0x2e3   :  { %6008 = vmatprep.subr.bf16.mxu1 %v6007_v41  ;;  %5750 = vmatpush1.bf16.msra.mxu0 %v5749_v45  ;;  %v6025_v41 = vpack.c.bf16 %v2585_v54, %v2577_v27  ;;  %v5769_v45 = vpack.c.bf16 %v1811_v38, %v1809_v37  ;;  %v5771_v49 = vpack.c.bf16 %v1816_v40, %v1814_v23  ;;  %v2642_v0 = vld [vmem:[#allocation10 + $0x988] sm:$0xff] }
 0x2e4   :  { %5752 = vmatprep.subr.bf16.mxu0 %v5751_v47  ;;  %v2618_v47 = vld [vmem:[#allocation10 + $0x8c8] sm:$0xff] }
 0x2e5   :  { %v6031_v50 = vpack.c.bf16 %v2618_v47, %v2610_v1  ;;  %v2666_v10 = vld [vmem:[#allocation10 + $0xa48] sm:$0xff] }
 0x2e6   :  { %6010 = vmatpush1.bf16.msra.mxu1 %v6009_v51  ;;  %v2609_v51 = vld [vmem:[#allocation10 + $0x880] sm:$0xff]  ;;  %v8002_v48 = vld [vmem:[#allocation17] sm:$0xff] }
 0x2e7   :  { %6012 = vmatprep.subr.bf16.mxu1 %v6011_v52  ;;  %5754 = vmatpush1.bf16.msra.mxu0 %v5753_v21  ;;  %v2617_v52 = vld [vmem:[#allocation10 + $0x8c0] sm:$0xff]  ;;  %v1015_v16 = vrot.slane %v8002_v48, %v7928_v34  ;;  %v8010_v20 = vrot.slane %v8002_v48, %v7951_v3  ;;  %v2690_v22 = vld [vmem:[#allocation10 + $0xb08] sm:$0xff] }
 0x2e8   :  { %5756 = vmatprep.subr.bf16.mxu0 %v5755_v59  ;;  %v6033_v21 = vpack.c.bf16 %v2617_v52, %v2609_v51  ;;  %v6035_v59 = vpack.c.bf16 %v2634_v57, %v2626_v56  ;;  %v2698_v32 = vld [vmem:[#allocation10 + $0xb48] sm:$0xff] }
 0x2e9   :  { %v2706_v23 = vld [vmem:[#allocation10 + $0xb88] sm:$0xff] }
 0x2ea   :  { %6014 = vmatpush1.bf16.msra.mxu1 %v6013_v2  ;;  %v2650_v2 = vld [vmem:[#allocation10 + $0x9c8] sm:$0xff] }
 0x2eb   :  { %6016 = vmatprep.subr.bf16.mxu1 %v6015_v4  ;;  %5758 = vmatpush1.bf16.msra.mxu0 %v5757_v9  ;;  %v6037_v4 = vpack.c.bf16 %v2633_v62, %v2625_v26  ;;  %v6039_v5 = vpack.c.bf16 %v2650_v2, %v2642_v0  ;;  %v2658_v9 = vld [vmem:[#allocation10 + $0xa08] sm:$0xff]  ;;  %v2721_v26 = vld [vmem:[#allocation10 + $0xc00] sm:$0xff] }
 0x2ec   :  { %5760 = vmatprep.subr.bf16.mxu0 %v5759_v11  ;;  %v6041_v11 = vpack.c.bf16 %v2649_v8, %v2641_v6  ;;  %v6043_v46 = vpack.c.bf16 %v2666_v10, %v2658_v9  ;;  %v2714_v40 = vld [vmem:[#allocation10 + $0xbc8] sm:$0xff]  ;;  %v2729_v62 = vld [vmem:[#allocation10 + $0xc40] sm:$0xff] }
 0x2ed   :  { %v6055_v47 = vpack.c.bf16 %v2714_v40, %v2706_v23  ;;  %v2722_v52 = vld [vmem:[#allocation10 + $0xc08] sm:$0xff]  ;;  %v6061_v2 = vpack.c.bf16 %v2729_v62, %v2721_v26  ;;  %v2745_v6 = vld [vmem:[#allocation10 + $0xcc0] sm:$0xff]  ;;  %v1821_v62 = vld [vmem:[#allocation19 + $0x240] sm:$0xff] }
 0x2ee   :  { %6018 = vmatpush1.bf16.msra.mxu1 %v6017_v53  ;;  %v2674_v53 = vld [vmem:[#allocation10 + $0xa88] sm:$0xff] }
 0x2ef   :  { %6020 = vmatprep.subr.bf16.mxu1 %v6019_v13  ;;  %5762 = vmatpush1.bf16.msra.mxu0 %v5761_v18  ;;  %v2682_v13 = vld [vmem:[#allocation10 + $0xac8] sm:$0xff]  ;;  %v2673_v18 = vld [vmem:[#allocation10 + $0xa80] sm:$0xff] }
 0x2f0   :  { %5764 = vmatprep.subr.bf16.mxu0 %v5763_v19  ;;  %v6047_v17 = vpack.c.bf16 %v2682_v13, %v2674_v53  ;;  %v1019_v19 = vrot.slane %v8002_v48, %v7923_v31  ;;  %v2746_v0 = vld [vmem:[#allocation10 + $0xcc8] sm:$0xff] }
 0x2f1   :  { %v2754_v8 = vld [vmem:[#allocation10 + $0xd08] sm:$0xff] }
 0x2f2   :  { %6022 = vmatpush1.bf16.msra.mxu1 %v6021_v33  ;;  %v2762_v9 = vld [vmem:[#allocation10 + $0xd48] sm:$0xff] }
 0x2f3   :  { %6024 = vmatprep.subr.bf16.mxu1 %v6023_v25  ;;  %5766 = vmatpush1.bf16.msra.mxu0 %v5765_v35  ;;  %v6049_v25 = vpack.c.bf16 %v2681_v61, %v2673_v18  ;;  %v6051_v35 = vpack.c.bf16 %v2698_v32, %v2690_v22  ;;  %v6067_v13 = vpack.c.bf16 %v2762_v9, %v2754_v8  ;;  %v2770_v22 = vld [vmem:[#allocation10 + $0xd88] sm:$0xff]  ;;  %v1826_v9 = vld [vmem:[#allocation19 + $0x268] sm:$0xff] }
 0x2f4   :  { %5768 = vmatprep.subr.bf16.mxu0 %v5767_v36  ;;  %v2697_v36 = vld [vmem:[#allocation10 + $0xb40] sm:$0xff]  ;;  %v2778_v32 = vld [vmem:[#allocation10 + $0xdc8] sm:$0xff] }
 0x2f5   :  { %v6053_v43 = vpack.c.bf16 %v2697_v36, %v2689_v7  ;;  %v6071_v40 = vpack.c.bf16 %v2778_v32, %v2770_v22  ;;  %v2810_v8 = vld [vmem:[#allocation10 + $0xec8] sm:$0xff] }
 0x2f6   :  { %6026 = vmatpush1.bf16.msra.mxu1 %v6025_v41 }
 0x2f7   :  { %6028 = vmatprep.subr.bf16.mxu1 %v6027_v15  ;;  %5770 = vmatpush1.bf16.msra.mxu0 %v5769_v45 }
 0x2f8   :  { %5772 = vmatprep.subr.bf16.mxu0 %v5771_v49  ;;  %v2705_v49 = vld [vmem:[#allocation10 + $0xb80] sm:$0xff] }
 0x2f9   :  { %3212 = vmatmul.mubr.f32.vlgmr.msra.gmra.mrb[16].mxu1 %v2325_v42  ;;  %v2713_v42 = vld [vmem:[#allocation10 + $0xbc0] sm:$0xff] }
 0x2fa   :  { %6030 = vmatpush1.bf16.msra.mxu1 %v6029_v28  ;;  %3217 = vmatprep.mubr.f32.mxu1 %v2332_v55  ;;  %v2730_v55 = vld [vmem:[#allocation10 + $0xc48] sm:$0xff] }
 0x2fb   :  { %6032 = vmatprep.subr.bf16.mxu1 %v6031_v50 }
 0x2fd   :  { %3218 = vmatmul.mubr.f32.gmra.mrb[18].mxu1 %v2331_v58 }
 0x2fe   :  { %6034 = vmatpush1.bf16.msra.mxu1 %v6033_v21  ;;  %3288 = vmatprep.mubr.f32.mxu1 %v2328_v63  ;;  %v6057_v21 = vpack.c.bf16 %v2713_v42, %v2705_v49  ;;  %v2738_v63 = vld [vmem:[#allocation10 + $0xc88] sm:$0xff] }
 0x2ff   :  { %6036 = vmatprep.subr.bf16.mxu1 %v6035_v59  ;;  %v6059_v59 = vpack.c.bf16 %v2730_v55, %v2722_v52  ;;  %v2786_v52 = vld [vmem:[#allocation10 + $0xe08] sm:$0xff] }
 0x300   :  { %v2794_v55 = vld [vmem:[#allocation10 + $0xe48] sm:$0xff] }
 0x302   :  { %6038 = vmatpush1.bf16.msra.mxu1 %v6037_v4  ;;  %v6063_v4 = vpack.c.bf16 %v2746_v0, %v2738_v63  ;;  %v2785_v63 = vld [vmem:[#allocation10 + $0xe00] sm:$0xff] }
 0x303   :  { %6040 = vmatprep.subr.bf16.mxu1 %v6039_v5  ;;  %v2737_v5 = vld [vmem:[#allocation10 + $0xc80] sm:$0xff] }
 0x304   :  { %v2793_v0 = vld [vmem:[#allocation10 + $0xe40] sm:$0xff] }
 0x306   :  { %6042 = vmatpush1.bf16.msra.mxu1 %v6041_v11  ;;  %v6065_v11 = vpack.c.bf16 %v2745_v6, %v2737_v5  ;;  %v1823_v5 = vld [vmem:[#allocation19 + $0x250] sm:$0xff] }
 0x307   :  { %6044 = vmatprep.subr.bf16.mxu1 %v6043_v46  ;;  %v1813_v46 = vld [vmem:[#allocation19 + $0x200] sm:$0xff]  ;;  %v2802_v6 = vld [vmem:[#allocation10 + $0xe88] sm:$0xff] }
 0x30a   :  { %6046 = vmatpush1.bf16.msra.mxu1 %v6045_v14  ;;  %v1195_v24 = vpop.f32.mrb[0].mxu0  ;;  %v8012_v33 = vpop.f32.mrb[8].mxu1  ;;  %v2753_v14 = vld [vmem:[#allocation10 + $0xd00] sm:$0xff] }
 0x30b   :  { %v8014_v27 = vadd.f32 %v1195_v24, %v1015_v16  ;;  %v1197_v54 = vpop.f32.mrb[1].mxu0  ;;  %v1351_v29 = vpop.f32.mrb[9].mxu1  ;;  %6048 = vmatprep.subr.bf16.mxu1 %v6047_v17  ;;  %v1818_v17 = vld [vmem:[#allocation19 + $0x228] sm:$0xff] }
 0x30c   :  { %v7068_v37 = vadd.f32 %v1197_v54, %v1019_v19  ;;  %v8017_v38 = vadd.f32 %v1351_v29, %v8010_v20 }
 0x30d   :  { %v1685_v41 = vmul.f32 0.70710677, %v8014_v27 }
 0x30e   :  { %v1686_v15 = vmul.f32 0.70710677, %v7068_v37  ;;  %6050 = vmatpush1.bf16.msra.mxu1 %v6049_v25  ;;  %v1688_v44 = vmul.f32 0.70710677, %v8017_v38  ;;  %v1201_v45 = vpop.f32.mrb[2].mxu0  ;;  %v8021_v1 = vpop.f32.mrb[10].mxu1 }
 0x30f   :  { %7203 = verf.f32 %v1685_v41  ;;  %6052 = vmatprep.subr.bf16.mxu1 %v6051_v35  ;;  %v8023_v28 = vadd.f32 %v1201_v45, %v1015_v16  ;;  %v1203_v50 = vpop.f32.mrb[3].mxu0  ;;  %v8025_v51 = vpop.f32.mrb[11].mxu1  ;;  %v2761_v16 = vld [vmem:[#allocation10 + $0xd40] sm:$0xff]  ;;  %v1669_v18 = vmul.f32 0.5, %v7068_v37  ;;  %v1668_v25 = vmul.f32 0.5, %v8014_v27 }
 0x310   :  { %7205 = verf.f32 %v1686_v15  ;;  %v7070_v56 = vadd.f32 %v1203_v50, %v1019_v19  ;;  %v1820_v19 = vld [vmem:[#allocation19 + $0x238] sm:$0xff]  ;;  %v5773_v35 = vpack.c.bf16 %v1815_v12, %v1813_v46  ;;  %v6069_v7 = vpack.c.bf16 %v2761_v16, %v2753_v14  ;;  %v2769_v41 = vld [vmem:[#allocation10 + $0xd80] sm:$0xff]  ;;  %v1825_v12 = vld [vmem:[#allocation19 + $0x260] sm:$0xff] }
 0x311   :  { %v1693_v57 = vmul.f32 0.70710677, %v8023_v28  ;;  %7207 = verf.f32 %v1688_v44  ;;  %v5775_v23 = vpack.c.bf16 %v1820_v19, %v1818_v17  ;;  %v2777_v15 = vld [vmem:[#allocation10 + $0xdc0] sm:$0xff]  ;;  %v1817_v44 = vld [vmem:[#allocation19 + $0x220] sm:$0xff]  ;;  %v1824_v50 = vld [vmem:[#allocation19 + $0x258] sm:$0xff]  ;;  %v6079_v46 = vpack.c.bf16 %v2810_v8, %v2802_v6 }
 0x312   :  { %6054 = vmatpush1.bf16.msra.mxu1 %v6053_v43  ;;  %v1694_v58 = vmul.f32 0.70710677, %v7070_v56  ;;  %v1819_v45 = vld [vmem:[#allocation19 + $0x230] sm:$0xff]  ;;  %v1677_v42 = vmul.f32 0.5, %v7070_v56  ;;  %v1841_v8 = vld [vmem:[#allocation19 + $0x2e0] sm:$0xff] }
 0x313   :  { %6056 = vmatprep.subr.bf16.mxu1 %v6055_v47  ;;  %7209 = verf.f32 %v1693_v57  ;;  %v1822_v47 = vld [vmem:[#allocation19 + $0x248] sm:$0xff]  ;;  %v1676_v57 = vmul.f32 0.5, %v8023_v28  ;;  %v5777_v26 = vpack.c.bf16 %v1819_v45, %v1817_v44  ;;  %v1827_v14 = vld [vmem:[#allocation19 + $0x270] sm:$0xff] }
 0x314   :  { %7211 = verf.f32 %v1694_v58  ;;  %v1671_v58 = vmul.f32 0.5, %v8017_v38  ;;  %v6077_v38 = vpack.c.bf16 %v2793_v0, %v2785_v63  ;;  %v2818_v16 = vld [vmem:[#allocation10 + $0xf08] sm:$0xff]  ;;  %v5785_v22 = vpack.c.bf16 %v1827_v14, %v1825_v12  ;;  %v2833_v44 = vld [vmem:[#allocation10 + $0xf80] sm:$0xff] }
 0x315   :  { %v2826_v17 = vld [vmem:[#allocation10 + $0xf48] sm:$0xff]  ;;  %v2841_v45 = vld [vmem:[#allocation10 + $0xfc0] sm:$0xff] }
 0x316   :  { %6058 = vmatpush1.bf16.msra.mxu1 %v6057_v21  ;;  %v6073_v21 = vpack.c.bf16 %v2777_v15, %v2769_v41  ;;  %v6083_v32 = vpack.c.bf16 %v2826_v17, %v2818_v16  ;;  %v1839_v63 = vld [vmem:[#allocation19 + $0x2d0] sm:$0xff]  ;;  %v1848_v14 = vld [vmem:[#allocation19 + $0x318] sm:$0xff]  ;;  %v1845_v17 = vld [vmem:[#allocation19 + $0x300] sm:$0xff] }
 0x317   :  { %6060 = vmatprep.subr.bf16.mxu1 %v6059_v59  ;;  %v2866_v0 = vld [vmem:[#allocation10 + $0x1088] sm:$0xff] }
 0x318   :  { %v1843_v12 = vld [vmem:[#allocation19 + $0x2f0] sm:$0xff] }
 0x319   :  { %v7204_v10 = vpop.eup %7203 }
 0x31a   :  { %6062 = vmatpush1.bf16.msra.mxu1 %v6061_v2  ;;  %v7206_v39 = vpop.eup %7205  ;;  %v1717_v53 = vadd.f32 1.0, %v7204_v10  ;;  %v5779_v2 = vpack.c.bf16 %v1824_v50, %v1822_v47  ;;  %v1828_v10 = vld [vmem:[#allocation19 + $0x278] sm:$0xff]  ;;  %v1838_v50 = vld [vmem:[#allocation19 + $0x2c8] sm:$0xff] }
 0x31b   :  { %6064 = vmatprep.subr.bf16.mxu1 %v6063_v4  ;;  %v1718_v61 = vadd.f32 1.0, %v7206_v39  ;;  %v7208_v24 = vpop.eup %7207  ;;  %v6075_v4 = vpack.c.bf16 %v2794_v55, %v2786_v52  ;;  %v2801_v39 = vld [vmem:[#allocation10 + $0xe80] sm:$0xff]  ;;  %v1840_v52 = vld [vmem:[#allocation19 + $0x2d8] sm:$0xff]  ;;  %v6089_v55 = vpack.c.bf16 %v2841_v45, %v2833_v44 }
 0x31c   :  { %v1733_v36 = vmul.f32 %v1717_v53, %v1668_v25  ;;  %v1720_v49 = vadd.f32 1.0, %v7208_v24  ;;  %v2809_v53 = vld [vmem:[#allocation10 + $0xec0] sm:$0xff]  ;;  %v1829_v24 = vld [vmem:[#allocation19 + $0x280] sm:$0xff] }
 0x31d   :  { %v7210_v54 = vpop.eup %7209  ;;  %v1734_v29 = vmul.f32 %v1718_v61, %v1669_v18  ;;  %v1830_v18 = vld [vmem:[#allocation19 + $0x288] sm:$0xff]  ;;  %v1832_v61 = vld [vmem:[#allocation19 + $0x298] sm:$0xff]  ;;  %v6081_v19 = vpack.c.bf16 %v2809_v53, %v2801_v39  ;;  %v1851_v45 = vld [vmem:[#allocation19 + $0x330] sm:$0xff] }
 0x31e   :  { %6066 = vmatpush1.bf16.msra.mxu1 %v6065_v11  ;;  %v7212_v43 = vpop.eup %7211  ;;  %v1725_v37 = vadd.f32 1.0, %v7210_v54  ;;  %v1736_v28 = vmul.f32 %v1720_v49, %v1671_v58  ;;  %v5781_v11 = vpack.c.bf16 %v1823_v5, %v1821_v62  ;;  %v2817_v25 = vld [vmem:[#allocation10 + $0xf00] sm:$0xff]  ;;  %v1837_v58 = vld [vmem:[#allocation19 + $0x2c0] sm:$0xff]  ;;  %v5795_v62 = vpack.c.bf16 %v1840_v52, %v1838_v50  ;;  %v2882_v39 = vld [vmem:[#allocation10 + $0x1108] sm:$0xff] }
 0x31f   :  { %6068 = vmatprep.subr.bf16.mxu1 %v6067_v13  ;;  %2081 = vmatprep.mubr.f32.mxu0 %v1734_v29  ;;  %v1726_v27 = vadd.f32 1.0, %v7212_v43  ;;  %v5783_v13 = vpack.c.bf16 %v1828_v10, %v1826_v9  ;;  %v2825_v54 = vld [vmem:[#allocation10 + $0xf40] sm:$0xff]  ;;  %v5787_v29 = vpack.c.bf16 %v1832_v61, %v1830_v18  ;;  %v2327_v5 = vld [vmem:[#allocation5 + $0x10] sm:$0xff]  ;;  %v2333_v18 = vld [vmem:[#allocation5 + $0x40] sm:$0xf]  ;;  %v5801_v61 = vpack.c.bf16 %v1843_v12, %v1841_v8 }
 0x320   :  { %2082 = vmatmul.mubr.f32.vlgmr.msra.gmra.mrb[8].mxu0 %v1733_v36  ;;  %v1741_v56 = vmul.f32 %v1725_v37, %v1676_v57  ;;  %v2842_v36 = vld [vmem:[#allocation10 + $0xfc8] sm:$0xff]  ;;  %v6085_v41 = vpack.c.bf16 %v2825_v54, %v2817_v25  ;;  %v1833_v37 = vld [vmem:[#allocation19 + $0x2a0] sm:$0xff]  ;;  %v2865_v10 = vld [vmem:[#allocation10 + $0x1080] sm:$0xff]  ;;  %v1023_v52 = vrot.slane %v8002_v48, %v7967_v60 }
 0x321   :  { %5774 = vmatpush1.bf16.msra.mxu0 %v5773_v35  ;;  %v1742_v59 = vmul.f32 %v1726_v27, %v1677_v42  ;;  %v1831_v35 = vld [vmem:[#allocation19 + $0x290] sm:$0xff]  ;;  %v1857_v8 = vld [vmem:[#allocation19 + $0x360] sm:$0xff] }
 0x322   :  { %6070 = vmatpush1.bf16.msra.mxu1 %v6069_v7  ;;  %5776 = vmatprep.subr.bf16.mxu0 %v5775_v23  ;;  %v2834_v7 = vld [vmem:[#allocation10 + $0xf88] sm:$0xff]  ;;  %v1834_v23 = vld [vmem:[#allocation19 + $0x2a8] sm:$0xff]  ;;  %v5789_v15 = vpack.c.bf16 %v1831_v35, %v1829_v24 }
 0x323   :  { %6072 = vmatprep.subr.bf16.mxu1 %v6071_v40  ;;  %2087 = vmatprep.mubr.f32.mxu0 %v1742_v59  ;;  %v1836_v40 = vld [vmem:[#allocation19 + $0x2b8] sm:$0xff]  ;;  %v6087_v43 = vpack.c.bf16 %v2842_v36, %v2834_v7  ;;  %v1835_v49 = vld [vmem:[#allocation19 + $0x2b0] sm:$0xff]  ;;  %v1850_v7 = vld [vmem:[#allocation19 + $0x328] sm:$0xff] }
 0x324   :  { %2088 = vmatmul.mubr.f32.gmra.mrb[10].mxu0 %v1741_v56  ;;  %v5791_v47 = vpack.c.bf16 %v1836_v40, %v1834_v23  ;;  %v2850_v42 = vld [vmem:[#allocation10 + $0x1008] sm:$0xff]  ;;  %v5793_v57 = vpack.c.bf16 %v1835_v49, %v1833_v37  ;;  %v2849_v59 = vld [vmem:[#allocation10 + $0x1000] sm:$0xff] }
 0x325   :  { %5778 = vmatpush1.bf16.msra.mxu0 %v5777_v26  ;;  %2158 = vmatprep.mubr.f32.mxu0 %v1736_v28  ;;  %v2858_v27 = vld [vmem:[#allocation10 + $0x1048] sm:$0xff]  ;;  %v2857_v26 = vld [vmem:[#allocation10 + $0x1040] sm:$0xff]  ;;  %v5797_v28 = vpack.c.bf16 %v1839_v63, %v1837_v58 }
 0x326   :  { %6074 = vmatpush1.bf16.msra.mxu1 %v6073_v21  ;;  %5780 = vmatprep.subr.bf16.mxu0 %v5779_v2  ;;  %v6091_v21 = vpack.c.bf16 %v2858_v27, %v2850_v42  ;;  %v2874_v56 = vld [vmem:[#allocation10 + $0x10c8] sm:$0xff]  ;;  %v1842_v2 = vld [vmem:[#allocation19 + $0x2e8] sm:$0xff]  ;;  %v6093_v6 = vpack.c.bf16 %v2857_v26, %v2849_v59 }
 0x327   :  { %6076 = vmatprep.subr.bf16.mxu1 %v6075_v4  ;;  %v1844_v4 = vld [vmem:[#allocation19 + $0x2f8] sm:$0xff]  ;;  %v6095_v9 = vpack.c.bf16 %v2874_v56, %v2866_v0  ;;  %v1847_v54 = vld [vmem:[#allocation19 + $0x310] sm:$0xff]  ;;  %v1854_v42 = vld [vmem:[#allocation19 + $0x348] sm:$0xff] }
 0x328   :  { %v2890_v53 = vld [vmem:[#allocation10 + $0x1148] sm:$0xff]  ;;  %v5805_v40 = vpack.c.bf16 %v1847_v54, %v1845_v17  ;;  %v2905_v37 = vld [vmem:[#allocation10 + $0x11c0] sm:$0xff] }
 0x329   :  { %5782 = vmatpush1.bf16.msra.mxu0 %v5781_v11  ;;  %v2334_v11 = vld [vmem:[#allocation5 + $0x48] sm:$0xf]  ;;  %v2906_v35 = vld [vmem:[#allocation10 + $0x11c8] sm:$0xff]  ;;  %v1858_v56 = vld [vmem:[#allocation19 + $0x368] sm:$0xff] }
 0x32a   :  { %6078 = vmatpush1.bf16.msra.mxu1 %v6077_v38  ;;  %5784 = vmatprep.subr.bf16.mxu0 %v5783_v13  ;;  %v2873_v38 = vld [vmem:[#allocation10 + $0x10c0] sm:$0xff]  ;;  %v1852_v36 = vld [vmem:[#allocation19 + $0x338] sm:$0xff] }
 0x32b   :  { %6080 = vmatprep.subr.bf16.mxu1 %v6079_v46  ;;  %v5799_v46 = vpack.c.bf16 %v1844_v4, %v1842_v2  ;;  %v1846_v13 = vld [vmem:[#allocation19 + $0x308] sm:$0xff]  ;;  %v6097_v16 = vpack.c.bf16 %v2873_v38, %v2865_v10  ;;  %v2330_v24 = vld [vmem:[#allocation5 + $0x28] sm:$0xff]  ;;  %v5807_v44 = vpack.c.bf16 %v1852_v36, %v1850_v7  ;;  %v8038_v10 = vadd.f32 %v8025_v51, %v8010_v20  ;;  %v1861_v20 = vld [vmem:[#allocation19 + $0x380] sm:$0xff] }
 0x32c   :  { %v5803_v25 = vpack.c.bf16 %v1848_v14, %v1846_v13  ;;  %v2922_v49 = vld [vmem:[#allocation10 + $0x1248] sm:$0xff]  ;;  %v2913_v58 = vld [vmem:[#allocation10 + $0x1200] sm:$0xff]  ;;  %v8042_v14 = vadd.f32 %v8021_v1, %v1023_v52  ;;  %v1865_v36 = vld [vmem:[#allocation19 + $0x3a0] sm:$0xff] }
 0x32d   :  { %5786 = vmatpush1.bf16.msra.mxu0 %v5785_v22  ;;  %v2881_v22 = vld [vmem:[#allocation10 + $0x1100] sm:$0xff]  ;;  %v1856_v27 = vld [vmem:[#allocation19 + $0x358] sm:$0xff] }
 0x32e   :  { %6082 = vmatpush1.bf16.msra.mxu1 %v6081_v19  ;;  %5788 = vmatprep.subr.bf16.mxu0 %v5787_v29  ;;  %v6099_v19 = vpack.c.bf16 %v2890_v53, %v2882_v39  ;;  %v2898_v29 = vld [vmem:[#allocation10 + $0x1188] sm:$0xff]  ;;  %v2921_v59 = vld [vmem:[#allocation10 + $0x1240] sm:$0xff]  ;;  %v5811_v26 = vpack.c.bf16 %v1856_v27, %v1854_v42  ;;  %v1695_v1 = vmul.f32 0.70710677, %v8042_v14  ;;  %v1869_v27 = vld [vmem:[#allocation19 + $0x3c0] sm:$0xff] }
 0x32f   :  { %6084 = vmatprep.subr.bf16.mxu1 %v6083_v32  ;;  %v2889_v32 = vld [vmem:[#allocation10 + $0x1140] sm:$0xff]  ;;  %v2930_v63 = vld [vmem:[#allocation10 + $0x1288] sm:$0xff]  ;;  %v6109_v4 = vpack.c.bf16 %v2921_v59, %v2913_v58 }
 0x330   :  { %v6101_v23 = vpack.c.bf16 %v2889_v32, %v2881_v22  ;;  %v2938_v0 = vld [vmem:[#allocation10 + $0x12c8] sm:$0xff]  ;;  %v1862_v39 = vld [vmem:[#allocation19 + $0x388] sm:$0xff] }
 0x331   :  { %5790 = vmatpush1.bf16.msra.mxu0 %v5789_v15  ;;  %v1849_v15 = vld [vmem:[#allocation19 + $0x320] sm:$0xff]  ;;  %v1860_v2 = vld [vmem:[#allocation19 + $0x378] sm:$0xff]  ;;  %v2945_v51 = vld [vmem:[#allocation10 + $0x1300] sm:$0xff] }
 0x332   :  { %6086 = vmatpush1.bf16.msra.mxu1 %v6085_v41  ;;  %5792 = vmatprep.subr.bf16.mxu0 %v5791_v47  ;;  %v6103_v41 = vpack.c.bf16 %v2906_v35, %v2898_v29  ;;  %v2914_v47 = vld [vmem:[#allocation10 + $0x1208] sm:$0xff]  ;;  %v5815_v38 = vpack.c.bf16 %v1860_v2, %v1858_v56  ;;  %v1874_v59 = vld [vmem:[#allocation19 + $0x3e8] sm:$0xff]  ;;  %v1873_v56 = vld [vmem:[#allocation19 + $0x3e0] sm:$0xff] }
 0x333   :  { %6088 = vmatprep.subr.bf16.mxu1 %v6087_v43  ;;  %v2897_v43 = vld [vmem:[#allocation10 + $0x1180] sm:$0xff]  ;;  %v2954_v12 = vld [vmem:[#allocation10 + $0x1348] sm:$0xff] }
 0x334   :  { %v6105_v50 = vpack.c.bf16 %v2905_v37, %v2897_v43  ;;  %v1864_v53 = vld [vmem:[#allocation19 + $0x398] sm:$0xff]  ;;  %v1863_v22 = vld [vmem:[#allocation19 + $0x390] sm:$0xff] }
 0x335   :  { %5794 = vmatpush1.bf16.msra.mxu0 %v5793_v57  ;;  %v6107_v57 = vpack.c.bf16 %v2922_v49, %v2914_v47  ;;  %v2962_v32 = vld [vmem:[#allocation10 + $0x1388] sm:$0xff]  ;;  %v5821_v35 = vpack.c.bf16 %v1863_v22, %v1861_v20  ;;  %v2993_v2 = vld [vmem:[#allocation10 + $0x1480] sm:$0xff]  ;;  %v1877_v20 = vld [vmem:[#allocation19 + $0x400] sm:$0xff] }
 0x336   :  { %6090 = vmatpush1.bf16.msra.mxu1 %v6089_v55  ;;  %5796 = vmatprep.subr.bf16.mxu0 %v5795_v62  ;;  %v5809_v55 = vpack.c.bf16 %v1851_v45, %v1849_v15  ;;  %v1855_v62 = vld [vmem:[#allocation19 + $0x350] sm:$0xff]  ;;  %v1868_v54 = vld [vmem:[#allocation19 + $0x3b8] sm:$0xff] }
 0x337   :  { %6092 = vmatprep.subr.bf16.mxu1 %v6091_v21  ;;  %v1853_v21 = vld [vmem:[#allocation19 + $0x340] sm:$0xff]  ;;  %v1867_v15 = vld [vmem:[#allocation19 + $0x3b0] sm:$0xff]  ;;  %v1872_v45 = vld [vmem:[#allocation19 + $0x3d8] sm:$0xff] }
 0x338   :  { %v5813_v48 = vpack.c.bf16 %v1855_v62, %v1853_v21  ;;  %v2978_v43 = vld [vmem:[#allocation10 + $0x1408] sm:$0xff]  ;;  %v5825_v49 = vpack.c.bf16 %v1867_v15, %v1865_v36  ;;  %v3033_v36 = vld [vmem:[#allocation10 + $0x15c0] sm:$0xff] }
 0x339   :  { %3289 = vmatmul.mubr.f32.vlgmr.msra.gmra.mrb[16].mxu1 %v2327_v5  ;;  %5798 = vmatpush1.bf16.msra.mxu0 %v5797_v28  ;;  %v8034_v5 = vadd.f32 %v8012_v33, %v1023_v52  ;;  %v2929_v28 = vld [vmem:[#allocation10 + $0x1280] sm:$0xff]  ;;  %v2986_v37 = vld [vmem:[#allocation10 + $0x1448] sm:$0xff] }
 0x33a   :  { %6094 = vmatpush1.bf16.msra.mxu1 %v6093_v6  ;;  %3294 = vmatprep.mubr.f32.mxu1 %v2334_v11  ;;  %v6111_v6 = vpack.c.bf16 %v2938_v0, %v2930_v63  ;;  %v1859_v11 = vld [vmem:[#allocation19 + $0x370] sm:$0xff]  ;;  %v6123_v42 = vpack.c.bf16 %v2986_v37, %v2978_v43  ;;  %v1884_v22 = vld [vmem:[#allocation19 + $0x438] sm:$0xff] }
 0x33b   :  { %6096 = vmatprep.subr.bf16.mxu1 %v6095_v9  ;;  %5800 = vmatprep.subr.bf16.mxu0 %v5799_v46  ;;  %v2937_v9 = vld [vmem:[#allocation10 + $0x12c0] sm:$0xff]  ;;  %v2946_v46 = vld [vmem:[#allocation10 + $0x1308] sm:$0xff]  ;;  %v1687_v13 = vmul.f32 0.70710677, %v8034_v5 }
 0x33c   :  { %v6113_v33 = vpack.c.bf16 %v2937_v9, %v2929_v28  ;;  %v6115_v17 = vpack.c.bf16 %v2954_v12, %v2946_v46  ;;  %v2985_v52 = vld [vmem:[#allocation10 + $0x1440] sm:$0xff]  ;;  %v2994_v21 = vld [vmem:[#allocation10 + $0x1488] sm:$0xff] }
 0x33d   :  { %3295 = vmatmul.mubr.f32.gmra.mrb[18].mxu1 %v2333_v18  ;;  %5802 = vmatpush1.bf16.msra.mxu0 %v5801_v61  ;;  %v2953_v18 = vld [vmem:[#allocation10 + $0x1340] sm:$0xff]  ;;  %v1696_v61 = vmul.f32 0.70710677, %v8038_v10  ;;  %7213 = verf.f32 %v1687_v13  ;;  %v3002_v58 = vld [vmem:[#allocation10 + $0x14c8] sm:$0xff] }
 0x33e   :  { %6098 = vmatpush1.bf16.msra.mxu1 %v6097_v16  ;;  %3365 = vmatprep.mubr.f32.mxu1 %v2330_v24  ;;  %v5817_v16 = vpack.c.bf16 %v1859_v11, %v1857_v8  ;;  %v2970_v24 = vld [vmem:[#allocation10 + $0x13c8] sm:$0xff]  ;;  %v6117_v29 = vpack.c.bf16 %v2953_v18, %v2945_v51  ;;  %v6127_v0 = vpack.c.bf16 %v3002_v58, %v2994_v21  ;;  %v3017_v13 = vld [vmem:[#allocation10 + $0x1540] sm:$0xff] }
 0x33f   :  { %6100 = vmatprep.subr.bf16.mxu1 %v6099_v19  ;;  %5804 = vmatprep.subr.bf16.mxu0 %v5803_v25  ;;  %v5819_v19 = vpack.c.bf16 %v1864_v53, %v1862_v39  ;;  %v1866_v25 = vld [vmem:[#allocation19 + $0x3a8] sm:$0xff]  ;;  %v6119_v7 = vpack.c.bf16 %v2970_v24, %v2962_v32  ;;  %7215 = verf.f32 %v1696_v61  ;;  %v3010_v8 = vld [vmem:[#allocation10 + $0x1508] sm:$0xff] }
 0x340   :  { %7217 = verf.f32 %v1695_v1  ;;  %v3018_v28 = vld [vmem:[#allocation10 + $0x1548] sm:$0xff]  ;;  %v1882_v18 = vld [vmem:[#allocation19 + $0x428] sm:$0xff] }
 0x341   :  { %5806 = vmatpush1.bf16.msra.mxu0 %v5805_v40  ;;  %v2969_v40 = vld [vmem:[#allocation10 + $0x13c0] sm:$0xff]  ;;  %v1880_v11 = vld [vmem:[#allocation19 + $0x418] sm:$0xff]  ;;  %v6131_v53 = vpack.c.bf16 %v3018_v28, %v3010_v8 }
 0x342   :  { %6102 = vmatpush1.bf16.msra.mxu1 %v6101_v23  ;;  %5808 = vmatprep.subr.bf16.mxu0 %v5807_v44  ;;  %v2961_v23 = vld [vmem:[#allocation10 + $0x1380] sm:$0xff]  ;;  %v3026_v32 = vld [vmem:[#allocation10 + $0x1588] sm:$0xff] }
 0x343   :  { %6104 = vmatprep.subr.bf16.mxu1 %v6103_v41  ;;  %v5823_v41 = vpack.c.bf16 %v1868_v54, %v1866_v25  ;;  %v1870_v44 = vld [vmem:[#allocation19 + $0x3c8] sm:$0xff]  ;;  %v6121_v47 = vpack.c.bf16 %v2969_v40, %v2961_v23  ;;  %v1879_v51 = vld [vmem:[#allocation19 + $0x410] sm:$0xff]  ;;  %v1670_v25 = vmul.f32 0.5, %v8034_v5 }
 0x344   :  { %v3034_v24 = vld [vmem:[#allocation10 + $0x15c8] sm:$0xff]  ;;  %v5837_v1 = vpack.c.bf16 %v1879_v51, %v1877_v20  ;;  %v1886_v5 = vld [vmem:[#allocation19 + $0x448] sm:$0xff] }
 0x345   :  { %5810 = vmatpush1.bf16.msra.mxu0 %v5809_v55  ;;  %v5827_v55 = vpack.c.bf16 %v1872_v45, %v1870_v44  ;;  %v6135_v15 = vpack.c.bf16 %v3034_v24, %v3026_v32  ;;  %v1883_v43 = vld [vmem:[#allocation19 + $0x430] sm:$0xff]  ;;  %v1897_v24 = vld [vmem:[#allocation19 + $0x4a0] sm:$0xff] }
 0x346   :  { %6106 = vmatpush1.bf16.msra.mxu1 %v6105_v50  ;;  %5812 = vmatprep.subr.bf16.mxu0 %v5811_v26  ;;  %v2977_v50 = vld [vmem:[#allocation10 + $0x1400] sm:$0xff]  ;;  %v1876_v26 = vld [vmem:[#allocation19 + $0x3f8] sm:$0xff] }
 0x347   :  { %6108 = vmatprep.subr.bf16.mxu1 %v6107_v57  ;;  %v1871_v57 = vld [vmem:[#allocation19 + $0x3d0] sm:$0xff]  ;;  %v6125_v62 = vpack.c.bf16 %v2985_v52, %v2977_v50  ;;  %v7214_v9 = vpop.eup %7213  ;;  %v1885_v50 = vld [vmem:[#allocation19 + $0x440] sm:$0xff] }
 0x348   :  { %v5829_v63 = vpack.c.bf16 %v1871_v57, %v1869_v27  ;;  %v3042_v37 = vld [vmem:[#allocation10 + $0x1608] sm:$0xff]  ;;  %v3041_v52 = vld [vmem:[#allocation10 + $0x1600] sm:$0xff] }
 0x349   :  { %5814 = vmatpush1.bf16.msra.mxu0 %v5813_v48  ;;  %v5831_v48 = vpack.c.bf16 %v1876_v26, %v1874_v59  ;;  %v7216_v46 = vpop.eup %7215  ;;  %v3050_v44 = vld [vmem:[#allocation10 + $0x1648] sm:$0xff] }
 0x34a   :  { %6110 = vmatpush1.bf16.msra.mxu1 %v6109_v4  ;;  %5816 = vmatprep.subr.bf16.mxu0 %v5815_v38  ;;  %v3001_v4 = vld [vmem:[#allocation10 + $0x14c0] sm:$0xff]  ;;  %v7218_v61 = vpop.eup %7217  ;;  %v6139_v27 = vpack.c.bf16 %v3050_v44, %v3042_v37  ;;  %v3058_v59 = vld [vmem:[#allocation10 + $0x1688] sm:$0xff]  ;;  %v2339_v37 = vld [vmem:[#allocation10 + $0x10] sm:$0xff] }
 0x34b   :  { %6112 = vmatprep.subr.bf16.mxu1 %v6111_v6  ;;  %v1875_v6 = vld [vmem:[#allocation19 + $0x3f0] sm:$0xff]  ;;  %v1878_v38 = vld [vmem:[#allocation19 + $0x408] sm:$0xff]  ;;  %v6129_v12 = vpack.c.bf16 %v3001_v4, %v2993_v2  ;;  %v1727_v40 = vadd.f32 1.0, %v7218_v61  ;;  %v1889_v2 = vld [vmem:[#allocation19 + $0x460] sm:$0xff] }
 0x34c   :  { %v5833_v39 = vpack.c.bf16 %v1875_v6, %v1873_v56  ;;  %v1887_v58 = vld [vmem:[#allocation19 + $0x450] sm:$0xff]  ;;  %v1900_v61 = vld [vmem:[#allocation19 + $0x4b8] sm:$0xff] }
 0x34d   :  { %5818 = vmatpush1.bf16.msra.mxu0 %v5817_v16  ;;  %v1719_v16 = vadd.f32 1.0, %v7214_v9  ;;  %v3066_v26 = vld [vmem:[#allocation10 + $0x16c8] sm:$0xff]  ;;  %v3057_v4 = vld [vmem:[#allocation10 + $0x1680] sm:$0xff]  ;;  %v2347_v44 = vld [vmem:[#allocation10 + $0x50] sm:$0xff] }
 0x34e   :  { %6114 = vmatpush1.bf16.msra.mxu1 %v6113_v33  ;;  %5820 = vmatprep.subr.bf16.mxu0 %v5819_v19  ;;  %v3009_v33 = vld [vmem:[#allocation10 + $0x1500] sm:$0xff]  ;;  %v1728_v19 = vadd.f32 1.0, %v7216_v46  ;;  %v6143_v56 = vpack.c.bf16 %v3066_v26, %v3058_v59  ;;  %v3074_v28 = vld [vmem:[#allocation10 + $0x1708] sm:$0xff]  ;;  %v2363_v59 = vld [vmem:[#allocation10 + $0xd0] sm:$0xff] }
 0x34f   :  { %6116 = vmatprep.subr.bf16.mxu1 %v6115_v17  ;;  %v5835_v17 = vpack.c.bf16 %v1880_v11, %v1878_v38  ;;  %v6133_v54 = vpack.c.bf16 %v3017_v13, %v3009_v33  ;;  %v1735_v23 = vmul.f32 %v1719_v16, %v1670_v25  ;;  %v1891_v8 = vld [vmem:[#allocation19 + $0x470] sm:$0xff]  ;;  %v1894_v38 = vld [vmem:[#allocation19 + $0x488] sm:$0xff]  ;;  %v1896_v11 = vld [vmem:[#allocation19 + $0x498] sm:$0xff] }
 0x350   :  { %v3082_v9 = vld [vmem:[#allocation10 + $0x1748] sm:$0xff]  ;;  %v3073_v33 = vld [vmem:[#allocation10 + $0x1700] sm:$0xff]  ;;  %v5851_v16 = vpack.c.bf16 %v1896_v11, %v1894_v38 }
 0x351   :  { %5822 = vmatpush1.bf16.msra.mxu0 %v5821_v35  ;;  %v1881_v35 = vld [vmem:[#allocation19 + $0x420] sm:$0xff]  ;;  %v3081_v13 = vld [vmem:[#allocation10 + $0x1740] sm:$0xff]  ;;  %v3090_v20 = vld [vmem:[#allocation10 + $0x1788] sm:$0xff] }
 0x352   :  { %6118 = vmatpush1.bf16.msra.mxu1 %v6117_v29  ;;  %5824 = vmatprep.subr.bf16.mxu0 %v5823_v41  ;;  %v1679_v29 = vmul.f32 0.5, %v8038_v10  ;;  %v5839_v41 = vpack.c.bf16 %v1884_v22, %v1882_v18  ;;  %v3098_v51 = vld [vmem:[#allocation10 + $0x17c8] sm:$0xff]  ;;  %v1898_v18 = vld [vmem:[#allocation19 + $0x4a8] sm:$0xff] }
 0x353   :  { %6120 = vmatprep.subr.bf16.mxu1 %v6119_v7  ;;  %v3025_v7 = vld [vmem:[#allocation10 + $0x1580] sm:$0xff]  ;;  %v6151_v32 = vpack.c.bf16 %v3098_v51, %v3090_v20  ;;  %v1913_v20 = vld [vmem:[#allocation19 + $0x520] sm:$0xff] }
 0x354   :  { %v1744_v45 = vmul.f32 %v1728_v19, %v1679_v29  ;;  %v6137_v10 = vpack.c.bf16 %v3033_v36, %v3025_v7  ;;  %v6149_v19 = vpack.c.bf16 %v3081_v13, %v3073_v33  ;;  %v3089_v25 = vld [vmem:[#allocation10 + $0x1780] sm:$0xff]  ;;  %v5855_v29 = vpack.c.bf16 %v1900_v61, %v1898_v18  ;;  %v2348_v7 = vld [vmem:[#allocation10 + $0x58] sm:$0xff]  ;;  %v2387_v51 = vld [vmem:[#allocation10 + $0x190] sm:$0xff] }
 0x355   :  { %5826 = vmatpush1.bf16.msra.mxu0 %v5825_v49  ;;  %v1678_v49 = vmul.f32 0.5, %v8042_v14  ;;  %v1902_v36 = vld [vmem:[#allocation19 + $0x4c8] sm:$0xff]  ;;  %v1911_v11 = vld [vmem:[#allocation19 + $0x510] sm:$0xff]  ;;  %v2395_v18 = vld [vmem:[#allocation10 + $0x1d0] sm:$0xff] }
 0x356   :  { %6122 = vmatpush1.bf16.msra.mxu1 %v6121_v47  ;;  %5828 = vmatprep.subr.bf16.mxu0 %v5827_v55  ;;  %v1888_v47 = vld [vmem:[#allocation19 + $0x458] sm:$0xff]  ;;  %v3049_v55 = vld [vmem:[#allocation10 + $0x1640] sm:$0xff] }
 0x357   :  { %6124 = vmatprep.subr.bf16.mxu1 %v6123_v42  ;;  %v5841_v42 = vpack.c.bf16 %v1883_v43, %v1881_v35  ;;  %v1743_v57 = vmul.f32 %v1727_v40, %v1678_v49  ;;  %v5843_v21 = vpack.c.bf16 %v1888_v47, %v1886_v5  ;;  %v6141_v14 = vpack.c.bf16 %v3049_v55, %v3041_v52  ;;  %v2340_v35 = vld [vmem:[#allocation10 + $0x18] sm:$0xff]  ;;  %v1903_v5 = vld [vmem:[#allocation19 + $0x4d0] sm:$0xff]  ;;  %v2336_v52 = vld [vmem:[#allocation5 + $0x58] sm:$0xf] }
 0x358   :  { %v1901_v43 = vld [vmem:[#allocation19 + $0x4c0] sm:$0xff]  ;;  %v8049_v13 = vld [vmem:[#allocation5 + $0x8] sm:$0xff] }
 0x359   :  { %5830 = vmatpush1.bf16.msra.mxu0 %v5829_v63  ;;  %v1892_v63 = vld [vmem:[#allocation19 + $0x478] sm:$0xff]  ;;  %v2356_v47 = vld [vmem:[#allocation10 + $0x98] sm:$0xff]  ;;  %v5861_v55 = vpack.c.bf16 %v1903_v5, %v1901_v43 }
 0x35a   :  { %6126 = vmatpush1.bf16.msra.mxu1 %v6125_v62  ;;  %5832 = vmatprep.subr.bf16.mxu0 %v5831_v48  ;;  %v1890_v62 = vld [vmem:[#allocation19 + $0x468] sm:$0xff] }
 0x35b   :  { %6128 = vmatprep.subr.bf16.mxu1 %v6127_v0  ;;  %v5845_v0 = vpack.c.bf16 %v1887_v58, %v1885_v50  ;;  %v3065_v48 = vld [vmem:[#allocation10 + $0x16c0] sm:$0xff]  ;;  %v5847_v6 = vpack.c.bf16 %v1892_v63, %v1890_v62  ;;  %v2364_v49 = vld [vmem:[#allocation10 + $0xd8] sm:$0xff]  ;;  %v6157_v50 = vpack.c.bf16 %v2347_v44, %v2339_v37  ;;  %v2355_v58 = vld [vmem:[#allocation10 + $0x90] sm:$0xff]  ;;  %v1034_v37 = vsub.s32 5, %v7920_v30 }
 0x35c   :  { %v6145_v46 = vpack.c.bf16 %v3065_v48, %v3057_v4  ;;  %v1907_v62 = vld [vmem:[#allocation19 + $0x4f0] sm:$0xff]  ;;  %v2372_v63 = vld [vmem:[#allocation10 + $0x118] sm:$0xff]  ;;  %v6161_v4 = vpack.c.bf16 %v2363_v59, %v2355_v58 }
 0x35d   :  { %5834 = vmatpush1.bf16.msra.mxu0 %v5833_v39  ;;  %v6147_v39 = vpack.c.bf16 %v3082_v9, %v3074_v28  ;;  %v2371_v28 = vld [vmem:[#allocation10 + $0x110] sm:$0xff]  ;;  %v2428_v43 = vld [vmem:[#allocation10 + $0x2d8] sm:$0xff] }
 0x35e   :  { %6130 = vmatpush1.bf16.msra.mxu1 %v6129_v12  ;;  %5836 = vmatprep.subr.bf16.mxu0 %v5835_v17  ;;  %v5849_v12 = vpack.c.bf16 %v1891_v8, %v1889_v2  ;;  %v1895_v17 = vld [vmem:[#allocation19 + $0x490] sm:$0xff]  ;;  %v2335_v2 = vld [vmem:[#allocation5 + $0x50] sm:$0xf]  ;;  %v1909_v8 = vld [vmem:[#allocation19 + $0x500] sm:$0xff] }
 0x35f   :  { %6132 = vmatprep.subr.bf16.mxu1 %v6131_v53  ;;  %v1893_v53 = vld [vmem:[#allocation19 + $0x480] sm:$0xff]  ;;  %v1922_v44 = vld [vmem:[#allocation19 + $0x568] sm:$0xff] }
 0x360   :  { %2159 = vmatmul.mubr.f32.vlgmr.msra.gmra.mrb[8].mxu0 %v1735_v23  ;;  %v5853_v22 = vpack.c.bf16 %v1895_v17, %v1893_v53  ;;  %v1904_v23 = vld [vmem:[#allocation19 + $0x4d8] sm:$0xff]  ;;  %v2436_v58 = vld [vmem:[#allocation10 + $0x318] sm:$0xff] }
 0x361   :  { %2164 = vmatprep.mubr.f32.mxu0 %v1744_v45  ;;  %5838 = vmatpush1.bf16.msra.mxu0 %v5837_v1  ;;  %v1899_v1 = vld [vmem:[#allocation19 + $0x4b0] sm:$0xff]  ;;  %v5859_v45 = vpack.c.bf16 %v1904_v23, %v1902_v36  ;;  %v2379_v9 = vld [vmem:[#allocation10 + $0x150] sm:$0xff]  ;;  %v2444_v59 = vld [vmem:[#allocation10 + $0x358] sm:$0xff] }
 0x362   :  { %6134 = vmatpush1.bf16.msra.mxu1 %v6133_v54  ;;  %5840 = vmatprep.subr.bf16.mxu0 %v5839_v41  ;;  %v3097_v54 = vld [vmem:[#allocation10 + $0x17c0] sm:$0xff]  ;;  %v5857_v41 = vpack.c.bf16 %v1899_v1, %v1897_v24  ;;  %v1916_v53 = vld [vmem:[#allocation19 + $0x538] sm:$0xff]  ;;  %v6165_v33 = vpack.c.bf16 %v2379_v9, %v2371_v28 }
 0x363   :  { %6136 = vmatprep.subr.bf16.mxu1 %v6135_v15  ;;  %v6153_v40 = vpack.c.bf16 %v3097_v54, %v3089_v25  ;;  %v6155_v15 = vpack.c.bf16 %v2348_v7, %v2340_v35  ;;  %v1918_v24 = vld [vmem:[#allocation19 + $0x548] sm:$0xff]  ;;  %v1920_v25 = vld [vmem:[#allocation19 + $0x558] sm:$0xff]  ;;  %v6169_v54 = vpack.c.bf16 %v2395_v18, %v2387_v51  ;;  %v1917_v35 = vld [vmem:[#allocation19 + $0x540] sm:$0xff] }
 0x364   :  { %2165 = vmatmul.mubr.f32.gmra.mrb[10].mxu0 %v1743_v57  ;;  %v6159_v57 = vpack.c.bf16 %v2364_v49, %v2356_v47  ;;  %v2403_v7 = vld [vmem:[#allocation10 + $0x210] sm:$0xff]  ;;  %v5875_v23 = vpack.c.bf16 %v1920_v25, %v1918_v24  ;;  %v1042_v47 = vsub.s32 7, %v7920_v30  ;;  %v1931_v24 = vld [vmem:[#allocation19 + $0x5b0] sm:$0xff] }
 0x365   :  { %5842 = vmatpush1.bf16.msra.mxu0 %v5841_v42  ;;  %v1908_v42 = vld [vmem:[#allocation19 + $0x4f8] sm:$0xff] }
 0x366   :  { %6138 = vmatpush1.bf16.msra.mxu1 %v6137_v10  ;;  %5844 = vmatprep.subr.bf16.mxu0 %v5843_v21  ;;  %v1906_v10 = vld [vmem:[#allocation19 + $0x4e8] sm:$0xff]  ;;  %v1905_v21 = vld [vmem:[#allocation19 + $0x4e0] sm:$0xff] }
 0x367   :  { %6140 = vmatprep.subr.bf16.mxu1 %v6139_v27  ;;  %v2329_v27 = vld [vmem:[#allocation5 + $0x20] sm:$0xff]  ;;  %v5863_v26 = vpack.c.bf16 %v1908_v42, %v1906_v10  ;;  %v5865_v48 = vpack.c.bf16 %v1907_v62, %v1905_v21  ;;  %v2411_v36 = vld [vmem:[#allocation10 + $0x250] sm:$0xff] }
 0x368   :  { %v6173_v5 = vpack.c.bf16 %v2411_v36, %v2403_v7  ;;  %v1921_v42 = vld [vmem:[#allocation19 + $0x560] sm:$0xff]  ;;  %v1923_v21 = vld [vmem:[#allocation19 + $0x570] sm:$0xff]  ;;  %v1926_v62 = vld [vmem:[#allocation19 + $0x588] sm:$0xff] }
 0x369   :  { %5846 = vmatpush1.bf16.msra.mxu0 %v5845_v0  ;;  %v1910_v0 = vld [vmem:[#allocation19 + $0x508] sm:$0xff]  ;;  %v2451_v25 = vld [vmem:[#allocation10 + $0x390] sm:$0xff] }
 0x36a   :  { %6142 = vmatpush1.bf16.msra.mxu1 %v6141_v14  ;;  %5848 = vmatprep.subr.bf16.mxu0 %v5847_v6  ;;  %v2380_v14 = vld [vmem:[#allocation10 + $0x158] sm:$0xff] }
 0x36b   :  { %6144 = vmatprep.subr.bf16.mxu1 %v6143_v56  ;;  %v1912_v56 = vld [vmem:[#allocation19 + $0x518] sm:$0xff]  ;;  %v6163_v6 = vpack.c.bf16 %v2380_v14, %v2372_v63  ;;  %v2468_v36 = vld [vmem:[#allocation10 + $0x418] sm:$0xff] }
 0x36c   :  { %v5867_v38 = vpack.c.bf16 %v1912_v56, %v1910_v0  ;;  %v1928_v63 = vld [vmem:[#allocation19 + $0x598] sm:$0xff] }
 0x36d   :  { %5850 = vmatpush1.bf16.msra.mxu0 %v5849_v12  ;;  %v2396_v12 = vld [vmem:[#allocation10 + $0x1d8] sm:$0xff] }
 0x36e   :  { %6146 = vmatpush1.bf16.msra.mxu1 %v6145_v46  ;;  %5852 = vmatprep.subr.bf16.mxu0 %v5851_v16  ;;  %v2388_v46 = vld [vmem:[#allocation10 + $0x198] sm:$0xff]  ;;  %v5869_v16 = vpack.c.bf16 %v1911_v11, %v1909_v8  ;;  %v2443_v8 = vld [vmem:[#allocation10 + $0x350] sm:$0xff]  ;;  %v5883_v11 = vpack.c.bf16 %v1928_v63, %v1926_v62 }
 0x36f   :  { %6148 = vmatprep.subr.bf16.mxu1 %v6147_v39  ;;  %v1914_v39 = vld [vmem:[#allocation19 + $0x528] sm:$0xff]  ;;  %v6167_v17 = vpack.c.bf16 %v2396_v12, %v2388_v46  ;;  %v1927_v46 = vld [vmem:[#allocation19 + $0x590] sm:$0xff] }
 0x370   :  { %v5871_v61 = vpack.c.bf16 %v1916_v53, %v1914_v39  ;;  %v2452_v12 = vld [vmem:[#allocation10 + $0x398] sm:$0xff] }
 0x371   :  { %5854 = vmatpush1.bf16.msra.mxu0 %v5853_v22  ;;  %v2404_v22 = vld [vmem:[#allocation10 + $0x218] sm:$0xff] }
 0x372   :  { %6150 = vmatpush1.bf16.msra.mxu1 %v6149_v19  ;;  %5856 = vmatprep.subr.bf16.mxu0 %v5855_v29  ;;  %v1915_v19 = vld [vmem:[#allocation19 + $0x530] sm:$0xff]  ;;  %v2460_v39 = vld [vmem:[#allocation10 + $0x3d8] sm:$0xff] }
 0x373   :  { %6152 = vmatprep.subr.bf16.mxu1 %v6151_v32  ;;  %v2412_v32 = vld [vmem:[#allocation10 + $0x258] sm:$0xff]  ;;  %v5873_v29 = vpack.c.bf16 %v1915_v19, %v1913_v20 }
 0x374   :  { %v6171_v1 = vpack.c.bf16 %v2412_v32, %v2404_v22  ;;  %v6183_v32 = vpack.c.bf16 %v2460_v39, %v2452_v12  ;;  %v2484_v62 = vld [vmem:[#allocation10 + $0x498] sm:$0xff] }
 0x375   :  { %5858 = vmatpush1.bf16.msra.mxu0 %v5857_v41  ;;  %v1030_v41 = vsub.s32 4, %v7920_v30  ;;  %v1938_v63 = vld [vmem:[#allocation19 + $0x5e8] sm:$0xff] }
 0x376   :  { %6154 = vmatpush1.bf16.msra.mxu1 %v6153_v40  ;;  %5860 = vmatprep.subr.bf16.mxu0 %v5859_v45  ;;  %v1919_v40 = vld [vmem:[#allocation19 + $0x550] sm:$0xff]  ;;  %v1924_v45 = vld [vmem:[#allocation19 + $0x578] sm:$0xff]  ;;  %v2508_v12 = vld [vmem:[#allocation10 + $0x558] sm:$0xff] }
 0x377   :  { %6156 = vmatprep.subr.bf16.mxu1 %v6155_v15  ;;  %v2420_v15 = vld [vmem:[#allocation10 + $0x298] sm:$0xff]  ;;  %v5877_v49 = vpack.c.bf16 %v1919_v40, %v1917_v35 }
 0x378   :  { %v6175_v10 = vpack.c.bf16 %v2428_v43, %v2420_v15  ;;  %v1942_v39 = vld [vmem:[#allocation19 + $0x608] sm:$0xff] }
 0x379   :  { %3366 = vmatmul.mubr.f32.vlgmr.msra.gmra.mrb[16].mxu1 %v2329_v27  ;;  %5862 = vmatpush1.bf16.msra.mxu0 %v5861_v55  ;;  %v2419_v27 = vld [vmem:[#allocation10 + $0x290] sm:$0xff] }
 0x37a   :  { %6158 = vmatpush1.bf16.msra.mxu1 %v6157_v50  ;;  %3371 = vmatprep.mubr.f32.mxu1 %v2336_v52  ;;  %v2427_v50 = vld [vmem:[#allocation10 + $0x2d0] sm:$0xff] }
 0x37b   :  { %6160 = vmatprep.subr.bf16.mxu1 %v6159_v57  ;;  %5864 = vmatprep.subr.bf16.mxu0 %v5863_v26  ;;  %v8055_v52 = vld [vmem:[#allocation17] sm:$0xff]  ;;  %v5879_v57 = vpack.c.bf16 %v1924_v45, %v1922_v44  ;;  %v6177_v0 = vpack.c.bf16 %v2427_v50, %v2419_v27  ;;  %v1934_v44 = vld [vmem:[#allocation19 + $0x5c8] sm:$0xff]  ;;  %v1933_v50 = vld [vmem:[#allocation19 + $0x5c0] sm:$0xff] }
 0x37c   :  { %v1031_v55 = vrot.slane %v8055_v52, %v1030_v41  ;;  %v1035_v26 = vrot.slane %v8055_v52, %v1034_v37  ;;  %v8066_v14 = vrot.slane %v8055_v52, %v1042_v47  ;;  %v1936_v45 = vld [vmem:[#allocation19 + $0x5d8] sm:$0xff] }
 0x37d   :  { %3372 = vmatmul.mubr.f32.gmra.mrb[18].mxu1 %v2335_v2  ;;  %5866 = vmatpush1.bf16.msra.mxu0 %v5865_v48  ;;  %v5881_v2 = vpack.c.bf16 %v1923_v21, %v1921_v42  ;;  %v1925_v48 = vld [vmem:[#allocation19 + $0x580] sm:$0xff] }
 0x37e   :  { %6162 = vmatpush1.bf16.msra.mxu1 %v6161_v4  ;;  %3442 = vmatprep.mubr.f32.mxu1 %v8049_v13  ;;  %v6179_v4 = vpack.c.bf16 %v2444_v59, %v2436_v58  ;;  %v5885_v22 = vpack.c.bf16 %v1927_v46, %v1925_v48  ;;  %v5891_v58 = vpack.c.bf16 %v1936_v45, %v1934_v44  ;;  %v1935_v59 = vld [vmem:[#allocation19 + $0x5d0] sm:$0xff]  ;;  %v1937_v48 = vld [vmem:[#allocation19 + $0x5e0] sm:$0xff] }
 0x37f   :  { %6164 = vmatprep.subr.bf16.mxu1 %v6163_v6  ;;  %5868 = vmatprep.subr.bf16.mxu0 %v5867_v38  ;;  %v2435_v6 = vld [vmem:[#allocation10 + $0x310] sm:$0xff]  ;;  %v2500_v46 = vld [vmem:[#allocation10 + $0x518] sm:$0xff] }
 0x380   :  { %v6181_v18 = vpack.c.bf16 %v2443_v8, %v2435_v6  ;;  %v2483_v6 = vld [vmem:[#allocation10 + $0x490] sm:$0xff] }
 0x381   :  { %5870 = vmatpush1.bf16.msra.mxu0 %v5869_v16  ;;  %v1930_v16 = vld [vmem:[#allocation19 + $0x5a8] sm:$0xff]  ;;  %v2491_v8 = vld [vmem:[#allocation10 + $0x4d0] sm:$0xff] }
 0x382   :  { %6166 = vmatpush1.bf16.msra.mxu1 %v6165_v33  ;;  %5872 = vmatprep.subr.bf16.mxu0 %v5871_v61  ;;  %v1929_v61 = vld [vmem:[#allocation19 + $0x5a0] sm:$0xff] }
 0x383   :  { %6168 = vmatprep.subr.bf16.mxu1 %v6167_v17  ;;  %v1932_v17 = vld [vmem:[#allocation19 + $0x5b8] sm:$0xff]  ;;  %v5889_v42 = vpack.c.bf16 %v1931_v24, %v1929_v61  ;;  %v1941_v61 = vld [vmem:[#allocation19 + $0x600] sm:$0xff] }
 0x384   :  { %v5887_v7 = vpack.c.bf16 %v1932_v17, %v1930_v16  ;;  %v6193_v17 = vpack.c.bf16 %v2491_v8, %v2483_v6  ;;  %v1952_v6 = vld [vmem:[#allocation19 + $0x658] sm:$0xff] }
 0x385   :  { %5874 = vmatpush1.bf16.msra.mxu0 %v5873_v29 }
 0x386   :  { %6170 = vmatpush1.bf16.msra.mxu1 %v6169_v54  ;;  %5876 = vmatprep.subr.bf16.mxu0 %v5875_v23  ;;  %v2459_v54 = vld [vmem:[#allocation10 + $0x3d0] sm:$0xff]  ;;  %v2476_v23 = vld [vmem:[#allocation10 + $0x458] sm:$0xff] }
 0x387   :  { %6172 = vmatprep.subr.bf16.mxu1 %v6171_v1  ;;  %v6187_v27 = vpack.c.bf16 %v2476_v23, %v2468_v36  ;;  %v1946_v23 = vld [vmem:[#allocation19 + $0x628] sm:$0xff] }
 0x389   :  { %5878 = vmatpush1.bf16.msra.mxu0 %v5877_v49  ;;  %v6185_v49 = vpack.c.bf16 %v2459_v54, %v2451_v25  ;;  %v1943_v54 = vld [vmem:[#allocation19 + $0x610] sm:$0xff] }
 0x38a   :  { %6174 = vmatpush1.bf16.msra.mxu1 %v6173_v5  ;;  %5880 = vmatprep.subr.bf16.mxu0 %v5879_v57  ;;  %v2467_v57 = vld [vmem:[#allocation10 + $0x410] sm:$0xff] }
 0x38b   :  { %v1503_v56 = vpop.f32.mrb[4].mxu0  ;;  %6176 = vmatprep.subr.bf16.mxu1 %v6175_v10 }
 0x38c   :  { %v8068_v28 = vadd.f32 %v1503_v56, %v1031_v55  ;;  %v8070_v9 = vpop.f32.mrb[12].mxu1  ;;  %v1505_v38 = vpop.f32.mrb[5].mxu0 }
 0x38d   :  { %v8072_v53 = vadd.f32 %v1505_v38, %v1035_v26  ;;  %v1659_v33 = vpop.f32.mrb[13].mxu1  ;;  %5882 = vmatpush1.bf16.msra.mxu0 %v5881_v2  ;;  %v5893_v2 = vpack.c.bf16 %v1935_v59, %v1933_v50  ;;  %v2540_v59 = vld [vmem:[#allocation10 + $0x658] sm:$0xff] }
 0x38e   :  { %v1689_v20 = vmul.f32 0.70710677, %v8068_v28  ;;  %v8076_v51 = vadd.f32 %v1659_v33, %v8066_v14  ;;  %6178 = vmatpush1.bf16.msra.mxu1 %v6177_v0  ;;  %5884 = vmatprep.subr.bf16.mxu0 %v5883_v11  ;;  %v1940_v0 = vld [vmem:[#allocation19 + $0x5f8] sm:$0xff]  ;;  %v1939_v11 = vld [vmem:[#allocation19 + $0x5f0] sm:$0xff]  ;;  %v1672_v45 = vmul.f32 0.5, %v8068_v28 }
 0x38f   :  { %v1690_v19 = vmul.f32 0.70710677, %v8072_v53  ;;  %6180 = vmatprep.subr.bf16.mxu1 %v6179_v4  ;;  %v1509_v1 = vpop.f32.mrb[6].mxu0  ;;  %v5895_v38 = vpack.c.bf16 %v1940_v0, %v1938_v63  ;;  %v1944_v33 = vld [vmem:[#allocation19 + $0x618] sm:$0xff]  ;;  %v1945_v63 = vld [vmem:[#allocation19 + $0x620] sm:$0xff]  ;;  %v1947_v28 = vld [vmem:[#allocation19 + $0x630] sm:$0xff] }
 0x390   :  { %7219 = verf.f32 %v1689_v20  ;;  %v1692_v29 = vmul.f32 0.70710677, %v8076_v51  ;;  %v8080_v35 = vpop.f32.mrb[14].mxu1  ;;  %v8082_v40 = vadd.f32 %v1509_v1, %v1031_v55  ;;  %v1511_v15 = vpop.f32.mrb[7].mxu0  ;;  %v2475_v55 = vld [vmem:[#allocation10 + $0x450] sm:$0xff]  ;;  %v5897_v20 = vpack.c.bf16 %v1939_v11, %v1937_v48  ;;  %v2524_v1 = vld [vmem:[#allocation10 + $0x5d8] sm:$0xff] }
 0x391   :  { %v8084_v43 = vpop.f32.mrb[15].mxu1  ;;  %7221 = verf.f32 %v1690_v19  ;;  %v8086_v5 = vadd.f32 %v1511_v15, %v1035_v26  ;;  %5886 = vmatpush1.bf16.msra.mxu0 %v5885_v22  ;;  %v2492_v26 = vld [vmem:[#allocation10 + $0x4d8] sm:$0xff]  ;;  %v6189_v56 = vpack.c.bf16 %v2475_v55, %v2467_v57  ;;  %v2499_v19 = vld [vmem:[#allocation10 + $0x510] sm:$0xff]  ;;  %v5899_v25 = vpack.c.bf16 %v1944_v33, %v1942_v39 }
 0x392   :  { %6182 = vmatpush1.bf16.msra.mxu1 %v6181_v18  ;;  %v1697_v10 = vmul.f32 0.70710677, %v8082_v40  ;;  %7223 = verf.f32 %v1692_v29  ;;  %5888 = vmatprep.subr.bf16.mxu0 %v5887_v7  ;;  %v6191_v4 = vpack.c.bf16 %v2492_v26, %v2484_v62  ;;  %v6195_v18 = vpack.c.bf16 %v2508_v12, %v2500_v46  ;;  %v2507_v22 = vld [vmem:[#allocation10 + $0x550] sm:$0xff]  ;;  %v2516_v29 = vld [vmem:[#allocation10 + $0x598] sm:$0xff] }
 0x393   :  { %6184 = vmatprep.subr.bf16.mxu1 %v6183_v32  ;;  %v1698_v21 = vmul.f32 0.70710677, %v8086_v5  ;;  %v1673_v7 = vmul.f32 0.5, %v8072_v53  ;;  %v1948_v15 = vld [vmem:[#allocation19 + $0x638] sm:$0xff]  ;;  %v6199_v50 = vpack.c.bf16 %v2524_v1, %v2516_v29  ;;  %v2532_v53 = vld [vmem:[#allocation10 + $0x618] sm:$0xff]  ;;  %v1680_v8 = vmul.f32 0.5, %v8082_v40 }
 0x394   :  { %7225 = verf.f32 %v1697_v10  ;;  %v2515_v57 = vld [vmem:[#allocation10 + $0x590] sm:$0xff]  ;;  %v1950_v48 = vld [vmem:[#allocation19 + $0x648] sm:$0xff]  ;;  %v1675_v12 = vmul.f32 0.5, %v8076_v51  ;;  %v5905_v33 = vpack.c.bf16 %v1947_v28, %v1945_v63 }
 0x395   :  { %7227 = verf.f32 %v1698_v21  ;;  %5890 = vmatpush1.bf16.msra.mxu0 %v5889_v42  ;;  %v2523_v55 = vld [vmem:[#allocation10 + $0x5d0] sm:$0xff]  ;;  %v2564_v29 = vld [vmem:[#allocation10 + $0x718] sm:$0xff] }
 0x396   :  { %6186 = vmatpush1.bf16.msra.mxu1 %v6185_v49  ;;  %5892 = vmatprep.subr.bf16.mxu0 %v5891_v58  ;;  %v6197_v49 = vpack.c.bf16 %v2507_v22, %v2499_v19  ;;  %v5903_v58 = vpack.c.bf16 %v1948_v15, %v1946_v23  ;;  %v2531_v11 = vld [vmem:[#allocation10 + $0x610] sm:$0xff]  ;;  %v1954_v22 = vld [vmem:[#allocation19 + $0x668] sm:$0xff]  ;;  %v1955_v23 = vld [vmem:[#allocation19 + $0x670] sm:$0xff] }
 0x397   :  { %6188 = vmatprep.subr.bf16.mxu1 %v6187_v27  ;;  %v5901_v27 = vpack.c.bf16 %v1943_v54, %v1941_v61  ;;  %v2539_v46 = vld [vmem:[#allocation10 + $0x650] sm:$0xff]  ;;  %v1951_v61 = vld [vmem:[#allocation19 + $0x650] sm:$0xff]  ;;  %v2572_v1 = vld [vmem:[#allocation10 + $0x758] sm:$0xff] }
 0x398   :  { %v6205_v40 = vpack.c.bf16 %v2539_v46, %v2531_v11  ;;  %v2555_v51 = vld [vmem:[#allocation10 + $0x6d0] sm:$0xff] }
 0x399   :  { %5894 = vmatpush1.bf16.msra.mxu0 %v5893_v2  ;;  %v2579_v63 = vld [vmem:[#allocation10 + $0x790] sm:$0xff] }
 0x39a   :  { %v7220_v16 = vpop.eup %7219  ;;  %6190 = vmatpush1.bf16.msra.mxu1 %v6189_v56  ;;  %5896 = vmatprep.subr.bf16.mxu0 %v5895_v38  ;;  %v1681_v56 = vmul.f32 0.5, %v8086_v5  ;;  %v6203_v38 = vpack.c.bf16 %v2540_v59, %v2532_v53  ;;  %v2556_v5 = vld [vmem:[#allocation10 + $0x6d8] sm:$0xff]  ;;  %v2587_v28 = vld [vmem:[#allocation10 + $0x7d0] sm:$0xff] }
 0x39b   :  { %6192 = vmatprep.subr.bf16.mxu1 %v6191_v4  ;;  %v7222_v32 = vpop.eup %7221  ;;  %v1721_v24 = vadd.f32 1.0, %v7220_v16  ;;  %v6201_v4 = vpack.c.bf16 %v2523_v55, %v2515_v57  ;;  %v2548_v16 = vld [vmem:[#allocation10 + $0x698] sm:$0xff]  ;;  %v1968_v11 = vld [vmem:[#allocation19 + $0x6d8] sm:$0xff] }
 0x39c   :  { %v1722_v36 = vadd.f32 1.0, %v7222_v32  ;;  %v7224_v44 = vpop.eup %7223  ;;  %v1956_v32 = vld [vmem:[#allocation19 + $0x678] sm:$0xff]  ;;  %v2588_v57 = vld [vmem:[#allocation10 + $0x7d8] sm:$0xff] }
 0x39d   :  { %5898 = vmatpush1.bf16.msra.mxu0 %v5897_v20  ;;  %v1737_v21 = vmul.f32 %v1721_v24, %v1672_v45  ;;  %v1724_v0 = vadd.f32 1.0, %v7224_v44  ;;  %v5907_v20 = vpack.c.bf16 %v1952_v6, %v1950_v48  ;;  %v6207_v24 = vpack.c.bf16 %v2556_v5, %v2548_v16  ;;  %v1958_v44 = vld [vmem:[#allocation19 + $0x688] sm:$0xff]  ;;  %v1960_v45 = vld [vmem:[#allocation19 + $0x698] sm:$0xff]  ;;  %v1961_v48 = vld [vmem:[#allocation19 + $0x6a0] sm:$0xff] }
 0x39e   :  { %6194 = vmatpush1.bf16.msra.mxu1 %v6193_v17  ;;  %v7226_v10 = vpop.eup %7225  ;;  %v1738_v42 = vmul.f32 %v1722_v36, %v1673_v7  ;;  %5900 = vmatprep.subr.bf16.mxu0 %v5899_v25  ;;  %v2547_v25 = vld [vmem:[#allocation10 + $0x690] sm:$0xff]  ;;  %v5911_v7 = vpack.c.bf16 %v1956_v32, %v1954_v22  ;;  %v5915_v55 = vpack.c.bf16 %v1960_v45, %v1958_v44  ;;  %v1962_v59 = vld [vmem:[#allocation19 + $0x6a8] sm:$0xff]  ;;  %v1963_v6 = vld [vmem:[#allocation19 + $0x6b0] sm:$0xff] }
 0x39f   :  { %6196 = vmatprep.subr.bf16.mxu1 %v6195_v18  ;;  %v7228_v62 = vpop.eup %7227  ;;  %v1729_v26 = vadd.f32 1.0, %v7226_v10  ;;  %v1949_v18 = vld [vmem:[#allocation19 + $0x640] sm:$0xff]  ;;  %v1740_v19 = vmul.f32 %v1724_v0, %v1675_v12  ;;  %v6209_v15 = vpack.c.bf16 %v2555_v51, %v2547_v25  ;;  %v1976_v44 = vld [vmem:[#allocation19 + $0x718] sm:$0xff] }
 0x3a0   :  { %2235 = vmatprep.mubr.f32.mxu0 %v1738_v42  ;;  %v1730_v2 = vadd.f32 1.0, %v7228_v62  ;;  %v5909_v54 = vpack.c.bf16 %v1951_v61, %v1949_v18  ;;  %v1953_v36 = vld [vmem:[#allocation19 + $0x660] sm:$0xff]  ;;  %v1964_v62 = vld [vmem:[#allocation19 + $0x6b8] sm:$0xff]  ;;  %v1967_v18 = vld [vmem:[#allocation19 + $0x6d0] sm:$0xff] }
 0x3a1   :  { %2236 = vmatmul.mubr.f32.vlgmr.msra.gmra.mrb[8].mxu0 %v1737_v21  ;;  %v1745_v17 = vmul.f32 %v1729_v26, %v1680_v8  ;;  %v2563_v10 = vld [vmem:[#allocation10 + $0x710] sm:$0xff]  ;;  %v6217_v8 = vpack.c.bf16 %v2587_v28, %v2579_v63  ;;  %v2612_v16 = vld [vmem:[#allocation10 + $0x898] sm:$0xff] }
 0x3a2   :  { %6198 = vmatpush1.bf16.msra.mxu1 %v6197_v49  ;;  %5902 = vmatpush1.bf16.msra.mxu0 %v5901_v27  ;;  %v1746_v39 = vmul.f32 %v1730_v2, %v1681_v56  ;;  %v6211_v49 = vpack.c.bf16 %v2572_v1, %v2564_v29  ;;  %v2571_v42 = vld [vmem:[#allocation10 + $0x750] sm:$0xff]  ;;  %v5913_v27 = vpack.c.bf16 %v1955_v23, %v1953_v36  ;;  %v2596_v56 = vld [vmem:[#allocation10 + $0x818] sm:$0xff]  ;;  %v1971_v36 = vld [vmem:[#allocation19 + $0x6f0] sm:$0xff] }
 0x3a3   :  { %6200 = vmatprep.subr.bf16.mxu1 %v6199_v50  ;;  %5904 = vmatprep.subr.bf16.mxu0 %v5903_v58  ;;  %v2580_v50 = vld [vmem:[#allocation10 + $0x798] sm:$0xff]  ;;  %v1959_v58 = vld [vmem:[#allocation19 + $0x690] sm:$0xff]  ;;  %v6213_v53 = vpack.c.bf16 %v2571_v42, %v2563_v10  ;;  %v2595_v12 = vld [vmem:[#allocation10 + $0x810] sm:$0xff] }
 0x3a4   :  { %2241 = vmatprep.mubr.f32.mxu0 %v1746_v39  ;;  %v1957_v21 = vld [vmem:[#allocation19 + $0x680] sm:$0xff]  ;;  %v6215_v26 = vpack.c.bf16 %v2588_v57, %v2580_v50  ;;  %v8095_v29 = vld [vmem:[#allocation5] sm:$0xff] }
 0x3a5   :  { %2242 = vmatmul.mubr.f32.gmra.mrb[10].mxu0 %v1745_v17  ;;  %v5917_v0 = vpack.c.bf16 %v1959_v58, %v1957_v21  ;;  %v2604_v2 = vld [vmem:[#allocation10 + $0x858] sm:$0xff]  ;;  %v2603_v39 = vld [vmem:[#allocation10 + $0x850] sm:$0xff]  ;;  %v1975_v58 = vld [vmem:[#allocation19 + $0x710] sm:$0xff] }
 0x3a6   :  { %6202 = vmatpush1.bf16.msra.mxu1 %v6201_v4  ;;  %5906 = vmatpush1.bf16.msra.mxu0 %v5905_v33  ;;  %v5919_v4 = vpack.c.bf16 %v1964_v62, %v1962_v59  ;;  %v6219_v46 = vpack.c.bf16 %v2604_v2, %v2596_v56  ;;  %v5921_v33 = vpack.c.bf16 %v1963_v6, %v1961_v48  ;;  %v2620_v5 = vld [vmem:[#allocation10 + $0x8d8] sm:$0xff]  ;;  %v2611_v32 = vld [vmem:[#allocation10 + $0x890] sm:$0xff]  ;;  %v1038_v2 = vsub.s32 6, %v7920_v30 }
 0x3a7   :  { %6204 = vmatprep.subr.bf16.mxu1 %v6203_v38  ;;  %2312 = vmatprep.mubr.f32.mxu0 %v1740_v19  ;;  %v1966_v38 = vld [vmem:[#allocation19 + $0x6c8] sm:$0xff]  ;;  %v6221_v61 = vpack.c.bf16 %v2603_v39, %v2595_v12  ;;  %v6223_v22 = vpack.c.bf16 %v2620_v5, %v2612_v16  ;;  %v8098_v45 = vld [vmem:[#allocation5 + $0x38] sm:$0xf]  ;;  %v1984_v39 = vld [vmem:[#allocation19 + $0x758] sm:$0xff] }
 0x3a8   :  { %5908 = vmatprep.subr.bf16.mxu0 %v5907_v20  ;;  %v5923_v17 = vpack.c.bf16 %v1968_v11, %v1966_v38  ;;  %v1965_v20 = vld [vmem:[#allocation19 + $0x6c0] sm:$0xff]  ;;  %v1970_v19 = vld [vmem:[#allocation19 + $0x6e8] sm:$0xff]  ;;  %v1979_v11 = vld [vmem:[#allocation19 + $0x730] sm:$0xff] }
 0x3a9   :  { %v5925_v25 = vpack.c.bf16 %v1967_v18, %v1965_v20  ;;  %v2628_v51 = vld [vmem:[#allocation10 + $0x918] sm:$0xff]  ;;  %v2627_v10 = vld [vmem:[#allocation10 + $0x910] sm:$0xff] }
 0x3aa   :  { %6206 = vmatpush1.bf16.msra.mxu1 %v6205_v40  ;;  %5910 = vmatpush1.bf16.msra.mxu0 %v5909_v54  ;;  %v1972_v40 = vld [vmem:[#allocation19 + $0x6f8] sm:$0xff]  ;;  %v2636_v54 = vld [vmem:[#allocation10 + $0x958] sm:$0xff] }
 0x3ab   :  { %6208 = vmatprep.subr.bf16.mxu1 %v6207_v24  ;;  %5912 = vmatprep.subr.bf16.mxu0 %v5911_v7  ;;  %v2619_v24 = vld [vmem:[#allocation10 + $0x8d0] sm:$0xff]  ;;  %v5927_v1 = vpack.c.bf16 %v1972_v40, %v1970_v19  ;;  %v2644_v50 = vld [vmem:[#allocation10 + $0x998] sm:$0xff] }
 0x3ac   :  { %v1969_v7 = vld [vmem:[#allocation19 + $0x6e0] sm:$0xff]  ;;  %v6225_v23 = vpack.c.bf16 %v2619_v24, %v2611_v32  ;;  %v1978_v62 = vld [vmem:[#allocation19 + $0x728] sm:$0xff] }
 0x3ad   :  { %v2635_v42 = vld [vmem:[#allocation10 + $0x950] sm:$0xff]  ;;  %v2652_v57 = vld [vmem:[#allocation10 + $0x9d8] sm:$0xff] }
 0x3ae   :  { %6210 = vmatpush1.bf16.msra.mxu1 %v6209_v15  ;;  %5914 = vmatpush1.bf16.msra.mxu0 %v5913_v27  ;;  %v1974_v15 = vld [vmem:[#allocation19 + $0x708] sm:$0xff]  ;;  %v5929_v27 = vpack.c.bf16 %v1971_v36, %v1969_v7  ;;  %v1973_v21 = vld [vmem:[#allocation19 + $0x700] sm:$0xff]  ;;  %v6229_v59 = vpack.c.bf16 %v2635_v42, %v2627_v10  ;;  %v6231_v28 = vpack.c.bf16 %v2652_v57, %v2644_v50  ;;  %v1987_v10 = vld [vmem:[#allocation19 + $0x770] sm:$0xff] }
 0x3af   :  { %6212 = vmatprep.subr.bf16.mxu1 %v6211_v49  ;;  %5916 = vmatprep.subr.bf16.mxu0 %v5915_v55  ;;  %v6227_v49 = vpack.c.bf16 %v2636_v54, %v2628_v51  ;;  %v5931_v55 = vpack.c.bf16 %v1976_v44, %v1974_v15  ;;  %v8104_v63 = vld [vmem:[#allocation5 + $0x18] sm:$0xff]  ;;  %v8116_v15 = vadd.f32 %v8084_v43, %v8066_v14  ;;  %v1992_v50 = vld [vmem:[#allocation19 + $0x798] sm:$0xff] }
 0x3b0   :  { %v2651_v56 = vld [vmem:[#allocation10 + $0x9d0] sm:$0xff]  ;;  %v2660_v48 = vld [vmem:[#allocation10 + $0xa18] sm:$0xff] }
 0x3b1   :  { %v2668_v6 = vld [vmem:[#allocation10 + $0xa58] sm:$0xff]  ;;  %v2659_v16 = vld [vmem:[#allocation10 + $0xa10] sm:$0xff] }
 0x3b2   :  { %6214 = vmatpush1.bf16.msra.mxu1 %v6213_v53  ;;  %5918 = vmatpush1.bf16.msra.mxu0 %v5917_v0  ;;  %v8101_v53 = vld [vmem:[#allocation5 + $0x30] sm:$0xf]  ;;  %v2643_v0 = vld [vmem:[#allocation10 + $0x990] sm:$0xff]  ;;  %v1982_v12 = vld [vmem:[#allocation19 + $0x748] sm:$0xff] }
 0x3b3   :  { %6216 = vmatprep.subr.bf16.mxu1 %v6215_v26  ;;  %5920 = vmatprep.subr.bf16.mxu0 %v5919_v4  ;;  %v1980_v26 = vld [vmem:[#allocation19 + $0x738] sm:$0xff]  ;;  %v5933_v4 = vpack.c.bf16 %v1975_v58, %v1973_v21  ;;  %v1977_v38 = vld [vmem:[#allocation19 + $0x720] sm:$0xff]  ;;  %v5939_v19 = vpack.c.bf16 %v1984_v39, %v1982_v12  ;;  %v1986_v24 = vld [vmem:[#allocation19 + $0x768] sm:$0xff] }
 0x3b4   :  { %v2667_v5 = vld [vmem:[#allocation10 + $0xa50] sm:$0xff]  ;;  %v5937_v20 = vpack.c.bf16 %v1979_v11, %v1977_v38  ;;  %v2676_v18 = vld [vmem:[#allocation10 + $0xa98] sm:$0xff] }
 0x3b5   :  { %v1981_v40 = vld [vmem:[#allocation19 + $0x740] sm:$0xff]  ;;  %v6237_v32 = vpack.c.bf16 %v2667_v5, %v2659_v16  ;;  %v1995_v16 = vld [vmem:[#allocation19 + $0x7b0] sm:$0xff] }
 0x3b6   :  { %6218 = vmatpush1.bf16.msra.mxu1 %v6217_v8  ;;  %5922 = vmatpush1.bf16.msra.mxu0 %v5921_v33  ;;  %v5935_v8 = vpack.c.bf16 %v1980_v26, %v1978_v62  ;;  %v6235_v33 = vpack.c.bf16 %v2668_v6, %v2660_v48  ;;  %v2675_v54 = vld [vmem:[#allocation10 + $0xa90] sm:$0xff]  ;;  %v2692_v36 = vld [vmem:[#allocation10 + $0xb18] sm:$0xff]  ;;  %v1700_v62 = vmul.f32 0.70710677, %v8116_v15 }
 0x3b7   :  { %6220 = vmatprep.subr.bf16.mxu1 %v6219_v46  ;;  %5924 = vmatprep.subr.bf16.mxu0 %v5923_v17  ;;  %v6233_v46 = vpack.c.bf16 %v2651_v56, %v2643_v0  ;;  %v1039_v17 = vrot.slane %v8055_v52, %v1038_v2  ;;  %v2708_v43 = vld [vmem:[#allocation10 + $0xb98] sm:$0xff]  ;;  %v1991_v0 = vld [vmem:[#allocation19 + $0x790] sm:$0xff]  ;;  %v1996_v48 = vld [vmem:[#allocation19 + $0x7b8] sm:$0xff] }
 0x3b8   :  { %v2715_v38 = vld [vmem:[#allocation10 + $0xbd0] sm:$0xff]  ;;  %v2732_v12 = vld [vmem:[#allocation10 + $0xc58] sm:$0xff] }
 0x3b9   :  { %3443 = vmatmul.mubr.f32.vlgmr.msra.gmra.mrb[20].mxu1 %v8095_v29  ;;  %v8112_v7 = vadd.f32 %v8070_v9, %v1039_v17  ;;  %v2691_v9 = vld [vmem:[#allocation10 + $0xb10] sm:$0xff]  ;;  %v8120_v58 = vadd.f32 %v8080_v35, %v1039_v17  ;;  %v1998_v17 = vld [vmem:[#allocation19 + $0x7c8] sm:$0xff] }
 0x3ba   :  { %6222 = vmatpush1.bf16.msra.mxu1 %v6221_v61  ;;  %3448 = vmatprep.mubr.f32.mxu1 %v8098_v45  ;;  %v2684_v61 = vld [vmem:[#allocation10 + $0xad8] sm:$0xff] }
 0x3bb   :  { %6224 = vmatprep.subr.bf16.mxu1 %v6223_v22  ;;  %5926 = vmatpush1.bf16.msra.mxu0 %v5925_v25  ;;  %v1983_v22 = vld [vmem:[#allocation19 + $0x750] sm:$0xff]  ;;  %v1988_v25 = vld [vmem:[#allocation19 + $0x778] sm:$0xff]  ;;  %v6239_v51 = vpack.c.bf16 %v2684_v61, %v2676_v18  ;;  %v1691_v21 = vmul.f32 0.70710677, %v8112_v7  ;;  %v1699_v35 = vmul.f32 0.70710677, %v8120_v58 }
 0x3bc   :  { %5928 = vmatprep.subr.bf16.mxu0 %v5927_v1  ;;  %v2683_v1 = vld [vmem:[#allocation10 + $0xad0] sm:$0xff]  ;;  %v5941_v52 = vpack.c.bf16 %v1983_v22, %v1981_v40  ;;  %v5943_v44 = vpack.c.bf16 %v1988_v25, %v1986_v24  ;;  %v2740_v22 = vld [vmem:[#allocation10 + $0xc98] sm:$0xff] }
 0x3bd   :  { %3449 = vmatmul.mubr.f32.gmra.mrb[22].mxu1 %v8101_v53  ;;  %v6241_v42 = vpack.c.bf16 %v2683_v1, %v2675_v54  ;;  %7229 = verf.f32 %v1691_v21  ;;  %v2723_v61 = vld [vmem:[#allocation10 + $0xc10] sm:$0xff]  ;;  %v2002_v1 = vld [vmem:[#allocation19 + $0x7e8] sm:$0xff]  ;;  %v2342_v21 = vld [vmem:[#allocation10 + $0x28] sm:$0xff] }
 0x3be   :  { %6226 = vmatpush1.bf16.msra.mxu1 %v6225_v23  ;;  %3519 = vmatprep.mubr.f32.mxu1 %v8104_v63  ;;  %v2700_v23 = vld [vmem:[#allocation10 + $0xb58] sm:$0xff]  ;;  %7231 = verf.f32 %v1700_v62  ;;  %v2755_v62 = vld [vmem:[#allocation10 + $0xd10] sm:$0xff] }
 0x3bf   :  { %6228 = vmatprep.subr.bf16.mxu1 %v6227_v49  ;;  %5930 = vmatpush1.bf16.msra.mxu0 %v5929_v27  ;;  %v1985_v49 = vld [vmem:[#allocation19 + $0x760] sm:$0xff]  ;;  %v1990_v27 = vld [vmem:[#allocation19 + $0x788] sm:$0xff]  ;;  %v6243_v57 = vpack.c.bf16 %v2700_v23, %v2692_v36  ;;  %7233 = verf.f32 %v1699_v35 }
 0x3c0   :  { %5932 = vmatprep.subr.bf16.mxu0 %v5931_v55  ;;  %v2699_v55 = vld [vmem:[#allocation10 + $0xb50] sm:$0xff]  ;;  %v5945_v14 = vpack.c.bf16 %v1987_v10, %v1985_v49  ;;  %v5947_v26 = vpack.c.bf16 %v1992_v50, %v1990_v27  ;;  %v2756_v10 = vld [vmem:[#allocation10 + $0xd18] sm:$0xff] }
 0x3c1   :  { %v6245_v56 = vpack.c.bf16 %v2699_v55, %v2691_v9  ;;  %v1997_v25 = vld [vmem:[#allocation19 + $0x7c0] sm:$0xff] }
 0x3c2   :  { %6230 = vmatpush1.bf16.msra.mxu1 %v6229_v59  ;;  %v2716_v59 = vld [vmem:[#allocation10 + $0xbd8] sm:$0xff]  ;;  %v2739_v23 = vld [vmem:[#allocation10 + $0xc90] sm:$0xff] }
 0x3c3   :  { %6232 = vmatprep.subr.bf16.mxu1 %v6231_v28  ;;  %5934 = vmatpush1.bf16.msra.mxu0 %v5933_v4  ;;  %v1989_v28 = vld [vmem:[#allocation19 + $0x780] sm:$0xff]  ;;  %v1994_v4 = vld [vmem:[#allocation19 + $0x7a8] sm:$0xff]  ;;  %v6247_v6 = vpack.c.bf16 %v2716_v59, %v2708_v43 }
 0x3c4   :  { %5936 = vmatprep.subr.bf16.mxu0 %v5935_v8  ;;  %v2707_v8 = vld [vmem:[#allocation10 + $0xb90] sm:$0xff]  ;;  %v5949_v11 = vpack.c.bf16 %v1991_v0, %v1989_v28  ;;  %v5951_v39 = vpack.c.bf16 %v1996_v48, %v1994_v4  ;;  %v2772_v0 = vld [vmem:[#allocation10 + $0xd98] sm:$0xff] }
 0x3c5   :  { %v6249_v5 = vpack.c.bf16 %v2715_v38, %v2707_v8  ;;  %v2001_v50 = vld [vmem:[#allocation19 + $0x7e0] sm:$0xff]  ;;  %v2349_v8 = vld [vmem:[#allocation10 + $0x60] sm:$0xff] }
 0x3c6   :  { %6234 = vmatpush1.bf16.msra.mxu1 %v6233_v46  ;;  %v2724_v46 = vld [vmem:[#allocation10 + $0xc18] sm:$0xff] }
 0x3c7   :  { %6236 = vmatprep.subr.bf16.mxu1 %v6235_v33  ;;  %5938 = vmatpush1.bf16.msra.mxu0 %v5937_v20  ;;  %v1993_v33 = vld [vmem:[#allocation19 + $0x7a0] sm:$0xff]  ;;  %v2000_v20 = vld [vmem:[#allocation19 + $0x7d8] sm:$0xff]  ;;  %v6251_v18 = vpack.c.bf16 %v2732_v12, %v2724_v46  ;;  %v7230_v9 = vpop.eup %7229 }
 0x3c8   :  { %5940 = vmatprep.subr.bf16.mxu0 %v5939_v19  ;;  %v2731_v19 = vld [vmem:[#allocation10 + $0xc50] sm:$0xff]  ;;  %v5953_v40 = vpack.c.bf16 %v1995_v16, %v1993_v33  ;;  %v5955_v24 = vpack.c.bf16 %v2000_v20, %v1998_v17  ;;  %v7232_v43 = vpop.eup %7231  ;;  %v1723_v4 = vadd.f32 1.0, %v7230_v9  ;;  %v2358_v46 = vld [vmem:[#allocation10 + $0xa8] sm:$0xff]  ;;  %v1683_v17 = vmul.f32 0.5, %v8116_v15 }
 0x3c9   :  { %v6253_v54 = vpack.c.bf16 %v2731_v19, %v2723_v61  ;;  %v7234_v38 = vpop.eup %7233  ;;  %v1732_v35 = vadd.f32 1.0, %v7232_v43  ;;  %v2366_v12 = vld [vmem:[#allocation10 + $0xe8] sm:$0xff]  ;;  %v2771_v16 = vld [vmem:[#allocation10 + $0xd90] sm:$0xff]  ;;  %v2796_v61 = vld [vmem:[#allocation10 + $0xe58] sm:$0xff] }
 0x3ca   :  { %6238 = vmatpush1.bf16.msra.mxu1 %v6237_v32  ;;  %v2748_v32 = vld [vmem:[#allocation10 + $0xcd8] sm:$0xff]  ;;  %v2390_v9 = vld [vmem:[#allocation10 + $0x1a8] sm:$0xff] }
 0x3cb   :  { %6240 = vmatprep.subr.bf16.mxu1 %v6239_v51  ;;  %5942 = vmatpush1.bf16.msra.mxu0 %v5941_v52  ;;  %v1999_v51 = vld [vmem:[#allocation19 + $0x7d0] sm:$0xff]  ;;  %v2004_v52 = vld [vmem:[#allocation19 + $0x7f8] sm:$0xff]  ;;  %v6255_v36 = vpack.c.bf16 %v2748_v32, %v2740_v22  ;;  %v6351_v22 = vpack.c.bf16 %v2366_v12, %v2358_v46  ;;  %v2844_v46 = vld [vmem:[#allocation10 + $0xfd8] sm:$0xff] }
 0x3cc   :  { %5944 = vmatprep.subr.bf16.mxu0 %v5943_v44  ;;  %v2747_v44 = vld [vmem:[#allocation10 + $0xcd0] sm:$0xff]  ;;  %v5957_v49 = vpack.c.bf16 %v1999_v51, %v1997_v25  ;;  %v5959_v27 = vpack.c.bf16 %v2004_v52, %v2002_v1  ;;  %v2357_v32 = vld [vmem:[#allocation10 + $0xa0] sm:$0xff]  ;;  %v1748_v25 = vmul.f32 %v1732_v35, %v1683_v17  ;;  %v1682_v1 = vmul.f32 0.5, %v8120_v58 }
 0x3cd   :  { %v6257_v55 = vpack.c.bf16 %v2747_v44, %v2739_v23  ;;  %v2787_v52 = vld [vmem:[#allocation10 + $0xe10] sm:$0xff]  ;;  %v2804_v44 = vld [vmem:[#allocation10 + $0xe98] sm:$0xff] }
 0x3ce   :  { %6242 = vmatpush1.bf16.msra.mxu1 %v6241_v42  ;;  %v2764_v42 = vld [vmem:[#allocation10 + $0xd58] sm:$0xff] }
 0x3cf   :  { %6244 = vmatprep.subr.bf16.mxu1 %v6243_v57  ;;  %5946 = vmatpush1.bf16.msra.mxu0 %v5945_v14  ;;  %v2003_v57 = vld [vmem:[#allocation19 + $0x7f0] sm:$0xff]  ;;  %v6259_v59 = vpack.c.bf16 %v2764_v42, %v2756_v10 }
 0x3d0   :  { %5948 = vmatprep.subr.bf16.mxu0 %v5947_v26  ;;  %v2350_v14 = vld [vmem:[#allocation10 + $0x68] sm:$0xff]  ;;  %v2763_v26 = vld [vmem:[#allocation10 + $0xd50] sm:$0xff]  ;;  %v5961_v28 = vpack.c.bf16 %v2003_v57, %v2001_v50  ;;  %v2381_v50 = vld [vmem:[#allocation10 + $0x160] sm:$0xff] }
 0x3d1   :  { %v6347_v48 = vpack.c.bf16 %v2350_v14, %v2342_v21  ;;  %v2803_v21 = vld [vmem:[#allocation10 + $0xe90] sm:$0xff] }
 0x3d2   :  { %6246 = vmatpush1.bf16.msra.mxu1 %v6245_v56  ;;  %v2780_v56 = vld [vmem:[#allocation10 + $0xdd8] sm:$0xff]  ;;  %v2811_v14 = vld [vmem:[#allocation10 + $0xed0] sm:$0xff] }
 0x3d3   :  { %6248 = vmatprep.subr.bf16.mxu1 %v6247_v6  ;;  %5950 = vmatpush1.bf16.msra.mxu0 %v5949_v11  ;;  %v2341_v6 = vld [vmem:[#allocation10 + $0x20] sm:$0xff]  ;;  %v6261_v11 = vpack.c.bf16 %v2763_v26, %v2755_v62  ;;  %v6263_v33 = vpack.c.bf16 %v2780_v56, %v2772_v0  ;;  %v2828_v62 = vld [vmem:[#allocation10 + $0xf58] sm:$0xff]  ;;  %v6273_v56 = vpack.c.bf16 %v2811_v14, %v2803_v21 }
 0x3d4   :  { %5952 = vmatprep.subr.bf16.mxu0 %v5951_v39  ;;  %v1674_v39 = vmul.f32 0.5, %v8112_v7  ;;  %v6349_v20 = vpack.c.bf16 %v2349_v8, %v2341_v6  ;;  %v2374_v7 = vld [vmem:[#allocation10 + $0x128] sm:$0xff]  ;;  %v2397_v0 = vld [vmem:[#allocation10 + $0x1e0] sm:$0xff]  ;;  %v2819_v8 = vld [vmem:[#allocation10 + $0xf10] sm:$0xff] }
 0x3d5   :  { %v2884_v21 = vld [vmem:[#allocation10 + $0x1118] sm:$0xff] }
 0x3d6   :  { %6250 = vmatpush1.bf16.msra.mxu1 %v6249_v5  ;;  %v2779_v5 = vld [vmem:[#allocation10 + $0xdd0] sm:$0xff]  ;;  %v1739_v19 = vmul.f32 %v1723_v4, %v1674_v39  ;;  %v2406_v4 = vld [vmem:[#allocation10 + $0x228] sm:$0xff]  ;;  %v2405_v39 = vld [vmem:[#allocation10 + $0x220] sm:$0xff] }
 0x3d7   :  { %6252 = vmatprep.subr.bf16.mxu1 %v6251_v18  ;;  %5954 = vmatpush1.bf16.msra.mxu0 %v5953_v40  ;;  %v2788_v18 = vld [vmem:[#allocation10 + $0xe18] sm:$0xff]  ;;  %v1731_v40 = vadd.f32 1.0, %v7234_v38  ;;  %v6265_v51 = vpack.c.bf16 %v2779_v5, %v2771_v16  ;;  %v2827_v38 = vld [vmem:[#allocation10 + $0xf50] sm:$0xff]  ;;  %v2422_v16 = vld [vmem:[#allocation10 + $0x2a8] sm:$0xff] }
 0x3d8   :  { %5956 = vmatprep.subr.bf16.mxu0 %v5955_v24  ;;  %v2365_v24 = vld [vmem:[#allocation10 + $0xe0] sm:$0xff]  ;;  %v6267_v15 = vpack.c.bf16 %v2796_v61, %v2788_v18  ;;  %v2430_v5 = vld [vmem:[#allocation10 + $0x2e8] sm:$0xff]  ;;  %v2843_v18 = vld [vmem:[#allocation10 + $0xfd0] sm:$0xff] }
 0x3d9   :  { %v6353_v23 = vpack.c.bf16 %v2365_v24, %v2357_v32  ;;  %v1747_v10 = vmul.f32 %v1731_v40, %v1682_v1  ;;  %v2860_v40 = vld [vmem:[#allocation10 + $0x1058] sm:$0xff]  ;;  %v2421_v32 = vld [vmem:[#allocation10 + $0x2a0] sm:$0xff]  ;;  %v2851_v1 = vld [vmem:[#allocation10 + $0x1010] sm:$0xff] }
 0x3da   :  { %6254 = vmatpush1.bf16.msra.mxu1 %v6253_v54  ;;  %v2382_v54 = vld [vmem:[#allocation10 + $0x168] sm:$0xff]  ;;  %v2429_v24 = vld [vmem:[#allocation10 + $0x2e0] sm:$0xff]  ;;  %v2892_v14 = vld [vmem:[#allocation10 + $0x1158] sm:$0xff] }
 0x3db   :  { %6256 = vmatprep.subr.bf16.mxu1 %v6255_v36  ;;  %5958 = vmatpush1.bf16.msra.mxu0 %v5957_v49  ;;  %v2795_v36 = vld [vmem:[#allocation10 + $0xe50] sm:$0xff]  ;;  %v2812_v49 = vld [vmem:[#allocation10 + $0xed8] sm:$0xff]  ;;  %v6355_v42 = vpack.c.bf16 %v2382_v54, %v2374_v7  ;;  %v2446_v7 = vld [vmem:[#allocation10 + $0x368] sm:$0xff] }
 0x3dc   :  { %5960 = vmatprep.subr.bf16.mxu0 %v5959_v27  ;;  %v2373_v27 = vld [vmem:[#allocation10 + $0x120] sm:$0xff]  ;;  %v6269_v57 = vpack.c.bf16 %v2795_v36, %v2787_v52  ;;  %v6271_v58 = vpack.c.bf16 %v2812_v49, %v2804_v44  ;;  %v6369_v52 = vpack.c.bf16 %v2429_v24, %v2421_v32  ;;  %v2868_v36 = vld [vmem:[#allocation10 + $0x1098] sm:$0xff] }
 0x3dd   :  { %v6357_v43 = vpack.c.bf16 %v2381_v50, %v2373_v27  ;;  %v2437_v49 = vld [vmem:[#allocation10 + $0x320] sm:$0xff]  ;;  %v2454_v27 = vld [vmem:[#allocation10 + $0x3a8] sm:$0xff] }
 0x3de   :  { %6258 = vmatpush1.bf16.msra.mxu1 %v6257_v55  ;;  %v2398_v55 = vld [vmem:[#allocation10 + $0x1e8] sm:$0xff]  ;;  %v2485_v24 = vld [vmem:[#allocation10 + $0x4a0] sm:$0xff] }
 0x3df   :  { %6260 = vmatprep.subr.bf16.mxu1 %v6259_v59  ;;  %5962 = vmatpush1.bf16.msra.mxu0 %v5961_v28  ;;  %v2820_v59 = vld [vmem:[#allocation10 + $0xf18] sm:$0xff]  ;;  %v6359_v26 = vpack.c.bf16 %v2398_v55, %v2390_v9  ;;  %v2389_v28 = vld [vmem:[#allocation10 + $0x1a0] sm:$0xff]  ;;  %v2462_v50 = vld [vmem:[#allocation10 + $0x3e8] sm:$0xff] }
 0x3e0   :  { %6348 = vmatprep.subr.bf16.mxu0 %v6347_v48  ;;  %v2414_v48 = vld [vmem:[#allocation10 + $0x268] sm:$0xff]  ;;  %v6275_v6 = vpack.c.bf16 %v2828_v62, %v2820_v59  ;;  %v6361_v35 = vpack.c.bf16 %v2397_v0, %v2389_v28  ;;  %v2867_v9 = vld [vmem:[#allocation10 + $0x1090] sm:$0xff]  ;;  %v6375_v59 = vpack.c.bf16 %v2462_v50, %v2454_v27  ;;  %v2453_v62 = vld [vmem:[#allocation10 + $0x3a0] sm:$0xff] }
 0x3e1   :  { %v6363_v12 = vpack.c.bf16 %v2414_v48, %v2406_v4  ;;  %v2875_v55 = vld [vmem:[#allocation10 + $0x10d0] sm:$0xff]  ;;  %v2470_v0 = vld [vmem:[#allocation10 + $0x428] sm:$0xff]  ;;  %v8131_v4 = vld [vmem:[#allocation5 + $0x48] sm:$0xf]  ;;  %v6291_v48 = vpack.c.bf16 %v2892_v14, %v2884_v21 }
 0x3e2   :  { %6262 = vmatpush1.bf16.msra.mxu1 %v6261_v11  ;;  %2313 = vmatmul.mubr.f32.vlgmr.msra.gmra.mrb[8].mxu0 %v1739_v19  ;;  %v2836_v11 = vld [vmem:[#allocation10 + $0xf98] sm:$0xff]  ;;  %v6289_v28 = vpack.c.bf16 %v2875_v55, %v2867_v9  ;;  %v2518_v50 = vld [vmem:[#allocation10 + $0x5a8] sm:$0xff]  ;;  %v2931_v55 = vld [vmem:[#allocation10 + $0x1290] sm:$0xff] }
 0x3e3   :  { %6264 = vmatprep.subr.bf16.mxu1 %v6263_v33  ;;  %2318 = vmatprep.mubr.f32.mxu0 %v1748_v25  ;;  %v6277_v33 = vpack.c.bf16 %v2827_v38, %v2819_v8  ;;  %v6279_v17 = vpack.c.bf16 %v2844_v46, %v2836_v11  ;;  %v2852_v19 = vld [vmem:[#allocation10 + $0x1018] sm:$0xff]  ;;  %v2891_v8 = vld [vmem:[#allocation10 + $0x1150] sm:$0xff] }
 0x3e4   :  { %6350 = vmatpush1.bf16.msra.mxu0 %v6349_v20  ;;  %v2835_v20 = vld [vmem:[#allocation10 + $0xf90] sm:$0xff]  ;;  %v6283_v54 = vpack.c.bf16 %v2860_v40, %v2852_v19  ;;  %v2908_v11 = vld [vmem:[#allocation10 + $0x11d8] sm:$0xff] }
 0x3e5   :  { %6352 = vmatprep.subr.bf16.mxu0 %v6351_v22  ;;  %v6367_v22 = vpack.c.bf16 %v2430_v5, %v2422_v16  ;;  %v6281_v25 = vpack.c.bf16 %v2843_v18, %v2835_v20  ;;  %v2486_v16 = vld [vmem:[#allocation10 + $0x4a8] sm:$0xff]  ;;  %v2899_v18 = vld [vmem:[#allocation10 + $0x1190] sm:$0xff]  ;;  %v2916_v40 = vld [vmem:[#allocation10 + $0x1218] sm:$0xff] }
 0x3e6   :  { %6266 = vmatpush1.bf16.msra.mxu1 %v6265_v51  ;;  %2319 = vmatmul.mubr.f32.gmra.mrb[10].mxu0 %v1747_v10  ;;  %v2438_v51 = vld [vmem:[#allocation10 + $0x328] sm:$0xff]  ;;  %v2445_v10 = vld [vmem:[#allocation10 + $0x360] sm:$0xff]  ;;  %v2948_v14 = vld [vmem:[#allocation10 + $0x1318] sm:$0xff] }
 0x3e7   :  { %6268 = vmatprep.subr.bf16.mxu1 %v6267_v15  ;;  %3673 = vmatprep.mubr.f32.mxu0 %v8049_v13  ;;  %v2413_v13 = vld [vmem:[#allocation10 + $0x260] sm:$0xff]  ;;  %v2859_v15 = vld [vmem:[#allocation10 + $0x1050] sm:$0xff]  ;;  %v6371_v44 = vpack.c.bf16 %v2446_v7, %v2438_v51  ;;  %v2494_v5 = vld [vmem:[#allocation10 + $0x4e8] sm:$0xff] }
 0x3e8   :  { %6354 = vmatpush1.bf16.msra.mxu0 %v6353_v23  ;;  %v6365_v61 = vpack.c.bf16 %v2413_v13, %v2405_v39  ;;  %v2876_v23 = vld [vmem:[#allocation10 + $0x10d8] sm:$0xff]  ;;  %v2477_v39 = vld [vmem:[#allocation10 + $0x460] sm:$0xff]  ;;  %v6383_v32 = vpack.c.bf16 %v2494_v5, %v2486_v16  ;;  %v2502_v7 = vld [vmem:[#allocation10 + $0x528] sm:$0xff] }
 0x3e9   :  { %6356 = vmatprep.subr.bf16.mxu0 %v6355_v42  ;;  %v6285_v42 = vpack.c.bf16 %v2859_v15, %v2851_v1  ;;  %v8134_v13 = vld [vmem:[#allocation5 + $0x40] sm:$0xf]  ;;  %v2915_v15 = vld [vmem:[#allocation10 + $0x1210] sm:$0xff]  ;;  %v2550_v5 = vld [vmem:[#allocation10 + $0x6a8] sm:$0xff] }
 0x3ea   :  { %6270 = vmatpush1.bf16.msra.mxu1 %v6269_v57  ;;  %v6287_v57 = vpack.c.bf16 %v2876_v23, %v2868_v36  ;;  %v2932_v23 = vld [vmem:[#allocation10 + $0x1298] sm:$0xff] }
 0x3eb   :  { %6272 = vmatprep.subr.bf16.mxu1 %v6271_v58  ;;  %v6373_v58 = vpack.c.bf16 %v2445_v10, %v2437_v49  ;;  %v2501_v10 = vld [vmem:[#allocation10 + $0x520] sm:$0xff] }
 0x3ec   :  { %6358 = vmatpush1.bf16.msra.mxu0 %v6357_v43  ;;  %v8128_v43 = vld [vmem:[#allocation5 + $0x10] sm:$0xff] }
 0x3ed   :  { %6360 = vmatprep.subr.bf16.mxu0 %v6359_v26  ;;  %v2461_v26 = vld [vmem:[#allocation10 + $0x3e0] sm:$0xff] }
 0x3ee   :  { %6274 = vmatpush1.bf16.msra.mxu1 %v6273_v56  ;;  %v2478_v56 = vld [vmem:[#allocation10 + $0x468] sm:$0xff]  ;;  %v6377_v38 = vpack.c.bf16 %v2461_v26, %v2453_v62  ;;  %v2517_v26 = vld [vmem:[#allocation10 + $0x5a0] sm:$0xff] }
 0x3ef   :  { %6276 = vmatprep.subr.bf16.mxu1 %v6275_v6  ;;  %v2883_v6 = vld [vmem:[#allocation10 + $0x1110] sm:$0xff]  ;;  %v6379_v46 = vpack.c.bf16 %v2478_v56, %v2470_v0  ;;  %v2534_v56 = vld [vmem:[#allocation10 + $0x628] sm:$0xff] }
 0x3f0   :  { %6362 = vmatpush1.bf16.msra.mxu0 %v6361_v35  ;;  %v2900_v35 = vld [vmem:[#allocation10 + $0x1198] sm:$0xff] }
 0x3f1   :  { %6364 = vmatprep.subr.bf16.mxu0 %v6363_v12  ;;  %v2469_v12 = vld [vmem:[#allocation10 + $0x420] sm:$0xff]  ;;  %v6295_v20 = vpack.c.bf16 %v2908_v11, %v2900_v35  ;;  %v2964_v11 = vld [vmem:[#allocation10 + $0x1398] sm:$0xff] }
 0x3f2   :  { %6278 = vmatpush1.bf16.msra.mxu1 %v6277_v33  ;;  %v6293_v33 = vpack.c.bf16 %v2891_v8, %v2883_v6  ;;  %v6381_v19 = vpack.c.bf16 %v2477_v39, %v2469_v12  ;;  %v2947_v8 = vld [vmem:[#allocation10 + $0x1310] sm:$0xff]  ;;  %v2533_v39 = vld [vmem:[#allocation10 + $0x620] sm:$0xff] }
 0x3f3   :  { %6280 = vmatprep.subr.bf16.mxu1 %v6279_v17  ;;  %v8137_v17 = vld [vmem:[#allocation5 + $0x28] sm:$0xff] }
 0x3f4   :  { %6366 = vmatpush1.bf16.msra.mxu0 %v6365_v61  ;;  %v2907_v61 = vld [vmem:[#allocation10 + $0x11d0] sm:$0xff] }
 0x3f5   :  { %6368 = vmatprep.subr.bf16.mxu0 %v6367_v22  ;;  %v2924_v22 = vld [vmem:[#allocation10 + $0x1258] sm:$0xff]  ;;  %v6297_v51 = vpack.c.bf16 %v2907_v61, %v2899_v18  ;;  %v2963_v61 = vld [vmem:[#allocation10 + $0x1390] sm:$0xff] }
 0x3f6   :  { %6282 = vmatpush1.bf16.msra.mxu1 %v6281_v25  ;;  %v2493_v25 = vld [vmem:[#allocation10 + $0x4e0] sm:$0xff]  ;;  %v6299_v1 = vpack.c.bf16 %v2924_v22, %v2916_v40  ;;  %v2980_v22 = vld [vmem:[#allocation10 + $0x1418] sm:$0xff] }
 0x3f7   :  { %6284 = vmatprep.subr.bf16.mxu1 %v6283_v54  ;;  %v2510_v54 = vld [vmem:[#allocation10 + $0x568] sm:$0xff]  ;;  %v6385_v36 = vpack.c.bf16 %v2493_v25, %v2485_v24  ;;  %v2549_v25 = vld [vmem:[#allocation10 + $0x6a0] sm:$0xff] }
 0x3f8   :  { %6370 = vmatpush1.bf16.msra.mxu0 %v6369_v52  ;;  %v2923_v52 = vld [vmem:[#allocation10 + $0x1250] sm:$0xff]  ;;  %v6387_v49 = vpack.c.bf16 %v2510_v54, %v2502_v7  ;;  %v2566_v54 = vld [vmem:[#allocation10 + $0x728] sm:$0xff] }
 0x3f9   :  { %6372 = vmatprep.subr.bf16.mxu0 %v6371_v44  ;;  %3520 = vmatmul.mubr.f32.vlgmr.msra.gmra.mrb[20].mxu1 %v8128_v43  ;;  %v2940_v44 = vld [vmem:[#allocation10 + $0x12d8] sm:$0xff]  ;;  %v6301_v27 = vpack.c.bf16 %v2923_v52, %v2915_v15  ;;  %v2979_v52 = vld [vmem:[#allocation10 + $0x1410] sm:$0xff] }
 0x3fa   :  { %6286 = vmatpush1.bf16.msra.mxu1 %v6285_v42  ;;  %3525 = vmatprep.mubr.f32.mxu1 %v8131_v4  ;;  %v2509_v42 = vld [vmem:[#allocation10 + $0x560] sm:$0xff]  ;;  %v6303_v9 = vpack.c.bf16 %v2940_v44, %v2932_v23  ;;  %v2996_v44 = vld [vmem:[#allocation10 + $0x1498] sm:$0xff] }
 0x3fb   :  { %6288 = vmatprep.subr.bf16.mxu1 %v6287_v57  ;;  %v2526_v57 = vld [vmem:[#allocation10 + $0x5e8] sm:$0xff]  ;;  %v6389_v21 = vpack.c.bf16 %v2509_v42, %v2501_v10  ;;  %v2565_v42 = vld [vmem:[#allocation10 + $0x720] sm:$0xff] }
 0x3fc   :  { %6374 = vmatpush1.bf16.msra.mxu0 %v6373_v58  ;;  %v2939_v58 = vld [vmem:[#allocation10 + $0x12d0] sm:$0xff]  ;;  %v6391_v62 = vpack.c.bf16 %v2526_v57, %v2518_v50  ;;  %v2582_v57 = vld [vmem:[#allocation10 + $0x7a8] sm:$0xff] }
 0x3fd   :  { %6376 = vmatprep.subr.bf16.mxu0 %v6375_v59  ;;  %3526 = vmatmul.mubr.f32.gmra.mrb[22].mxu1 %v8134_v13  ;;  %v2956_v59 = vld [vmem:[#allocation10 + $0x1358] sm:$0xff]  ;;  %v6305_v0 = vpack.c.bf16 %v2939_v58, %v2931_v55  ;;  %v2995_v58 = vld [vmem:[#allocation10 + $0x1490] sm:$0xff] }
 0x3fe   :  { %6290 = vmatpush1.bf16.msra.mxu1 %v6289_v28  ;;  %3596 = vmatprep.mubr.f32.mxu1 %v8137_v17  ;;  %v2525_v28 = vld [vmem:[#allocation10 + $0x5e0] sm:$0xff]  ;;  %v6307_v6 = vpack.c.bf16 %v2956_v59, %v2948_v14  ;;  %v3012_v59 = vld [vmem:[#allocation10 + $0x1518] sm:$0xff] }
 0x3ff   :  { %6292 = vmatprep.subr.bf16.mxu1 %v6291_v48  ;;  %v2542_v48 = vld [vmem:[#allocation10 + $0x668] sm:$0xff]  ;;  %v6393_v35 = vpack.c.bf16 %v2525_v28, %v2517_v26  ;;  %v2581_v28 = vld [vmem:[#allocation10 + $0x7a0] sm:$0xff] }
 0x400   :  { %6378 = vmatpush1.bf16.msra.mxu0 %v6377_v38  ;;  %v2955_v38 = vld [vmem:[#allocation10 + $0x1350] sm:$0xff]  ;;  %v6395_v12 = vpack.c.bf16 %v2542_v48, %v2534_v56  ;;  %v2598_v48 = vld [vmem:[#allocation10 + $0x828] sm:$0xff] }
 0x401   :  { %6380 = vmatprep.subr.bf16.mxu0 %v6379_v46  ;;  %v2972_v46 = vld [vmem:[#allocation10 + $0x13d8] sm:$0xff]  ;;  %v6309_v16 = vpack.c.bf16 %v2955_v38, %v2947_v8  ;;  %v3011_v38 = vld [vmem:[#allocation10 + $0x1510] sm:$0xff] }
 0x402   :  { %6294 = vmatpush1.bf16.msra.mxu1 %v6293_v33  ;;  %v2541_v33 = vld [vmem:[#allocation10 + $0x660] sm:$0xff]  ;;  %v6311_v18 = vpack.c.bf16 %v2972_v46, %v2964_v11  ;;  %v3028_v46 = vld [vmem:[#allocation10 + $0x1598] sm:$0xff] }
 0x403   :  { %6296 = vmatprep.subr.bf16.mxu1 %v6295_v20  ;;  %v2558_v20 = vld [vmem:[#allocation10 + $0x6e8] sm:$0xff]  ;;  %v6397_v40 = vpack.c.bf16 %v2541_v33, %v2533_v39  ;;  %v2597_v33 = vld [vmem:[#allocation10 + $0x820] sm:$0xff] }
 0x404   :  { %6382 = vmatpush1.bf16.msra.mxu0 %v6381_v19  ;;  %v2971_v19 = vld [vmem:[#allocation10 + $0x13d0] sm:$0xff]  ;;  %v6399_v24 = vpack.c.bf16 %v2558_v20, %v2550_v5  ;;  %v2614_v20 = vld [vmem:[#allocation10 + $0x8a8] sm:$0xff] }
 0x405   :  { %6384 = vmatprep.subr.bf16.mxu0 %v6383_v32  ;;  %v2988_v32 = vld [vmem:[#allocation10 + $0x1458] sm:$0xff]  ;;  %v6313_v7 = vpack.c.bf16 %v2971_v19, %v2963_v61  ;;  %v3027_v19 = vld [vmem:[#allocation10 + $0x1590] sm:$0xff] }
 0x406   :  { %6298 = vmatpush1.bf16.msra.mxu1 %v6297_v51  ;;  %v2557_v51 = vld [vmem:[#allocation10 + $0x6e0] sm:$0xff]  ;;  %v6315_v15 = vpack.c.bf16 %v2988_v32, %v2980_v22  ;;  %v3044_v32 = vld [vmem:[#allocation10 + $0x1618] sm:$0xff] }
 0x407   :  { %6300 = vmatprep.subr.bf16.mxu1 %v6299_v1  ;;  %v2574_v1 = vld [vmem:[#allocation10 + $0x768] sm:$0xff]  ;;  %v6401_v23 = vpack.c.bf16 %v2557_v51, %v2549_v25  ;;  %v2613_v51 = vld [vmem:[#allocation10 + $0x8a0] sm:$0xff] }
 0x408   :  { %6386 = vmatpush1.bf16.msra.mxu0 %v6385_v36  ;;  %v2987_v36 = vld [vmem:[#allocation10 + $0x1450] sm:$0xff]  ;;  %v6403_v10 = vpack.c.bf16 %v2574_v1, %v2566_v54  ;;  %v2630_v1 = vld [vmem:[#allocation10 + $0x928] sm:$0xff] }
 0x409   :  { %6388 = vmatprep.subr.bf16.mxu0 %v6387_v49  ;;  %v3004_v49 = vld [vmem:[#allocation10 + $0x14d8] sm:$0xff]  ;;  %v6317_v50 = vpack.c.bf16 %v2987_v36, %v2979_v52  ;;  %v3043_v36 = vld [vmem:[#allocation10 + $0x1610] sm:$0xff] }
 0x40a   :  { %6302 = vmatpush1.bf16.msra.mxu1 %v6301_v27  ;;  %v2573_v27 = vld [vmem:[#allocation10 + $0x760] sm:$0xff]  ;;  %v6319_v55 = vpack.c.bf16 %v3004_v49, %v2996_v44  ;;  %v3060_v49 = vld [vmem:[#allocation10 + $0x1698] sm:$0xff] }
 0x40b   :  { %6304 = vmatprep.subr.bf16.mxu1 %v6303_v9  ;;  %v2590_v9 = vld [vmem:[#allocation10 + $0x7e8] sm:$0xff]  ;;  %v6405_v14 = vpack.c.bf16 %v2573_v27, %v2565_v42  ;;  %v2629_v27 = vld [vmem:[#allocation10 + $0x920] sm:$0xff] }
 0x40c   :  { %6390 = vmatpush1.bf16.msra.mxu0 %v6389_v21  ;;  %v3003_v21 = vld [vmem:[#allocation10 + $0x14d0] sm:$0xff]  ;;  %v6407_v26 = vpack.c.bf16 %v2590_v9, %v2582_v57  ;;  %v2646_v9 = vld [vmem:[#allocation10 + $0x9a8] sm:$0xff] }
 0x40d   :  { %6392 = vmatprep.subr.bf16.mxu0 %v6391_v62  ;;  %v3020_v62 = vld [vmem:[#allocation10 + $0x1558] sm:$0xff]  ;;  %v6321_v56 = vpack.c.bf16 %v3003_v21, %v2995_v58  ;;  %v3059_v58 = vld [vmem:[#allocation10 + $0x1690] sm:$0xff] }
 0x40e   :  { %6306 = vmatpush1.bf16.msra.mxu1 %v6305_v0  ;;  %v2589_v0 = vld [vmem:[#allocation10 + $0x7e0] sm:$0xff]  ;;  %v6323_v8 = vpack.c.bf16 %v3020_v62, %v3012_v59  ;;  %v3067_v21 = vld [vmem:[#allocation10 + $0x16d0] sm:$0xff]  ;;  %v3076_v59 = vld [vmem:[#allocation10 + $0x1718] sm:$0xff] }
 0x40f   :  { %6308 = vmatprep.subr.bf16.mxu1 %v6307_v6  ;;  %v2606_v6 = vld [vmem:[#allocation10 + $0x868] sm:$0xff]  ;;  %v6409_v11 = vpack.c.bf16 %v2589_v0, %v2581_v28  ;;  %v3084_v62 = vld [vmem:[#allocation10 + $0x1758] sm:$0xff]  ;;  %v2653_v28 = vld [vmem:[#allocation10 + $0x9e0] sm:$0xff]  ;;  %v6337_v0 = vpack.c.bf16 %v3067_v21, %v3059_v58 }
 0x410   :  { %6394 = vmatpush1.bf16.msra.mxu0 %v6393_v35  ;;  %v3019_v35 = vld [vmem:[#allocation10 + $0x1550] sm:$0xff]  ;;  %v6411_v39 = vpack.c.bf16 %v2606_v6, %v2598_v48  ;;  %v2670_v48 = vld [vmem:[#allocation10 + $0xa68] sm:$0xff]  ;;  %v6339_v6 = vpack.c.bf16 %v3084_v62, %v3076_v59  ;;  %v2376_v58 = vld [vmem:[#allocation10 + $0x138] sm:$0xff] }
 0x411   :  { %6396 = vmatprep.subr.bf16.mxu0 %v6395_v12  ;;  %v3036_v12 = vld [vmem:[#allocation10 + $0x15d8] sm:$0xff]  ;;  %v6325_v5 = vpack.c.bf16 %v3019_v35, %v3011_v38  ;;  %v3083_v38 = vld [vmem:[#allocation10 + $0x1750] sm:$0xff]  ;;  %v2709_v62 = vld [vmem:[#allocation10 + $0xba0] sm:$0xff] }
 0x412   :  { %6310 = vmatpush1.bf16.msra.mxu1 %v6309_v16  ;;  %v2605_v16 = vld [vmem:[#allocation10 + $0x860] sm:$0xff]  ;;  %v6327_v61 = vpack.c.bf16 %v3036_v12, %v3028_v46  ;;  %v3092_v35 = vld [vmem:[#allocation10 + $0x1798] sm:$0xff] }
 0x413   :  { %6312 = vmatprep.subr.bf16.mxu1 %v6311_v18  ;;  %v2622_v18 = vld [vmem:[#allocation10 + $0x8e8] sm:$0xff]  ;;  %v6413_v22 = vpack.c.bf16 %v2605_v16, %v2597_v33  ;;  %v2661_v12 = vld [vmem:[#allocation10 + $0xa20] sm:$0xff]  ;;  %v2384_v21 = vld [vmem:[#allocation10 + $0x178] sm:$0xff] }
 0x414   :  { %6398 = vmatpush1.bf16.msra.mxu0 %v6397_v40  ;;  %v3035_v40 = vld [vmem:[#allocation10 + $0x15d0] sm:$0xff]  ;;  %v6415_v25 = vpack.c.bf16 %v2622_v18, %v2614_v20  ;;  %v2678_v33 = vld [vmem:[#allocation10 + $0xaa8] sm:$0xff] }
 0x415   :  { %6400 = vmatprep.subr.bf16.mxu0 %v6399_v24  ;;  %v3052_v24 = vld [vmem:[#allocation10 + $0x1658] sm:$0xff]  ;;  %v6329_v54 = vpack.c.bf16 %v3035_v40, %v3027_v19  ;;  %v2686_v16 = vld [vmem:[#allocation10 + $0xae8] sm:$0xff]  ;;  %v3091_v20 = vld [vmem:[#allocation10 + $0x1790] sm:$0xff] }
 0x416   :  { %6314 = vmatpush1.bf16.msra.mxu1 %v6313_v7  ;;  %v2621_v7 = vld [vmem:[#allocation10 + $0x8e0] sm:$0xff]  ;;  %v6331_v52 = vpack.c.bf16 %v3052_v24, %v3044_v32  ;;  %v3099_v18 = vld [vmem:[#allocation10 + $0x17d0] sm:$0xff]  ;;  %v2344_v19 = vld [vmem:[#allocation10 + $0x38] sm:$0xff] }
 0x417   :  { %6316 = vmatprep.subr.bf16.mxu1 %v6315_v15  ;;  %v2638_v15 = vld [vmem:[#allocation10 + $0x968] sm:$0xff]  ;;  %v6417_v44 = vpack.c.bf16 %v2621_v7, %v2613_v51  ;;  %v2352_v40 = vld [vmem:[#allocation10 + $0x78] sm:$0xff]  ;;  %v2677_v32 = vld [vmem:[#allocation10 + $0xaa0] sm:$0xff] }
 0x418   :  { %6402 = vmatpush1.bf16.msra.mxu0 %v6401_v23  ;;  %v3051_v23 = vld [vmem:[#allocation10 + $0x1650] sm:$0xff]  ;;  %v6419_v42 = vpack.c.bf16 %v2638_v15, %v2630_v1  ;;  %v2685_v24 = vld [vmem:[#allocation10 + $0xae0] sm:$0xff]  ;;  %v2694_v51 = vld [vmem:[#allocation10 + $0xb28] sm:$0xff] }
 0x419   :  { %6404 = vmatprep.subr.bf16.mxu0 %v6403_v10  ;;  %v3068_v10 = vld [vmem:[#allocation10 + $0x16d8] sm:$0xff]  ;;  %v6333_v57 = vpack.c.bf16 %v3051_v23, %v3043_v36  ;;  %v2702_v7 = vld [vmem:[#allocation10 + $0xb68] sm:$0xff]  ;;  %v2343_v1 = vld [vmem:[#allocation10 + $0x30] sm:$0xff] }
 0x41a   :  { %6318 = vmatpush1.bf16.msra.mxu1 %v6317_v50  ;;  %v2637_v50 = vld [vmem:[#allocation10 + $0x960] sm:$0xff]  ;;  %v2351_v15 = vld [vmem:[#allocation10 + $0x70] sm:$0xff]  ;;  %v2360_v36 = vld [vmem:[#allocation10 + $0xb8] sm:$0xff] }
 0x41b   :  { %6320 = vmatprep.subr.bf16.mxu1 %v6319_v55  ;;  %v2654_v55 = vld [vmem:[#allocation10 + $0x9e8] sm:$0xff]  ;;  %v2368_v23 = vld [vmem:[#allocation10 + $0xf8] sm:$0xff] }
 0x41c   :  { %6406 = vmatpush1.bf16.msra.mxu0 %v6405_v14  ;;  %v6421_v14 = vpack.c.bf16 %v2637_v50, %v2629_v27  ;;  %v2710_v27 = vld [vmem:[#allocation10 + $0xba8] sm:$0xff] }
 0x41d   :  { %6408 = vmatprep.subr.bf16.mxu0 %v6407_v26  ;;  %v2645_v26 = vld [vmem:[#allocation10 + $0x9a0] sm:$0xff]  ;;  %v2718_v50 = vld [vmem:[#allocation10 + $0xbe8] sm:$0xff] }
 0x41e   :  { %6322 = vmatpush1.bf16.msra.mxu1 %v6321_v56  ;;  %v2662_v56 = vld [vmem:[#allocation10 + $0xa28] sm:$0xff]  ;;  %v6439_v59 = vpack.c.bf16 %v2718_v50, %v2710_v27 }
 0x41f   :  { %6324 = vmatprep.subr.bf16.mxu1 %v6323_v8  ;;  %v3075_v8 = vld [vmem:[#allocation10 + $0x1710] sm:$0xff]  ;;  %v6427_v46 = vpack.c.bf16 %v2670_v48, %v2662_v56  ;;  %v2734_v56 = vld [vmem:[#allocation10 + $0xc68] sm:$0xff]  ;;  %v6547_v48 = vpack.c.bf16 %v2384_v21, %v2376_v58  ;;  %v2440_v21 = vld [vmem:[#allocation10 + $0x338] sm:$0xff] }
 0x420   :  { %6410 = vmatpush1.bf16.msra.mxu0 %v6409_v11  ;;  %v3100_v11 = vld [vmem:[#allocation10 + $0x17d8] sm:$0xff]  ;;  %v2774_v50 = vld [vmem:[#allocation10 + $0xda8] sm:$0xff] }
 0x421   :  { %6412 = vmatprep.subr.bf16.mxu0 %v6411_v39  ;;  %v6341_v39 = vpack.c.bf16 %v3083_v38, %v3075_v8  ;;  %v2383_v8 = vld [vmem:[#allocation10 + $0x170] sm:$0xff] }
 0x422   :  { %6326 = vmatpush1.bf16.msra.mxu1 %v6325_v5  ;;  %v6343_v5 = vpack.c.bf16 %v3100_v11, %v3092_v35  ;;  %v2400_v35 = vld [vmem:[#allocation10 + $0x1f8] sm:$0xff]  ;;  %v8150_v11 = vld [vmem:[#allocation5 + $0x50] sm:$0xf] }
 0x423   :  { %3674 = vmatmul.mubr.f32.vlgmr.msra.gmra.mrb[12].mxu0 %v8095_v29  ;;  %6328 = vmatprep.subr.bf16.mxu1 %v6327_v61  ;;  %v6335_v29 = vpack.c.bf16 %v3068_v10, %v3060_v49  ;;  %v2693_v49 = vld [vmem:[#allocation10 + $0xb20] sm:$0xff] }
 0x424   :  { %6414 = vmatpush1.bf16.msra.mxu0 %v6413_v22  ;;  %3679 = vmatprep.mubr.f32.mxu0 %v8098_v45  ;;  %v6423_v45 = vpack.c.bf16 %v2654_v55, %v2646_v9  ;;  %v6431_v22 = vpack.c.bf16 %v2686_v16, %v2678_v33  ;;  %v2701_v10 = vld [vmem:[#allocation10 + $0xb60] sm:$0xff]  ;;  %v2359_v9 = vld [vmem:[#allocation10 + $0xb0] sm:$0xff]  ;;  %v2742_v33 = vld [vmem:[#allocation10 + $0xca8] sm:$0xff] }
 0x425   :  { %6416 = vmatprep.subr.bf16.mxu0 %v6415_v25  ;;  %v6345_v25 = vpack.c.bf16 %v3099_v18, %v3091_v20  ;;  %v2367_v55 = vld [vmem:[#allocation10 + $0xf0] sm:$0xff]  ;;  %v2750_v16 = vld [vmem:[#allocation10 + $0xce8] sm:$0xff] }
 0x426   :  { %6330 = vmatpush1.bf16.msra.mxu1 %v6329_v54  ;;  %v6539_v54 = vpack.c.bf16 %v2352_v40, %v2344_v19  ;;  %v2391_v18 = vld [vmem:[#allocation10 + $0x1b0] sm:$0xff]  ;;  %v2408_v40 = vld [vmem:[#allocation10 + $0x238] sm:$0xff] }
 0x427   :  { %6332 = vmatprep.subr.bf16.mxu1 %v6331_v52  ;;  %3680 = vmatmul.mubr.f32.gmra.mrb[14].mxu0 %v8101_v53  ;;  %v6425_v53 = vpack.c.bf16 %v2653_v28, %v2645_v26  ;;  %v6433_v52 = vpack.c.bf16 %v2685_v24, %v2677_v32  ;;  %v8147_v26 = vld [vmem:[#allocation5 + $0x58] sm:$0xf]  ;;  %v6545_v28 = vpack.c.bf16 %v2367_v55, %v2359_v9  ;;  %v2741_v24 = vld [vmem:[#allocation10 + $0xca0] sm:$0xff] }
 0x428   :  { %6418 = vmatpush1.bf16.msra.mxu0 %v6417_v44  ;;  %3750 = vmatprep.mubr.f32.mxu0 %v8104_v63  ;;  %v2669_v63 = vld [vmem:[#allocation10 + $0xa60] sm:$0xff]  ;;  %v6435_v44 = vpack.c.bf16 %v2702_v7, %v2694_v51  ;;  %v6447_v32 = vpack.c.bf16 %v2750_v16, %v2742_v33  ;;  %v2758_v7 = vld [vmem:[#allocation10 + $0xd28] sm:$0xff]  ;;  %v2423_v55 = vld [vmem:[#allocation10 + $0x2b0] sm:$0xff] }
 0x429   :  { %6420 = vmatprep.subr.bf16.mxu0 %v6419_v42  ;;  %v6429_v61 = vpack.c.bf16 %v2669_v63, %v2661_v12  ;;  %v6541_v42 = vpack.c.bf16 %v2351_v15, %v2343_v1  ;;  %v2725_v12 = vld [vmem:[#allocation10 + $0xc20] sm:$0xff]  ;;  %v2407_v15 = vld [vmem:[#allocation10 + $0x230] sm:$0xff] }
 0x42a   :  { %6334 = vmatpush1.bf16.msra.mxu1 %v6333_v57  ;;  %v6543_v57 = vpack.c.bf16 %v2368_v23, %v2360_v36  ;;  %v2733_v63 = vld [vmem:[#allocation10 + $0xc60] sm:$0xff]  ;;  %v2424_v23 = vld [vmem:[#allocation10 + $0x2b8] sm:$0xff] }
 0x42b   :  { %6336 = vmatprep.subr.bf16.mxu1 %v6335_v29  ;;  %v6437_v29 = vpack.c.bf16 %v2701_v10, %v2693_v49  ;;  %v6445_v19 = vpack.c.bf16 %v2733_v63, %v2725_v12  ;;  %v2757_v10 = vld [vmem:[#allocation10 + $0xd20] sm:$0xff]  ;;  %v2464_v12 = vld [vmem:[#allocation10 + $0x3f8] sm:$0xff] }
 0x42c   :  { %6422 = vmatpush1.bf16.msra.mxu0 %v6421_v14  ;;  %v8144_v14 = vld [vmem:[#allocation5 + $0x20] sm:$0xff] }
 0x42d   :  { %6424 = vmatprep.subr.bf16.mxu0 %v6423_v45  ;;  %v2717_v45 = vld [vmem:[#allocation10 + $0xbe0] sm:$0xff] }
 0x42e   :  { %6338 = vmatpush1.bf16.msra.mxu1 %v6337_v0  ;;  %v2726_v0 = vld [vmem:[#allocation10 + $0xc28] sm:$0xff]  ;;  %v6441_v38 = vpack.c.bf16 %v2717_v45, %v2709_v62  ;;  %v2773_v45 = vld [vmem:[#allocation10 + $0xda0] sm:$0xff] }
 0x42f   :  { %6340 = vmatprep.subr.bf16.mxu1 %v6339_v6  ;;  %v2375_v6 = vld [vmem:[#allocation10 + $0x130] sm:$0xff]  ;;  %v2789_v33 = vld [vmem:[#allocation10 + $0xe20] sm:$0xff] }
 0x430   :  { %6426 = vmatpush1.bf16.msra.mxu0 %v6425_v53  ;;  %v2392_v53 = vld [vmem:[#allocation10 + $0x1b8] sm:$0xff]  ;;  %v2797_v16 = vld [vmem:[#allocation10 + $0xe60] sm:$0xff] }
 0x431   :  { %6428 = vmatprep.subr.bf16.mxu0 %v6427_v46  ;;  %v6443_v46 = vpack.c.bf16 %v2734_v56, %v2726_v0  ;;  %v6551_v20 = vpack.c.bf16 %v2400_v35, %v2392_v53  ;;  %v2790_v56 = vld [vmem:[#allocation10 + $0xe28] sm:$0xff] }
 0x432   :  { %6342 = vmatpush1.bf16.msra.mxu1 %v6341_v39  ;;  %v6549_v39 = vpack.c.bf16 %v2383_v8, %v2375_v6  ;;  %v2439_v8 = vld [vmem:[#allocation10 + $0x330] sm:$0xff] }
 0x433   :  { %6344 = vmatprep.subr.bf16.mxu1 %v6343_v5  ;;  %v7288_v5 = vld [vmem:[#allocation5 + $0x8] sm:$0xff] }
 0x434   :  { %6430 = vmatpush1.bf16.msra.mxu0 %v6429_v61  ;;  %v2399_v61 = vld [vmem:[#allocation10 + $0x1f0] sm:$0xff] }
 0x435   :  { %6432 = vmatprep.subr.bf16.mxu0 %v6431_v22  ;;  %v2416_v22 = vld [vmem:[#allocation10 + $0x278] sm:$0xff]  ;;  %v6553_v51 = vpack.c.bf16 %v2399_v61, %v2391_v18  ;;  %v2814_v18 = vld [vmem:[#allocation10 + $0xee8] sm:$0xff] }
 0x436   :  { %6346 = vmatpush1.bf16.msra.mxu1 %v6345_v25  ;;  %v2749_v25 = vld [vmem:[#allocation10 + $0xce0] sm:$0xff]  ;;  %v6555_v1 = vpack.c.bf16 %v2416_v22, %v2408_v40  ;;  %v2463_v40 = vld [vmem:[#allocation10 + $0x3f0] sm:$0xff] }
 0x437   :  { %6540 = vmatprep.subr.bf16.mxu1 %v6539_v54  ;;  %v2766_v54 = vld [vmem:[#allocation10 + $0xd68] sm:$0xff]  ;;  %v6449_v36 = vpack.c.bf16 %v2749_v25, %v2741_v24  ;;  %v2472_v24 = vld [vmem:[#allocation10 + $0x438] sm:$0xff] }
 0x438   :  { %6434 = vmatpush1.bf16.msra.mxu0 %v6433_v52  ;;  %v2415_v52 = vld [vmem:[#allocation10 + $0x270] sm:$0xff]  ;;  %v6451_v49 = vpack.c.bf16 %v2766_v54, %v2758_v7  ;;  %v2480_v25 = vld [vmem:[#allocation10 + $0x478] sm:$0xff]  ;;  %v2805_v54 = vld [vmem:[#allocation10 + $0xea0] sm:$0xff] }
 0x439   :  { %3597 = vmatmul.mubr.f32.vlgmr.msra.gmra.mrb[20].mxu1 %v8144_v14  ;;  %6436 = vmatprep.subr.bf16.mxu0 %v6435_v44  ;;  %v2432_v44 = vld [vmem:[#allocation10 + $0x2f8] sm:$0xff]  ;;  %v6557_v27 = vpack.c.bf16 %v2415_v52, %v2407_v15  ;;  %v2822_v52 = vld [vmem:[#allocation10 + $0xf28] sm:$0xff] }
 0x43a   :  { %6542 = vmatpush1.bf16.msra.mxu1 %v6541_v42  ;;  %3602 = vmatprep.mubr.f32.mxu1 %v8147_v26  ;;  %v2765_v42 = vld [vmem:[#allocation10 + $0xd60] sm:$0xff]  ;;  %v6559_v9 = vpack.c.bf16 %v2432_v44, %v2424_v23  ;;  %v6571_v23 = vpack.c.bf16 %v2480_v25, %v2472_v24  ;;  %v2471_v44 = vld [vmem:[#allocation10 + $0x430] sm:$0xff] }
 0x43b   :  { %6544 = vmatprep.subr.bf16.mxu1 %v6543_v57  ;;  %v2782_v57 = vld [vmem:[#allocation10 + $0xde8] sm:$0xff]  ;;  %v6453_v58 = vpack.c.bf16 %v2765_v42, %v2757_v10  ;;  %v2488_v42 = vld [vmem:[#allocation10 + $0x4b8] sm:$0xff]  ;;  %v2519_v25 = vld [vmem:[#allocation10 + $0x5b0] sm:$0xff] }
 0x43c   :  { %6438 = vmatpush1.bf16.msra.mxu0 %v6437_v29  ;;  %v2431_v29 = vld [vmem:[#allocation10 + $0x2f0] sm:$0xff]  ;;  %v6455_v62 = vpack.c.bf16 %v2782_v57, %v2774_v50  ;;  %v2821_v57 = vld [vmem:[#allocation10 + $0xf20] sm:$0xff] }
 0x43d   :  { %3603 = vmatmul.mubr.f32.gmra.mrb[22].mxu1 %v8150_v11  ;;  %6440 = vmatprep.subr.bf16.mxu0 %v6439_v59  ;;  %v2448_v59 = vld [vmem:[#allocation10 + $0x378] sm:$0xff]  ;;  %v6561_v0 = vpack.c.bf16 %v2431_v29, %v2423_v55  ;;  %v2838_v29 = vld [vmem:[#allocation10 + $0xfa8] sm:$0xff] }
 0x43e   :  { %6546 = vmatpush1.bf16.msra.mxu1 %v6545_v28  ;;  %3904 = vmatprep.mubr.f32.mxu1 %v7288_v5  ;;  %v2781_v28 = vld [vmem:[#allocation10 + $0xde0] sm:$0xff]  ;;  %v6563_v6 = vpack.c.bf16 %v2448_v59, %v2440_v21  ;;  %v2487_v59 = vld [vmem:[#allocation10 + $0x4b0] sm:$0xff] }
 0x43f   :  { %6548 = vmatprep.subr.bf16.mxu1 %v6547_v48  ;;  %v2798_v48 = vld [vmem:[#allocation10 + $0xe68] sm:$0xff]  ;;  %v6457_v35 = vpack.c.bf16 %v2781_v28, %v2773_v45  ;;  %v2504_v28 = vld [vmem:[#allocation10 + $0x538] sm:$0xff] }
 0x440   :  { %6442 = vmatpush1.bf16.msra.mxu0 %v6441_v38  ;;  %v2447_v38 = vld [vmem:[#allocation10 + $0x370] sm:$0xff] }
 0x441   :  { %6444 = vmatprep.subr.bf16.mxu0 %v6443_v46  ;;  %v2456_v46 = vld [vmem:[#allocation10 + $0x3b8] sm:$0xff]  ;;  %v6565_v5 = vpack.c.bf16 %v2447_v38, %v2439_v8  ;;  %v2854_v38 = vld [vmem:[#allocation10 + $0x1028] sm:$0xff] }
 0x442   :  { %6550 = vmatpush1.bf16.msra.mxu1 %v6549_v39  ;;  %v6459_v39 = vpack.c.bf16 %v2798_v48, %v2790_v56  ;;  %v6567_v61 = vpack.c.bf16 %v2464_v12, %v2456_v46  ;;  %v2837_v48 = vld [vmem:[#allocation10 + $0xfa0] sm:$0xff]  ;;  %v2503_v12 = vld [vmem:[#allocation10 + $0x530] sm:$0xff] }
 0x443   :  { %6552 = vmatprep.subr.bf16.mxu1 %v6551_v20  ;;  %v2806_v20 = vld [vmem:[#allocation10 + $0xea8] sm:$0xff] }
 0x444   :  { %6446 = vmatpush1.bf16.msra.mxu0 %v6445_v19  ;;  %v2455_v19 = vld [vmem:[#allocation10 + $0x3b0] sm:$0xff]  ;;  %v6463_v7 = vpack.c.bf16 %v2814_v18, %v2806_v20  ;;  %v2853_v18 = vld [vmem:[#allocation10 + $0x1020] sm:$0xff] }
 0x445   :  { %6448 = vmatprep.subr.bf16.mxu0 %v6447_v32  ;;  %v6461_v32 = vpack.c.bf16 %v2797_v16, %v2789_v33  ;;  %v6569_v15 = vpack.c.bf16 %v2463_v40, %v2455_v19  ;;  %v2520_v16 = vld [vmem:[#allocation10 + $0x5b8] sm:$0xff]  ;;  %v2870_v40 = vld [vmem:[#allocation10 + $0x10a8] sm:$0xff] }
 0x446   :  { %6554 = vmatpush1.bf16.msra.mxu1 %v6553_v51 }
 0x447   :  { %6556 = vmatprep.subr.bf16.mxu1 %v6555_v1  ;;  %v2813_v1 = vld [vmem:[#allocation10 + $0xee0] sm:$0xff] }
 0x448   :  { %6450 = vmatpush1.bf16.msra.mxu0 %v6449_v36  ;;  %v2830_v36 = vld [vmem:[#allocation10 + $0xf68] sm:$0xff]  ;;  %v6465_v10 = vpack.c.bf16 %v2813_v1, %v2805_v54  ;;  %v2536_v1 = vld [vmem:[#allocation10 + $0x638] sm:$0xff] }
 0x449   :  { %6452 = vmatprep.subr.bf16.mxu0 %v6451_v49  ;;  %v2479_v49 = vld [vmem:[#allocation10 + $0x470] sm:$0xff]  ;;  %v6467_v50 = vpack.c.bf16 %v2830_v36, %v2822_v52  ;;  %v2869_v36 = vld [vmem:[#allocation10 + $0x10a0] sm:$0xff] }
 0x44a   :  { %6558 = vmatpush1.bf16.msra.mxu1 %v6557_v27  ;;  %v2496_v27 = vld [vmem:[#allocation10 + $0x4f8] sm:$0xff]  ;;  %v6573_v55 = vpack.c.bf16 %v2479_v49, %v2471_v44  ;;  %v2886_v49 = vld [vmem:[#allocation10 + $0x1128] sm:$0xff] }
 0x44b   :  { %6560 = vmatprep.subr.bf16.mxu1 %v6559_v9  ;;  %v2829_v9 = vld [vmem:[#allocation10 + $0xf60] sm:$0xff]  ;;  %v6575_v21 = vpack.c.bf16 %v2496_v27, %v2488_v42  ;;  %v2535_v27 = vld [vmem:[#allocation10 + $0x630] sm:$0xff] }
 0x44c   :  { %6454 = vmatpush1.bf16.msra.mxu0 %v6453_v58  ;;  %v8153_v53 = vpop.f32.mrb[16].mxu1  ;;  %v2846_v58 = vld [vmem:[#allocation10 + $0xfe8] sm:$0xff]  ;;  %v6469_v45 = vpack.c.bf16 %v2829_v9, %v2821_v57  ;;  %v2552_v9 = vld [vmem:[#allocation10 + $0x6b8] sm:$0xff] }
 0x44d   :  { %v8155_v63 = vpop.f32.mrb[17].mxu1  ;;  %6456 = vmatprep.subr.bf16.mxu0 %v6455_v62  ;;  %v2495_v62 = vld [vmem:[#allocation10 + $0x4f0] sm:$0xff]  ;;  %v6471_v56 = vpack.c.bf16 %v2846_v58, %v2838_v29  ;;  %v2885_v58 = vld [vmem:[#allocation10 + $0x1120] sm:$0xff] }
 0x44e   :  { %6562 = vmatpush1.bf16.msra.mxu1 %v6561_v0  ;;  %v2512_v0 = vld [vmem:[#allocation10 + $0x578] sm:$0xff]  ;;  %v6577_v8 = vpack.c.bf16 %v2495_v62, %v2487_v59  ;;  %v2902_v62 = vld [vmem:[#allocation10 + $0x11a8] sm:$0xff] }
 0x44f   :  { %6564 = vmatprep.subr.bf16.mxu1 %v6563_v6  ;;  %v2845_v6 = vld [vmem:[#allocation10 + $0xfe0] sm:$0xff]  ;;  %v6579_v46 = vpack.c.bf16 %v2512_v0, %v2504_v28  ;;  %v2551_v28 = vld [vmem:[#allocation10 + $0x6b0] sm:$0xff] }
 0x450   :  { %6458 = vmatpush1.bf16.msra.mxu0 %v6457_v35  ;;  %v8157_v22 = vpop.f32.mrb[18].mxu1  ;;  %v2862_v35 = vld [vmem:[#allocation10 + $0x1068] sm:$0xff]  ;;  %v6473_v33 = vpack.c.bf16 %v2845_v6, %v2837_v48  ;;  %v2559_v0 = vld [vmem:[#allocation10 + $0x6f0] sm:$0xff]  ;;  %v2568_v48 = vld [vmem:[#allocation10 + $0x738] sm:$0xff] }
 0x451   :  { %v8159_v51 = vpop.f32.mrb[19].mxu1  ;;  %6460 = vmatprep.subr.bf16.mxu0 %v6459_v39  ;;  %v2511_v39 = vld [vmem:[#allocation10 + $0x570] sm:$0xff]  ;;  %v6475_v20 = vpack.c.bf16 %v2862_v35, %v2854_v38  ;;  %v2576_v6 = vld [vmem:[#allocation10 + $0x778] sm:$0xff]  ;;  %v2909_v38 = vld [vmem:[#allocation10 + $0x11e0] sm:$0xff]  ;;  %v6593_v35 = vpack.c.bf16 %v2559_v0, %v2551_v28 }
 0x452   :  { %6566 = vmatpush1.bf16.msra.mxu1 %v6565_v5  ;;  %v2528_v5 = vld [vmem:[#allocation10 + $0x5f8] sm:$0xff]  ;;  %v6581_v19 = vpack.c.bf16 %v2511_v39, %v2503_v12  ;;  %v2926_v12 = vld [vmem:[#allocation10 + $0x1268] sm:$0xff]  ;;  %v6595_v39 = vpack.c.bf16 %v2576_v6, %v2568_v48  ;;  %v2615_v28 = vld [vmem:[#allocation10 + $0x8b0] sm:$0xff] }
 0x453   :  { %6568 = vmatprep.subr.bf16.mxu1 %v6567_v61  ;;  %v2861_v61 = vld [vmem:[#allocation10 + $0x1060] sm:$0xff]  ;;  %v6583_v24 = vpack.c.bf16 %v2528_v5, %v2520_v16  ;;  %v2575_v16 = vld [vmem:[#allocation10 + $0x770] sm:$0xff]  ;;  %v2584_v5 = vld [vmem:[#allocation10 + $0x7b8] sm:$0xff] }
 0x454   :  { %6462 = vmatpush1.bf16.msra.mxu0 %v6461_v32  ;;  %v2878_v32 = vld [vmem:[#allocation10 + $0x10e8] sm:$0xff]  ;;  %v6477_v54 = vpack.c.bf16 %v2861_v61, %v2853_v18  ;;  %v2917_v61 = vld [vmem:[#allocation10 + $0x1220] sm:$0xff]  ;;  %v2623_v0 = vld [vmem:[#allocation10 + $0x8f0] sm:$0xff] }
 0x455   :  { %6464 = vmatprep.subr.bf16.mxu0 %v6463_v7  ;;  %v2527_v7 = vld [vmem:[#allocation10 + $0x5f0] sm:$0xff]  ;;  %v6479_v52 = vpack.c.bf16 %v2878_v32, %v2870_v40  ;;  %v2934_v40 = vld [vmem:[#allocation10 + $0x12a8] sm:$0xff]  ;;  %v2632_v48 = vld [vmem:[#allocation10 + $0x938] sm:$0xff] }
 0x456   :  { %6570 = vmatpush1.bf16.msra.mxu1 %v6569_v15  ;;  %v2544_v15 = vld [vmem:[#allocation10 + $0x678] sm:$0xff]  ;;  %v6585_v44 = vpack.c.bf16 %v2527_v7, %v2519_v25  ;;  %v2942_v32 = vld [vmem:[#allocation10 + $0x12e8] sm:$0xff]  ;;  %v2583_v25 = vld [vmem:[#allocation10 + $0x7b0] sm:$0xff] }
 0x457   :  { %6572 = vmatprep.subr.bf16.mxu1 %v6571_v23  ;;  %v2877_v23 = vld [vmem:[#allocation10 + $0x10e0] sm:$0xff]  ;;  %v6587_v42 = vpack.c.bf16 %v2544_v15, %v2536_v1  ;;  %v2591_v7 = vld [vmem:[#allocation10 + $0x7f0] sm:$0xff]  ;;  %v2600_v1 = vld [vmem:[#allocation10 + $0x838] sm:$0xff] }
 0x458   :  { %6466 = vmatpush1.bf16.msra.mxu0 %v6465_v10  ;;  %v2894_v10 = vld [vmem:[#allocation10 + $0x1168] sm:$0xff]  ;;  %v6481_v57 = vpack.c.bf16 %v2877_v23, %v2869_v36  ;;  %v2608_v15 = vld [vmem:[#allocation10 + $0x878] sm:$0xff]  ;;  %v2933_v36 = vld [vmem:[#allocation10 + $0x12a0] sm:$0xff] }
 0x459   :  { %6468 = vmatprep.subr.bf16.mxu0 %v6467_v50  ;;  %v2543_v50 = vld [vmem:[#allocation10 + $0x670] sm:$0xff]  ;;  %v6483_v29 = vpack.c.bf16 %v2894_v10, %v2886_v49  ;;  %v2941_v23 = vld [vmem:[#allocation10 + $0x12e0] sm:$0xff]  ;;  %v2950_v49 = vld [vmem:[#allocation10 + $0x1328] sm:$0xff] }
 0x45a   :  { %6574 = vmatpush1.bf16.msra.mxu1 %v6573_v55  ;;  %v2560_v55 = vld [vmem:[#allocation10 + $0x6f8] sm:$0xff]  ;;  %v6589_v59 = vpack.c.bf16 %v2543_v50, %v2535_v27  ;;  %v2958_v10 = vld [vmem:[#allocation10 + $0x1368] sm:$0xff]  ;;  %v2599_v27 = vld [vmem:[#allocation10 + $0x830] sm:$0xff] }
 0x45b   :  { %6576 = vmatprep.subr.bf16.mxu1 %v6575_v21  ;;  %v2893_v21 = vld [vmem:[#allocation10 + $0x1160] sm:$0xff]  ;;  %v2607_v50 = vld [vmem:[#allocation10 + $0x870] sm:$0xff]  ;;  %v2640_v6 = vld [vmem:[#allocation10 + $0x978] sm:$0xff] }
 0x45c   :  { %6470 = vmatpush1.bf16.msra.mxu0 %v6469_v45  ;;  %v2910_v45 = vld [vmem:[#allocation10 + $0x11e8] sm:$0xff] }
 0x45d   :  { %6472 = vmatprep.subr.bf16.mxu0 %v6471_v56  ;;  %v6485_v56 = vpack.c.bf16 %v2893_v21, %v2885_v58  ;;  %v2949_v58 = vld [vmem:[#allocation10 + $0x1320] sm:$0xff] }
 0x45e   :  { %6578 = vmatpush1.bf16.msra.mxu1 %v6577_v8  ;;  %v2901_v8 = vld [vmem:[#allocation10 + $0x11a0] sm:$0xff] }
 0x45f   :  { %6580 = vmatprep.subr.bf16.mxu1 %v6579_v46  ;;  %v2918_v46 = vld [vmem:[#allocation10 + $0x1228] sm:$0xff]  ;;  %v2957_v21 = vld [vmem:[#allocation10 + $0x1360] sm:$0xff] }
 0x460   :  { %6474 = vmatpush1.bf16.msra.mxu0 %v6473_v33  ;;  %v2567_v33 = vld [vmem:[#allocation10 + $0x730] sm:$0xff]  ;;  %v6491_v18 = vpack.c.bf16 %v2926_v12, %v2918_v46  ;;  %v6609_v46 = vpack.c.bf16 %v2623_v0, %v2615_v28  ;;  %v2982_v12 = vld [vmem:[#allocation10 + $0x1428] sm:$0xff]  ;;  %v8165_v28 = vld [vmem:[#allocation11] sm:$0xff] }
 0x461   :  { %6476 = vmatprep.subr.bf16.mxu0 %v6475_v20  ;;  %v2592_v20 = vld [vmem:[#allocation10 + $0x7f8] sm:$0xff] }
 0x462   :  { %6582 = vmatpush1.bf16.msra.mxu1 %v6581_v19  ;;  %v6597_v19 = vpack.c.bf16 %v2575_v16, %v2567_v33  ;;  %v7290_v33 = vld [vmem:[#allocation5 + $0x38] sm:$0xf]  ;;  %v6611_v16 = vpack.c.bf16 %v2640_v6, %v2632_v48  ;;  %v3038_v48 = vld [vmem:[#allocation10 + $0x15e8] sm:$0xff] }
 0x463   :  { %3751 = vmatmul.mubr.f32.vlgmr.msra.gmra.mrb[12].mxu0 %v8128_v43  ;;  %6584 = vmatprep.subr.bf16.mxu1 %v6583_v24  ;;  %v6591_v43 = vpack.c.bf16 %v2560_v55, %v2552_v9  ;;  %v6599_v24 = vpack.c.bf16 %v2592_v20, %v2584_v5  ;;  %v2616_v9 = vld [vmem:[#allocation10 + $0x8b8] sm:$0xff]  ;;  %v2639_v5 = vld [vmem:[#allocation10 + $0x970] sm:$0xff] }
 0x464   :  { %6478 = vmatpush1.bf16.msra.mxu0 %v6477_v54  ;;  %3756 = vmatprep.mubr.f32.mxu0 %v8131_v4  ;;  %v6487_v4 = vpack.c.bf16 %v2910_v45, %v2902_v62  ;;  %v2624_v55 = vld [vmem:[#allocation10 + $0x8f8] sm:$0xff]  ;;  %v2966_v62 = vld [vmem:[#allocation10 + $0x13a8] sm:$0xff] }
 0x465   :  { %6480 = vmatprep.subr.bf16.mxu0 %v6479_v52  ;;  %v6495_v52 = vpack.c.bf16 %v2942_v32, %v2934_v40  ;;  %v2974_v45 = vld [vmem:[#allocation10 + $0x13e8] sm:$0xff]  ;;  %v2989_v40 = vld [vmem:[#allocation10 + $0x1460] sm:$0xff] }
 0x466   :  { %6586 = vmatpush1.bf16.msra.mxu1 %v6585_v44  ;;  %v6601_v44 = vpack.c.bf16 %v2591_v7, %v2583_v25  ;;  %v7291_v32 = vld [vmem:[#allocation5 + $0x30] sm:$0xf] }
 0x467   :  { %6588 = vmatprep.subr.bf16.mxu1 %v6587_v42  ;;  %3757 = vmatmul.mubr.f32.gmra.mrb[14].mxu0 %v8134_v13  ;;  %v6489_v13 = vpack.c.bf16 %v2909_v38, %v2901_v8  ;;  %v6603_v42 = vpack.c.bf16 %v2608_v15, %v2600_v1  ;;  %v6503_v8 = vpack.c.bf16 %v2974_v45, %v2966_v62  ;;  %v2965_v38 = vld [vmem:[#allocation10 + $0x13a0] sm:$0xff]  ;;  %v2998_v25 = vld [vmem:[#allocation10 + $0x14a8] sm:$0xff]  ;;  %v2647_v15 = vld [vmem:[#allocation10 + $0x9b0] sm:$0xff] }
 0x468   :  { %6482 = vmatpush1.bf16.msra.mxu0 %v6481_v57  ;;  %3827 = vmatprep.mubr.f32.mxu0 %v8137_v17  ;;  %v2925_v17 = vld [vmem:[#allocation10 + $0x1260] sm:$0xff]  ;;  %v6497_v57 = vpack.c.bf16 %v2941_v23, %v2933_v36  ;;  %v3006_v7 = vld [vmem:[#allocation10 + $0x14e8] sm:$0xff]  ;;  %v2664_v23 = vld [vmem:[#allocation10 + $0xa38] sm:$0xff] }
 0x469   :  { %6484 = vmatprep.subr.bf16.mxu0 %v6483_v29  ;;  %v6493_v54 = vpack.c.bf16 %v2925_v17, %v2917_v61  ;;  %v6499_v29 = vpack.c.bf16 %v2958_v10, %v2950_v49  ;;  %v2656_v61 = vld [vmem:[#allocation10 + $0x9f8] sm:$0xff]  ;;  %v6511_v49 = vpack.c.bf16 %v3006_v7, %v2998_v25  ;;  %v2997_v10 = vld [vmem:[#allocation10 + $0x14a0] sm:$0xff] }
 0x46a   :  { %6590 = vmatpush1.bf16.msra.mxu1 %v6589_v59  ;;  %v6605_v59 = vpack.c.bf16 %v2607_v50, %v2599_v27  ;;  %v3014_v50 = vld [vmem:[#allocation10 + $0x1528] sm:$0xff]  ;;  %v3013_v45 = vld [vmem:[#allocation10 + $0x1520] sm:$0xff] }
 0x46b   :  { %6592 = vmatprep.subr.bf16.mxu1 %v6591_v43  ;;  %v6607_v43 = vpack.c.bf16 %v2624_v55, %v2616_v9  ;;  %v2663_v55 = vld [vmem:[#allocation10 + $0xa30] sm:$0xff]  ;;  %v3045_v7 = vld [vmem:[#allocation10 + $0x1620] sm:$0xff] }
 0x46c   :  { %6486 = vmatpush1.bf16.msra.mxu0 %v6485_v56  ;;  %v6501_v56 = vpack.c.bf16 %v2957_v21, %v2949_v58  ;;  %v2680_v21 = vld [vmem:[#allocation10 + $0xab8] sm:$0xff] }
 0x46d   :  { %6488 = vmatprep.subr.bf16.mxu0 %v6487_v4  ;;  %v7289_v4 = vld [vmem:[#allocation5] sm:$0xff] }
 0x46e   :  { %6594 = vmatpush1.bf16.msra.mxu1 %v6593_v35  ;;  %v2973_v35 = vld [vmem:[#allocation10 + $0x13e0] sm:$0xff] }
 0x46f   :  { %6596 = vmatprep.subr.bf16.mxu1 %v6595_v39  ;;  %v2990_v39 = vld [vmem:[#allocation10 + $0x1468] sm:$0xff]  ;;  %v6505_v20 = vpack.c.bf16 %v2973_v35, %v2965_v38  ;;  %v2696_v35 = vld [vmem:[#allocation10 + $0xb38] sm:$0xff] }
 0x470   :  { %6490 = vmatpush1.bf16.msra.mxu0 %v6489_v13  ;;  %v2631_v13 = vld [vmem:[#allocation10 + $0x930] sm:$0xff]  ;;  %v6507_v17 = vpack.c.bf16 %v2990_v39, %v2982_v12  ;;  %v8169_v12 = vrot.slane %v8165_v28, %v7923_v31 }
 0x471   :  { %6492 = vmatprep.subr.bf16.mxu0 %v6491_v18  ;;  %v2648_v18 = vld [vmem:[#allocation10 + $0x9b8] sm:$0xff] }
 0x472   :  { %6598 = vmatpush1.bf16.msra.mxu1 %v6597_v19  ;;  %v2981_v19 = vld [vmem:[#allocation10 + $0x1420] sm:$0xff]  ;;  %v6615_v1 = vpack.c.bf16 %v2656_v61, %v2648_v18  ;;  %v2695_v61 = vld [vmem:[#allocation10 + $0xb30] sm:$0xff] }
 0x473   :  { %6600 = vmatprep.subr.bf16.mxu1 %v6599_v24  ;;  %v6613_v24 = vpack.c.bf16 %v2639_v5, %v2631_v13  ;;  %v6509_v36 = vpack.c.bf16 %v2989_v40, %v2981_v19  ;;  %v3046_v5 = vld [vmem:[#allocation10 + $0x1628] sm:$0xff]  ;;  %v2712_v40 = vld [vmem:[#allocation10 + $0xbb8] sm:$0xff] }
 0x474   :  { %6494 = vmatpush1.bf16.msra.mxu0 %v6493_v54  ;;  %v7292_v54 = vld [vmem:[#allocation5 + $0x18] sm:$0xff] }
 0x475   :  { %6496 = vmatprep.subr.bf16.mxu0 %v6495_v52  ;;  %v2655_v52 = vld [vmem:[#allocation10 + $0x9f0] sm:$0xff] }
 0x476   :  { %6602 = vmatpush1.bf16.msra.mxu1 %v6601_v44  ;;  %v2672_v44 = vld [vmem:[#allocation10 + $0xa78] sm:$0xff]  ;;  %v6617_v27 = vpack.c.bf16 %v2655_v52, %v2647_v15  ;;  %v3062_v15 = vld [vmem:[#allocation10 + $0x16a8] sm:$0xff] }
 0x477   :  { %6604 = vmatprep.subr.bf16.mxu1 %v6603_v42  ;;  %v3005_v42 = vld [vmem:[#allocation10 + $0x14e0] sm:$0xff]  ;;  %v6619_v9 = vpack.c.bf16 %v2672_v44, %v2664_v23  ;;  %v3070_v52 = vld [vmem:[#allocation10 + $0x16e8] sm:$0xff]  ;;  %v2711_v23 = vld [vmem:[#allocation10 + $0xbb0] sm:$0xff] }
 0x478   :  { %6498 = vmatpush1.bf16.msra.mxu0 %v6497_v57  ;;  %v3022_v57 = vld [vmem:[#allocation10 + $0x1568] sm:$0xff]  ;;  %v6513_v58 = vpack.c.bf16 %v3005_v42, %v2997_v10  ;;  %v2719_v44 = vld [vmem:[#allocation10 + $0xbf0] sm:$0xff]  ;;  %v2728_v10 = vld [vmem:[#allocation10 + $0xc38] sm:$0xff] }
 0x479   :  { %6500 = vmatprep.subr.bf16.mxu0 %v6499_v29  ;;  %3905 = vmatmul.mubr.f32.vlgmr.msra.gmra.mrb[24].mxu1 %v7289_v4  ;;  %v2671_v29 = vld [vmem:[#allocation10 + $0xa70] sm:$0xff]  ;;  %v6515_v62 = vpack.c.bf16 %v3022_v57, %v3014_v50  ;;  %v2736_v42 = vld [vmem:[#allocation10 + $0xc78] sm:$0xff]  ;;  %v3061_v50 = vld [vmem:[#allocation10 + $0x16a0] sm:$0xff] }
 0x47a   :  { %6606 = vmatpush1.bf16.msra.mxu1 %v6605_v59  ;;  %3910 = vmatprep.mubr.f32.mxu1 %v7290_v33  ;;  %v2688_v59 = vld [vmem:[#allocation10 + $0xaf8] sm:$0xff]  ;;  %v6621_v0 = vpack.c.bf16 %v2671_v29, %v2663_v55  ;;  %v2679_v4 = vld [vmem:[#allocation10 + $0xab0] sm:$0xff]  ;;  %v3029_v33 = vld [vmem:[#allocation10 + $0x15a0] sm:$0xff] }
 0x47b   :  { %6608 = vmatprep.subr.bf16.mxu1 %v6607_v43  ;;  %v3021_v43 = vld [vmem:[#allocation10 + $0x1560] sm:$0xff]  ;;  %v6623_v6 = vpack.c.bf16 %v2688_v59, %v2680_v21  ;;  %v3078_v55 = vld [vmem:[#allocation10 + $0x1728] sm:$0xff]  ;;  %v2727_v21 = vld [vmem:[#allocation10 + $0xc30] sm:$0xff] }
 0x47c   :  { %6502 = vmatpush1.bf16.msra.mxu0 %v6501_v56  ;;  %v3030_v56 = vld [vmem:[#allocation10 + $0x15a8] sm:$0xff]  ;;  %v6517_v38 = vpack.c.bf16 %v3021_v43, %v3013_v45  ;;  %v3069_v57 = vld [vmem:[#allocation10 + $0x16e0] sm:$0xff]  ;;  %v2735_v59 = vld [vmem:[#allocation10 + $0xc70] sm:$0xff] }
 0x47d   :  { %6504 = vmatprep.subr.bf16.mxu0 %v6503_v8  ;;  %3911 = vmatmul.mubr.f32.gmra.mrb[26].mxu1 %v7291_v32  ;;  %v2687_v8 = vld [vmem:[#allocation10 + $0xaf0] sm:$0xff]  ;;  %v6519_v39 = vpack.c.bf16 %v3038_v48, %v3030_v56  ;;  %v2720_v32 = vld [vmem:[#allocation10 + $0xbf8] sm:$0xff]  ;;  %v3086_v29 = vld [vmem:[#allocation10 + $0x1768] sm:$0xff] }
 0x47e   :  { %6610 = vmatpush1.bf16.msra.mxu1 %v6609_v46  ;;  %3981 = vmatprep.mubr.f32.mxu1 %v7292_v54  ;;  %v2704_v46 = vld [vmem:[#allocation10 + $0xb78] sm:$0xff]  ;;  %v6625_v13 = vpack.c.bf16 %v2687_v8, %v2679_v4  ;;  %v3053_v54 = vld [vmem:[#allocation10 + $0x1660] sm:$0xff]  ;;  %v3094_v4 = vld [vmem:[#allocation10 + $0x17a8] sm:$0xff] }
 0x47f   :  { %6612 = vmatprep.subr.bf16.mxu1 %v6611_v16  ;;  %v3037_v16 = vld [vmem:[#allocation10 + $0x15e0] sm:$0xff]  ;;  %v6627_v18 = vpack.c.bf16 %v2704_v46, %v2696_v35  ;;  %v2744_v45 = vld [vmem:[#allocation10 + $0xcb8] sm:$0xff]  ;;  %v3102_v8 = vld [vmem:[#allocation10 + $0x17e8] sm:$0xff] }
 0x480   :  { %6506 = vmatpush1.bf16.msra.mxu0 %v6505_v20  ;;  %v3054_v20 = vld [vmem:[#allocation10 + $0x1668] sm:$0xff]  ;;  %v6521_v19 = vpack.c.bf16 %v3037_v16, %v3029_v33  ;;  %v2752_v43 = vld [vmem:[#allocation10 + $0xcf8] sm:$0xff]  ;;  %v3077_v56 = vld [vmem:[#allocation10 + $0x1720] sm:$0xff] }
 0x481   :  { %6508 = vmatprep.subr.bf16.mxu0 %v6507_v17  ;;  %v2703_v17 = vld [vmem:[#allocation10 + $0xb70] sm:$0xff]  ;;  %v6523_v25 = vpack.c.bf16 %v3054_v20, %v3046_v5  ;;  %v3085_v48 = vld [vmem:[#allocation10 + $0x1760] sm:$0xff]  ;;  %v2760_v33 = vld [vmem:[#allocation10 + $0xd38] sm:$0xff] }
 0x482   :  { %6614 = vmatpush1.bf16.msra.mxu1 %v6613_v24  ;;  %v8173_v24 = vadd.f32 %v8155_v63, %v8169_v12  ;;  %v6527_v63 = vpack.c.bf16 %v3070_v52, %v3062_v15  ;;  %v2743_v35 = vld [vmem:[#allocation10 + $0xcb0] sm:$0xff]  ;;  %v2768_v16 = vld [vmem:[#allocation10 + $0xd78] sm:$0xff]  ;;  %v3093_v5 = vld [vmem:[#allocation10 + $0x17a0] sm:$0xff] }
 0x483   :  { %6616 = vmatprep.subr.bf16.mxu1 %v6615_v1  ;;  %v6629_v1 = vpack.c.bf16 %v2703_v17, %v2695_v61  ;;  %v2751_v46 = vld [vmem:[#allocation10 + $0xcf0] sm:$0xff]  ;;  %v3101_v20 = vld [vmem:[#allocation10 + $0x17e0] sm:$0xff]  ;;  %v4151_v15 = vld [vmem:[#allocation13] sm:$0xff] }
 0x484   :  { %6510 = vmatpush1.bf16.msra.mxu0 %v6509_v36  ;;  %v6631_v36 = vpack.c.bf16 %v2720_v32, %v2712_v40  ;;  %v4152_v61 = vld [vmem:[#allocation13 + $0x8] sm:$0xff]  ;;  %v4154_v17 = vld [vmem:[#allocation13 + $0x18] sm:$0xff]  ;;  %v4153_v52 = vld [vmem:[#allocation13 + $0x10] sm:$0xff] }
 0x485   :  { %6512 = vmatprep.subr.bf16.mxu0 %v6511_v49  ;;  %v6525_v49 = vpack.c.bf16 %v3053_v54, %v3045_v7  ;;  %v2759_v40 = vld [vmem:[#allocation10 + $0xd30] sm:$0xff]  ;;  %v2776_v7 = vld [vmem:[#allocation10 + $0xdb8] sm:$0xff] }
 0x486   :  { %6618 = vmatpush1.bf16.msra.mxu1 %v6617_v27  ;;  %v4088_v27 = vmul.f32 0.70710677, %v8173_v24  ;;  %v2767_v32 = vld [vmem:[#allocation10 + $0xd70] sm:$0xff]  ;;  %v2784_v54 = vld [vmem:[#allocation10 + $0xdf8] sm:$0xff] }
 0x487   :  { %6620 = vmatprep.subr.bf16.mxu1 %v6619_v9  ;;  %v6633_v9 = vpack.c.bf16 %v2719_v44, %v2711_v23  ;;  %v4156_v23 = vld [vmem:[#allocation13 + $0x28] sm:$0xff]  ;;  %v4158_v44 = vld [vmem:[#allocation13 + $0x38] sm:$0xff] }
 0x488   :  { %6514 = vmatpush1.bf16.msra.mxu0 %v6513_v58  ;;  %v6635_v58 = vpack.c.bf16 %v2736_v42, %v2728_v10  ;;  %7235 = verf.f32 %v4088_v27  ;;  %v6647_v10 = vpack.c.bf16 %v2784_v54, %v2776_v7  ;;  %v2775_v42 = vld [vmem:[#allocation10 + $0xdb0] sm:$0xff] }
 0x489   :  { %6516 = vmatprep.subr.bf16.mxu0 %v6515_v62  ;;  %v6529_v62 = vpack.c.bf16 %v3069_v57, %v3061_v50  ;;  %v2783_v27 = vld [vmem:[#allocation10 + $0xdf0] sm:$0xff]  ;;  %v2792_v50 = vld [vmem:[#allocation10 + $0xe38] sm:$0xff] }
 0x48a   :  { %6622 = vmatpush1.bf16.msra.mxu1 %v6621_v0  ;;  %v6531_v0 = vpack.c.bf16 %v3086_v29, %v3078_v55  ;;  %v2800_v57 = vld [vmem:[#allocation10 + $0xe78] sm:$0xff]  ;;  %v4155_v55 = vld [vmem:[#allocation13 + $0x20] sm:$0xff]  ;;  %v2831_v7 = vld [vmem:[#allocation10 + $0xf70] sm:$0xff] }
 0x48b   :  { %6624 = vmatprep.subr.bf16.mxu1 %v6623_v6  ;;  %v6637_v6 = vpack.c.bf16 %v2735_v59, %v2727_v21  ;;  %v4157_v29 = vld [vmem:[#allocation13 + $0x30] sm:$0xff]  ;;  %v6649_v21 = vpack.c.bf16 %v2783_v27, %v2775_v42  ;;  %v4160_v59 = vld [vmem:[#allocation13 + $0x48] sm:$0xff] }
 0x48c   :  { %6518 = vmatpush1.bf16.msra.mxu0 %v6517_v38  ;;  %v6639_v38 = vpack.c.bf16 %v2752_v43, %v2744_v45  ;;  %v6651_v45 = vpack.c.bf16 %v2800_v57, %v2792_v50  ;;  %v2791_v43 = vld [vmem:[#allocation10 + $0xe30] sm:$0xff] }
 0x48d   :  { %6520 = vmatprep.subr.bf16.mxu0 %v6519_v39  ;;  %v6533_v39 = vpack.c.bf16 %v3085_v48, %v3077_v56  ;;  %v4072_v56 = vmul.f32 0.5, %v8173_v24  ;;  %v6737_v48 = vpack.c.bf16 %v4157_v29, %v4155_v55  ;;  %v2807_v24 = vld [vmem:[#allocation10 + $0xeb0] sm:$0xff]  ;;  %v2864_v55 = vld [vmem:[#allocation10 + $0x1078] sm:$0xff] }
 0x48e   :  { %6626 = vmatpush1.bf16.msra.mxu1 %v6625_v13  ;;  %v6535_v13 = vpack.c.bf16 %v3102_v8, %v3094_v4  ;;  %v2816_v4 = vld [vmem:[#allocation10 + $0xef8] sm:$0xff]  ;;  %v2839_v27 = vld [vmem:[#allocation10 + $0xfb0] sm:$0xff] }
 0x48f   :  { %6628 = vmatprep.subr.bf16.mxu1 %v6627_v18  ;;  %v6641_v18 = vpack.c.bf16 %v2751_v46, %v2743_v35  ;;  %v4161_v35 = vld [vmem:[#allocation13 + $0x50] sm:$0xff]  ;;  %v2005_v57 = vld [vmem:[#allocation20] sm:$0x3] }
 0x490   :  { %6522 = vmatpush1.bf16.msra.mxu0 %v6521_v19  ;;  %v6643_v19 = vpack.c.bf16 %v2768_v16, %v2760_v33  ;;  %v4166_v33 = vld [vmem:[#allocation13 + $0x78] sm:$0xff] }
 0x491   :  { %6524 = vmatprep.subr.bf16.mxu0 %v6523_v25  ;;  %v6537_v25 = vpack.c.bf16 %v3101_v20, %v3093_v5  ;;  %v2824_v5 = vld [vmem:[#allocation10 + $0xf38] sm:$0xff] }
 0x492   :  { %6630 = vmatpush1.bf16.msra.mxu1 %v6629_v1  ;;  %v6731_v1 = vpack.c.bf16 %v4154_v17, %v4152_v61  ;;  %v2832_v20 = vld [vmem:[#allocation10 + $0xf78] sm:$0xff]  ;;  %v4163_v61 = vld [vmem:[#allocation13 + $0x60] sm:$0xff] }
 0x493   :  { %6632 = vmatprep.subr.bf16.mxu1 %v6631_v36  ;;  %v6645_v36 = vpack.c.bf16 %v2767_v32, %v2759_v40  ;;  %v4165_v17 = vld [vmem:[#allocation13 + $0x70] sm:$0xff]  ;;  %v4168_v40 = vld [vmem:[#allocation13 + $0x88] sm:$0xff]  ;;  %v4170_v32 = vld [vmem:[#allocation13 + $0x98] sm:$0xff] }
 0x494   :  { %6526 = vmatpush1.bf16.msra.mxu0 %v6525_v49  ;;  %v7236_v49 = vpop.eup %7235  ;;  %v6745_v54 = vpack.c.bf16 %v4165_v17, %v4163_v61 }
 0x495   :  { %6528 = vmatprep.subr.bf16.mxu0 %v6527_v63  ;;  %v6733_v63 = vpack.c.bf16 %v4153_v52, %v4151_v15  ;;  %v2848_v15 = vld [vmem:[#allocation10 + $0xff8] sm:$0xff]  ;;  %v6747_v52 = vpack.c.bf16 %v4170_v32, %v4168_v40  ;;  %v7293_v32 = vld [vmem:[#allocation5 + $0x10] sm:$0xff] }
 0x496   :  { %6634 = vmatpush1.bf16.msra.mxu1 %v6633_v9  ;;  %v6735_v9 = vpack.c.bf16 %v4158_v44, %v4156_v23  ;;  %v4169_v23 = vld [vmem:[#allocation13 + $0x90] sm:$0xff] }
 0x497   :  { %6636 = vmatprep.subr.bf16.mxu1 %v6635_v58  ;;  %v4120_v58 = vadd.f32 1.0, %v7236_v49  ;;  %v4172_v49 = vld [vmem:[#allocation13 + $0xa8] sm:$0xff]  ;;  %v2896_v40 = vld [vmem:[#allocation10 + $0x1178] sm:$0xff] }
 0x498   :  { %6530 = vmatpush1.bf16.msra.mxu0 %v6529_v62  ;;  %v4162_v62 = vld [vmem:[#allocation13 + $0x58] sm:$0xff] }
 0x499   :  { %6532 = vmatprep.subr.bf16.mxu0 %v6531_v0  ;;  %v2799_v0 = vld [vmem:[#allocation10 + $0xe70] sm:$0xff]  ;;  %v6739_v8 = vpack.c.bf16 %v4162_v62, %v4160_v59  ;;  %v4136_v46 = vmul.f32 %v4120_v58, %v4072_v56  ;;  %v4171_v58 = vld [vmem:[#allocation13 + $0xa0] sm:$0xff] }
 0x49a   :  { %6638 = vmatpush1.bf16.msra.mxu1 %v6637_v6  ;;  %v2808_v6 = vld [vmem:[#allocation10 + $0xeb8] sm:$0xff]  ;;  %v4176_v62 = vld [vmem:[#allocation13 + $0xc8] sm:$0xff] }
 0x49b   :  { %6640 = vmatprep.subr.bf16.mxu1 %v6639_v38  ;;  %v4159_v38 = vld [vmem:[#allocation13 + $0x40] sm:$0xff]  ;;  %v6655_v16 = vpack.c.bf16 %v2816_v4, %v2808_v6  ;;  %v2855_v56 = vld [vmem:[#allocation10 + $0x1030] sm:$0xff]  ;;  %v2014_v6 = vrot.slane %v2005_v57, %v7923_v31 }
 0x49c   :  { %6534 = vmatpush1.bf16.msra.mxu0 %v6533_v39  ;;  %v6653_v39 = vpack.c.bf16 %v2799_v0, %v2791_v43  ;;  %v2010_v43 = vrot.slane %v2005_v57, %v7928_v34 }
 0x49d   :  { %6536 = vmatprep.subr.bf16.mxu0 %v6535_v13  ;;  %v2815_v13 = vld [vmem:[#allocation10 + $0xef0] sm:$0xff] }
 0x49e   :  { %6642 = vmatpush1.bf16.msra.mxu1 %v6641_v18 }
 0x49f   :  { %6644 = vmatprep.subr.bf16.mxu1 %v6643_v19  ;;  %v6657_v19 = vpack.c.bf16 %v2815_v13, %v2807_v24  ;;  %v4182_v24 = vld [vmem:[#allocation13 + $0xf8] sm:$0xff] }
 0x4a0   :  { %6538 = vmatpush1.bf16.msra.mxu0 %v6537_v25  ;;  %v6659_v25 = vpack.c.bf16 %v2832_v20, %v2824_v5  ;;  %v2871_v20 = vld [vmem:[#allocation10 + $0x10b0] sm:$0xff] }
 0x4a1   :  { %6732 = vmatprep.subr.bf16.mxu0 %v6731_v1  ;;  %v2840_v1 = vld [vmem:[#allocation10 + $0xfb8] sm:$0xff] }
 0x4a2   :  { %6646 = vmatpush1.bf16.msra.mxu1 %v6645_v36  ;;  %v4167_v36 = vld [vmem:[#allocation13 + $0x80] sm:$0xff]  ;;  %v6663_v42 = vpack.c.bf16 %v2848_v15, %v2840_v1 }
 0x4a3   :  { %3828 = vmatmul.mubr.f32.vlgmr.msra.gmra.mrb[12].mxu0 %v8144_v14  ;;  %6648 = vmatprep.subr.bf16.mxu1 %v6647_v10  ;;  %v4164_v14 = vld [vmem:[#allocation13 + $0x68] sm:$0xff]  ;;  %v4174_v10 = vld [vmem:[#allocation13 + $0xb8] sm:$0xff]  ;;  %v6749_v50 = vpack.c.bf16 %v4169_v23, %v4167_v36 }
 0x4a4   :  { %6734 = vmatpush1.bf16.msra.mxu0 %v6733_v63  ;;  %3833 = vmatprep.mubr.f32.mxu0 %v8147_v26  ;;  %v6741_v26 = vpack.c.bf16 %v4161_v35, %v4159_v38  ;;  %v6743_v18 = vpack.c.bf16 %v4166_v33, %v4164_v14  ;;  %v2847_v63 = vld [vmem:[#allocation10 + $0xff0] sm:$0xff]  ;;  %v6751_v29 = vpack.c.bf16 %v4174_v10, %v4172_v49  ;;  %v2880_v38 = vld [vmem:[#allocation10 + $0x10f8] sm:$0xff]  ;;  %v4186_v23 = vld [vmem:[#allocation13 + $0x118] sm:$0xff] }
 0x4a5   :  { %6736 = vmatprep.subr.bf16.mxu0 %v6735_v9  ;;  %v2856_v9 = vld [vmem:[#allocation10 + $0x1038] sm:$0xff]  ;;  %v6665_v59 = vpack.c.bf16 %v2847_v63, %v2839_v27  ;;  %v4184_v36 = vld [vmem:[#allocation13 + $0x108] sm:$0xff] }
 0x4a6   :  { %6650 = vmatpush1.bf16.msra.mxu1 %v6649_v21  ;;  %v4173_v21 = vld [vmem:[#allocation13 + $0xb0] sm:$0xff]  ;;  %v6667_v0 = vpack.c.bf16 %v2864_v55, %v2856_v9  ;;  %v2887_v27 = vld [vmem:[#allocation10 + $0x1130] sm:$0xff] }
 0x4a7   :  { %3834 = vmatmul.mubr.f32.gmra.mrb[14].mxu0 %v8150_v11  ;;  %6652 = vmatprep.subr.bf16.mxu1 %v6651_v45  ;;  %v2823_v11 = vld [vmem:[#allocation10 + $0xf30] sm:$0xff]  ;;  %v4178_v45 = vld [vmem:[#allocation13 + $0xd8] sm:$0xff]  ;;  %v6753_v4 = vpack.c.bf16 %v4173_v21, %v4171_v58  ;;  %v2904_v55 = vld [vmem:[#allocation10 + $0x11b8] sm:$0xff]  ;;  %v6763_v21 = vpack.c.bf16 %v4186_v23, %v4184_v36 }
 0x4a8   :  { %6738 = vmatpush1.bf16.msra.mxu0 %v6737_v48  ;;  %4483 = vmatprep.mubr.f32.mxu0 %v4136_v46  ;;  %v6661_v44 = vpack.c.bf16 %v2831_v7, %v2823_v11  ;;  %v2863_v48 = vld [vmem:[#allocation10 + $0x1070] sm:$0xff]  ;;  %v6755_v35 = vpack.c.bf16 %v4178_v45, %v4176_v62  ;;  %v4175_v46 = vld [vmem:[#allocation13 + $0xc0] sm:$0xff]  ;;  %v4185_v62 = vld [vmem:[#allocation13 + $0x110] sm:$0xff] }
 0x4a9   :  { %6740 = vmatprep.subr.bf16.mxu0 %v6739_v8  ;;  %v2872_v8 = vld [vmem:[#allocation10 + $0x10b8] sm:$0xff]  ;;  %v6669_v33 = vpack.c.bf16 %v2863_v48, %v2855_v56  ;;  %v4179_v7 = vld [vmem:[#allocation13 + $0xe0] sm:$0xff]  ;;  %v2895_v63 = vld [vmem:[#allocation10 + $0x1170] sm:$0xff] }
 0x4aa   :  { %6654 = vmatpush1.bf16.msra.mxu1 %v6653_v39  ;;  %v4177_v39 = vld [vmem:[#allocation13 + $0xd0] sm:$0xff]  ;;  %v6671_v5 = vpack.c.bf16 %v2880_v38, %v2872_v8  ;;  %v4188_v56 = vld [vmem:[#allocation13 + $0x128] sm:$0xff]  ;;  %v4190_v48 = vld [vmem:[#allocation13 + $0x138] sm:$0xff] }
 0x4ab   :  { %6656 = vmatprep.subr.bf16.mxu1 %v6655_v16  ;;  %v4180_v16 = vld [vmem:[#allocation13 + $0xe8] sm:$0xff]  ;;  %v6757_v17 = vpack.c.bf16 %v4177_v39, %v4175_v46  ;;  %v7295_v45 = vld [vmem:[#allocation5 + $0x40] sm:$0xf] }
 0x4ac   :  { %6742 = vmatpush1.bf16.msra.mxu0 %v6741_v26  ;;  %v6759_v11 = vpack.c.bf16 %v4182_v24, %v4180_v16  ;;  %v2903_v8 = vld [vmem:[#allocation10 + $0x11b0] sm:$0xff]  ;;  %v6767_v24 = vpack.c.bf16 %v4190_v48, %v4188_v56 }
 0x4ad   :  { %6744 = vmatprep.subr.bf16.mxu0 %v6743_v18  ;;  %v2879_v18 = vld [vmem:[#allocation10 + $0x10f0] sm:$0xff] }
 0x4ae   :  { %6658 = vmatpush1.bf16.msra.mxu1 %v6657_v19  ;;  %v2888_v19 = vld [vmem:[#allocation10 + $0x1138] sm:$0xff]  ;;  %v2911_v38 = vld [vmem:[#allocation10 + $0x11f0] sm:$0xff] }
 0x4af   :  { %6660 = vmatprep.subr.bf16.mxu1 %v6659_v25  ;;  %v4196_v23 = vld [vmem:[#allocation13 + $0x168] sm:$0xff] }
 0x4b0   :  { %6746 = vmatpush1.bf16.msra.mxu0 %v6745_v54  ;;  %v4181_v54 = vld [vmem:[#allocation13 + $0xf0] sm:$0xff] }
 0x4b1   :  { %6748 = vmatprep.subr.bf16.mxu0 %v6747_v52  ;;  %v6673_v52 = vpack.c.bf16 %v2879_v18, %v2871_v20  ;;  %v6761_v9 = vpack.c.bf16 %v4181_v54, %v4179_v7  ;;  %v6681_v20 = vpack.c.bf16 %v2911_v38, %v2903_v8  ;;  %v4192_v18 = vld [vmem:[#allocation13 + $0x148] sm:$0xff]  ;;  %v2936_v7 = vld [vmem:[#allocation10 + $0x12b8] sm:$0xff]  ;;  %v4199_v38 = vld [vmem:[#allocation13 + $0x180] sm:$0xff] }
 0x4b2   :  { %6662 = vmatpush1.bf16.msra.mxu1 %v6661_v44  ;;  %v7294_v44 = vld [vmem:[#allocation5 + $0x48] sm:$0xf]  ;;  %v2944_v54 = vld [vmem:[#allocation10 + $0x12f8] sm:$0xff] }
 0x4b3   :  { %6664 = vmatprep.subr.bf16.mxu1 %v6663_v42  ;;  %v6675_v42 = vpack.c.bf16 %v2896_v40, %v2888_v19  ;;  %v2919_v40 = vld [vmem:[#allocation10 + $0x1230] sm:$0xff] }
 0x4b4   :  { %6750 = vmatpush1.bf16.msra.mxu0 %v6749_v50 }
 0x4b5   :  { %6752 = vmatprep.subr.bf16.mxu0 %v6751_v29  ;;  %v2314_v14 = vpop.f32.mrb[8].mxu0  ;;  %v2912_v29 = vld [vmem:[#allocation10 + $0x11f8] sm:$0xff] }
 0x4b6   :  { %6666 = vmatpush1.bf16.msra.mxu1 %v6665_v59  ;;  %v8182_v13 = vadd.f32 %v2314_v14, %v2010_v43  ;;  %v2316_v26 = vpop.f32.mrb[9].mxu0  ;;  %v4183_v59 = vld [vmem:[#allocation13 + $0x100] sm:$0xff]  ;;  %v2920_v14 = vld [vmem:[#allocation10 + $0x1238] sm:$0xff] }
 0x4b7   :  { %6668 = vmatprep.subr.bf16.mxu1 %v6667_v0  ;;  %v8184_v61 = vadd.f32 %v2316_v26, %v2014_v6  ;;  %v6677_v0 = vpack.c.bf16 %v2895_v63, %v2887_v27  ;;  %v6765_v39 = vpack.c.bf16 %v4185_v62, %v4183_v59  ;;  %v4187_v26 = vld [vmem:[#allocation13 + $0x120] sm:$0xff]  ;;  %v2943_v27 = vld [vmem:[#allocation10 + $0x12f0] sm:$0xff] }
 0x4b8   :  { %6754 = vmatpush1.bf16.msra.mxu0 %v6753_v4  ;;  %v4727_v25 = vmul.f32 %v8182_v13, %v8182_v13  ;;  %v6679_v4 = vpack.c.bf16 %v2912_v29, %v2904_v55  ;;  %v8207_v55 = vadd.f32 %v8159_v51, %v8169_v12  ;;  %v4200_v62 = vld [vmem:[#allocation13 + $0x188] sm:$0xff]  ;;  %v2968_v12 = vld [vmem:[#allocation10 + $0x13b8] sm:$0xff] }
 0x4b9   :  { %6756 = vmatprep.subr.bf16.mxu0 %v6755_v35  ;;  %3982 = vmatmul.mubr.f32.vlgmr.msra.gmra.mrb[24].mxu1 %v7293_v32  ;;  %v2320_v1 = vpop.f32.mrb[10].mxu0  ;;  %v4728_v15 = vmul.f32 %v8184_v61, %v8184_v61  ;;  %v7296_v35 = vld [vmem:[#allocation5 + $0x28] sm:$0xff]  ;;  %v2927_v32 = vld [vmem:[#allocation10 + $0x1270] sm:$0xff] }
 0x4ba   :  { %6670 = vmatpush1.bf16.msra.mxu1 %v6669_v33  ;;  %3987 = vmatprep.mubr.f32.mxu1 %v7294_v44  ;;  %v8190_v49 = vadd.f32 %v2320_v1, %v2010_v43  ;;  %v2322_v10 = vpop.f32.mrb[11].mxu0  ;;  %v2928_v33 = vld [vmem:[#allocation10 + $0x1278] sm:$0xff]  ;;  %v6685_v36 = vpack.c.bf16 %v2927_v32, %v2919_v40  ;;  %v4198_v44 = vld [vmem:[#allocation13 + $0x178] sm:$0xff]  ;;  %v4208_v32 = vld [vmem:[#allocation13 + $0x1c8] sm:$0xff] }
 0x4bb   :  { %6672 = vmatprep.subr.bf16.mxu1 %v6671_v5  ;;  %v8192_v50 = vadd.f32 %v2322_v10, %v2014_v6  ;;  %v4731_v57 = vadd.f32 %v4728_v15, %v4727_v25  ;;  %v4189_v5 = vld [vmem:[#allocation13 + $0x130] sm:$0xff]  ;;  %v6683_v19 = vpack.c.bf16 %v2928_v33, %v2920_v14  ;;  %v3110_v25 = vrot.slane %v8165_v28, %v7928_v34  ;;  %v4191_v15 = vld [vmem:[#allocation13 + $0x140] sm:$0xff]  ;;  %v4206_v14 = vld [vmem:[#allocation13 + $0x1b8] sm:$0xff] }
 0x4bc   :  { %6758 = vmatpush1.bf16.msra.mxu0 %v6757_v17  ;;  %v4729_v58 = vmul.f32 %v8190_v49, %v8190_v49  ;;  %v4194_v17 = vld [vmem:[#allocation13 + $0x158] sm:$0xff]  ;;  %v6687_v10 = vpack.c.bf16 %v2944_v54, %v2936_v7  ;;  %v6775_v29 = vpack.c.bf16 %v4198_v44, %v4196_v23  ;;  %v2983_v7 = vld [vmem:[#allocation10 + $0x1430] sm:$0xff]  ;;  %v4207_v23 = vld [vmem:[#allocation13 + $0x1c0] sm:$0xff] }
 0x4bd   :  { %6760 = vmatprep.subr.bf16.mxu0 %v6759_v11  ;;  %3988 = vmatmul.mubr.f32.gmra.mrb[26].mxu1 %v7295_v45  ;;  %v4730_v43 = vmul.f32 %v8192_v50, %v8192_v50  ;;  %v6769_v11 = vpack.c.bf16 %v4189_v5, %v4187_v26  ;;  %v6771_v1 = vpack.c.bf16 %v4194_v17, %v4192_v18  ;;  %v4202_v45 = vld [vmem:[#allocation13 + $0x198] sm:$0xff]  ;;  %v2984_v5 = vld [vmem:[#allocation10 + $0x1438] sm:$0xff]  ;;  %v4203_v17 = vld [vmem:[#allocation13 + $0x1a0] sm:$0xff] }
 0x4be   :  { %4732 = vadd.xlane.f32.xlu1 %v4731_v57  ;;  %6674 = vmatpush1.bf16.msra.mxu1 %v6673_v52  ;;  %v4735_v6 = vsel %vm4734_vm1, %v4729_v58, 0.0  ;;  %v4193_v52 = vld [vmem:[#allocation13 + $0x150] sm:$0xff]  ;;  %v8203_v63 = vadd.f32 %v8153_v53, %v3110_v25  ;;  %v4195_v58 = vld [vmem:[#allocation13 + $0x160] sm:$0xff]  ;;  %v2951_v53 = vld [vmem:[#allocation10 + $0x1330] sm:$0xff]  ;;  %v8211_v48 = vadd.f32 %v8157_v22, %v3110_v25  ;;  %v6779_v8 = vpack.c.bf16 %v4202_v45, %v4200_v62 }
 0x4bf   :  { %6676 = vmatprep.subr.bf16.mxu1 %v6675_v42  ;;  %4058 = vmatprep.mubr.f32.mxu1 %v7296_v35  ;;  %v4736_v46 = vsel %vm4734_vm1, %v4730_v43, 0.0  ;;  %v2935_v42 = vld [vmem:[#allocation10 + $0x12b0] sm:$0xff]  ;;  %v6773_v28 = vpack.c.bf16 %v4193_v52, %v4191_v15  ;;  %v2952_v57 = vld [vmem:[#allocation10 + $0x1338] sm:$0xff]  ;;  %v4210_v25 = vld [vmem:[#allocation13 + $0x1d8] sm:$0xff] }
 0x4c0   :  { %6762 = vmatpush1.bf16.msra.mxu0 %v6761_v9  ;;  %v4737_v16 = vadd.f32 %v4736_v46, %v4735_v6  ;;  %v2960_v9 = vld [vmem:[#allocation10 + $0x1378] sm:$0xff]  ;;  %v6689_v59 = vpack.c.bf16 %v2943_v27, %v2935_v42  ;;  %v4087_v56 = vmul.f32 0.70710677, %v8203_v63  ;;  %v4095_v22 = vmul.f32 0.70710677, %v8211_v48  ;;  %v2991_v54 = vld [vmem:[#allocation10 + $0x1470] sm:$0xff] }
 0x4c1   :  { %6764 = vmatprep.subr.bf16.mxu0 %v6763_v21  ;;  %v4197_v21 = vld [vmem:[#allocation13 + $0x170] sm:$0xff]  ;;  %v6691_v43 = vpack.c.bf16 %v2960_v9, %v2952_v57  ;;  %v4212_v42 = vld [vmem:[#allocation13 + $0x1e8] sm:$0xff]  ;;  %v4214_v27 = vld [vmem:[#allocation13 + $0x1f8] sm:$0xff] }
 0x4c2   :  { %6678 = vmatpush1.bf16.msra.mxu1 %v6677_v0  ;;  %4738 = vadd.xlane.f32.xlu1 %v4737_v16  ;;  %v2959_v0 = vld [vmem:[#allocation10 + $0x1370] sm:$0xff]  ;;  %v6777_v51 = vpack.c.bf16 %v4197_v21, %v4195_v58  ;;  %v2976_v6 = vld [vmem:[#allocation10 + $0x13f8] sm:$0xff]  ;;  %7237 = verf.f32 %v4087_v56  ;;  %v4211_v62 = vld [vmem:[#allocation13 + $0x1e0] sm:$0xff] }
 0x4c3   :  { %6680 = vmatprep.subr.bf16.mxu1 %v6679_v4  ;;  %v4096_v4 = vmul.f32 0.70710677, %v8207_v55  ;;  %v4201_v35 = vld [vmem:[#allocation13 + $0x190] sm:$0xff]  ;;  %v6693_v46 = vpack.c.bf16 %v2959_v0, %v2951_v53  ;;  %v6695_v33 = vpack.c.bf16 %v2976_v6, %v2968_v12  ;;  %v2967_v16 = vld [vmem:[#allocation10 + $0x13b0] sm:$0xff]  ;;  %v4218_v56 = vld [vmem:[#allocation13 + $0x218] sm:$0xff] }
 0x4c4   :  { %6766 = vmatpush1.bf16.msra.mxu0 %v6765_v39  ;;  %v4204_v39 = vld [vmem:[#allocation13 + $0x1a8] sm:$0xff]  ;;  %v6781_v26 = vpack.c.bf16 %v4201_v35, %v4199_v38  ;;  %v3000_v15 = vld [vmem:[#allocation10 + $0x14b8] sm:$0xff] }
 0x4c5   :  { %6768 = vmatprep.subr.bf16.mxu0 %v6767_v24  ;;  %v2975_v24 = vld [vmem:[#allocation10 + $0x13f0] sm:$0xff]  ;;  %7239 = verf.f32 %v4096_v4  ;;  %v6783_v18 = vpack.c.bf16 %v4206_v14, %v4204_v39  ;;  %v3008_v52 = vld [vmem:[#allocation10 + $0x14f8] sm:$0xff]  ;;  %v4215_v14 = vld [vmem:[#allocation13 + $0x200] sm:$0xff] }
 0x4c6   :  { %6682 = vmatpush1.bf16.msra.mxu1 %v6681_v20  ;;  %v2992_v20 = vld [vmem:[#allocation10 + $0x1478] sm:$0xff]  ;;  %v6697_v40 = vpack.c.bf16 %v2975_v24, %v2967_v16  ;;  %7241 = verf.f32 %v4095_v22  ;;  %v2999_v57 = vld [vmem:[#allocation10 + $0x14b0] sm:$0xff] }
 0x4c7   :  { %6684 = vmatprep.subr.bf16.mxu1 %v6683_v19  ;;  %v4205_v19 = vld [vmem:[#allocation13 + $0x1b0] sm:$0xff]  ;;  %v3007_v9 = vld [vmem:[#allocation10 + $0x14f0] sm:$0xff] }
 0x4c8   :  { %6770 = vmatpush1.bf16.msra.mxu0 %v6769_v11  ;;  %v6699_v11 = vpack.c.bf16 %v2992_v20, %v2984_v5  ;;  %v4209_v44 = vld [vmem:[#allocation13 + $0x1d0] sm:$0xff]  ;;  %v6705_v53 = vpack.c.bf16 %v3007_v9, %v2999_v57  ;;  %v4216_v0 = vld [vmem:[#allocation13 + $0x208] sm:$0xff]  ;;  %v4222_v5 = vld [vmem:[#allocation13 + $0x238] sm:$0xff]  ;;  %v4071_v20 = vmul.f32 0.5, %v8203_v63 }
 0x4c9   :  { %6772 = vmatprep.subr.bf16.mxu0 %v6771_v1  ;;  %v6785_v1 = vpack.c.bf16 %v4205_v19, %v4203_v17  ;;  %v3016_v58 = vld [vmem:[#allocation10 + $0x1538] sm:$0xff]  ;;  %v3015_v6 = vld [vmem:[#allocation10 + $0x1530] sm:$0xff]  ;;  %v6795_v39 = vpack.c.bf16 %v4218_v56, %v4216_v0 }
 0x4ca   :  { %6686 = vmatpush1.bf16.msra.mxu1 %v6685_v36  ;;  %v6787_v36 = vpack.c.bf16 %v4210_v25, %v4208_v32  ;;  %v3024_v21 = vld [vmem:[#allocation10 + $0x1578] sm:$0xff]  ;;  %v3023_v4 = vld [vmem:[#allocation10 + $0x1570] sm:$0xff] }
 0x4cb   :  { %6688 = vmatprep.subr.bf16.mxu1 %v6687_v10  ;;  %v6701_v10 = vpack.c.bf16 %v2991_v54, %v2983_v7  ;;  %v4213_v45 = vld [vmem:[#allocation13 + $0x1f0] sm:$0xff]  ;;  %v6707_v12 = vpack.c.bf16 %v3024_v21, %v3016_v58  ;;  %v6709_v22 = vpack.c.bf16 %v3023_v4, %v3015_v6  ;;  %v3031_v17 = vld [vmem:[#allocation10 + $0x15b0] sm:$0xff]  ;;  %v4223_v21 = vld [vmem:[#allocation13 + $0x240] sm:$0xff] }
 0x4cc   :  { %6774 = vmatpush1.bf16.msra.mxu0 %v6773_v28  ;;  %v6703_v28 = vpack.c.bf16 %v3008_v52, %v3000_v15  ;;  %v3032_v38 = vld [vmem:[#allocation10 + $0x15b8] sm:$0xff]  ;;  %v3039_v19 = vld [vmem:[#allocation10 + $0x15f0] sm:$0xff]  ;;  %v4219_v15 = vld [vmem:[#allocation13 + $0x220] sm:$0xff] }
 0x4cd   :  { %6776 = vmatprep.subr.bf16.mxu0 %v6775_v29  ;;  %v6789_v29 = vpack.c.bf16 %v4209_v44, %v4207_v23  ;;  %v3040_v35 = vld [vmem:[#allocation10 + $0x15f8] sm:$0xff]  ;;  %v6713_v23 = vpack.c.bf16 %v3039_v19, %v3031_v17  ;;  %v4224_v63 = vld [vmem:[#allocation13 + $0x248] sm:$0xff]  ;;  %v4226_v44 = vld [vmem:[#allocation13 + $0x258] sm:$0xff] }
 0x4ce   :  { %6690 = vmatpush1.bf16.msra.mxu1 %v6689_v59  ;;  %v6791_v59 = vpack.c.bf16 %v4214_v27, %v4212_v42  ;;  %v3048_v25 = vld [vmem:[#allocation10 + $0x1638] sm:$0xff]  ;;  %v3047_v42 = vld [vmem:[#allocation10 + $0x1630] sm:$0xff]  ;;  %v6803_v58 = vpack.c.bf16 %v4226_v44, %v4224_v63  ;;  %v4227_v4 = vld [vmem:[#allocation13 + $0x260] sm:$0xff] }
 0x4cf   :  { %6692 = vmatprep.subr.bf16.mxu1 %v6691_v43  ;;  %v7238_v43 = vpop.eup %7237  ;;  %v4221_v52 = vld [vmem:[#allocation13 + $0x230] sm:$0xff]  ;;  %v3055_v27 = vld [vmem:[#allocation10 + $0x1670] sm:$0xff]  ;;  %v4238_v19 = vld [vmem:[#allocation13 + $0x2b8] sm:$0xff] }
 0x4d0   :  { %6778 = vmatpush1.bf16.msra.mxu0 %v6777_v51  ;;  %v7240_v51 = vpop.eup %7239  ;;  %v3064_v57 = vld [vmem:[#allocation10 + $0x16b8] sm:$0xff]  ;;  %v3071_v0 = vld [vmem:[#allocation10 + $0x16f0] sm:$0xff]  ;;  %v4239_v44 = vld [vmem:[#allocation13 + $0x2c0] sm:$0xff] }
 0x4d1   :  { %6780 = vmatprep.subr.bf16.mxu0 %v6779_v8  ;;  %v6793_v8 = vpack.c.bf16 %v4213_v45, %v4211_v62  ;;  %v7242_v16 = vpop.eup %7241  ;;  %v4128_v24 = vadd.f32 1.0, %v7240_v51  ;;  %v3072_v9 = vld [vmem:[#allocation10 + $0x16f8] sm:$0xff]  ;;  %v6717_v62 = vpack.c.bf16 %v3055_v27, %v3047_v42  ;;  %v4228_v45 = vld [vmem:[#allocation13 + $0x268] sm:$0xff]  ;;  %v4246_v42 = vld [vmem:[#allocation13 + $0x2f8] sm:$0xff] }
 0x4d2   :  { %6694 = vmatpush1.bf16.msra.mxu1 %v6693_v46  ;;  %v4119_v46 = vadd.f32 1.0, %v7238_v43  ;;  %v4127_v54 = vadd.f32 1.0, %v7242_v16  ;;  %v4230_v43 = vld [vmem:[#allocation13 + $0x278] sm:$0xff]  ;;  %v3080_v51 = vld [vmem:[#allocation10 + $0x1738] sm:$0xff]  ;;  %v4236_v17 = vld [vmem:[#allocation13 + $0x2a8] sm:$0xff] }
 0x4d3   :  { %6696 = vmatprep.subr.bf16.mxu1 %v6695_v33  ;;  %v4217_v33 = vld [vmem:[#allocation13 + $0x210] sm:$0xff]  ;;  %v6807_v6 = vpack.c.bf16 %v4230_v43, %v4228_v45  ;;  %v7299_v45 = vld [vmem:[#allocation5 + $0x50] sm:$0xf] }
 0x4d4   :  { %6782 = vmatpush1.bf16.msra.mxu0 %v6781_v26  ;;  %v4220_v26 = vld [vmem:[#allocation13 + $0x228] sm:$0xff]  ;;  %v6797_v32 = vpack.c.bf16 %v4217_v33, %v4215_v14  ;;  %v4135_v7 = vmul.f32 %v4119_v46, %v4071_v20  ;;  %v4234_v46 = vld [vmem:[#allocation13 + $0x298] sm:$0xff]  ;;  %v4233_v20 = vld [vmem:[#allocation13 + $0x290] sm:$0xff] }
 0x4d5   :  { %6784 = vmatprep.subr.bf16.mxu0 %v6783_v18  ;;  %v6711_v18 = vpack.c.bf16 %v3040_v35, %v3032_v38  ;;  %v4232_v35 = vld [vmem:[#allocation13 + $0x288] sm:$0xff] }
 0x4d6   :  { %6698 = vmatpush1.bf16.msra.mxu1 %v6697_v40  ;;  %v4080_v40 = vmul.f32 0.5, %v8207_v55  ;;  %v3079_v14 = vld [vmem:[#allocation10 + $0x1730] sm:$0xff] }
 0x4d7   :  { %6700 = vmatprep.subr.bf16.mxu1 %v6699_v11  ;;  %v3056_v11 = vld [vmem:[#allocation10 + $0x1678] sm:$0xff]  ;;  %v3087_v33 = vld [vmem:[#allocation10 + $0x1770] sm:$0xff] }
 0x4d8   :  { %6786 = vmatpush1.bf16.msra.mxu0 %v6785_v1  ;;  %v6799_v1 = vpack.c.bf16 %v4222_v5, %v4220_v26  ;;  %v6715_v55 = vpack.c.bf16 %v3056_v11, %v3048_v25  ;;  %v6811_v26 = vpack.c.bf16 %v4234_v46, %v4232_v35  ;;  %v4231_v5 = vld [vmem:[#allocation13 + $0x280] sm:$0xff]  ;;  %v3103_v25 = vld [vmem:[#allocation10 + $0x17f0] sm:$0xff] }
 0x4d9   :  { %6788 = vmatprep.subr.bf16.mxu0 %v6787_v36  ;;  %v4144_v36 = vmul.f32 %v4128_v24, %v4080_v40  ;;  %v3096_v24 = vld [vmem:[#allocation10 + $0x17b8] sm:$0xff]  ;;  %v6813_v11 = vpack.c.bf16 %v4233_v20, %v4231_v5  ;;  %v4259_v20 = vld [vmem:[#allocation13 + $0x360] sm:$0xff] }
 0x4da   :  { %6702 = vmatpush1.bf16.msra.mxu1 %v6701_v10  ;;  %v4079_v10 = vmul.f32 0.5, %v8211_v48  ;;  %v6719_v48 = vpack.c.bf16 %v3072_v9, %v3064_v57  ;;  %v4243_v9 = vld [vmem:[#allocation13 + $0x2e0] sm:$0xff] }
 0x4db   :  { %6704 = vmatprep.subr.bf16.mxu1 %v6703_v28  ;;  %v6801_v28 = vpack.c.bf16 %v4221_v52, %v4219_v15  ;;  %v4240_v52 = vld [vmem:[#allocation13 + $0x2c8] sm:$0xff] }
 0x4dc   :  { %6790 = vmatpush1.bf16.msra.mxu0 %v6789_v29  ;;  %v4143_v29 = vmul.f32 %v4127_v54, %v4079_v10  ;;  %v4235_v54 = vld [vmem:[#allocation13 + $0x2a0] sm:$0xff]  ;;  %v4241_v10 = vld [vmem:[#allocation13 + $0x2d0] sm:$0xff] }
 0x4dd   :  { %6792 = vmatprep.subr.bf16.mxu0 %v6791_v59  ;;  %v4225_v59 = vld [vmem:[#allocation13 + $0x250] sm:$0xff]  ;;  %v6821_v27 = vpack.c.bf16 %v4241_v10, %v4239_v44 }
 0x4de   :  { %6706 = vmatpush1.bf16.msra.mxu1 %v6705_v53  ;;  %v3063_v53 = vld [vmem:[#allocation10 + $0x16b0] sm:$0xff]  ;;  %v6805_v56 = vpack.c.bf16 %v4225_v59, %v4223_v21  ;;  %v4250_v59 = vld [vmem:[#allocation13 + $0x318] sm:$0xff] }
 0x4df   :  { %6708 = vmatprep.subr.bf16.mxu1 %v6707_v12  ;;  %v3088_v12 = vld [vmem:[#allocation10 + $0x1778] sm:$0xff]  ;;  %v6721_v38 = vpack.c.bf16 %v3071_v0, %v3063_v53  ;;  %v4248_v21 = vld [vmem:[#allocation13 + $0x308] sm:$0xff] }
 0x4e0   :  { %6794 = vmatpush1.bf16.msra.mxu0 %v6793_v8  ;;  %v4229_v8 = vld [vmem:[#allocation13 + $0x270] sm:$0xff]  ;;  %v6827_v43 = vpack.c.bf16 %v4250_v59, %v4248_v21  ;;  %v4252_v0 = vld [vmem:[#allocation13 + $0x328] sm:$0xff] }
 0x4e1   :  { %6796 = vmatprep.subr.bf16.mxu0 %v6795_v39  ;;  %v6723_v39 = vpack.c.bf16 %v3088_v12, %v3080_v51  ;;  %v6809_v16 = vpack.c.bf16 %v4229_v8, %v4227_v4  ;;  %v4249_v53 = vld [vmem:[#allocation13 + $0x310] sm:$0xff]  ;;  %v4256_v8 = vld [vmem:[#allocation13 + $0x348] sm:$0xff] }
 0x4e2   :  { %6710 = vmatpush1.bf16.msra.mxu1 %v6709_v22  ;;  %v3104_v22 = vld [vmem:[#allocation10 + $0x17f8] sm:$0xff] }
 0x4e3   :  { %4484 = vmatmul.mubr.f32.vlgmr.msra.gmra.mrb[16].mxu0 %v4135_v7  ;;  %6712 = vmatprep.subr.bf16.mxu1 %v6711_v18  ;;  %v6725_v18 = vpack.c.bf16 %v3087_v33, %v3079_v14  ;;  %v6727_v40 = vpack.c.bf16 %v3104_v22, %v3096_v24  ;;  %v6815_v7 = vpack.c.bf16 %v4238_v19, %v4236_v17  ;;  %v4253_v4 = vld [vmem:[#allocation13 + $0x330] sm:$0xff]  ;;  %v4260_v33 = vld [vmem:[#allocation13 + $0x368] sm:$0xff]  ;;  %v8218_v22 = vld [vmem:[#allocation11] sm:$0xff] }
 0x4e4   :  { %4489 = vmatprep.mubr.f32.mxu0 %v4144_v36  ;;  %6798 = vmatpush1.bf16.msra.mxu0 %v6797_v32  ;;  %v3095_v32 = vld [vmem:[#allocation10 + $0x17b0] sm:$0xff]  ;;  %v4242_v36 = vld [vmem:[#allocation13 + $0x2d8] sm:$0xff]  ;;  %v4257_v14 = vld [vmem:[#allocation13 + $0x350] sm:$0xff]  ;;  %v3122_v17 = vrot.slane %v8218_v22, %v7951_v3 }
 0x4e5   :  { %6800 = vmatprep.subr.bf16.mxu0 %v6799_v1  ;;  %v4237_v1 = vld [vmem:[#allocation13 + $0x2b0] sm:$0xff]  ;;  %v6729_v15 = vpack.c.bf16 %v3103_v25, %v3095_v32  ;;  %v6819_v63 = vpack.c.bf16 %v4242_v36, %v4240_v52  ;;  %v4264_v19 = vld [vmem:[#allocation13 + $0x388] sm:$0xff] }
 0x4e6   :  { %6714 = vmatpush1.bf16.msra.mxu1 %v6713_v23  ;;  %v6817_v23 = vpack.c.bf16 %v4237_v1, %v4235_v54  ;;  %v4263_v1 = vld [vmem:[#allocation13 + $0x380] sm:$0xff]  ;;  %v4268_v36 = vld [vmem:[#allocation13 + $0x3a8] sm:$0xff] }
 0x4e7   :  { %4490 = vmatmul.mubr.f32.gmra.mrb[18].mxu0 %v4143_v29  ;;  %6716 = vmatprep.subr.bf16.mxu1 %v6715_v55  ;;  %v4244_v55 = vld [vmem:[#allocation13 + $0x2e8] sm:$0xff]  ;;  %v4245_v29 = vld [vmem:[#allocation13 + $0x2f0] sm:$0xff] }
 0x4e8   :  { %6802 = vmatpush1.bf16.msra.mxu0 %v6801_v28  ;;  %v7297_v28 = vld [vmem:[#allocation5 + $0x20] sm:$0xff]  ;;  %v6823_v57 = vpack.c.bf16 %v4246_v42, %v4244_v55 }
 0x4e9   :  { %6804 = vmatprep.subr.bf16.mxu0 %v6803_v58  ;;  %v7298_v58 = vld [vmem:[#allocation5 + $0x58] sm:$0xf] }
 0x4ea   :  { %6718 = vmatpush1.bf16.msra.mxu1 %v6717_v62  ;;  %v6825_v62 = vpack.c.bf16 %v4245_v29, %v4243_v9  ;;  %v4272_v9 = vld [vmem:[#allocation13 + $0x3c8] sm:$0xff]  ;;  %v4274_v29 = vld [vmem:[#allocation13 + $0x3d8] sm:$0xff] }
 0x4eb   :  { %6720 = vmatprep.subr.bf16.mxu1 %v6719_v48  ;;  %v4247_v48 = vld [vmem:[#allocation13 + $0x300] sm:$0xff] }
 0x4ec   :  { %6806 = vmatpush1.bf16.msra.mxu0 %v6805_v56  ;;  %v4254_v56 = vld [vmem:[#allocation13 + $0x338] sm:$0xff]  ;;  %v6829_v51 = vpack.c.bf16 %v4249_v53, %v4247_v48  ;;  %v4276_v48 = vld [vmem:[#allocation13 + $0x3e8] sm:$0xff] }
 0x4ed   :  { %6808 = vmatprep.subr.bf16.mxu0 %v6807_v6  ;;  %v6831_v12 = vpack.c.bf16 %v4254_v56, %v4252_v0  ;;  %v4251_v6 = vld [vmem:[#allocation13 + $0x320] sm:$0xff]  ;;  %v4278_v53 = vld [vmem:[#allocation13 + $0x3f8] sm:$0xff] }
 0x4ee   :  { %6722 = vmatpush1.bf16.msra.mxu1 %v6721_v38  ;;  %v4258_v38 = vld [vmem:[#allocation13 + $0x358] sm:$0xff]  ;;  %v6833_v35 = vpack.c.bf16 %v4253_v4, %v4251_v6  ;;  %v6855_v56 = vpack.c.bf16 %v4278_v53, %v4276_v48  ;;  %v4280_v6 = vld [vmem:[#allocation13 + $0x408] sm:$0xff] }
 0x4ef   :  { %6724 = vmatprep.subr.bf16.mxu1 %v6723_v39  ;;  %v6835_v46 = vpack.c.bf16 %v4258_v38, %v4256_v8  ;;  %v4255_v39 = vld [vmem:[#allocation13 + $0x340] sm:$0xff]  ;;  %v4282_v4 = vld [vmem:[#allocation13 + $0x418] sm:$0xff]  ;;  %v4300_v48 = vld [vmem:[#allocation13 + $0x4a8] sm:$0xff] }
 0x4f0   :  { %6810 = vmatpush1.bf16.msra.mxu0 %v6809_v16  ;;  %v4262_v16 = vld [vmem:[#allocation13 + $0x378] sm:$0xff]  ;;  %v6837_v24 = vpack.c.bf16 %v4257_v14, %v4255_v39 }
 0x4f1   :  { %6812 = vmatprep.subr.bf16.mxu0 %v6811_v26  ;;  %v3118_v26 = vrot.slane %v8218_v22, %v7967_v60  ;;  %v6839_v5 = vpack.c.bf16 %v4262_v16, %v4260_v33  ;;  %v4270_v60 = vld [vmem:[#allocation13 + $0x3b8] sm:$0xff]  ;;  %v6859_v16 = vpack.c.bf16 %v4282_v4, %v4280_v6  ;;  %v4304_v6 = vld [vmem:[#allocation13 + $0x4c8] sm:$0xff] }
 0x4f2   :  { %6726 = vmatpush1.bf16.msra.mxu1 %v6725_v18  ;;  %v4261_v18 = vld [vmem:[#allocation13 + $0x370] sm:$0xff]  ;;  %v6847_v42 = vpack.c.bf16 %v4270_v60, %v4268_v36  ;;  %v4288_v36 = vld [vmem:[#allocation13 + $0x448] sm:$0xff]  ;;  %v4290_v60 = vld [vmem:[#allocation13 + $0x458] sm:$0xff] }
 0x4f3   :  { %6728 = vmatprep.subr.bf16.mxu1 %v6727_v40  ;;  %v4266_v40 = vld [vmem:[#allocation13 + $0x398] sm:$0xff]  ;;  %v6841_v25 = vpack.c.bf16 %v4261_v18, %v4259_v20 }
 0x4f4   :  { %6814 = vmatpush1.bf16.msra.mxu0 %v6813_v11  ;;  %v6843_v54 = vpack.c.bf16 %v4266_v40, %v4264_v19  ;;  %v4302_v53 = vld [vmem:[#allocation13 + $0x4b8] sm:$0xff] }
 0x4f5   :  { %6816 = vmatprep.subr.bf16.mxu0 %v6815_v7  ;;  %v4306_v4 = vld [vmem:[#allocation13 + $0x4d8] sm:$0xff] }
 0x4f6   :  { %6730 = vmatpush1.bf16.msra.mxu1 %v6729_v15  ;;  %v4265_v15 = vld [vmem:[#allocation13 + $0x390] sm:$0xff] }
 0x4f7   :  { %v6845_v10 = vpack.c.bf16 %v4265_v15, %v4263_v1  ;;  %v4283_v15 = vld [vmem:[#allocation13 + $0x420] sm:$0xff] }
 0x4f8   :  { %6818 = vmatpush1.bf16.msra.mxu0 %v6817_v23 }
 0x4f9   :  { %4059 = vmatmul.mubr.f32.vlgmr.msra.gmra.mrb[24].mxu1 %v7297_v28  ;;  %6820 = vmatprep.subr.bf16.mxu0 %v6819_v63  ;;  %v4269_v28 = vld [vmem:[#allocation13 + $0x3b0] sm:$0xff] }
 0x4fa   :  { %4064 = vmatprep.mubr.f32.mxu1 %v7298_v58 }
 0x4fc   :  { %6822 = vmatpush1.bf16.msra.mxu0 %v6821_v27  ;;  %v4267_v27 = vld [vmem:[#allocation13 + $0x3a0] sm:$0xff] }
 0x4fd   :  { %4065 = vmatmul.mubr.f32.gmra.mrb[26].mxu1 %v7299_v45  ;;  %6824 = vmatprep.subr.bf16.mxu0 %v6823_v57  ;;  %v6849_v59 = vpack.c.bf16 %v4269_v28, %v4267_v27  ;;  %v4271_v45 = vld [vmem:[#allocation13 + $0x3c0] sm:$0xff]  ;;  %v4292_v27 = vld [vmem:[#allocation13 + $0x468] sm:$0xff]  ;;  %v4294_v28 = vld [vmem:[#allocation13 + $0x478] sm:$0xff] }
 0x500   :  { %6826 = vmatpush1.bf16.msra.mxu0 %v6825_v62  ;;  %v6851_v62 = vpack.c.bf16 %v4274_v29, %v4272_v9  ;;  %v6871_v9 = vpack.c.bf16 %v4294_v28, %v4292_v27  ;;  %v4291_v29 = vld [vmem:[#allocation13 + $0x460] sm:$0xff]  ;;  %v4325_v28 = vld [vmem:[#allocation13 + $0x570] sm:$0xff] }
 0x501   :  { %6828 = vmatprep.subr.bf16.mxu0 %v6827_v43  ;;  %v4273_v43 = vld [vmem:[#allocation13 + $0x3d0] sm:$0xff]  ;;  %v4323_v27 = vld [vmem:[#allocation13 + $0x560] sm:$0xff] }
 0x502   :  { %v6853_v0 = vpack.c.bf16 %v4273_v43, %v4271_v45  ;;  %v4295_v45 = vld [vmem:[#allocation13 + $0x480] sm:$0xff]  ;;  %v4297_v43 = vld [vmem:[#allocation13 + $0x490] sm:$0xff] }
 0x504   :  { %6830 = vmatpush1.bf16.msra.mxu0 %v6829_v51  ;;  %v4275_v51 = vld [vmem:[#allocation13 + $0x3e0] sm:$0xff] }
 0x505   :  { %6832 = vmatprep.subr.bf16.mxu0 %v6831_v12  ;;  %v4277_v12 = vld [vmem:[#allocation13 + $0x3f0] sm:$0xff] }
 0x508   :  { %6834 = vmatpush1.bf16.msra.mxu0 %v6833_v35  ;;  %v6857_v35 = vpack.c.bf16 %v4277_v12, %v4275_v51  ;;  %v4299_v51 = vld [vmem:[#allocation13 + $0x4a0] sm:$0xff]  ;;  %v4301_v12 = vld [vmem:[#allocation13 + $0x4b0] sm:$0xff] }
 0x509   :  { %6836 = vmatprep.subr.bf16.mxu0 %v6835_v46  ;;  %v4279_v46 = vld [vmem:[#allocation13 + $0x400] sm:$0xff] }
 0x50c   :  { %6838 = vmatpush1.bf16.msra.mxu0 %v6837_v24  ;;  %v3598_v32 = vpop.f32.mrb[20].mxu1  ;;  %v4281_v24 = vld [vmem:[#allocation13 + $0x410] sm:$0xff] }
 0x50d   :  { %v7091_v11 = vadd.f32 %v3598_v32, %v3118_v26  ;;  %v3600_v7 = vpop.f32.mrb[21].mxu1  ;;  %6840 = vmatprep.subr.bf16.mxu0 %v6839_v5  ;;  %v4286_v5 = vld [vmem:[#allocation13 + $0x438] sm:$0xff]  ;;  %v6861_v40 = vpack.c.bf16 %v4281_v24, %v4279_v46  ;;  %v4305_v46 = vld [vmem:[#allocation13 + $0x4d0] sm:$0xff]  ;;  %v4307_v24 = vld [vmem:[#allocation13 + $0x4e0] sm:$0xff] }
 0x50e   :  { %v7092_v52 = vadd.f32 %v3600_v7, %v3122_v17 }
 0x50f   :  { %v4089_v23 = vmul.f32 0.70710677, %v7091_v11  ;;  %v4073_v18 = vmul.f32 0.5, %v7091_v11 }
 0x510   :  { %v4090_v63 = vmul.f32 0.70710677, %v7092_v52  ;;  %6842 = vmatpush1.bf16.msra.mxu0 %v6841_v25  ;;  %v3604_v44 = vpop.f32.mrb[22].mxu1  ;;  %v4074_v14 = vmul.f32 0.5, %v7092_v52  ;;  %v4285_v52 = vld [vmem:[#allocation13 + $0x430] sm:$0xff] }
 0x511   :  { %7243 = verf.f32 %v4089_v23  ;;  %v7093_v3 = vadd.f32 %v3604_v44, %v3118_v26  ;;  %v3606_v55 = vpop.f32.mrb[23].mxu1  ;;  %6844 = vmatprep.subr.bf16.mxu0 %v6843_v54  ;;  %v4284_v26 = vld [vmem:[#allocation13 + $0x428] sm:$0xff]  ;;  %v6865_v11 = vpack.c.bf16 %v4285_v52, %v4283_v15  ;;  %v4317_v15 = vld [vmem:[#allocation13 + $0x530] sm:$0xff] }
 0x512   :  { %7245 = verf.f32 %v4090_v63  ;;  %v7094_v57 = vadd.f32 %v3606_v55, %v3122_v17  ;;  %v6863_v32 = vpack.c.bf16 %v4286_v5, %v4284_v26  ;;  %v4287_v55 = vld [vmem:[#allocation13 + $0x440] sm:$0xff]  ;;  %v4309_v26 = vld [vmem:[#allocation13 + $0x4f0] sm:$0xff]  ;;  %v4312_v5 = vld [vmem:[#allocation13 + $0x508] sm:$0xff] }
 0x513   :  { %v4097_v58 = vmul.f32 0.70710677, %v7093_v3  ;;  %v4081_v23 = vmul.f32 0.5, %v7093_v3  ;;  %v4296_v3 = vld [vmem:[#allocation13 + $0x488] sm:$0xff] }
 0x514   :  { %v4098_v21 = vmul.f32 0.70710677, %v7094_v57  ;;  %6846 = vmatpush1.bf16.msra.mxu0 %v6845_v10  ;;  %v4082_v54 = vmul.f32 0.5, %v7094_v57  ;;  %v6867_v10 = vpack.c.bf16 %v4290_v60, %v4288_v36  ;;  %v4320_v52 = vld [vmem:[#allocation13 + $0x548] sm:$0xff]  ;;  %v4322_v36 = vld [vmem:[#allocation13 + $0x558] sm:$0xff] }
 0x515   :  { %7247 = verf.f32 %v4097_v58  ;;  %6848 = vmatprep.subr.bf16.mxu0 %v6847_v42  ;;  %v4289_v42 = vld [vmem:[#allocation13 + $0x450] sm:$0xff] }
 0x516   :  { %7249 = verf.f32 %v4098_v21  ;;  %v6869_v57 = vpack.c.bf16 %v4289_v42, %v4287_v55  ;;  %v4293_v58 = vld [vmem:[#allocation13 + $0x470] sm:$0xff]  ;;  %v4298_v21 = vld [vmem:[#allocation13 + $0x498] sm:$0xff] }
 0x518   :  { %6850 = vmatpush1.bf16.msra.mxu0 %v6849_v59  ;;  %v6873_v59 = vpack.c.bf16 %v4293_v58, %v4291_v29  ;;  %v6905_v29 = vpack.c.bf16 %v4325_v28, %v4323_v27 }
 0x519   :  { %6852 = vmatprep.subr.bf16.mxu0 %v6851_v62  ;;  %v6875_v62 = vpack.c.bf16 %v4298_v21, %v4296_v3  ;;  %v4327_v3 = vld [vmem:[#allocation13 + $0x580] sm:$0xff]  ;;  %v4329_v21 = vld [vmem:[#allocation13 + $0x590] sm:$0xff] }
 0x51b   :  { %v7244_v8 = vpop.eup %7243 }
 0x51c   :  { %v7246_v38 = vpop.eup %7245  ;;  %6854 = vmatpush1.bf16.msra.mxu0 %v6853_v0  ;;  %v4121_v39 = vadd.f32 1.0, %v7244_v8  ;;  %v6877_v0 = vpack.c.bf16 %v4297_v43, %v4295_v45  ;;  %v6881_v8 = vpack.c.bf16 %v4301_v12, %v4299_v51  ;;  %v6909_v45 = vpack.c.bf16 %v4329_v21, %v4327_v3  ;;  %v4347_v21 = vld [vmem:[#allocation13 + $0x620] sm:$0xff] }
 0x51d   :  { %v4122_v33 = vadd.f32 1.0, %v7246_v38  ;;  %6856 = vmatprep.subr.bf16.mxu0 %v6855_v56  ;;  %v6879_v56 = vpack.c.bf16 %v4302_v53, %v4300_v48  ;;  %v6883_v38 = vpack.c.bf16 %v4306_v4, %v4304_v6  ;;  %v4331_v48 = vld [vmem:[#allocation13 + $0x5a0] sm:$0xff]  ;;  %v4333_v53 = vld [vmem:[#allocation13 + $0x5b0] sm:$0xff] }
 0x51e   :  { %v4137_v25 = vmul.f32 %v4121_v39, %v4073_v18  ;;  %v4308_v39 = vld [vmem:[#allocation13 + $0x4e8] sm:$0xff]  ;;  %v6889_v18 = vpack.c.bf16 %v4309_v26, %v4307_v24  ;;  %v6913_v51 = vpack.c.bf16 %v4333_v53, %v4331_v48  ;;  %v4335_v6 = vld [vmem:[#allocation13 + $0x5c0] sm:$0xff]  ;;  %v4337_v4 = vld [vmem:[#allocation13 + $0x5d0] sm:$0xff] }
 0x51f   :  { %v7248_v20 = vpop.eup %7247  ;;  %v4138_v17 = vmul.f32 %v4122_v33, %v4074_v14  ;;  %v4310_v14 = vld [vmem:[#allocation13 + $0x4f8] sm:$0xff] }
 0x520   :  { %v7250_v19 = vpop.eup %7249  ;;  %6858 = vmatpush1.bf16.msra.mxu0 %v6857_v35  ;;  %v4129_v7 = vadd.f32 1.0, %v7248_v20  ;;  %v4303_v35 = vld [vmem:[#allocation13 + $0x4c0] sm:$0xff]  ;;  %v4314_v20 = vld [vmem:[#allocation13 + $0x518] sm:$0xff] }
 0x521   :  { %v4130_v1 = vadd.f32 1.0, %v7250_v19  ;;  %4560 = vmatprep.mubr.f32.mxu0 %v4138_v17  ;;  %6860 = vmatprep.subr.bf16.mxu0 %v6859_v16  ;;  %v6885_v33 = vpack.c.bf16 %v4305_v46, %v4303_v35  ;;  %v6887_v16 = vpack.c.bf16 %v4310_v14, %v4308_v39  ;;  %v6891_v17 = vpack.c.bf16 %v4314_v20, %v4312_v5  ;;  %v4311_v19 = vld [vmem:[#allocation13 + $0x500] sm:$0xff]  ;;  %v4341_v14 = vld [vmem:[#allocation13 + $0x5f0] sm:$0xff]  ;;  %v4354_v48 = vld [vmem:[#allocation13 + $0x658] sm:$0xff] }
 0x522   :  { %v4145_v44 = vmul.f32 %v4129_v7, %v4081_v23  ;;  %v6899_v23 = vpack.c.bf16 %v4322_v36, %v4320_v52  ;;  %v6917_v35 = vpack.c.bf16 %v4337_v4, %v4335_v6  ;;  %v4339_v39 = vld [vmem:[#allocation13 + $0x5e0] sm:$0xff]  ;;  %v3126_v5 = vrot.slane %v8218_v22, %v1030_v41  ;;  %v4353_v4 = vld [vmem:[#allocation13 + $0x650] sm:$0xff] }
 0x523   :  { %4561 = vmatmul.mubr.f32.vlgmr.msra.gmra.mrb[16].mxu0 %v4137_v25  ;;  %v4146_v63 = vmul.f32 %v4130_v1, %v4082_v54  ;;  %v4318_v25 = vld [vmem:[#allocation13 + $0x538] sm:$0xff]  ;;  %v4315_v1 = vld [vmem:[#allocation13 + $0x520] sm:$0xff]  ;;  %v6921_v24 = vpack.c.bf16 %v4341_v14, %v4339_v39  ;;  %v3130_v20 = vrot.slane %v8218_v22, %v1034_v37  ;;  %v4357_v14 = vld [vmem:[#allocation13 + $0x670] sm:$0xff] }
 0x524   :  { %6862 = vmatpush1.bf16.msra.mxu0 %v6861_v40  ;;  %v4313_v40 = vld [vmem:[#allocation13 + $0x510] sm:$0xff]  ;;  %v6897_v60 = vpack.c.bf16 %v4317_v15, %v4315_v1  ;;  %v4343_v37 = vld [vmem:[#allocation13 + $0x600] sm:$0xff] }
 0x525   :  { %4566 = vmatprep.mubr.f32.mxu0 %v4146_v63  ;;  %6864 = vmatprep.subr.bf16.mxu0 %v6863_v32  ;;  %v4316_v32 = vld [vmem:[#allocation13 + $0x528] sm:$0xff]  ;;  %v6893_v7 = vpack.c.bf16 %v4313_v40, %v4311_v19  ;;  %v4319_v63 = vld [vmem:[#allocation13 + $0x540] sm:$0xff] }
 0x526   :  { %v6895_v54 = vpack.c.bf16 %v4318_v25, %v4316_v32  ;;  %v4351_v6 = vld [vmem:[#allocation13 + $0x640] sm:$0xff] }
 0x527   :  { %4567 = vmatmul.mubr.f32.gmra.mrb[18].mxu0 %v4145_v44  ;;  %v4324_v44 = vld [vmem:[#allocation13 + $0x568] sm:$0xff]  ;;  %v4355_v39 = vld [vmem:[#allocation13 + $0x660] sm:$0xff] }
 0x528   :  { %6866 = vmatpush1.bf16.msra.mxu0 %v6865_v11  ;;  %v4321_v11 = vld [vmem:[#allocation13 + $0x550] sm:$0xff] }
 0x529   :  { %6868 = vmatprep.subr.bf16.mxu0 %v6867_v10  ;;  %v4326_v10 = vld [vmem:[#allocation13 + $0x578] sm:$0xff]  ;;  %v6901_v55 = vpack.c.bf16 %v4321_v11, %v4319_v63  ;;  %v4345_v63 = vld [vmem:[#allocation13 + $0x610] sm:$0xff] }
 0x52a   :  { %v6903_v42 = vpack.c.bf16 %v4326_v10, %v4324_v44  ;;  %v4348_v10 = vld [vmem:[#allocation13 + $0x628] sm:$0xff] }
 0x52c   :  { %6870 = vmatpush1.bf16.msra.mxu0 %v6869_v57  ;;  %v4328_v57 = vld [vmem:[#allocation13 + $0x588] sm:$0xff] }
 0x52d   :  { %6872 = vmatprep.subr.bf16.mxu0 %v6871_v9  ;;  %v4330_v9 = vld [vmem:[#allocation13 + $0x598] sm:$0xff] }
 0x52e   :  { %v6907_v58 = vpack.c.bf16 %v4330_v9, %v4328_v57  ;;  %v6925_v57 = vpack.c.bf16 %v4345_v63, %v4343_v37  ;;  %v4371_v63 = vld [vmem:[#allocation13 + $0x6e0] sm:$0xff] }
 0x530   :  { %6874 = vmatpush1.bf16.msra.mxu0 %v6873_v59  ;;  %v4332_v59 = vld [vmem:[#allocation13 + $0x5a8] sm:$0xff] }
 0x531   :  { %6876 = vmatprep.subr.bf16.mxu0 %v6875_v62  ;;  %v4334_v62 = vld [vmem:[#allocation13 + $0x5b8] sm:$0xff] }
 0x532   :  { %v6911_v43 = vpack.c.bf16 %v4334_v62, %v4332_v59  ;;  %v4349_v59 = vld [vmem:[#allocation13 + $0x630] sm:$0xff] }
 0x534   :  { %6878 = vmatpush1.bf16.msra.mxu0 %v6877_v0  ;;  %v4336_v0 = vld [vmem:[#allocation13 + $0x5c8] sm:$0xff] }
 0x535   :  { %6880 = vmatprep.subr.bf16.mxu0 %v6879_v56  ;;  %v4338_v56 = vld [vmem:[#allocation13 + $0x5d8] sm:$0xff] }
 0x536   :  { %v6915_v12 = vpack.c.bf16 %v4338_v56, %v4336_v0  ;;  %v6929_v56 = vpack.c.bf16 %v4349_v59, %v4347_v21  ;;  %v4381_v21 = vld [vmem:[#allocation13 + $0x730] sm:$0xff]  ;;  %v4384_v59 = vld [vmem:[#allocation13 + $0x748] sm:$0xff] }
 0x538   :  { %6882 = vmatpush1.bf16.msra.mxu0 %v6881_v8  ;;  %v4340_v8 = vld [vmem:[#allocation13 + $0x5e8] sm:$0xff] }
 0x539   :  { %6884 = vmatprep.subr.bf16.mxu0 %v6883_v38  ;;  %v4342_v38 = vld [vmem:[#allocation13 + $0x5f8] sm:$0xff] }
 0x53a   :  { %v6919_v46 = vpack.c.bf16 %v4342_v38, %v4340_v8  ;;  %v4356_v8 = vld [vmem:[#allocation13 + $0x668] sm:$0xff]  ;;  %v4358_v38 = vld [vmem:[#allocation13 + $0x678] sm:$0xff] }
 0x53c   :  { %6886 = vmatpush1.bf16.msra.mxu0 %v6885_v33  ;;  %v4344_v33 = vld [vmem:[#allocation13 + $0x608] sm:$0xff] }
 0x53d   :  { %6888 = vmatprep.subr.bf16.mxu0 %v6887_v16  ;;  %v4346_v16 = vld [vmem:[#allocation13 + $0x618] sm:$0xff] }
 0x53e   :  { %v6923_v26 = vpack.c.bf16 %v4346_v16, %v4344_v33  ;;  %v4360_v33 = vld [vmem:[#allocation13 + $0x688] sm:$0xff]  ;;  %v4362_v16 = vld [vmem:[#allocation13 + $0x698] sm:$0xff] }
 0x540   :  { %6890 = vmatpush1.bf16.msra.mxu0 %v6889_v18 }
 0x541   :  { %6892 = vmatprep.subr.bf16.mxu0 %v6891_v17 }
 0x544   :  { %6894 = vmatpush1.bf16.msra.mxu0 %v6893_v7 }
 0x545   :  { %6896 = vmatprep.subr.bf16.mxu0 %v6895_v54 }
 0x548   :  { %6898 = vmatpush1.bf16.msra.mxu0 %v6897_v60 }
 0x549   :  { %6900 = vmatprep.subr.bf16.mxu0 %v6899_v23 }
 0x54c   :  { %6902 = vmatpush1.bf16.msra.mxu0 %v6901_v55  ;;  %v4350_v55 = vld [vmem:[#allocation13 + $0x638] sm:$0xff] }
 0x54d   :  { %6904 = vmatprep.subr.bf16.mxu0 %v6903_v42  ;;  %v6927_v3 = vpack.c.bf16 %v4350_v55, %v4348_v10  ;;  %v4378_v10 = vld [vmem:[#allocation13 + $0x718] sm:$0xff] }
 0x550   :  { %6906 = vmatpush1.bf16.msra.mxu0 %v6905_v29 }
 0x551   :  { %6908 = vmatprep.subr.bf16.mxu0 %v6907_v58 }
 0x554   :  { %6910 = vmatpush1.bf16.msra.mxu0 %v6909_v45 }
 0x555   :  { %6912 = vmatprep.subr.bf16.mxu0 %v6911_v43  ;;  %v4352_v43 = vld [vmem:[#allocation13 + $0x648] sm:$0xff] }
 0x558   :  { %6914 = vmatpush1.bf16.msra.mxu0 %v6913_v51 }
 0x559   :  { %6916 = vmatprep.subr.bf16.mxu0 %v6915_v12  ;;  %v6931_v12 = vpack.c.bf16 %v4354_v48, %v4352_v43  ;;  %v4383_v48 = vld [vmem:[#allocation13 + $0x740] sm:$0xff] }
 0x55c   :  { %6918 = vmatpush1.bf16.msra.mxu0 %v6917_v35  ;;  %v6933_v35 = vpack.c.bf16 %v4353_v4, %v4351_v6  ;;  %v4387_v6 = vld [vmem:[#allocation13 + $0x760] sm:$0xff]  ;;  %v4389_v4 = vld [vmem:[#allocation13 + $0x770] sm:$0xff] }
 0x55d   :  { %6920 = vmatprep.subr.bf16.mxu0 %v6919_v46  ;;  %v6935_v46 = vpack.c.bf16 %v4358_v38, %v4356_v8  ;;  %v4392_v8 = vld [vmem:[#allocation13 + $0x788] sm:$0xff]  ;;  %v4394_v38 = vld [vmem:[#allocation13 + $0x798] sm:$0xff] }
 0x560   :  { %6922 = vmatpush1.bf16.msra.mxu0 %v6921_v24  ;;  %v6937_v24 = vpack.c.bf16 %v4357_v14, %v4355_v39  ;;  %v4391_v39 = vld [vmem:[#allocation13 + $0x780] sm:$0xff]  ;;  %v4393_v14 = vld [vmem:[#allocation13 + $0x790] sm:$0xff] }
 0x561   :  { %6924 = vmatprep.subr.bf16.mxu0 %v6923_v26  ;;  %v6939_v26 = vpack.c.bf16 %v4362_v16, %v4360_v33  ;;  %v4396_v33 = vld [vmem:[#allocation13 + $0x7a8] sm:$0xff]  ;;  %v4398_v16 = vld [vmem:[#allocation13 + $0x7b8] sm:$0xff] }
 0x576   :  { %v3829_v18 = vpop.f32.mrb[12].mxu0 }
 0x577   :  { %v7095_v17 = vadd.f32 %v3829_v18, %v3126_v5  ;;  %v3831_v19 = vpop.f32.mrb[13].mxu0  ;;  %v4364_v18 = vld [vmem:[#allocation13 + $0x6a8] sm:$0xff] }
 0x578   :  { %v7096_v40 = vadd.f32 %v3831_v19, %v3130_v20 }
 0x579   :  { %v4091_v32 = vmul.f32 0.70710677, %v7095_v17  ;;  %v4075_v42 = vmul.f32 0.5, %v7095_v17  ;;  %v4366_v17 = vld [vmem:[#allocation13 + $0x6b8] sm:$0xff] }
 0x57a   :  { %v4092_v25 = vmul.f32 0.70710677, %v7096_v40  ;;  %v3835_v7 = vpop.f32.mrb[14].mxu0  ;;  %v4076_v11 = vmul.f32 0.5, %v7096_v40  ;;  %v6943_v40 = vpack.c.bf16 %v4366_v17, %v4364_v18  ;;  %v4400_v18 = vld [vmem:[#allocation13 + $0x7c8] sm:$0xff]  ;;  %v4402_v17 = vld [vmem:[#allocation13 + $0x7d8] sm:$0xff] }
 0x57b   :  { %7251 = verf.f32 %v4091_v32  ;;  %v7097_v54 = vadd.f32 %v3835_v7, %v3126_v5  ;;  %v3837_v1 = vpop.f32.mrb[15].mxu0  ;;  %v4359_v5 = vld [vmem:[#allocation13 + $0x680] sm:$0xff]  ;;  %v4368_v7 = vld [vmem:[#allocation13 + $0x6c8] sm:$0xff] }
 0x57c   :  { %7253 = verf.f32 %v4092_v25  ;;  %v7098_v15 = vadd.f32 %v3837_v1, %v3130_v20  ;;  %v4361_v20 = vld [vmem:[#allocation13 + $0x690] sm:$0xff]  ;;  %v4363_v32 = vld [vmem:[#allocation13 + $0x6a0] sm:$0xff] }
 0x57d   :  { %v4099_v52 = vmul.f32 0.70710677, %v7097_v54  ;;  %v4083_v53 = vmul.f32 0.5, %v7097_v54  ;;  %v6941_v19 = vpack.c.bf16 %v4361_v20, %v4359_v5  ;;  %v4365_v25 = vld [vmem:[#allocation13 + $0x6b0] sm:$0xff]  ;;  %v4370_v54 = vld [vmem:[#allocation13 + $0x6d8] sm:$0xff]  ;;  %v4395_v5 = vld [vmem:[#allocation13 + $0x7a0] sm:$0xff] }
 0x57e   :  { %v4100_v36 = vmul.f32 0.70710677, %v7098_v15  ;;  %v4084_v62 = vmul.f32 0.5, %v7098_v15  ;;  %v6945_v1 = vpack.c.bf16 %v4365_v25, %v4363_v32  ;;  %v6947_v15 = vpack.c.bf16 %v4370_v54, %v4368_v7  ;;  %v4397_v20 = vld [vmem:[#allocation13 + $0x7b0] sm:$0xff]  ;;  %v4399_v32 = vld [vmem:[#allocation13 + $0x7c0] sm:$0xff]  ;;  %v4404_v7 = vld [vmem:[#allocation13 + $0x7e8] sm:$0xff] }
 0x57f   :  { %7255 = verf.f32 %v4099_v52  ;;  %v4367_v52 = vld [vmem:[#allocation13 + $0x6c0] sm:$0xff]  ;;  %v4401_v25 = vld [vmem:[#allocation13 + $0x7d0] sm:$0xff]  ;;  %v4406_v54 = vld [vmem:[#allocation13 + $0x7f8] sm:$0xff] }
 0x580   :  { %7257 = verf.f32 %v4100_v36  ;;  %v4369_v36 = vld [vmem:[#allocation13 + $0x6d0] sm:$0xff] }
 0x585   :  { %v7252_v41 = vpop.eup %7251 }
 0x586   :  { %v7254_v60 = vpop.eup %7253  ;;  %v4123_v23 = vadd.f32 1.0, %v7252_v41  ;;  %v4372_v41 = vld [vmem:[#allocation13 + $0x6e8] sm:$0xff] }
 0x587   :  { %v4124_v44 = vadd.f32 1.0, %v7254_v60  ;;  %v4374_v60 = vld [vmem:[#allocation13 + $0x6f8] sm:$0xff] }
 0x588   :  { %v4139_v29 = vmul.f32 %v4123_v23, %v4075_v42  ;;  %v6949_v23 = vpack.c.bf16 %v4369_v36, %v4367_v52  ;;  %v6951_v37 = vpack.c.bf16 %v4374_v60, %v4372_v41  ;;  %v4403_v52 = vld [vmem:[#allocation13 + $0x7e0] sm:$0xff]  ;;  %v4405_v36 = vld [vmem:[#allocation13 + $0x7f0] sm:$0xff] }
 0x589   :  { %v7256_v27 = vpop.eup %7255  ;;  %v4140_v28 = vmul.f32 %v4124_v44, %v4076_v11  ;;  %v4373_v11 = vld [vmem:[#allocation13 + $0x6f0] sm:$0xff]  ;;  %v4376_v44 = vld [vmem:[#allocation13 + $0x708] sm:$0xff]  ;;  %v4785_v60 = vld [vmem:[%s8524_s12 + $0x88] sm:$0xff] }
 0x58a   :  { %v7258_v9 = vpop.eup %7257  ;;  %v4131_v58 = vadd.f32 1.0, %v7256_v27  ;;  %v6953_v55 = vpack.c.bf16 %v4373_v11, %v4371_v63  ;;  %v6955_v42 = vpack.c.bf16 %v4378_v10, %v4376_v44  ;;  %v4375_v27 = vld [vmem:[#allocation13 + $0x700] sm:$0xff]  ;;  %v4784_v41 = vld [vmem:[%s8524_s12 + $0x80] sm:$0xff]  ;;  %v3134_v63 = vrot.slane %v8218_v22, %v1038_v2 }
 0x58b   :  { %v4132_v45 = vadd.f32 1.0, %v7258_v9  ;;  %4637 = vmatprep.mubr.f32.mxu0 %v4140_v28  ;;  %v4377_v28 = vld [vmem:[#allocation13 + $0x710] sm:$0xff]  ;;  %v4382_v9 = vld [vmem:[#allocation13 + $0x738] sm:$0xff]  ;;  %v3138_v11 = vrot.slane %v8218_v22, %v1042_v47 }
 0x58c   :  { %4638 = vmatmul.mubr.f32.vlgmr.msra.gmra.mrb[16].mxu0 %v4139_v29  ;;  %v4147_v51 = vmul.f32 %v4131_v58, %v4083_v53  ;;  %v6957_v29 = vpack.c.bf16 %v4377_v28, %v4375_v27  ;;  %v4385_v53 = vld [vmem:[#allocation13 + $0x750] sm:$0xff] }
 0x58d   :  { %v4148_v0 = vmul.f32 %v4132_v45, %v4084_v62  ;;  %6926 = vmatpush1.bf16.msra.mxu0 %v6925_v57  ;;  %v4380_v57 = vld [vmem:[#allocation13 + $0x728] sm:$0xff]  ;;  %v4386_v62 = vld [vmem:[#allocation13 + $0x758] sm:$0xff] }
 0x58e   :  { %6928 = vmatprep.subr.bf16.mxu0 %v6927_v3  ;;  %v6959_v58 = vpack.c.bf16 %v4382_v9, %v4380_v57  ;;  %v4379_v3 = vld [vmem:[#allocation13 + $0x720] sm:$0xff]  ;;  %v6963_v43 = vpack.c.bf16 %v4386_v62, %v4384_v59  ;;  %v4733_v9 = vpop.xlane.xlu1 %4732  ;;  %v4768_v62 = vld [vmem:[%s8524_s12] sm:$0xff] }
 0x58f   :  { %4643 = vmatprep.mubr.f32.mxu0 %v4148_v0  ;;  %v6961_v45 = vpack.c.bf16 %v4381_v21, %v4379_v3  ;;  %v4388_v0 = vld [vmem:[#allocation13 + $0x768] sm:$0xff]  ;;  %v4740_v21 = vmax.f32 %v4733_v9, 1e-12  ;;  %v4797_v9 = vld [vmem:[%s8524_s12 + $0xe8] sm:$0xff] }
 0x590   :  { %4644 = vmatmul.mubr.f32.gmra.mrb[18].mxu0 %v4147_v51  ;;  %v6965_v51 = vpack.c.bf16 %v4385_v53, %v4383_v48  ;;  %v4786_v53 = vld [vmem:[%s8524_s12 + $0x90] sm:$0xff] }
 0x591   :  { %6930 = vmatpush1.bf16.msra.mxu0 %v6929_v56  ;;  %v4390_v56 = vld [vmem:[#allocation13 + $0x778] sm:$0xff] }
 0x592   :  { %6932 = vmatprep.subr.bf16.mxu0 %v6931_v12  ;;  %v6967_v12 = vpack.c.bf16 %v4390_v56, %v4388_v0  ;;  %v4787_v0 = vld [vmem:[%s8524_s12 + $0x98] sm:$0xff] }
 0x595   :  { %6934 = vmatpush1.bf16.msra.mxu0 %v6933_v35  ;;  %v6969_v35 = vpack.c.bf16 %v4389_v4, %v4387_v6 }
 0x596   :  { %6936 = vmatprep.subr.bf16.mxu0 %v6935_v46  ;;  %v6971_v46 = vpack.c.bf16 %v4394_v38, %v4392_v8 }
 0x599   :  { %6938 = vmatpush1.bf16.msra.mxu0 %v6937_v24  ;;  %v6973_v24 = vpack.c.bf16 %v4393_v14, %v4391_v39  ;;  %v4771_v39 = vld [vmem:[%s8524_s12 + $0x18] sm:$0xff] }
 0x59a   :  { %6940 = vmatprep.subr.bf16.mxu0 %v6939_v26  ;;  %v6975_v26 = vpack.c.bf16 %v4398_v16, %v4396_v33  ;;  %v4788_v16 = vld [vmem:[%s8524_s12 + $0xa0] sm:$0xff] }
 0x59d   :  { %6942 = vmatpush1.bf16.msra.mxu0 %v6941_v19  ;;  %v6977_v19 = vpack.c.bf16 %v4397_v20, %v4395_v5 }
 0x59e   :  { %6944 = vmatprep.subr.bf16.mxu0 %v6943_v40  ;;  %v6979_v40 = vpack.c.bf16 %v4402_v17, %v4400_v18 }
 0x5a1   :  { %6946 = vmatpush1.bf16.msra.mxu0 %v6945_v1  ;;  %v6981_v1 = vpack.c.bf16 %v4401_v25, %v4399_v32  ;;  %v4773_v32 = vld [vmem:[%s8524_s12 + $0x28] sm:$0xff] }
 0x5a2   :  { %6948 = vmatprep.subr.bf16.mxu0 %v6947_v15  ;;  %v6983_v15 = vpack.c.bf16 %v4406_v54, %v4404_v7  ;;  %v4790_v7 = vld [vmem:[%s8524_s12 + $0xb0] sm:$0xff]  ;;  %v4791_v54 = vld [vmem:[%s8524_s12 + $0xb8] sm:$0xff] }
 0x5a5   :  { %6950 = vmatpush1.bf16.msra.mxu0 %v6949_v23  ;;  %v6985_v23 = vpack.c.bf16 %v4405_v36, %v4403_v52  ;;  %v4775_v52 = vld [vmem:[%s8524_s12 + $0x38] sm:$0xff]  ;;  %v4792_v36 = vld [vmem:[%s8524_s12 + $0xc0] sm:$0xff] }
 0x5a6   :  { %6952 = vmatprep.subr.bf16.mxu0 %v6951_v37  ;;  %v8236_v37 = vpack.c.bf16 %v4785_v60, %v4784_v41  ;;  %v4793_v41 = vld [vmem:[%s8524_s12 + $0xc8] sm:$0xff] }
 0x5a9   :  { %6954 = vmatpush1.bf16.msra.mxu0 %v6953_v55 }
 0x5aa   :  { %6956 = vmatprep.subr.bf16.mxu0 %v6955_v42 }
 0x5ad   :  { %6958 = vmatpush1.bf16.msra.mxu0 %v6957_v29 }
 0x5ae   :  { %6960 = vmatprep.subr.bf16.mxu0 %v6959_v58 }
 0x5b1   :  { %6962 = vmatpush1.bf16.msra.mxu0 %v6961_v45  ;;  %v4769_v45 = vld [vmem:[%s8524_s12 + $0x8] sm:$0xff] }
 0x5b2   :  { %6964 = vmatprep.subr.bf16.mxu0 %v6963_v43  ;;  %v8257_v6 = vpack.c.bf16 %v4769_v45, %v4768_v62  ;;  %v4783_v62 = vld [vmem:[%s8524_s12 + $0x78] sm:$0xff] }
 0x5b5   :  { %6966 = vmatpush1.bf16.msra.mxu0 %v6965_v51 }
 0x5b6   :  { %6968 = vmatprep.subr.bf16.mxu0 %v6967_v12 }
 0x5b9   :  { %6970 = vmatpush1.bf16.msra.mxu0 %v6969_v35  ;;  %v8259_v35 = vpack.c.bf16 %v4787_v0, %v4786_v53  ;;  %v4817_v53 = vld [vmem:[%s8525_s13 + $0x88] sm:$0xff]  ;;  %v4800_v0 = vld [vmem:[%s8525_s13] sm:$0xff] }
 0x5ba   :  { %6972 = vmatprep.subr.bf16.mxu0 %v6971_v46  ;;  %v4770_v46 = vld [vmem:[%s8524_s12 + $0x10] sm:$0xff] }
 0x5bb   :  { %v8274_v18 = vpack.c.bf16 %v4771_v39, %v4770_v46  ;;  %v4803_v46 = vld [vmem:[%s8525_s13 + $0x18] sm:$0xff]  ;;  %v4820_v39 = vld [vmem:[%s8525_s13 + $0xa0] sm:$0xff] }
 0x5bd   :  { %6974 = vmatpush1.bf16.msra.mxu0 %v6973_v24  ;;  %v4789_v24 = vld [vmem:[%s8524_s12 + $0xa8] sm:$0xff] }
 0x5be   :  { %6976 = vmatprep.subr.bf16.mxu0 %v6975_v26 }
 0x5c1   :  { %6978 = vmatpush1.bf16.msra.mxu0 %v6977_v19  ;;  %v8277_v19 = vpack.c.bf16 %v4789_v24, %v4788_v16  ;;  %v4804_v24 = vld [vmem:[%s8525_s13 + $0x20] sm:$0xff] }
 0x5c2   :  { %6980 = vmatprep.subr.bf16.mxu0 %v6979_v40  ;;  %v4772_v40 = vld [vmem:[%s8524_s12 + $0x20] sm:$0xff] }
 0x5c5   :  { %6982 = vmatpush1.bf16.msra.mxu0 %v6981_v1  ;;  %v8293_v1 = vpack.c.bf16 %v4773_v32, %v4772_v40  ;;  %v4806_v32 = vld [vmem:[%s8525_s13 + $0x30] sm:$0xff] }
 0x5c6   :  { %6984 = vmatprep.subr.bf16.mxu0 %v6983_v15  ;;  %v8296_v15 = vpack.c.bf16 %v4791_v54, %v4790_v7  ;;  %v4824_v7 = vld [vmem:[%s8525_s13 + $0xc0] sm:$0xff]  ;;  %v4825_v54 = vld [vmem:[%s8525_s13 + $0xc8] sm:$0xff] }
 0x5c9   :  { %6986 = vmatpush1.bf16.msra.mxu0 %v6985_v23  ;;  %v8314_v23 = vpack.c.bf16 %v4793_v41, %v4792_v36  ;;  %v4407_v36 = vld [vmem:[#allocation14] sm:$0x3] }
 0x5ca   :  { %7020 = vmatprep.subr.bf16.mxu0 %v8236_v37  ;;  %v4412_v41 = vrot.slane %v4407_v36, %v7928_v34 }
 0x5cc   :  { %v4060_v44 = vpop.f32.mrb[24].mxu1 }
 0x5cd   :  { %v7099_v10 = vadd.f32 %v4060_v44, %v3134_v63  ;;  %v4062_v55 = vpop.f32.mrb[25].mxu1  ;;  %v4794_v44 = vld [vmem:[%s8524_s12 + $0xd0] sm:$0xff] }
 0x5ce   :  { %v7100_v42 = vadd.f32 %v4062_v55, %v3138_v11 }
 0x5cf   :  { %v4093_v27 = vmul.f32 0.70710677, %v7099_v10  ;;  %v4077_v56 = vmul.f32 0.5, %v7099_v10  ;;  %v4795_v10 = vld [vmem:[%s8524_s12 + $0xd8] sm:$0xff] }
 0x5d0   :  { %v4094_v28 = vmul.f32 0.70710677, %v7100_v42  ;;  %v4066_v57 = vpop.f32.mrb[26].mxu1  ;;  %v4078_v43 = vmul.f32 0.5, %v7100_v42  ;;  %v8332_v42 = vpack.c.bf16 %v4795_v10, %v4794_v44 }
 0x5d1   :  { %7259 = verf.f32 %v4093_v27  ;;  %v7101_v29 = vadd.f32 %v4066_v57, %v3134_v63  ;;  %v4068_v58 = vpop.f32.mrb[27].mxu1  ;;  %v4776_v63 = vld [vmem:[%s8524_s12 + $0x40] sm:$0xff]  ;;  %v4778_v27 = vld [vmem:[%s8524_s12 + $0x50] sm:$0xff] }
 0x5d2   :  { %7261 = verf.f32 %v4094_v28  ;;  %v7102_v2 = vadd.f32 %v4068_v58, %v3138_v11  ;;  %v4777_v11 = vld [vmem:[%s8524_s12 + $0x48] sm:$0xff]  ;;  %v4779_v28 = vld [vmem:[%s8524_s12 + $0x58] sm:$0xff]  ;;  %v4796_v57 = vld [vmem:[%s8524_s12 + $0xe0] sm:$0xff] }
 0x5d3   :  { %v4101_v3 = vmul.f32 0.70710677, %v7101_v29  ;;  %v4085_v5 = vmul.f32 0.5, %v7101_v29  ;;  %v8329_v55 = vpack.c.bf16 %v4777_v11, %v4776_v63  ;;  %v8347_v29 = vpack.c.bf16 %v4779_v28, %v4778_v27 }
 0x5d4   :  { %v4102_v30 = vmul.f32 0.70710677, %v7102_v2  ;;  %v4086_v14 = vmul.f32 0.5, %v7102_v2  ;;  %v8350_v58 = vpack.c.bf16 %v4797_v9, %v4796_v57  ;;  %v4780_v2 = vld [vmem:[%s8524_s12 + $0x60] sm:$0xff]  ;;  %v4416_v63 = vrot.slane %v4407_v36, %v7923_v31 }
 0x5d5   :  { %7263 = verf.f32 %v4101_v3  ;;  %v4781_v3 = vld [vmem:[%s8524_s12 + $0x68] sm:$0xff]  ;;  %v4808_v31 = vld [vmem:[%s8525_s13 + $0x40] sm:$0xff] }
 0x5d6   :  { %7265 = verf.f32 %v4102_v30  ;;  %v4799_v30 = vld [vmem:[%s8524_s12 + $0xf8] sm:$0xff] }
 0x5d7   :  { %7267 = vrsqrt.f32 %v4740_v21  ;;  %v4798_v21 = vld [vmem:[%s8524_s12 + $0xf0] sm:$0xff] }
 0x5db   :  { %v7260_v47 = vpop.eup %7259 }
 0x5dc   :  { %v7262_v22 = vpop.eup %7261  ;;  %v4125_v59 = vadd.f32 1.0, %v7260_v47  ;;  %v8365_v47 = vpack.c.bf16 %v4781_v3, %v4780_v2 }
 0x5dd   :  { %v4126_v48 = vadd.f32 1.0, %v7262_v22  ;;  %v8368_v22 = vpack.c.bf16 %v4799_v30, %v4798_v21 }
 0x5de   :  { %v4141_v8 = vmul.f32 %v4125_v59, %v4077_v56  ;;  %v4782_v59 = vld [vmem:[%s8524_s12 + $0x70] sm:$0xff] }
 0x5df   :  { %v7264_v51 = vpop.eup %7263  ;;  %v4142_v12 = vmul.f32 %v4126_v48, %v4078_v43  ;;  %v8377_v45 = vpack.c.bf16 %v4783_v62, %v4782_v59  ;;  %v4816_v48 = vld [vmem:[%s8525_s13 + $0x80] sm:$0xff] }
 0x5e0   :  { %v7266_v4 = vpop.eup %7265  ;;  %v4133_v38 = vadd.f32 1.0, %v7264_v51  ;;  %v6987_v56 = vpack.c.bf16 %v4817_v53, %v4816_v48  ;;  %v4801_v51 = vld [vmem:[%s8525_s13 + $0x8] sm:$0xff] }
 0x5e1   :  { %v4134_v33 = vadd.f32 1.0, %v7266_v4  ;;  %4714 = vmatprep.mubr.f32.mxu0 %v4142_v12  ;;  %v7268_v26 = vpop.eup %7267  ;;  %v4819_v12 = vld [vmem:[%s8525_s13 + $0x98] sm:$0xff]  ;;  %v6989_v4 = vpack.c.bf16 %v4801_v51, %v4800_v0  ;;  %v4809_v53 = vld [vmem:[%s8525_s13 + $0x48] sm:$0xff] }
 0x5e2   :  { %4715 = vmatmul.mubr.f32.vlgmr.msra.gmra.mrb[16].mxu0 %v4141_v8  ;;  %v4149_v17 = vmul.f32 %v4133_v38, %v4085_v5  ;;  %v4745_v25 = vmul.f32 %v7268_v26, %v8184_v61  ;;  %v4774_v61 = vld [vmem:[%s8524_s12 + $0x30] sm:$0xff]  ;;  %v4744_v43 = vmul.f32 %v7268_v26, %v8182_v13  ;;  %6988 = vmatprep.subr.bf16.mxu1 %v6987_v56  ;;  %v4805_v26 = vld [vmem:[%s8525_s13 + $0x28] sm:$0xff]  ;;  %v4827_v51 = vld [vmem:[%s8525_s13 + $0xd8] sm:$0xff] }
 0x5e3   :  { %7022 = vmatpush3.bf16.msra.mxu0 %v8257_v6  ;;  %v4150_v20 = vmul.f32 %v4134_v33, %v4086_v14  ;;  %v8311_v60 = vpack.c.bf16 %v4775_v52, %v4774_v61  ;;  %v4818_v13 = vld [vmem:[%s8525_s13 + $0x90] sm:$0xff]  ;;  %v4821_v14 = vld [vmem:[%s8525_s13 + $0xa8] sm:$0xff]  ;;  %6990 = vmatpush3.bf16.msra.mxu1 %v6989_v4  ;;  %v7003_v52 = vpack.c.bf16 %v4825_v54, %v4824_v7  ;;  %v4811_v4 = vld [vmem:[%s8525_s13 + $0x58] sm:$0xff] }
 0x5e4   :  { %7024 = vmatprep.subr.bf16.mxu0 %v8259_v35  ;;  %v6991_v8 = vpack.c.bf16 %v4819_v12, %v4818_v13  ;;  %v4802_v38 = vld [vmem:[%s8525_s13 + $0x10] sm:$0xff]  ;;  %v6995_v16 = vpack.c.bf16 %v4821_v14, %v4820_v39  ;;  %v7005_v0 = vpack.c.bf16 %v4809_v53, %v4808_v31  ;;  %v4812_v14 = vld [vmem:[%s8525_s13 + $0x60] sm:$0xff] }
 0x5e5   :  { %4720 = vmatprep.mubr.f32.mxu0 %v4150_v20  ;;  %v6993_v33 = vpack.c.bf16 %v4803_v46, %v4802_v38  ;;  %v4822_v5 = vld [vmem:[%s8525_s13 + $0xb0] sm:$0xff]  ;;  %v4823_v20 = vld [vmem:[%s8525_s13 + $0xb8] sm:$0xff]  ;;  %v4828_v38 = vld [vmem:[%s8525_s13 + $0xe0] sm:$0xff] }
 0x5e6   :  { %4721 = vmatmul.mubr.f32.gmra.mrb[18].mxu0 %v4149_v17  ;;  %6992 = vmatprep.subr.bf16.mxu1 %v6991_v8  ;;  %v6997_v17 = vpack.c.bf16 %v4805_v26, %v4804_v24  ;;  %v6999_v40 = vpack.c.bf16 %v4823_v20, %v4822_v5  ;;  %v4826_v56 = vld [vmem:[%s8525_s13 + $0xd0] sm:$0xff]  ;;  %v4829_v46 = vld [vmem:[%s8525_s13 + $0xe8] sm:$0xff]  ;;  %v4831_v26 = vld [vmem:[%s8525_s13 + $0xf8] sm:$0xff] }
 0x5e7   :  { %7026 = vmatpush3.bf16.msra.mxu0 %v8274_v18  ;;  %4971 = vmatprep.mubr.f32.mxu0 %v4745_v25  ;;  %v4807_v25 = vld [vmem:[%s8525_s13 + $0x38] sm:$0xff]  ;;  %v4810_v13 = vld [vmem:[%s8525_s13 + $0x50] sm:$0xff]  ;;  %v7007_v12 = vpack.c.bf16 %v4827_v51, %v4826_v56  ;;  %v7011_v39 = vpack.c.bf16 %v4829_v46, %v4828_v38 }
 0x5e8   :  { %7028 = vmatprep.subr.bf16.mxu0 %v8277_v19  ;;  %6994 = vmatpush3.bf16.msra.mxu1 %v6993_v33  ;;  %v7001_v61 = vpack.c.bf16 %v4807_v25, %v4806_v32  ;;  %v7009_v8 = vpack.c.bf16 %v4811_v4, %v4810_v13  ;;  %v4813_v33 = vld [vmem:[%s8525_s13 + $0x68] sm:$0xff]  ;;  %v4814_v5 = vld [vmem:[%s8525_s13 + $0x70] sm:$0xff]  ;;  %v4815_v20 = vld [vmem:[%s8525_s13 + $0x78] sm:$0xff] }
 0x5e9   :  { %6996 = vmatprep.subr.bf16.mxu1 %v6995_v16  ;;  %v4830_v16 = vld [vmem:[%s8525_s13 + $0xf0] sm:$0xff]  ;;  %v7013_v24 = vpack.c.bf16 %v4813_v33, %v4812_v14  ;;  %v7017_v32 = vpack.c.bf16 %v4815_v20, %v4814_v5  ;;  %s7646_s13 = smov [#allocation23]  }
 0x5ea   :  { %s5000_s12 = sshll.u32 %s7646_s13, 4  ;;  %s5001_s12 = int_to_ptr.vmem [resolvable:$true] %s5000_s12 }
 0x5eb   :  { %7030 = vmatpush3.bf16.msra.mxu0 %v8293_v1  ;;  %s7587_s7 = scalar_lea.vmem %s5001_s12, 256  ;;  %p7592_p7 = scmp.lt.s32.totalorder %s5001_s12, %s5001_s12 }
 0x5ec   :  { %7032 = vmatprep.subr.bf16.mxu0 %v8296_v15  ;;  %6998 = vmatpush3.bf16.msra.mxu1 %v6997_v17  ;;  %v7015_v17 = vpack.c.bf16 %v4831_v26, %v4830_v16  ;;  %p7588_p6 = scmp.ne.s32.totalorder %s5001_s12, %s7587_s7  ;;  %p7593_p8 = scmp.lt.s32.totalorder %s7587_s7, %s7587_s7 }
 0x5ed   :  { %7000 = vmatprep.subr.bf16.mxu1 %v6999_v40 }
 0x5ee   :  { %p7594_p9 = por %p7593_p8, %p7592_p7 }
 0x5ef   :  { %7034 = vmatpush3.bf16.msra.mxu0 %v8311_v60 }
 0x5f0   :  { %7036 = vmatprep.subr.bf16.mxu0 %v8314_v23  ;;  %7002 = vmatpush3.bf16.msra.mxu1 %v7001_v61  ;;  %p7595_p10 = pnand %p7594_p9, %p7588_p6 }
 0x5f1   :  { %7004 = vmatprep.subr.bf16.mxu1 %v7003_v52  ;;  %v4739_v52 = vpop.xlane.xlu1 %4738 }
 0x5f2   :  { %v4741_v36 = vmax.f32 %v4739_v52, 1e-12 }
 0x5f3   :  { %7038 = vmatpush3.bf16.msra.mxu0 %v8329_v55 }
 0x5f4   :  { %7040 = vmatprep.subr.bf16.mxu0 %v8332_v42  ;;  %7006 = vmatpush3.bf16.msra.mxu1 %v7005_v0 }
 0x5f5   :  { %7008 = vmatprep.subr.bf16.mxu1 %v7007_v12 }
 0x5f7   :  { %7042 = vmatpush3.bf16.msra.mxu0 %v8347_v29 }
 0x5f8   :  { %7044 = vmatprep.subr.bf16.mxu0 %v8350_v58  ;;  %7010 = vmatpush3.bf16.msra.mxu1 %v7009_v8 }
 0x5f9   :  { %7012 = vmatprep.subr.bf16.mxu1 %v7011_v39 }
 0x5fb   :  { %7046 = vmatpush3.bf16.msra.mxu0 %v8365_v47 }
 0x5fc   :  { %7048 = vmatprep.subr.bf16.mxu0 %v8368_v22  ;;  %7014 = vmatpush3.bf16.msra.mxu1 %v7013_v24 }
 0x5fd   :  { %7016 = vmatprep.subr.bf16.mxu1 %v7015_v17 }
 0x5ff   :  { %7050 = vmatpush3.bf16.msra.mxu0 %v8377_v45 }
 0x600   :  { %7018 = vmatpush3.bf16.msra.mxu1 %v7017_v32 }
 0x601   :  { %7051 = vmatprep.subr.bf16.mxu1 %v8236_v37 }
 0x602   :  { %4972 = vmatmul.mubr.f32.vlgmr.msra.gmra.mrb[20].mxu0 %v4744_v43 }
 0x6b5   :  { %v4716_v11 = vpop.f32.mrb[16].mxu0 }
 0x6b6   :  { %v7103_v44 = vadd.f32 %v4716_v11, %v4412_v41  ;;  %v4718_v10 = vpop.f32.mrb[17].mxu0 }
 0x6b7   :  { %v7104_v27 = vadd.f32 %v4718_v10, %v4416_v63 }
 0x6b8   :  { %v4748_v28 = vmul.f32 %v7103_v44, %v7103_v44 }
 0x6b9   :  { %v4722_v57 = vpop.f32.mrb[18].mxu0  ;;  %v4749_v9 = vmul.f32 %v7104_v27, %v7104_v27 }
 0x6ba   :  { %v7105_v2 = vadd.f32 %v4722_v57, %v4412_v41  ;;  %v4724_v3 = vpop.f32.mrb[19].mxu0 }
 0x6bb   :  { %v7106_v21 = vadd.f32 %v4724_v3, %v4416_v63  ;;  %v4752_v30 = vadd.f32 %v4749_v9, %v4748_v28 }
 0x6bc   :  { %v4750_v59 = vmul.f32 %v7105_v2, %v7105_v2 }
 0x6bd   :  { %v4751_v62 = vmul.f32 %v7106_v21, %v7106_v21  ;;  %4753 = vadd.xlane.f32.xlu0 %v4752_v30 }
 0x6be   :  { %v4755_v43 = vsel %vm4734_vm1, %v4750_v59, 0.0 }
 0x6bf   :  { %v4756_v34 = vsel %vm4734_vm1, %v4751_v62, 0.0 }
 0x6c0   :  { %v4757_v48 = vadd.f32 %v4756_v34, %v4755_v43 }
 0x6c2   :  { %4758 = vadd.xlane.f32.xlu0 %v4757_v48 }
 0x6d5   :  { %v5093_v40 = vpop.f32.mrb[20].mxu0 }
 0x6d6   :  { %v5094_v25 = vpop.f32.mrb[21].mxu0 }
 0x6d7   :  { %v5095_v7 = vadd.f32 %v5094_v25, %v5093_v40 }
 0x74a   :  { %v4754_v54 = vpop.xlane.xlu0 %4753 }
 0x74b   :  { %v4760_v61 = vmax.f32 %v4754_v54, 1e-12 }
 0x74d   :  { %7269 = vrsqrt.f32 %v4760_v61 }
 0x74f   :  { %v4759_v41 = vpop.xlane.xlu0 %4758 }
 0x750   :  { %v4761_v63 = vmax.f32 %v4759_v41, 1e-12 }
 0x752   :  { %7271 = vrsqrt.f32 %v4761_v63 }
 0x753   :  { %7273 = vrsqrt.f32 %v4741_v36 }
 0x757   :  { %v7270_v11 = vpop.eup %7269 }
 0x758   :  { %v4765_v10 = vmul.f32 %v7270_v11, %v7104_v27  ;;  %v4764_v28 = vmul.f32 %v7270_v11, %v7103_v44 }
 0x75a   :  { %4896 = vmatprep.mubr.f32.mxu1 %v4765_v10 }
 0x75b   :  { %4897 = vmatmul.mubr.f32.vlgmr.msra.gmra.mrb[28].mxu1 %v4764_v28 }
 0x75c   :  { %v7272_v57 = vpop.eup %7271  ;;  %7059 = vmatpush3.bf16.msra.mxu1 %v8257_v6 }
 0x75d   :  { %v7274_v9 = vpop.eup %7273  ;;  %7052 = vmatprep.subr.bf16.mxu1 %v8259_v35  ;;  %v4767_v37 = vmul.f32 %v7272_v57, %v7106_v21  ;;  %v4766_v3 = vmul.f32 %v7272_v57, %v7105_v2 }
 0x75e   :  { %v4747_v30 = vmul.f32 %v7274_v9, %v8192_v50  ;;  %v4746_v50 = vmul.f32 %v7274_v9, %v8190_v49 }
 0x75f   :  { %4901 = vmatprep.mubr.f32.mxu1 %v4767_v37 }
 0x760   :  { %7060 = vmatpush3.bf16.msra.mxu1 %v8274_v18 }
 0x761   :  { %4902 = vmatmul.mubr.f32.gmra.mrb[30].mxu1 %v4766_v3  ;;  %7053 = vmatprep.subr.bf16.mxu1 %v8277_v19  ;;  %v5022_v19 = vld [vmem:[#allocation22] ss:$0 sm:$0xff] }
 0x762   :  { %4976 = vmatprep.mubr.f32.mxu1 %v4747_v30 }
 0x764   :  { %7061 = vmatpush3.bf16.msra.mxu1 %v8293_v1 }
 0x765   :  { %7054 = vmatprep.subr.bf16.mxu1 %v8296_v15 }
 0x768   :  { %7062 = vmatpush3.bf16.msra.mxu1 %v8311_v60 }
 0x769   :  { %7055 = vmatprep.subr.bf16.mxu1 %v8314_v23 }
 0x76c   :  { %7063 = vmatpush3.bf16.msra.mxu1 %v8329_v55 }
 0x76d   :  { %7056 = vmatprep.subr.bf16.mxu1 %v8332_v42 }
 0x770   :  { %7064 = vmatpush3.bf16.msra.mxu1 %v8347_v29 }
 0x771   :  { %7057 = vmatprep.subr.bf16.mxu1 %v8350_v58 }
 0x774   :  { %7065 = vmatpush3.bf16.msra.mxu1 %v8365_v47 }
 0x775   :  { %7058 = vmatprep.subr.bf16.mxu1 %v8368_v22 }
 0x778   :  { %7066 = vmatpush3.bf16.msra.mxu1 %v8377_v45 }
 0x77b   :  { %4977 = vmatmul.mubr.f32.vlgmr.msra.gmra.mrb[32].mxu1 %v4746_v50 }
 0x82e   :  { %v5055_v6 = vpop.f32.mrb[28].mxu1 }
 0x82f   :  { %v5056_v35 = vpop.f32.mrb[29].mxu1 }
 0x830   :  { %v5057_v18 = vadd.f32 %v5056_v35, %v5055_v6 }
 0x832   :  { %v4974_v1 = vadd.f32 %v5095_v7, %v5057_v18 }
 0x834   :  { %v4989_v15 = vadd.f32 %v5022_v19, %v4974_v1  ;;  %v5058_v60 = vpop.f32.mrb[30].mxu1 }
 0x835   :  { %v5059_v23 = vpop.f32.mrb[31].mxu1 }
 0x836   :  { %v5060_v55 = vadd.f32 %v5059_v23, %v5058_v60  ;;  %4992 = vst.msk [vmem:[#allocation23] sm:$0xff] %vm4991_vm2, %v4989_v15 }
 0x84e   :  { %v5096_v42 = vpop.f32.mrb[32].mxu1 }
 0x84f   :  { %v5097_v29 = vpop.f32.mrb[33].mxu1 }
 0x850   :  { %v5098_v58 = vadd.f32 %v5097_v29, %v5096_v42 }
 0x852   :  { %v4979_v47 = vadd.f32 %v5098_v58, %v5060_v55 }
 0x854   :  { %v4990_v49 = vadd.f32 %v5022_v19, %v4979_v47 }
 0x856   :  { %4994 = vst.msk [vmem:[#allocation23 + $0x8] sm:$0xf] %vm4993_vm3, %v4990_v49 }
 0x857   :  { %7598 = shalt.err (!%p7595_p10)
}
 0x858   :  { %s8530_s1 = sld [smem:[#allocation32_spill]] }
 0x85e   :  { %s7599_s19 = scalar_lea.hbm %s8530_s1, 256 }
 0x85f   :  { %p7600_p11 = scmp.ne.s32.totalorder %s8530_s1, %s7599_s19  ;;  %p7603_p12 = scmp.lt.u32.totalorder %s7599_s19, %s8530_s1 }
 0x861   :  { %p7605_p13 = pnand %p7603_p12, %p7600_p11 }
 0x863   :  { %7608 = shalt.err (!%p7605_p13)
}
 0x864   :  { %s7647_s29 = smov 128   ;;  %s7648_s16 = smov 8  }
 0x865   :  { %5006 = dma.vmem_to_hbm [thread:$0]  %s5001_s12, 256, %s8530_s1, [#allocation4], %s7647_s29, %s7647_s29, %s7648_s16  }
 0x866   :  { %7623 = dma.done.wait [#allocation4], 256  }
 0x867   :  { %7624 = vsyncadd [#allocation4], 4294967040 }
 0x868   :  { %5010 = vsyncpa [#allocation3], 1 }
 0x869   :  { %5011 = vsyncpa [#allocation6], 1 }
 0x86a   :  { %5012 = vsyncpa [#allocation9], 1 }
 0x86b   :  { %5013 = vsyncpa [#allocation12], 1 }
 0x86c   :  { %5014 = vsyncpa [#allocation15], 1 }
 0x86d   :  { %5015 = vsyncpa [#allocation18], 1 }
 0x86e   :  { %5016 = vsyncpa [#allocation21], 1 }
 0x86f   :  { %5017 = vsyncpa [#allocation4], 1 }

</bundles_post_ra>
